<compile_context>
chip_gen: v7x
topology: tpu7x:2x2x1
jax: 0.10.0
libtpu: 0.0.40
codegen_flags: <defaults>
</compile_context>

<pallas_src>
import functools
import math

import jax
import jax.numpy as jnp
import numpy as np
from jax import lax
from jax.experimental import pallas as pl
from jax.experimental.pallas import tpu as pltpu


# ----------------------------------------------------------------------------
# Kernel helpers
# ----------------------------------------------------------------------------
def _zero_halo(buf):
    """Zero only the 1-pixel halo ring of an (Hp, Wp, C) VMEM buffer."""
    Hp, Wp, C = buf.shape
    buf[0:1, :, :] = jnp.zeros((1, Wp, C), buf.dtype)
    buf[Hp - 1:Hp, :, :] = jnp.zeros((1, Wp, C), buf.dtype)
    buf[:, 0:1, :] = jnp.zeros((Hp, 1, C), buf.dtype)
    buf[:, Wp - 1:Wp, :] = jnp.zeros((Hp, 1, C), buf.dtype)


def fused_head_kernel(x_ref, *rest, H, W, relu_flags):
    """One batch element of the entire FCOS head for one FPN level.

    x_ref : (1, H, W, Cin)  unpadded NHWC input tile.
    rest  : w_0, b_0, ..., w_{L-1}, b_{L-1}, out_ref, buf_in, buf_0, .., buf_{L-2}
        w_l     : (9*cin_l, cout_l)  im2col-reshaped fused weights (VMEM)
        b_l     : (1, cout_l) for stem layers, (cout_L, 1) for the pred layer
        out_ref : (1, cout_L, H*W)   lane-dense fused prediction output
        buf_in  : (H+2, W+2, Cin)    VMEM halo buffer holding the padded input
        buf_l   : (H+2, W+2, cout_l) VMEM halo buffers for intermediates
    """
    n_layers = len(relu_flags)
    wb = rest[:2 * n_layers]
    out_ref = rest[2 * n_layers]
    bufs = rest[2 * n_layers + 1:]
    buf_in, inter = bufs[0], bufs[1:]

    # Halo ring must be zero (it is never written below); interiors are fully
    # overwritten every step, so no full-buffer zeroing is needed.
    for buf in bufs:
        _zero_halo(buf)

    # In-kernel "padding": copy the unpadded input into the buffer interior.
    buf_in[1:H + 1, 1:W + 1, :] = x_ref[0].astype(buf_in.dtype)

    src = buf_in
    for li in range(n_layers):
        w_ref, b_ref = wb[2 * li], wb[2 * li + 1]

        # im2col: 9 shifted views concatenated along channels -> one fat
        # (H*W, 9*cin) slab; a single MXU matmul per layer.
        parts = [src[dy:dy + H, dx:dx + W, :]
                 for dy in range(3) for dx in range(3)]
        slab = jnp.concatenate(parts, axis=-1).reshape(H * W,
                                                       9 * src.shape[-1])

        if li < n_layers - 1:
            acc = jnp.dot(slab, w_ref[...],
                          preferred_element_type=jnp.float32)       # (HW, cout)
            acc = acc + b_ref[...]                                   # (1, cout)
            if relu_flags[li]:
                acc = jnp.maximum(acc, 0.0)
            dst = inter[li]
            cout = dst.shape[-1]
            # Full-lane channel write; only the inherent +-1 sublane shift of
            # the halo interior remains.
            dst[1:H + 1, 1:W + 1, :] = acc.reshape(H, W, cout).astype(dst.dtype)
            src = dst
        else:
            # Fused prediction layer, emitted lane-dense as (cout, H*W):
            # contract w's dim 0 with slab's dim 1 -> no explicit transpose.
            accT = lax.dot_general(w_ref[...], slab,
                                   (((0,), (1,)), ((), ())),
                                   preferred_element_type=jnp.float32)
            accT = accT + b_ref[...]                                 # (cout, 1)
            out_ref[0] = accT.astype(out_ref.dtype)


# ----------------------------------------------------------------------------
# Parameter construction (mirrors nn.Module __init__). Weights are HWIO.
# ----------------------------------------------------------------------------
def make_conv_params(key, cin, cout, bias_value=0.0):
    w = 0.01 * jax.random.normal(key, (3, 3, cin, cout), jnp.float32)
    b = jnp.full((cout,), bias_value, jnp.float32)
    return w, b


def init_fcos_head_params(key, num_classes, in_channels, stem_channels):
    keys = jax.random.split(key, 2 * len(stem_channels) + 3)
    ki = iter(keys)
    stem_cls, stem_box = [], []
    num_layers = len(stem_channels)
    # ReLU after every stem conv EXCEPT the final one: this matches the
    # reference nn.Module exactly (ReLU is only interleaved inside the
    # `for i in range(num_layers - 1)` loop; final_conv_* is appended bare).
    for i in range(num_layers - 1):
        cin = in_channels if i == 0 else stem_channels[i - 1]
        stem_cls.append(make_conv_params(next(ki), cin, stem_channels[i]) + (True,))
        stem_box.append(make_conv_params(next(ki), cin, stem_channels[i]) + (True,))
    stem_cls.append(make_conv_params(next(ki), stem_channels[-2], stem_channels[-1]) + (False,))
    stem_box.append(make_conv_params(next(ki), stem_channels[-2], stem_channels[-1]) + (False,))
    pred_cls = make_conv_params(next(ki), stem_channels[-1], num_classes,
                                bias_value=-math.log(99.0))
    pred_box = make_conv_params(next(ki), stem_channels[-1], 4)
    pred_ctr = make_conv_params(next(ki), stem_channels[-1], 1)
    return dict(stem_cls=stem_cls, stem_box=stem_box,
                pred_cls=pred_cls, pred_box=pred_box, pred_ctr=pred_ctr)


# ----------------------------------------------------------------------------
# Fuse the two stems and the three prediction heads into one conv chain.
# ----------------------------------------------------------------------------
def fuse_head_params(params):
    """Returns ([(w (3,3,K,C), b (C,), relu)], num_classes)."""
    stem_cls, stem_box = params["stem_cls"], params["stem_box"]
    fused = []
    for i, ((w_c, b_c, relu), (w_b, b_b, _)) in enumerate(zip(stem_cls, stem_box)):
        cin, cout = w_c.shape[2], w_c.shape[3]
        if i == 0:
            # Both branches read the same input -> plain Cout concatenation.
            w = jnp.concatenate([w_c, w_b], axis=-1)          # (3,3,cin,2*cout)
        else:
            # Branches read disjoint halves of the fused activation ->
            # block-diagonal fused weight.
            # TODO(synk): for production cin >= ~128 split back into two dense
            # matmuls that share the im2col slab (zero blocks double MXU work).
            w = jnp.zeros((3, 3, 2 * cin, 2 * cout), jnp.float32)
            w = w.at[:, :, :cin, :cout].set(w_c)
            w = w.at[:, :, cin:, cout:].set(w_b)
        b = jnp.concatenate([b_c, b_b])
        fused.append((w, b, bool(relu)))

    w_pc, b_pc = params["pred_cls"]
    w_pb, b_pb = params["pred_box"]
    w_pt, b_pt = params["pred_ctr"]
    clast, nc = w_pc.shape[2], w_pc.shape[3]
    wf = jnp.zeros((3, 3, 2 * clast, nc + 5), jnp.float32)
    wf = wf.at[:, :, :clast, :nc].set(w_pc)            # cls stem -> cls logits
    wf = wf.at[:, :, clast:, nc:nc + 4].set(w_pb)      # box stem -> box deltas
    wf = wf.at[:, :, clast:, nc + 4:].set(w_pt)        # box stem -> centerness
    bf = jnp.concatenate([b_pc, b_pb, b_pt])
    fused.append((wf, bf, False))
    return fused, int(nc)


def prepare_kernel_params(fused, compute_dtype):
    """im2col-reshape fused weights to (9*K, C); layer-role bias layouts."""
    layers = []
    for li, (w, b, relu) in enumerate(fused):
        w_r = w.reshape(-1, w.shape[-1]).astype(compute_dtype)     # (9*K, C)
        if li < len(fused) - 1:
            b_r = b.reshape(1, -1).astype(jnp.float32)   # (1, C): row broadcast
        else:
            b_r = b.reshape(-1, 1).astype(jnp.float32)   # (C, 1): lane broadcast
        layers.append((w_r, b_r, relu))
    return layers


# ----------------------------------------------------------------------------
# Forward pass (matches FCOSPredictionNetwork.forward semantics).
# ----------------------------------------------------------------------------
def fcos_forward(params, feats_per_fpn_level, compute_dtype=jnp.float32):
    """feats_per_fpn_level: dict level -> NCHW tensor (PyTorch convention).
    compute_dtype: pass jnp.bfloat16 on v6e/v7x (f32 accumulation is kept)."""
    fused, num_classes = fuse_head_params(params)
    layers = prepare_kernel_params(fused, compute_dtype)
    relu_flags = tuple(r for (_, _, r) in layers)
    wb_flat = []
    for (w_r, b_r, _) in layers:
        wb_flat += [w_r, b_r]
    cout_final = int(layers[-1][0].shape[-1])
    inter_widths = [int(layers[li][0].shape[-1]) for li in range(len(layers) - 1)]

    class_logits, boxreg_deltas, centerness_logits = {}, {}, {}
    for level, feat_nchw in feats_per_fpn_level.items():
        B, Cin, H, W = feat_nchw.shape
        Hp, Wp = H + 2, W + 2
        # NCHW -> NHWC (channels on lanes).  Padding is done in-kernel.
        x = jnp.transpose(feat_nchw, (0, 2, 3, 1)).astype(compute_dtype)

        kernel = functools.partial(fused_head_kernel, H=H, W=W,
                                   relu_flags=relu_flags)

        in_specs = [pl.BlockSpec((1, H, W, Cin), lambda b: (b, 0, 0, 0))]
        for (w_r, b_r, _) in layers:
            in_specs.append(pl.BlockSpec(w_r.shape, lambda b: (0, 0)))
            in_specs.append(pl.BlockSpec(b_r.shape, lambda b: (0, 0)))

        scratch_shapes = (
            [pltpu.VMEM((Hp, Wp, Cin), compute_dtype)]
            + [pltpu.VMEM((Hp, Wp, c), compute_dtype) for c in inter_widths])

        out = pl.pallas_call(
            kernel,
            out_shape=jax.ShapeDtypeStruct((B, cout_final, H * W),
                                           feat_nchw.dtype),
            grid=(B,),
            in_specs=in_specs,
            out_specs=pl.BlockSpec((1, cout_final, H * W), lambda b: (b, 0, 0)),
            scratch_shapes=scratch_shapes,
            compiler_params=pltpu.CompilerParams(
                dimension_semantics=("parallel",)),
        )(x, *wb_flat)

        # Split the fused channel axis and put channels last (module contract);
        # tiny XLA slices/transposes on (B, 9, HW).
        class_logits[level] = jnp.transpose(out[:, :num_classes, :], (0, 2, 1))
        boxreg_deltas[level] = jnp.transpose(
            out[:, num_classes:num_classes + 4, :], (0, 2, 1))
        centerness_logits[level] = jnp.transpose(
            out[:, num_classes + 4:, :], (0, 2, 1))
    return [class_logits, boxreg_deltas, centerness_logits]


# ----------------------------------------------------------------------------
# Plain-JAX reference (unfused params) for correctness check.
# ----------------------------------------------------------------------------
def conv3x3_ref(x_nhwc, w, b, *, relu):
    y = lax.conv_general_dilated(
        x_nhwc, w, window_strides=(1, 1), padding="SAME",
        dimension_numbers=("NHWC", "HWIO", "NHWC"))
    y = y + b[None, None, None, :]
    return jnp.maximum(y, 0.0) if relu else y


def fcos_forward_ref(params, feats_per_fpn_level):
    def run_stem_ref(x, stem_params):
        for (w, b, relu) in stem_params:
            x = conv3x3_ref(x, w, b, relu=relu)
        return x

    class_logits, boxreg_deltas, centerness_logits = {}, {}, {}
    for level, feat_nchw in feats_per_fpn_level.items():
        B = feat_nchw.shape[0]
        x = jnp.transpose(feat_nchw, (0, 2, 3, 1))
        H, W = x.shape[1], x.shape[2]
        cls_stem = run_stem_ref(x, params["stem_cls"])
        cls = conv3x3_ref(cls_stem, *params["pred_cls"], relu=False)
        class_logits[level] = cls.reshape(B, H * W, -1)
        box_stem = run_stem_ref(x, params["stem_box"])
        box = conv3x3_ref(box_stem, *params["pred_box"], relu=False)
        boxreg_deltas[level] = box.reshape(B, H * W, 4)
        ctr = conv3x3_ref(box_stem, *params["pred_ctr"], relu=False)
        centerness_logits[level] = ctr.reshape(B, H * W, 1)
    return [class_logits, boxreg_deltas, centerness_logits]


if __name__ == "__main__":
    num_classes = 4
    in_channels = 4
    stem_channels = [8, 8]
    batch = 2

    key = jax.random.PRNGKey(0)
    pkey, xkey = jax.random.split(key)
    params = init_fcos_head_params(pkey, num_classes, in_channels, stem_channels)

    # Small FPN-like inputs (NCHW, as the PyTorch module expects).
    k3, k4, k5 = jax.random.split(xkey, 3)
    feats = {
        "p3": jax.random.normal(k3, (batch, in_channels, 16, 16), jnp.float32),
        "p4": jax.random.normal(k4, (batch, in_channels, 8, 8), jnp.float32),
        "p5": jax.random.normal(k5, (batch, in_channels, 4, 4), jnp.float32),
    }

    outs = jax.block_until_ready(fcos_forward(params, feats))

    # Verify against the plain-JAX (unfused) reference -> also validates the
    # branch/head weight fusion, im2col reshape and lane-dense output path.
    refs = jax.block_until_ready(fcos_forward_ref(params, feats))
    for out_d, ref_d in zip(outs, refs):
        for level in feats:
            np.testing.assert_allclose(np.asarray(out_d[level]),
                                       np.asarray(ref_d[level]),
                                       rtol=1e-4, atol=1e-5)

    # Shape sanity (matches the PyTorch forward contract).
    assert outs[0]["p3"].shape == (batch, 16 * 16, num_classes)
    assert outs[1]["p4"].shape == (batch, 8 * 8, 4)
    assert outs[2]["p5"].shape == (batch, 4 * 4, 1)

    print("KERNEL_OK")
</pallas_src>

<mosaic_0001>
module attributes {stable_mosaic.version = 11 : i64} {
  func.func @fused_head_kernel(%arg0: i32, %arg1: memref<1x16x16x4xf32, #tpu.memory_space<vmem>>, %arg2: memref<36x16xf32, #tpu.memory_space<vmem>>, %arg3: memref<1x16xf32, #tpu.memory_space<vmem>>, %arg4: memref<144x16xf32, #tpu.memory_space<vmem>>, %arg5: memref<1x16xf32, #tpu.memory_space<vmem>>, %arg6: memref<144x9xf32, #tpu.memory_space<vmem>>, %arg7: memref<9x1xf32, #tpu.memory_space<vmem>>, %arg8: memref<1x9x256xf32, #tpu.memory_space<vmem>>, %arg9: memref<18x18x4xf32, #tpu.memory_space<vmem>>, %arg10: memref<18x18x16xf32, #tpu.memory_space<vmem>>, %arg11: memref<18x18x16xf32, #tpu.memory_space<vmem>>) attributes {dimension_semantics = [#tpu.dimension_semantics<parallel>], iteration_bounds = array<i64: 2>, scalar_prefetch = 0 : i64, scratch_operands = 3 : i64, tpu.core_type = #tpu.core_type<tc>, window_params = [{transform_indices = @transform_0, window_bounds = array<i64: 1, 16, 16, 4>}, {pipeline_mode = #tpu.pipeline_mode<synchronous>, transform_indices = @transform_1, window_bounds = array<i64: 36, 16>}, {pipeline_mode = #tpu.pipeline_mode<synchronous>, transform_indices = @transform_2, window_bounds = array<i64: 1, 16>}, {pipeline_mode = #tpu.pipeline_mode<synchronous>, transform_indices = @transform_3, window_bounds = array<i64: 144, 16>}, {pipeline_mode = #tpu.pipeline_mode<synchronous>, transform_indices = @transform_4, window_bounds = array<i64: 1, 16>}, {pipeline_mode = #tpu.pipeline_mode<synchronous>, transform_indices = @transform_5, window_bounds = array<i64: 144, 9>}, {pipeline_mode = #tpu.pipeline_mode<synchronous>, transform_indices = @transform_6, window_bounds = array<i64: 9, 1>}, {transform_indices = @transform_7, window_bounds = array<i64: 1, 9, 256>}]} {
    %cst = arith.constant 0.000000e+00 : f32
    %0 = vector.broadcast %cst : f32 to vector<1x18x4xf32>
    %c0 = arith.constant 0 : index
    %c0_0 = arith.constant 0 : index
    %c0_1 = arith.constant 0 : index
    %1 = vector.load %arg9[%c0, %c0_0, %c0_1] : memref<18x18x4xf32, #tpu.memory_space<vmem>>, vector<1x18x4xf32>
    tpu.vector_store %arg9[%c0, %c0_0, %c0_1], %0 {strides = array<i32>} : memref<18x18x4xf32, #tpu.memory_space<vmem>>, vector<1x18x4xf32>,
    %cst_2 = arith.constant 0.000000e+00 : f32
    %2 = vector.broadcast %cst_2 : f32 to vector<1x18x4xf32>
    %c17 = arith.constant 17 : index
    %c0_3 = arith.constant 0 : index
    %c0_4 = arith.constant 0 : index
    %3 = vector.load %arg9[%c17, %c0_3, %c0_4] : memref<18x18x4xf32, #tpu.memory_space<vmem>>, vector<1x18x4xf32>
    tpu.vector_store %arg9[%c17, %c0_3, %c0_4], %2 {strides = array<i32>} : memref<18x18x4xf32, #tpu.memory_space<vmem>>, vector<1x18x4xf32>,
    %cst_5 = arith.constant 0.000000e+00 : f32
    %4 = vector.broadcast %cst_5 : f32 to vector<18x1x4xf32>
    %c0_6 = arith.constant 0 : index
    %c0_7 = arith.constant 0 : index
    %c0_8 = arith.constant 0 : index
    %5 = vector.load %arg9[%c0_6, %c0_7, %c0_8] : memref<18x18x4xf32, #tpu.memory_space<vmem>>, vector<18x1x4xf32>
    tpu.vector_store %arg9[%c0_6, %c0_7, %c0_8], %4 {strides = array<i32>} : memref<18x18x4xf32, #tpu.memory_space<vmem>>, vector<18x1x4xf32>,
    %cst_9 = arith.constant 0.000000e+00 : f32
    %6 = vector.broadcast %cst_9 : f32 to vector<18x1x4xf32>
    %c0_10 = arith.constant 0 : index
    %c17_11 = arith.constant 17 : index
    %c0_12 = arith.constant 0 : index
    %7 = vector.load %arg9[%c0_10, %c17_11, %c0_12] : memref<18x18x4xf32, #tpu.memory_space<vmem>>, vector<18x1x4xf32>
    tpu.vector_store %arg9[%c0_10, %c17_11, %c0_12], %6 {strides = array<i32>} : memref<18x18x4xf32, #tpu.memory_space<vmem>>, vector<18x1x4xf32>,
    %cst_13 = arith.constant 0.000000e+00 : f32
    %8 = vector.broadcast %cst_13 : f32 to vector<1x18x16xf32>
    %c0_14 = arith.constant 0 : index
    %c0_15 = arith.constant 0 : index
    %c0_16 = arith.constant 0 : index
    %9 = vector.load %arg10[%c0_14, %c0_15, %c0_16] : memref<18x18x16xf32, #tpu.memory_space<vmem>>, vector<1x18x16xf32>
    tpu.vector_store %arg10[%c0_14, %c0_15, %c0_16], %8 {strides = array<i32>} : memref<18x18x16xf32, #tpu.memory_space<vmem>>, vector<1x18x16xf32>,
    %cst_17 = arith.constant 0.000000e+00 : f32
    %10 = vector.broadcast %cst_17 : f32 to vector<1x18x16xf32>
    %c17_18 = arith.constant 17 : index
    %c0_19 = arith.constant 0 : index
    %c0_20 = arith.constant 0 : index
    %11 = vector.load %arg10[%c17_18, %c0_19, %c0_20] : memref<18x18x16xf32, #tpu.memory_space<vmem>>, vector<1x18x16xf32>
    tpu.vector_store %arg10[%c17_18, %c0_19, %c0_20], %10 {strides = array<i32>} : memref<18x18x16xf32, #tpu.memory_space<vmem>>, vector<1x18x16xf32>,
    %cst_21 = arith.constant 0.000000e+00 : f32
    %12 = vector.broadcast %cst_21 : f32 to vector<18x1x16xf32>
    %c0_22 = arith.constant 0 : index
    %c0_23 = arith.constant 0 : index
    %c0_24 = arith.constant 0 : index
    %13 = vector.load %arg10[%c0_22, %c0_23, %c0_24] : memref<18x18x16xf32, #tpu.memory_space<vmem>>, vector<18x1x16xf32>
    tpu.vector_store %arg10[%c0_22, %c0_23, %c0_24], %12 {strides = array<i32>} : memref<18x18x16xf32, #tpu.memory_space<vmem>>, vector<18x1x16xf32>,
    %cst_25 = arith.constant 0.000000e+00 : f32
    %14 = vector.broadcast %cst_25 : f32 to vector<18x1x16xf32>
    %c0_26 = arith.constant 0 : index
    %c17_27 = arith.constant 17 : index
    %c0_28 = arith.constant 0 : index
    %15 = vector.load %arg10[%c0_26, %c17_27, %c0_28] : memref<18x18x16xf32, #tpu.memory_space<vmem>>, vector<18x1x16xf32>
    tpu.vector_store %arg10[%c0_26, %c17_27, %c0_28], %14 {strides = array<i32>} : memref<18x18x16xf32, #tpu.memory_space<vmem>>, vector<18x1x16xf32>,
    %cst_29 = arith.constant 0.000000e+00 : f32
    %16 = vector.broadcast %cst_29 : f32 to vector<1x18x16xf32>
    %c0_30 = arith.constant 0 : index
    %c0_31 = arith.constant 0 : index
    %c0_32 = arith.constant 0 : index
    %17 = vector.load %arg11[%c0_30, %c0_31, %c0_32] : memref<18x18x16xf32, #tpu.memory_space<vmem>>, vector<1x18x16xf32>
    tpu.vector_store %arg11[%c0_30, %c0_31, %c0_32], %16 {strides = array<i32>} : memref<18x18x16xf32, #tpu.memory_space<vmem>>, vector<1x18x16xf32>,
    %cst_33 = arith.constant 0.000000e+00 : f32
    %18 = vector.broadcast %cst_33 : f32 to vector<1x18x16xf32>
    %c17_34 = arith.constant 17 : index
    %c0_35 = arith.constant 0 : index
    %c0_36 = arith.constant 0 : index
    %19 = vector.load %arg11[%c17_34, %c0_35, %c0_36] : memref<18x18x16xf32, #tpu.memory_space<vmem>>, vector<1x18x16xf32>
    tpu.vector_store %arg11[%c17_34, %c0_35, %c0_36], %18 {strides = array<i32>} : memref<18x18x16xf32, #tpu.memory_space<vmem>>, vector<1x18x16xf32>,
    %cst_37 = arith.constant 0.000000e+00 : f32
    %20 = vector.broadcast %cst_37 : f32 to vector<18x1x16xf32>
    %c0_38 = arith.constant 0 : index
    %c0_39 = arith.constant 0 : index
    %c0_40 = arith.constant 0 : index
    %21 = vector.load %arg11[%c0_38, %c0_39, %c0_40] : memref<18x18x16xf32, #tpu.memory_space<vmem>>, vector<18x1x16xf32>
    tpu.vector_store %arg11[%c0_38, %c0_39, %c0_40], %20 {strides = array<i32>} : memref<18x18x16xf32, #tpu.memory_space<vmem>>, vector<18x1x16xf32>,
    %cst_41 = arith.constant 0.000000e+00 : f32
    %22 = vector.broadcast %cst_41 : f32 to vector<18x1x16xf32>
    %c0_42 = arith.constant 0 : index
    %c17_43 = arith.constant 17 : index
    %c0_44 = arith.constant 0 : index
    %23 = vector.load %arg11[%c0_42, %c17_43, %c0_44] : memref<18x18x16xf32, #tpu.memory_space<vmem>>, vector<18x1x16xf32>
    tpu.vector_store %arg11[%c0_42, %c17_43, %c0_44], %22 {strides = array<i32>} : memref<18x18x16xf32, #tpu.memory_space<vmem>>, vector<18x1x16xf32>,
    %c0_45 = arith.constant 0 : index
    %c0_46 = arith.constant 0 : index
    %c0_47 = arith.constant 0 : index
    %c0_48 = arith.constant 0 : index
    %24 = vector.load %arg1[%c0_45, %c0_46, %c0_47, %c0_48] : memref<1x16x16x4xf32, #tpu.memory_space<vmem>>, vector<1x16x16x4xf32>
    %25 = vector.shape_cast %24 : vector<1x16x16x4xf32> to vector<16x16x4xf32>
    %c1 = arith.constant 1 : index
    %c1_49 = arith.constant 1 : index
    %c0_50 = arith.constant 0 : index
    %26 = vector.load %arg9[%c1, %c1_49, %c0_50] : memref<18x18x4xf32, #tpu.memory_space<vmem>>, vector<16x16x4xf32>
    tpu.vector_store %arg9[%c1, %c1_49, %c0_50], %25 {strides = array<i32>} : memref<18x18x4xf32, #tpu.memory_space<vmem>>, vector<16x16x4xf32>,
    %c0_51 = arith.constant 0 : index
    %c0_52 = arith.constant 0 : index
    %c0_53 = arith.constant 0 : index
    %27 = vector.load %arg9[%c0_51, %c0_52, %c0_53] : memref<18x18x4xf32, #tpu.memory_space<vmem>>, vector<16x16x4xf32>
    %c0_54 = arith.constant 0 : index
    %c1_55 = arith.constant 1 : index
    %c0_56 = arith.constant 0 : index
    %28 = vector.load %arg9[%c0_54, %c1_55, %c0_56] : memref<18x18x4xf32, #tpu.memory_space<vmem>>, vector<16x16x4xf32>
    %c0_57 = arith.constant 0 : index
    %c2 = arith.constant 2 : index
    %c0_58 = arith.constant 0 : index
    %29 = vector.load %arg9[%c0_57, %c2, %c0_58] : memref<18x18x4xf32, #tpu.memory_space<vmem>>, vector<16x16x4xf32>
    %c1_59 = arith.constant 1 : index
    %c0_60 = arith.constant 0 : index
    %c0_61 = arith.constant 0 : index
    %30 = vector.load %arg9[%c1_59, %c0_60, %c0_61] : memref<18x18x4xf32, #tpu.memory_space<vmem>>, vector<16x16x4xf32>
    %c1_62 = arith.constant 1 : index
    %c1_63 = arith.constant 1 : index
    %c0_64 = arith.constant 0 : index
    %31 = vector.load %arg9[%c1_62, %c1_63, %c0_64] : memref<18x18x4xf32, #tpu.memory_space<vmem>>, vector<16x16x4xf32>
    %c1_65 = arith.constant 1 : index
    %c2_66 = arith.constant 2 : index
    %c0_67 = arith.constant 0 : index
    %32 = vector.load %arg9[%c1_65, %c2_66, %c0_67] : memref<18x18x4xf32, #tpu.memory_space<vmem>>, vector<16x16x4xf32>
    %c2_68 = arith.constant 2 : index
    %c0_69 = arith.constant 0 : index
    %c0_70 = arith.constant 0 : index
    %33 = vector.load %arg9[%c2_68, %c0_69, %c0_70] : memref<18x18x4xf32, #tpu.memory_space<vmem>>, vector<16x16x4xf32>
    %c2_71 = arith.constant 2 : index
    %c1_72 = arith.constant 1 : index
    %c0_73 = arith.constant 0 : index
    %34 = vector.load %arg9[%c2_71, %c1_72, %c0_73] : memref<18x18x4xf32, #tpu.memory_space<vmem>>, vector<16x16x4xf32>
    %c2_74 = arith.constant 2 : index
    %c2_75 = arith.constant 2 : index
    %c0_76 = arith.constant 0 : index
    %35 = vector.load %arg9[%c2_74, %c2_75, %c0_76] : memref<18x18x4xf32, #tpu.memory_space<vmem>>, vector<16x16x4xf32>
    %36 = tpu.concatenate %27, %28, %29, %30, %31, %32, %33, %34, %35 in 2 : vector<16x16x4xf32>, vector<16x16x4xf32>, vector<16x16x4xf32>, vector<16x16x4xf32>, vector<16x16x4xf32>, vector<16x16x4xf32>, vector<16x16x4xf32>, vector<16x16x4xf32>, vector<16x16x4xf32> -> vector<16x16x36xf32>
    %37 = vector.shape_cast %36 : vector<16x16x36xf32> to vector<256x36xf32>
    %c0_77 = arith.constant 0 : index
    %c0_78 = arith.constant 0 : index
    %38 = vector.load %arg2[%c0_77, %c0_78] : memref<36x16xf32, #tpu.memory_space<vmem>>, vector<36x16xf32>
    %cst_79 = arith.constant dense<0.000000e+00> : vector<256x16xf32>
    %39 = tpu.matmul %37, %38, %cst_79 {dimension_numbers = #tpu.dot_dimension_numbers<[1], [0], [0], [1], [0, 0, 1, 1], [], []>} : vector<256x36xf32>, vector<36x16xf32>, vector<256x16xf32> -> vector<256x16xf32>
    %c0_80 = arith.constant 0 : index
    %c0_81 = arith.constant 0 : index
    %40 = vector.load %arg3[%c0_80, %c0_81] : memref<1x16xf32, #tpu.memory_space<vmem>>, vector<1x16xf32>
    %41 = vector.broadcast %40 : vector<1x16xf32> to vector<256x16xf32>
    %42 = arith.addf %39, %41 : vector<256x16xf32>
    %cst_82 = arith.constant 0.000000e+00 : f32
    %43 = vector.broadcast %cst_82 : f32 to vector<256x16xf32>
    %44 = arith.maximumf %42, %43 : vector<256x16xf32>
    %45 = vector.shape_cast %44 : vector<256x16xf32> to vector<16x16x16xf32>
    %c1_83 = arith.constant 1 : index
    %c1_84 = arith.constant 1 : index
    %c0_85 = arith.constant 0 : index
    %46 = vector.load %arg10[%c1_83, %c1_84, %c0_85] : memref<18x18x16xf32, #tpu.memory_space<vmem>>, vector<16x16x16xf32>
    tpu.vector_store %arg10[%c1_83, %c1_84, %c0_85], %45 {strides = array<i32>} : memref<18x18x16xf32, #tpu.memory_space<vmem>>, vector<16x16x16xf32>,
    %c0_86 = arith.constant 0 : index
    %c0_87 = arith.constant 0 : index
    %c0_88 = arith.constant 0 : index
    %47 = vector.load %arg10[%c0_86, %c0_87, %c0_88] : memref<18x18x16xf32, #tpu.memory_space<vmem>>, vector<16x16x16xf32>
    %c0_89 = arith.constant 0 : index
    %c1_90 = arith.constant 1 : index
    %c0_91 = arith.constant 0 : index
    %48 = vector.load %arg10[%c0_89, %c1_90, %c0_91] : memref<18x18x16xf32, #tpu.memory_space<vmem>>, vector<16x16x16xf32>
    %c0_92 = arith.constant 0 : index
    %c2_93 = arith.constant 2 : index
    %c0_94 = arith.constant 0 : index
    %49 = vector.load %arg10[%c0_92, %c2_93, %c0_94] : memref<18x18x16xf32, #tpu.memory_space<vmem>>, vector<16x16x16xf32>
    %c1_95 = arith.constant 1 : index
    %c0_96 = arith.constant 0 : index
    %c0_97 = arith.constant 0 : index
    %50 = vector.load %arg10[%c1_95, %c0_96, %c0_97] : memref<18x18x16xf32, #tpu.memory_space<vmem>>, vector<16x16x16xf32>
    %c1_98 = arith.constant 1 : index
    %c1_99 = arith.constant 1 : index
    %c0_100 = arith.constant 0 : index
    %51 = vector.load %arg10[%c1_98, %c1_99, %c0_100] : memref<18x18x16xf32, #tpu.memory_space<vmem>>, vector<16x16x16xf32>
    %c1_101 = arith.constant 1 : index
    %c2_102 = arith.constant 2 : index
    %c0_103 = arith.constant 0 : index
    %52 = vector.load %arg10[%c1_101, %c2_102, %c0_103] : memref<18x18x16xf32, #tpu.memory_space<vmem>>, vector<16x16x16xf32>
    %c2_104 = arith.constant 2 : index
    %c0_105 = arith.constant 0 : index
    %c0_106 = arith.constant 0 : index
    %53 = vector.load %arg10[%c2_104, %c0_105, %c0_106] : memref<18x18x16xf32, #tpu.memory_space<vmem>>, vector<16x16x16xf32>
    %c2_107 = arith.constant 2 : index
    %c1_108 = arith.constant 1 : index
    %c0_109 = arith.constant 0 : index
    %54 = vector.load %arg10[%c2_107, %c1_108, %c0_109] : memref<18x18x16xf32, #tpu.memory_space<vmem>>, vector<16x16x16xf32>
    %c2_110 = arith.constant 2 : index
    %c2_111 = arith.constant 2 : index
    %c0_112 = arith.constant 0 : index
    %55 = vector.load %arg10[%c2_110, %c2_111, %c0_112] : memref<18x18x16xf32, #tpu.memory_space<vmem>>, vector<16x16x16xf32>
    %56 = tpu.concatenate %47, %48, %49, %50, %51, %52, %53, %54, %55 in 2 : vector<16x16x16xf32>, vector<16x16x16xf32>, vector<16x16x16xf32>, vector<16x16x16xf32>, vector<16x16x16xf32>, vector<16x16x16xf32>, vector<16x16x16xf32>, vector<16x16x16xf32>, vector<16x16x16xf32> -> vector<16x16x144xf32>
    %57 = vector.shape_cast %56 : vector<16x16x144xf32> to vector<256x144xf32>
    %c0_113 = arith.constant 0 : index
    %c0_114 = arith.constant 0 : index
    %58 = vector.load %arg4[%c0_113, %c0_114] : memref<144x16xf32, #tpu.memory_space<vmem>>, vector<144x16xf32>
    %cst_115 = arith.constant dense<0.000000e+00> : vector<256x16xf32>
    %59 = tpu.matmul %57, %58, %cst_115 {dimension_numbers = #tpu.dot_dimension_numbers<[1], [0], [0], [1], [0, 0, 1, 1], [], []>} : vector<256x144xf32>, vector<144x16xf32>, vector<256x16xf32> -> vector<256x16xf32>
    %c0_116 = arith.constant 0 : index
    %c0_117 = arith.constant 0 : index
    %60 = vector.load %arg5[%c0_116, %c0_117] : memref<1x16xf32, #tpu.memory_space<vmem>>, vector<1x16xf32>
    %61 = vector.broadcast %60 : vector<1x16xf32> to vector<256x16xf32>
    %62 = arith.addf %59, %61 : vector<256x16xf32>
    %63 = vector.shape_cast %62 : vector<256x16xf32> to vector<16x16x16xf32>
    %c1_118 = arith.constant 1 : index
    %c1_119 = arith.constant 1 : index
    %c0_120 = arith.constant 0 : index
    %64 = vector.load %arg11[%c1_118, %c1_119, %c0_120] : memref<18x18x16xf32, #tpu.memory_space<vmem>>, vector<16x16x16xf32>
    tpu.vector_store %arg11[%c1_118, %c1_119, %c0_120], %63 {strides = array<i32>} : memref<18x18x16xf32, #tpu.memory_space<vmem>>, vector<16x16x16xf32>,
    %c0_121 = arith.constant 0 : index
    %c0_122 = arith.constant 0 : index
    %c0_123 = arith.constant 0 : index
    %65 = vector.load %arg11[%c0_121, %c0_122, %c0_123] : memref<18x18x16xf32, #tpu.memory_space<vmem>>, vector<16x16x16xf32>
    %c0_124 = arith.constant 0 : index
    %c1_125 = arith.constant 1 : index
    %c0_126 = arith.constant 0 : index
    %66 = vector.load %arg11[%c0_124, %c1_125, %c0_126] : memref<18x18x16xf32, #tpu.memory_space<vmem>>, vector<16x16x16xf32>
    %c0_127 = arith.constant 0 : index
    %c2_128 = arith.constant 2 : index
    %c0_129 = arith.constant 0 : index
    %67 = vector.load %arg11[%c0_127, %c2_128, %c0_129] : memref<18x18x16xf32, #tpu.memory_space<vmem>>, vector<16x16x16xf32>
    %c1_130 = arith.constant 1 : index
    %c0_131 = arith.constant 0 : index
    %c0_132 = arith.constant 0 : index
    %68 = vector.load %arg11[%c1_130, %c0_131, %c0_132] : memref<18x18x16xf32, #tpu.memory_space<vmem>>, vector<16x16x16xf32>
    %c1_133 = arith.constant 1 : index
    %c1_134 = arith.constant 1 : index
    %c0_135 = arith.constant 0 : index
    %69 = vector.load %arg11[%c1_133, %c1_134, %c0_135] : memref<18x18x16xf32, #tpu.memory_space<vmem>>, vector<16x16x16xf32>
    %c1_136 = arith.constant 1 : index
    %c2_137 = arith.constant 2 : index
    %c0_138 = arith.constant 0 : index
    %70 = vector.load %arg11[%c1_136, %c2_137, %c0_138] : memref<18x18x16xf32, #tpu.memory_space<vmem>>, vector<16x16x16xf32>
    %c2_139 = arith.constant 2 : index
    %c0_140 = arith.constant 0 : index
    %c0_141 = arith.constant 0 : index
    %71 = vector.load %arg11[%c2_139, %c0_140, %c0_141] : memref<18x18x16xf32, #tpu.memory_space<vmem>>, vector<16x16x16xf32>
    %c2_142 = arith.constant 2 : index
    %c1_143 = arith.constant 1 : index
    %c0_144 = arith.constant 0 : index
    %72 = vector.load %arg11[%c2_142, %c1_143, %c0_144] : memref<18x18x16xf32, #tpu.memory_space<vmem>>, vector<16x16x16xf32>
    %c2_145 = arith.constant 2 : index
    %c2_146 = arith.constant 2 : index
    %c0_147 = arith.constant 0 : index
    %73 = vector.load %arg11[%c2_145, %c2_146, %c0_147] : memref<18x18x16xf32, #tpu.memory_space<vmem>>, vector<16x16x16xf32>
    %74 = tpu.concatenate %65, %66, %67, %68, %69, %70, %71, %72, %73 in 2 : vector<16x16x16xf32>, vector<16x16x16xf32>, vector<16x16x16xf32>, vector<16x16x16xf32>, vector<16x16x16xf32>, vector<16x16x16xf32>, vector<16x16x16xf32>, vector<16x16x16xf32>, vector<16x16x16xf32> -> vector<16x16x144xf32>
    %75 = vector.shape_cast %74 : vector<16x16x144xf32> to vector<256x144xf32>
    %c0_148 = arith.constant 0 : index
    %c0_149 = arith.constant 0 : index
    %76 = vector.load %arg6[%c0_148, %c0_149] : memref<144x9xf32, #tpu.memory_space<vmem>>, vector<144x9xf32>
    %cst_150 = arith.constant dense<0.000000e+00> : vector<9x256xf32>
    %77 = tpu.matmul %76, %75, %cst_150 {dimension_numbers = #tpu.dot_dimension_numbers<[0], [1], [1], [0], [0, 1, 1, 0], [], []>} : vector<144x9xf32>, vector<256x144xf32>, vector<9x256xf32> -> vector<9x256xf32>
    %c0_151 = arith.constant 0 : index
    %c0_152 = arith.constant 0 : index
    %78 = vector.load %arg7[%c0_151, %c0_152] : memref<9x1xf32, #tpu.memory_space<vmem>>, vector<9x1xf32>
    %79 = vector.broadcast %78 : vector<9x1xf32> to vector<9x256xf32>
    %80 = arith.addf %77, %79 : vector<9x256xf32>
    %c0_153 = arith.constant 0 : index
    %c0_154 = arith.constant 0 : index
    %c0_155 = arith.constant 0 : index
    %81 = vector.load %arg8[%c0_153, %c0_154, %c0_155] : memref<1x9x256xf32, #tpu.memory_space<vmem>>, vector<1x9x256xf32>
    %82 = vector.shape_cast %81 : vector<1x9x256xf32> to vector<9x256xf32>
    %83 = vector.shape_cast %80 : vector<9x256xf32> to vector<1x9x256xf32>
    tpu.vector_store %arg8[%c0_153, %c0_154, %c0_155], %83 {strides = array<i32>} : memref<1x9x256xf32, #tpu.memory_space<vmem>>, vector<1x9x256xf32>,
    return
  }
  func.func @transform_0(%arg0: i32) -> (i32, i32, i32, i32) {
    %c0_i32 = arith.constant 0 : i32
    %c0_i32_0 = arith.constant 0 : i32
    %c0_i32_1 = arith.constant 0 : i32
    %c0_i32_2 = arith.constant 0 : i32
    return %arg0, %c0_i32, %c0_i32_0, %c0_i32_1 : i32, i32, i32, i32
  }
  func.func @transform_1(%arg0: i32) -> (i32, i32) {
    %c0_i32 = arith.constant 0 : i32
    %c0_i32_0 = arith.constant 0 : i32
    %c0_i32_1 = arith.constant 0 : i32
    return %c0_i32, %c0_i32_0 : i32, i32
  }
  func.func @transform_2(%arg0: i32) -> (i32, i32) {
    %c0_i32 = arith.constant 0 : i32
    %c0_i32_0 = arith.constant 0 : i32
    %c0_i32_1 = arith.constant 0 : i32
    return %c0_i32, %c0_i32_0 : i32, i32
  }
  func.func @transform_3(%arg0: i32) -> (i32, i32) {
    %c0_i32 = arith.constant 0 : i32
    %c0_i32_0 = arith.constant 0 : i32
    %c0_i32_1 = arith.constant 0 : i32
    return %c0_i32, %c0_i32_0 : i32, i32
  }
  func.func @transform_4(%arg0: i32) -> (i32, i32) {
    %c0_i32 = arith.constant 0 : i32
    %c0_i32_0 = arith.constant 0 : i32
    %c0_i32_1 = arith.constant 0 : i32
    return %c0_i32, %c0_i32_0 : i32, i32
  }
  func.func @transform_5(%arg0: i32) -> (i32, i32) {
    %c0_i32 = arith.constant 0 : i32
    %c0_i32_0 = arith.constant 0 : i32
    %c0_i32_1 = arith.constant 0 : i32
    return %c0_i32, %c0_i32_0 : i32, i32
  }
  func.func @transform_6(%arg0: i32) -> (i32, i32) {
    %c0_i32 = arith.constant 0 : i32
    %c0_i32_0 = arith.constant 0 : i32
    %c0_i32_1 = arith.constant 0 : i32
    return %c0_i32, %c0_i32_0 : i32, i32
  }
  func.func @transform_7(%arg0: i32) -> (i32, i32, i32) {
    %c0_i32 = arith.constant 0 : i32
    %c0_i32_0 = arith.constant 0 : i32
    %c0_i32_1 = arith.constant 0 : i32
    return %arg0, %c0_i32, %c0_i32_0 : i32, i32, i32
  }
}

</mosaic_0001>

<bundles_post_ra>
// kernel: tpu_custom_call.1
= control target key start
LH: loop header
LB: loop body
LE: loop exit
PB: predicated region body
PF: predicated region fallthrough
CT: control target
= control target key end

     0   :  { %s7590_s24 = smov 0   ;;  %s11537_s0 = inlined_call_operand.vmem [shape: f32[2,16,16,4], index: 0, kind: input, shape index: {}]   ;;  %s11538_s1 = inlined_call_operand.vmem [shape: f32[36,16], index: 1, kind: input, shape index: {}]   ;;  %s11539_s2 = inlined_call_operand.vmem [shape: f32[1,16], index: 2, kind: input, shape index: {}]   ;;  %s11540_s3 = inlined_call_operand.vmem [shape: f32[144,16], index: 3, kind: input, shape index: {}]   ;;  %s11541_s4 = inlined_call_operand.vmem [shape: f32[1,16], index: 4, kind: input, shape index: {}]   ;;  %s11542_s5 = inlined_call_operand.vmem [shape: f32[144,9], index: 5, kind: input, shape index: {}]   ;;  %s11543_s6 = inlined_call_operand.vmem [shape: f32[9,1], index: 6, kind: input, shape index: {}]   ;;  %s11544_s7 = inlined_call_operand.vmem [shape: f32[2,9,256], index: 7, kind: output, shape index: {}]  }
   0x1 LB: > { %s5991_s25 = sadd.s32 4294967295, %s7532_s24   ;;  %p5995_p0 = scmp.ge.s32.totalorder %s7532_s24, 1  ;;  %s7532_s24 = sphi %s7590_s24, %s17_s24  }
   0x2   : > { %p237_p1 = scmp.lt.s32.totalorder %s7532_s24, 3 }
   0x4   : > { %p238_p2 = pnand %p5995_p0, %p237_p1 }
   0x6   : > { %241 = sbr.rel (%p238_p2) target bundleno = 1979 (0x7bb), region = 48 }
   0xd   : > { %vm279_vm0 = vcmask 31744   ;;  %vm282_vm1 = vcmask 25600   ;;  %p7600_p3 = scmp.lt.s32.totalorder %s5991_s25, 1  ;;  %vm288_vm2 = vcmask 24576   ;;  %v11545_v0 = vmov 0.0   ;;  %s7535_s8 = smov 4  }
   0xe   : > { %280 = vst.msk [vmem:[#allocation2] sm:$0xff] %vm279_vm0, %v11545_v0  ;;  %281 = vst.msk [vmem:[#allocation2 + $0x8] sm:$0xff] %vm279_vm0, %v11545_v0  ;;  %s7536_s9 = smov 8   ;;  %s7537_s10 = smov 12   ;;  %vm325_vm3 = vcmask 130048   ;;  %vm2163_vm4 = vcmask 1043456  }
   0xf   : > { %285 = vst.msk [vmem:[#allocation2 + $0x198] sm:$0xff] %vm279_vm0, %v11545_v0  ;;  %286 = vst.msk [vmem:[#allocation2 + $0x1a0] sm:$0xff] %vm279_vm0, %v11545_v0  ;;  %s12135_s25 = smov (!%p7600_p3, %s5991_s25), 1  ;;  %s7538_s11 = smov 16   ;;  %vm1824_vm5 = vcmask 64512   ;;  %vm1857_vm6 = vcmask 97280  }
  0x10   : > { %283 = vst.msk [vmem:[#allocation2 + $0x10] sm:$0x3] %vm282_vm1, %v11545_v0  ;;  %287 = vst.msk [vmem:[#allocation2 + $0x1a8] sm:$0x3] %vm282_vm1, %v11545_v0  ;;  %s6103_s27 = sshll.u32 %s12135_s25, 8  ;;  %s7539_s12 = smov 20  }
  0x11   : > { %290 = vst.msk [vmem:[#allocation2 + $0x18] sm:$0x1] %vm288_vm2, %v11545_v0  ;;  %291 = vst.msk [vmem:[#allocation2 + $0x30] sm:$0x1] %vm288_vm2, %v11545_v0  ;;  %s7696_s30 = scalar_lea.vmem %s11537_s0, %s6103_s27  ;;  %s7540_s13 = smov 24   ;;  %vm1922_vm7 = vcmask 162816  }
  0x12   : > { %292 = vst.msk [vmem:[#allocation2 + $0x48] sm:$0x1] %vm288_vm2, %v11545_v0  ;;  %293 = vst.msk [vmem:[#allocation2 + $0x60] sm:$0x1] %vm288_vm2, %v11545_v0  ;;  %v414_v1 = vld [vmem:[%s7696_s30] sm:$0xff]  ;;  %v416_v2 = vld [vmem:[%s7696_s30 + $0x10] sm:$0xff] }
  0x13   : > { %294 = vst.msk [vmem:[#allocation2 + $0x78] sm:$0x1] %vm288_vm2, %v11545_v0  ;;  %295 = vst.msk [vmem:[#allocation2 + $0x90] sm:$0x1] %vm288_vm2, %v11545_v0  ;;  %v415_v3 = vld [vmem:[%s7696_s30 + $0x8] sm:$0xff]  ;;  %v418_v4 = vld [vmem:[%s7696_s30 + $0x20] sm:$0xff] }
  0x14   : > { %296 = vst.msk [vmem:[#allocation2 + $0xa8] sm:$0x1] %vm288_vm2, %v11545_v0  ;;  %297 = vst.msk [vmem:[#allocation2 + $0xc0] sm:$0x1] %vm288_vm2, %v11545_v0  ;;  %v417_v5 = vld [vmem:[%s7696_s30 + $0x18] sm:$0xff]  ;;  %v420_v6 = vld [vmem:[%s7696_s30 + $0x30] sm:$0xff] }
  0x15   : > { %298 = vst.msk [vmem:[#allocation2 + $0xd8] sm:$0x1] %vm288_vm2, %v11545_v0  ;;  %299 = vst.msk [vmem:[#allocation2 + $0xf0] sm:$0x1] %vm288_vm2, %v11545_v0  ;;  %v511_v7 = vld [vmem:[#allocation2 + $0x1] sm:$0xff]  ;;  %v421_v11 = vld [vmem:[%s7696_s30 + $0x38] sm:$0xff] }
  0x16   : > { %300 = vst.msk [vmem:[#allocation2 + $0x108] sm:$0x1] %vm288_vm2, %v11545_v0  ;;  %301 = vst.msk [vmem:[#allocation2 + $0x120] sm:$0x1] %vm288_vm2, %v11545_v0  ;;  %v419_v9 = vld [vmem:[%s7696_s30 + $0x28] sm:$0xff]  ;;  %800 = vrot.lane.b32.xlu0 %v511_v7, %s7535_s8  ;;  %v422_v10 = vld [vmem:[%s7696_s30 + $0x40] sm:$0xff] }
  0x17   : > { %302 = vst.msk [vmem:[#allocation2 + $0x138] sm:$0x1] %vm288_vm2, %v11545_v0  ;;  %303 = vst.msk [vmem:[#allocation2 + $0x150] sm:$0x1] %vm288_vm2, %v11545_v0  ;;  %v512_v8 = vld [vmem:[#allocation2 + $0x9] sm:$0xff]  ;;  %v426_v14 = vld [vmem:[%s7696_s30 + $0x60] sm:$0xff] }
  0x18   : > { %304 = vst.msk [vmem:[#allocation2 + $0x168] sm:$0x1] %vm288_vm2, %v11545_v0  ;;  %305 = vst.msk [vmem:[#allocation2 + $0x180] sm:$0x1] %vm288_vm2, %v11545_v0  ;;  %v424_v12 = vld [vmem:[%s7696_s30 + $0x50] sm:$0xff]  ;;  %v423_v13 = vld [vmem:[%s7696_s30 + $0x48] sm:$0xff] }
  0x19   : > { %308 = vst.msk [vmem:[#allocation2 + $0x29] sm:$0x1] %vm288_vm2, %v11545_v0  ;;  %309 = vst.msk [vmem:[#allocation2 + $0x41] sm:$0x1] %vm288_vm2, %v11545_v0  ;;  %v425_v15 = vld [vmem:[%s7696_s30 + $0x58] sm:$0xff]  ;;  %v428_v16 = vld [vmem:[%s7696_s30 + $0x70] sm:$0xff] }
  0x1a   : > { %310 = vst.msk [vmem:[#allocation2 + $0x59] sm:$0x1] %vm288_vm2, %v11545_v0  ;;  %311 = vst.msk [vmem:[#allocation2 + $0x71] sm:$0x1] %vm288_vm2, %v11545_v0  ;;  %v427_v17 = vld [vmem:[%s7696_s30 + $0x68] sm:$0xff]  ;;  %v430_v18 = vld [vmem:[%s7696_s30 + $0x80] sm:$0xff]  ;;  %802 = vrot.lane.b32.xlu0 %v512_v8, %s7535_s8 }
  0x1b   : > { %312 = vst.msk [vmem:[#allocation2 + $0x89] sm:$0x1] %vm288_vm2, %v11545_v0  ;;  %313 = vst.msk [vmem:[#allocation2 + $0xa1] sm:$0x1] %vm288_vm2, %v11545_v0  ;;  %v429_v19 = vld [vmem:[%s7696_s30 + $0x78] sm:$0xff]  ;;  %v432_v20 = vld [vmem:[%s7696_s30 + $0x90] sm:$0xff] }
  0x1c   : > { %314 = vst.msk [vmem:[#allocation2 + $0xb9] sm:$0x1] %vm288_vm2, %v11545_v0  ;;  %315 = vst.msk [vmem:[#allocation2 + $0xd1] sm:$0x1] %vm288_vm2, %v11545_v0  ;;  %v431_v21 = vld [vmem:[%s7696_s30 + $0x88] sm:$0xff]  ;;  %v434_v22 = vld [vmem:[%s7696_s30 + $0xa0] sm:$0xff] }
  0x1d   : > { %316 = vst.msk [vmem:[#allocation2 + $0xe9] sm:$0x1] %vm288_vm2, %v11545_v0  ;;  %317 = vst.msk [vmem:[#allocation2 + $0x101] sm:$0x1] %vm288_vm2, %v11545_v0  ;;  %v433_v23 = vld [vmem:[%s7696_s30 + $0x98] sm:$0xff]  ;;  %v436_v24 = vld [vmem:[%s7696_s30 + $0xb0] sm:$0xff] }
  0x1e   : > { %318 = vst.msk [vmem:[#allocation2 + $0x119] sm:$0x1] %vm288_vm2, %v11545_v0  ;;  %319 = vst.msk [vmem:[#allocation2 + $0x131] sm:$0x1] %vm288_vm2, %v11545_v0  ;;  %v435_v28 = vld [vmem:[%s7696_s30 + $0xa8] sm:$0xff]  ;;  %v438_v29 = vld [vmem:[%s7696_s30 + $0xc0] sm:$0xff] }
  0x1f   : > { %320 = vst.msk [vmem:[#allocation2 + $0x149] sm:$0x1] %vm288_vm2, %v11545_v0  ;;  %321 = vst.msk [vmem:[#allocation2 + $0x161] sm:$0x1] %vm288_vm2, %v11545_v0  ;;  %v437_v33 = vld [vmem:[%s7696_s30 + $0xb8] sm:$0xff]  ;;  %v440_v34 = vld [vmem:[%s7696_s30 + $0xd0] sm:$0xff] }
  0x20   : > { %322 = vst.msk [vmem:[#allocation2 + $0x179] sm:$0x1] %vm288_vm2, %v11545_v0  ;;  %323 = vst.msk [vmem:[#allocation2 + $0x191] sm:$0x1] %vm288_vm2, %v11545_v0  ;;  %v439_v35 = vld [vmem:[%s7696_s30 + $0xc8] sm:$0xff]  ;;  %v442_v36 = vld [vmem:[%s7696_s30 + $0xe0] sm:$0xff] }
  0x21   : > { %307 = vst.msk [vmem:[#allocation2 + $0x11] sm:$0x1] %vm288_vm2, %v11545_v0  ;;  %289 = vst.msk [vmem:[#allocation2] sm:$0x1] %vm288_vm2, %v11545_v0  ;;  %v441_v37 = vld [vmem:[%s7696_s30 + $0xd8] sm:$0xff]  ;;  %v443_v39 = vld [vmem:[%s7696_s30 + $0xe8] sm:$0xff] }
  0x22   : > { %306 = vst.msk [vmem:[#allocation2 + $0x198] sm:$0x1] %vm288_vm2, %v11545_v0  ;;  %324 = vst.msk [vmem:[#allocation2 + $0x1a9] sm:$0x1] %vm288_vm2, %v11545_v0  ;;  %v444_v58 = vld [vmem:[%s7696_s30 + $0xf0] sm:$0xff]  ;;  %v445_v62 = vld [vmem:[%s7696_s30 + $0xf8] sm:$0xff] }
  0x23   : > { %447 = vst.msk [vmem:[#allocation2 + $0x19] sm:$0xff] %vm279_vm0, %v414_v1  ;;  %449 = vst.msk [vmem:[#allocation2 + $0x31] sm:$0xff] %vm279_vm0, %v416_v2  ;;  %v543_v1 = vld [vmem:[#allocation2 + $0x2] sm:$0xff]  ;;  %s7541_s14 = smov 28   ;;  %s7542_s27 = smov 32   ;;  %vm1955_vm8 = vcmask 195584  }
  0x24   : > { %448 = vst.msk [vmem:[#allocation2 + $0x21] sm:$0xff] %vm279_vm0, %v415_v3  ;;  %451 = vst.msk [vmem:[#allocation2 + $0x49] sm:$0xff] %vm279_vm0, %v418_v4  ;;  %vm1988_vm9 = vcmask 228352   ;;  %vm2021_vm10 = vcmask 261120   ;;  %vm2066_vm11 = vcmask 293888   ;;  %vm334_vm12 = vcmask 122880  }
  0x25   : > { %450 = vst.msk [vmem:[#allocation2 + $0x39] sm:$0xff] %vm279_vm0, %v417_v5  ;;  %453 = vst.msk [vmem:[#allocation2 + $0x61] sm:$0xff] %vm279_vm0, %v420_v6  ;;  %vm328_vm13 = vcmask 123904   ;;  %s7543_s30 = smov 48   ;;  %s7545_s21 = smov 64   ;;  %vm3706_vm14 = vcmask 392192  }
  0x26   : > { %452 = vst.msk [vmem:[#allocation2 + $0x51] sm:$0xff] %vm279_vm0, %v419_v9  ;;  %455 = vst.msk [vmem:[#allocation2 + $0x79] sm:$0xff] %vm279_vm0, %v422_v10  ;;  %vm3739_vm15 = vcmask 523264   ;;  %vm3805_vm1 = vcmask 785408   ;;  %vm3838_vm2 = vcmask 916480  }
  0x27   : > { %454 = vst.msk [vmem:[#allocation2 + $0x69] sm:$0xff] %vm279_vm0, %v421_v11  ;;  %457 = vst.msk [vmem:[#allocation2 + $0x91] sm:$0xff] %vm279_vm0, %v424_v12 }
  0x28   : > { %456 = vst.msk [vmem:[#allocation2 + $0x81] sm:$0xff] %vm279_vm0, %v423_v13  ;;  %459 = vst.msk [vmem:[#allocation2 + $0xa9] sm:$0xff] %vm279_vm0, %v426_v14  ;;  %v544_v4 = vld [vmem:[#allocation2 + $0xa] sm:$0xff] }
  0x29   : > { %458 = vst.msk [vmem:[#allocation2 + $0x99] sm:$0xff] %vm279_vm0, %v425_v15  ;;  %461 = vst.msk [vmem:[#allocation2 + $0xc1] sm:$0xff] %vm279_vm0, %v428_v16 }
  0x2a   : > { %460 = vst.msk [vmem:[#allocation2 + $0xb1] sm:$0xff] %vm279_vm0, %v427_v17  ;;  %463 = vst.msk [vmem:[#allocation2 + $0xd9] sm:$0xff] %vm279_vm0, %v430_v18  ;;  %v7741_v25 = vld [vmem:[#allocation2 + $0x19] sm:$0xff]  ;;  %v7743_v26 = vld [vmem:[#allocation2 + $0x31] sm:$0xff] }
  0x2b   : > { %462 = vst.msk [vmem:[#allocation2 + $0xc9] sm:$0xff] %vm279_vm0, %v429_v19  ;;  %465 = vst.msk [vmem:[#allocation2 + $0xf1] sm:$0xff] %vm279_vm0, %v432_v20  ;;  %804 = vrot.lane.b32.xlu1 %v7741_v25, %s7535_s8  ;;  %v7750_v27 = vld [vmem:[#allocation2 + $0x21] sm:$0xff]  ;;  %808 = vrot.lane.b32.xlu0 %v7743_v26, %s7535_s8  ;;  %v7758_v30 = vld [vmem:[#allocation2 + $0x49] sm:$0xff] }
  0x2c   : > { %464 = vst.msk [vmem:[#allocation2 + $0xe1] sm:$0xff] %vm279_vm0, %v431_v21  ;;  %467 = vst.msk [vmem:[#allocation2 + $0x109] sm:$0xff] %vm279_vm0, %v434_v22  ;;  %v7762_v31 = vld [vmem:[#allocation2 + $0x39] sm:$0xff]  ;;  %v7766_v32 = vld [vmem:[#allocation2 + $0x61] sm:$0xff] }
  0x2d   : > { %466 = vst.msk [vmem:[#allocation2 + $0xf9] sm:$0xff] %vm279_vm0, %v433_v23  ;;  %469 = vst.msk [vmem:[#allocation2 + $0x121] sm:$0xff] %vm279_vm0, %v436_v24  ;;  %v7778_v38 = vld [vmem:[#allocation2 + $0x51] sm:$0xff]  ;;  %v7786_v40 = vld [vmem:[#allocation2 + $0x79] sm:$0xff] }
  0x2e   : > { %468 = vst.msk [vmem:[#allocation2 + $0x111] sm:$0xff] %vm279_vm0, %v435_v28  ;;  %471 = vst.msk [vmem:[#allocation2 + $0x139] sm:$0xff] %vm279_vm0, %v438_v29  ;;  %v7790_v41 = vld [vmem:[#allocation2 + $0x69] sm:$0xff]  ;;  %v7794_v42 = vld [vmem:[#allocation2 + $0x91] sm:$0xff] }
  0x2f   : > { %806 = vrot.lane.b32.xlu1 %v7750_v27, %s7535_s8  ;;  %812 = vrot.lane.b32.xlu0 %v7758_v30, %s7535_s8  ;;  %470 = vst.msk [vmem:[#allocation2 + $0x129] sm:$0xff] %vm279_vm0, %v437_v33  ;;  %473 = vst.msk [vmem:[#allocation2 + $0x151] sm:$0xff] %vm279_vm0, %v440_v34  ;;  %v7798_v43 = vld [vmem:[#allocation2 + $0x81] sm:$0xff]  ;;  %v7802_v44 = vld [vmem:[#allocation2 + $0xa9] sm:$0xff] }
  0x30   : > { %472 = vst.msk [vmem:[#allocation2 + $0x141] sm:$0xff] %vm279_vm0, %v439_v35  ;;  %475 = vst.msk [vmem:[#allocation2 + $0x169] sm:$0xff] %vm279_vm0, %v442_v36  ;;  %v7806_v45 = vld [vmem:[#allocation2 + $0x99] sm:$0xff]  ;;  %v7810_v46 = vld [vmem:[#allocation2 + $0xc1] sm:$0xff] }
  0x31   : > { %474 = vst.msk [vmem:[#allocation2 + $0x159] sm:$0xff] %vm279_vm0, %v441_v37  ;;  %476 = vst.msk [vmem:[#allocation2 + $0x171] sm:$0xff] %vm279_vm0, %v443_v39  ;;  %v7814_v47 = vld [vmem:[#allocation2 + $0xb1] sm:$0xff]  ;;  %v7818_v48 = vld [vmem:[#allocation2 + $0xd9] sm:$0xff] }
  0x32   : > { %v7822_v49 = vld [vmem:[#allocation2 + $0xc9] sm:$0xff]  ;;  %v7826_v50 = vld [vmem:[#allocation2 + $0xf1] sm:$0xff]  ;;  %477 = vst.msk [vmem:[#allocation2 + $0x181] sm:$0xff] %vm279_vm0, %v444_v58  ;;  %478 = vst.msk [vmem:[#allocation2 + $0x189] sm:$0xff] %vm279_vm0, %v445_v62 }
  0x33   : > { %810 = vrot.lane.b32.xlu1 %v7762_v31, %s7535_s8  ;;  %816 = vrot.lane.b32.xlu0 %v7766_v32, %s7535_s8  ;;  %v7830_v51 = vld [vmem:[#allocation2 + $0xe1] sm:$0xff]  ;;  %v7834_v52 = vld [vmem:[#allocation2 + $0x109] sm:$0xff]  ;;  %v7889_v5 = vld [vmem:[#allocation2 + $0x32] sm:$0xff] }
  0x34   : > { %v7838_v53 = vld [vmem:[#allocation2 + $0xf9] sm:$0xff]  ;;  %v7842_v54 = vld [vmem:[#allocation2 + $0x121] sm:$0xff]  ;;  %v7896_v7 = vld [vmem:[#allocation2 + $0x4a] sm:$0xff] }
  0x35   : > { %v7846_v55 = vld [vmem:[#allocation2 + $0x111] sm:$0xff]  ;;  %v7850_v56 = vld [vmem:[#allocation2 + $0x139] sm:$0xff]  ;;  %v7892_v6 = vld [vmem:[#allocation2 + $0x22] sm:$0xff] }
  0x36   : > { %v7854_v57 = vld [vmem:[#allocation2 + $0x129] sm:$0xff]  ;;  %v7860_v59 = vld [vmem:[#allocation2 + $0x151] sm:$0xff]  ;;  %v7883_v3 = vld [vmem:[#allocation2 + $0x1a] sm:$0xff] }
  0x37   : > { %814 = vrot.lane.b32.xlu1 %v7778_v38, %s7535_s8  ;;  %820 = vrot.lane.b32.xlu0 %v7786_v40, %s7535_s8  ;;  %v7864_v60 = vld [vmem:[#allocation2 + $0x141] sm:$0xff]  ;;  %v7868_v61 = vld [vmem:[#allocation2 + $0x169] sm:$0xff]  ;;  %v7908_v10 = vld [vmem:[#allocation2 + $0x52] sm:$0xff] }
  0x38   : > { %v7874_v63 = vld [vmem:[#allocation2 + $0x159] sm:$0xff]  ;;  %v7880_v2 = vld [vmem:[#allocation2 + $0x171] sm:$0xff]  ;;  %v7904_v9 = vld [vmem:[#allocation2 + $0x62] sm:$0xff] }
  0x39   : > { %v7900_v8 = vld [vmem:[#allocation2 + $0x3a] sm:$0xff]  ;;  %v7916_v12 = vld [vmem:[#allocation2 + $0x6a] sm:$0xff]  ;;  %v7920_v13 = vld [vmem:[#allocation2 + $0x92] sm:$0xff] }
  0x3a   : > { %v7912_v11 = vld [vmem:[#allocation2 + $0x7a] sm:$0xff]  ;;  %v7924_v14 = vld [vmem:[#allocation2 + $0x82] sm:$0xff]  ;;  %v7928_v15 = vld [vmem:[#allocation2 + $0xaa] sm:$0xff] }
  0x3b   : > { %818 = vrot.lane.b32.xlu1 %v7790_v41, %s7535_s8  ;;  %824 = vrot.lane.b32.xlu0 %v7794_v42, %s7535_s8  ;;  %v7932_v16 = vld [vmem:[#allocation2 + $0x9a] sm:$0xff]  ;;  %v7936_v17 = vld [vmem:[#allocation2 + $0xc2] sm:$0xff]  ;;  %v7940_v18 = vld [vmem:[#allocation2 + $0xb2] sm:$0xff] }
  0x3c   : > { %v7944_v19 = vld [vmem:[#allocation2 + $0xda] sm:$0xff]  ;;  %v7948_v20 = vld [vmem:[#allocation2 + $0xca] sm:$0xff]  ;;  %v7952_v21 = vld [vmem:[#allocation2 + $0xf2] sm:$0xff] }
  0x3d   : > { %v7956_v22 = vld [vmem:[#allocation2 + $0xe2] sm:$0xff]  ;;  %v7960_v23 = vld [vmem:[#allocation2 + $0x10a] sm:$0xff]  ;;  %v7964_v24 = vld [vmem:[#allocation2 + $0xfa] sm:$0xff] }
  0x3e   : > { %v7968_v28 = vld [vmem:[#allocation2 + $0x122] sm:$0xff]  ;;  %v7972_v29 = vld [vmem:[#allocation2 + $0x112] sm:$0xff]  ;;  %v7976_v33 = vld [vmem:[#allocation2 + $0x13a] sm:$0xff] }
  0x3f   : > { %822 = vrot.lane.b32.xlu1 %v7798_v43, %s7535_s8  ;;  %828 = vrot.lane.b32.xlu0 %v7802_v44, %s7535_s8  ;;  %v7982_v35 = vld [vmem:[#allocation2 + $0x12a] sm:$0xff]  ;;  %v7986_v36 = vld [vmem:[#allocation2 + $0x152] sm:$0xff]  ;;  %v7992_v39 = vld [vmem:[#allocation2 + $0x142] sm:$0xff] }
  0x40   : > { %11628 = vst [vmem:[#allocation7_spill] sm:$0xff] %v7992_v39  ;;  %v7998_v62 = vld [vmem:[#allocation2 + $0x16a] sm:$0xff] }
  0x41   : > { %11630 = vst [vmem:[#allocation9_spill] sm:$0xff] %v7998_v62 }
  0x43   : > { %826 = vrot.lane.b32.xlu1 %v7806_v45, %s7535_s8  ;;  %832 = vrot.lane.b32.xlu0 %v7810_v46, %s7535_s8 }
  0x47   : > { %830 = vrot.lane.b32.xlu1 %v7814_v47, %s7535_s8  ;;  %836 = vrot.lane.b32.xlu0 %v7818_v48, %s7535_s8 }
  0x4b   : > { %834 = vrot.lane.b32.xlu1 %v7822_v49, %s7535_s8  ;;  %840 = vrot.lane.b32.xlu0 %v7826_v50, %s7535_s8 }
  0x4f   : > { %838 = vrot.lane.b32.xlu1 %v7830_v51, %s7535_s8  ;;  %844 = vrot.lane.b32.xlu0 %v7834_v52, %s7535_s8 }
  0x53   : > { %842 = vrot.lane.b32.xlu1 %v7838_v53, %s7535_s8  ;;  %848 = vrot.lane.b32.xlu0 %v7842_v54, %s7535_s8 }
  0x57   : > { %846 = vrot.lane.b32.xlu1 %v7846_v55, %s7535_s8  ;;  %852 = vrot.lane.b32.xlu0 %v7850_v56, %s7535_s8 }
  0x5b   : > { %850 = vrot.lane.b32.xlu1 %v7854_v57, %s7535_s8  ;;  %856 = vrot.lane.b32.xlu0 %v7860_v59, %s7535_s8 }
  0x5f   : > { %854 = vrot.lane.b32.xlu1 %v7864_v60, %s7535_s8  ;;  %860 = vrot.lane.b32.xlu0 %v7868_v61, %s7535_s8 }
  0x63   : > { %858 = vrot.lane.b32.xlu1 %v7874_v63, %s7535_s8  ;;  %928 = vrot.lane.b32.xlu0 %v543_v1, %s7536_s9 }
  0x67   : > { %862 = vrot.lane.b32.xlu1 %v7880_v2, %s7535_s8  ;;  %932 = vrot.lane.b32.xlu0 %v7883_v3, %s7536_s9 }
  0x6b   : > { %930 = vrot.lane.b32.xlu1 %v544_v4, %s7536_s9  ;;  %936 = vrot.lane.b32.xlu0 %v7889_v5, %s7536_s9  ;;  %v8004_v4 = vld [vmem:[#allocation2 + $0x15a] sm:$0xff] }
  0x6c   : > { %11632 = vst [vmem:[#allocation11_spill] sm:$0xff] %v8004_v4 }
  0x6f   : > { %934 = vrot.lane.b32.xlu1 %v7892_v6, %s7536_s9  ;;  %940 = vrot.lane.b32.xlu0 %v7896_v7, %s7536_s9 }
  0x73   : > { %938 = vrot.lane.b32.xlu1 %v7900_v8, %s7536_s9  ;;  %944 = vrot.lane.b32.xlu0 %v7904_v9, %s7536_s9 }
  0x77   : > { %942 = vrot.lane.b32.xlu1 %v7908_v10, %s7536_s9  ;;  %948 = vrot.lane.b32.xlu0 %v7912_v11, %s7536_s9 }
  0x7b   : > { %946 = vrot.lane.b32.xlu1 %v7916_v12, %s7536_s9  ;;  %952 = vrot.lane.b32.xlu0 %v7920_v13, %s7536_s9 }
  0x7f   : > { %950 = vrot.lane.b32.xlu1 %v7924_v14, %s7536_s9  ;;  %956 = vrot.lane.b32.xlu0 %v7928_v15, %s7536_s9 }
  0x83   : > { %954 = vrot.lane.b32.xlu1 %v7932_v16, %s7536_s9  ;;  %960 = vrot.lane.b32.xlu0 %v7936_v17, %s7536_s9 }
  0x87   : > { %958 = vrot.lane.b32.xlu1 %v7940_v18, %s7536_s9  ;;  %964 = vrot.lane.b32.xlu0 %v7944_v19, %s7536_s9 }
  0x88   : > { %v7978_v34 = vpop.permute.xlu0 %800 }
  0x89   : > { %11626 = vst [vmem:[#allocation5_spill] sm:$0xff] %v7978_v34  ;;  %v8014_v34 = vld [vmem:[#allocation2 + $0x172] sm:$0xff] }
  0x8a   : > { %11635 = vst [vmem:[#allocation14_spill] sm:$0xff] %v8014_v34 }
  0x8b   : > { %962 = vrot.lane.b32.xlu1 %v7948_v20, %s7536_s9  ;;  %968 = vrot.lane.b32.xlu0 %v7952_v21, %s7536_s9 }
  0x8c   : > { %v7988_v37 = vpop.permute.xlu0 %802 }
  0x8d   : > { %11627 = vst [vmem:[#allocation6_spill] sm:$0xff] %v7988_v37 }
  0x8f   : > { %966 = vrot.lane.b32.xlu1 %v7956_v22, %s7536_s9  ;;  %972 = vrot.lane.b32.xlu0 %v7960_v23, %s7536_s9 }
  0x93   : > { %970 = vrot.lane.b32.xlu1 %v7964_v24, %s7536_s9  ;;  %976 = vrot.lane.b32.xlu0 %v7968_v28, %s7536_s9 }
  0x97   : > { %974 = vrot.lane.b32.xlu1 %v7972_v29, %s7536_s9  ;;  %980 = vrot.lane.b32.xlu0 %v7976_v33, %s7536_s9 }
  0x9b   : > { %978 = vrot.lane.b32.xlu1 %v7982_v35, %s7536_s9  ;;  %984 = vrot.lane.b32.xlu0 %v7986_v36, %s7536_s9 }
  0x9d   : > { %v7996_v58 = vpop.permute.xlu1 %804  ;;  %v8000_v1 = vpop.permute.xlu0 %808 }
  0x9e   : > { %11629 = vst [vmem:[#allocation8_spill] sm:$0xff] %v7996_v58  ;;  %11631 = vst [vmem:[#allocation10_spill] sm:$0xff] %v8000_v1  ;;  %v481_v58 = vld [vmem:[#allocation2 + $0x18] sm:$0xff] }
  0x9f   : > { %982 = vrot.lane.b32.xlu1 %v7992_v39, %s7536_s9  ;;  %988 = vrot.lane.b32.xlu0 %v7998_v62, %s7536_s9  ;;  %v8023_v62 = vld [vmem:[#allocation2 + $0x30] sm:$0xff] }
  0xa0   : > { %11638 = vst [vmem:[#allocation17_spill] sm:$0xff] %v8023_v62 }
  0xa1   : > { %v8008_v0 = vpop.permute.xlu1 %806  ;;  %v8010_v37 = vpop.permute.xlu0 %812 }
  0xa2   : > { %11633 = vst [vmem:[#allocation12_spill] sm:$0xff] %v8008_v0  ;;  %11634 = vst [vmem:[#allocation13_spill] sm:$0xff] %v8010_v37  ;;  %v482_v0 = vld [vmem:[#allocation2 + $0x20] sm:$0xff] }
  0xa3   : > { %986 = vrot.lane.b32.xlu1 %v8004_v4, %s7536_s9  ;;  %1056 = vrot.lane.b32.xlu0 %v481_v58, %s7537_s10  ;;  %v8032_v58 = vld [vmem:[#allocation2 + $0x48] sm:$0xff] }
  0xa4   : > { %11641 = vst [vmem:[#allocation20_spill] sm:$0xff] %v8032_v58 }
  0xa5   : > { %v8017_v1 = vpop.permute.xlu1 %810  ;;  %v8019_v39 = vpop.permute.xlu0 %816 }
  0xa6   : > { %11636 = vst [vmem:[#allocation15_spill] sm:$0xff] %v8017_v1  ;;  %11637 = vst [vmem:[#allocation16_spill] sm:$0xff] %v8019_v39  ;;  %v8038_v1 = vld [vmem:[#allocation2 + $0x38] sm:$0xff] }
  0xa7   : > { %990 = vrot.lane.b32.xlu1 %v8014_v34, %s7536_s9  ;;  %1060 = vrot.lane.b32.xlu0 %v8023_v62, %s7537_s10  ;;  %11643 = vst [vmem:[#allocation22_spill] sm:$0xff] %v8038_v1 }
  0xa9   : > { %v8027_v37 = vpop.permute.xlu1 %814  ;;  %v8029_v4 = vpop.permute.xlu0 %820 }
  0xaa   : > { %11639 = vst [vmem:[#allocation18_spill] sm:$0xff] %v8027_v37  ;;  %11640 = vst [vmem:[#allocation19_spill] sm:$0xff] %v8029_v4  ;;  %v8044_v37 = vld [vmem:[#allocation2 + $0x60] sm:$0xff]  ;;  %v8050_v4 = vld [vmem:[#allocation2 + $0x50] sm:$0xff] }
  0xab   : > { %1058 = vrot.lane.b32.xlu1 %v482_v0, %s7537_s10  ;;  %1064 = vrot.lane.b32.xlu0 %v8032_v58, %s7537_s10  ;;  %11645 = vst [vmem:[#allocation24_spill] sm:$0xff] %v8044_v37  ;;  %11647 = vst [vmem:[#allocation26_spill] sm:$0xff] %v8050_v4 }
  0xad   : > { %v8036_v39 = vpop.permute.xlu1 %818  ;;  %v8040_v34 = vpop.permute.xlu0 %824 }
  0xae   : > { %11642 = vst [vmem:[#allocation21_spill] sm:$0xff] %v8036_v39  ;;  %11644 = vst [vmem:[#allocation23_spill] sm:$0xff] %v8040_v34  ;;  %v8056_v39 = vld [vmem:[#allocation2 + $0x78] sm:$0xff] }
  0xaf   : > { %1062 = vrot.lane.b32.xlu1 %v8038_v1, %s7537_s10  ;;  %1068 = vrot.lane.b32.xlu0 %v8044_v37, %s7537_s10  ;;  %11649 = vst [vmem:[#allocation28_spill] sm:$0xff] %v8056_v39  ;;  %v8062_v1 = vld [vmem:[#allocation2 + $0x68] sm:$0xff] }
  0xb0   : > { %11651 = vst [vmem:[#allocation30_spill] sm:$0xff] %v8062_v1 }
  0xb1   : > { %v8048_v0 = vpop.permute.xlu1 %822  ;;  %v8052_v62 = vpop.permute.xlu0 %828 }
  0xb2   : > { %11646 = vst [vmem:[#allocation25_spill] sm:$0xff] %v8048_v0  ;;  %11648 = vst [vmem:[#allocation27_spill] sm:$0xff] %v8052_v62  ;;  %v8068_v0 = vld [vmem:[#allocation2 + $0x90] sm:$0xff] }
  0xb3   : > { %1066 = vrot.lane.b32.xlu1 %v8050_v4, %s7537_s10  ;;  %1072 = vrot.lane.b32.xlu0 %v8056_v39, %s7537_s10  ;;  %11653 = vst [vmem:[#allocation32_spill] sm:$0xff] %v8068_v0  ;;  %v8074_v4 = vld [vmem:[#allocation2 + $0x80] sm:$0xff] }
  0xb4   : > { %11655 = vst [vmem:[#allocation34_spill] sm:$0xff] %v8074_v4 }
  0xb5   : > { %v8060_v34 = vpop.permute.xlu1 %826  ;;  %v8064_v58 = vpop.permute.xlu0 %832 }
  0xb6   : > { %11650 = vst [vmem:[#allocation29_spill] sm:$0xff] %v8060_v34  ;;  %11652 = vst [vmem:[#allocation31_spill] sm:$0xff] %v8064_v58  ;;  %v8080_v34 = vld [vmem:[#allocation2 + $0xa8] sm:$0xff] }
  0xb7   : > { %1070 = vrot.lane.b32.xlu1 %v8062_v1, %s7537_s10  ;;  %1076 = vrot.lane.b32.xlu0 %v8068_v0, %s7537_s10  ;;  %11657 = vst [vmem:[#allocation36_spill] sm:$0xff] %v8080_v34  ;;  %v8086_v1 = vld [vmem:[#allocation2 + $0x98] sm:$0xff] }
  0xb8   : > { %11659 = vst [vmem:[#allocation38_spill] sm:$0xff] %v8086_v1 }
  0xb9   : > { %v8072_v62 = vpop.permute.xlu1 %830  ;;  %v8076_v37 = vpop.permute.xlu0 %836 }
  0xba   : > { %11654 = vst [vmem:[#allocation33_spill] sm:$0xff] %v8072_v62  ;;  %11656 = vst [vmem:[#allocation35_spill] sm:$0xff] %v8076_v37  ;;  %v8092_v62 = vld [vmem:[#allocation2 + $0xc0] sm:$0xff] }
  0xbb   : > { %1074 = vrot.lane.b32.xlu1 %v8074_v4, %s7537_s10  ;;  %1080 = vrot.lane.b32.xlu0 %v8080_v34, %s7537_s10  ;;  %11661 = vst [vmem:[#allocation40_spill] sm:$0xff] %v8092_v62  ;;  %v8098_v4 = vld [vmem:[#allocation2 + $0xb0] sm:$0xff] }
  0xbc   : > { %11663 = vst [vmem:[#allocation42_spill] sm:$0xff] %v8098_v4 }
  0xbd   : > { %v8084_v58 = vpop.permute.xlu1 %834  ;;  %v8088_v39 = vpop.permute.xlu0 %840 }
  0xbe   : > { %11658 = vst [vmem:[#allocation37_spill] sm:$0xff] %v8084_v58  ;;  %11660 = vst [vmem:[#allocation39_spill] sm:$0xff] %v8088_v39  ;;  %v8104_v58 = vld [vmem:[#allocation2 + $0xd8] sm:$0xff] }
  0xbf   : > { %1078 = vrot.lane.b32.xlu1 %v8086_v1, %s7537_s10  ;;  %1084 = vrot.lane.b32.xlu0 %v8092_v62, %s7537_s10  ;;  %11665 = vst [vmem:[#allocation44_spill] sm:$0xff] %v8104_v58  ;;  %v8110_v1 = vld [vmem:[#allocation2 + $0xc8] sm:$0xff] }
  0xc0   : > { %11667 = vst [vmem:[#allocation46_spill] sm:$0xff] %v8110_v1 }
  0xc1   : > { %v8096_v37 = vpop.permute.xlu1 %838  ;;  %v8100_v0 = vpop.permute.xlu0 %844 }
  0xc2   : > { %11662 = vst [vmem:[#allocation41_spill] sm:$0xff] %v8096_v37  ;;  %11664 = vst [vmem:[#allocation43_spill] sm:$0xff] %v8100_v0  ;;  %v8116_v37 = vld [vmem:[#allocation2 + $0xf0] sm:$0xff] }
  0xc3   : > { %1082 = vrot.lane.b32.xlu1 %v8098_v4, %s7537_s10  ;;  %1088 = vrot.lane.b32.xlu0 %v8104_v58, %s7537_s10  ;;  %11669 = vst [vmem:[#allocation48_spill] sm:$0xff] %v8116_v37  ;;  %v8122_v4 = vld [vmem:[#allocation2 + $0xe0] sm:$0xff] }
  0xc4   : > { %11671 = vst [vmem:[#allocation50_spill] sm:$0xff] %v8122_v4 }
  0xc5   : > { %v8108_v39 = vpop.permute.xlu1 %842  ;;  %v8112_v34 = vpop.permute.xlu0 %848 }
  0xc6   : > { %11666 = vst [vmem:[#allocation45_spill] sm:$0xff] %v8108_v39  ;;  %11668 = vst [vmem:[#allocation47_spill] sm:$0xff] %v8112_v34  ;;  %v8128_v39 = vld [vmem:[#allocation2 + $0x108] sm:$0xff] }
  0xc7   : > { %1086 = vrot.lane.b32.xlu1 %v8110_v1, %s7537_s10  ;;  %1092 = vrot.lane.b32.xlu0 %v8116_v37, %s7537_s10  ;;  %11673 = vst [vmem:[#allocation52_spill] sm:$0xff] %v8128_v39  ;;  %v8134_v1 = vld [vmem:[#allocation2 + $0xf8] sm:$0xff] }
  0xc8   : > { %11675 = vst [vmem:[#allocation54_spill] sm:$0xff] %v8134_v1 }
  0xc9   : > { %v8120_v0 = vpop.permute.xlu1 %846  ;;  %v8124_v62 = vpop.permute.xlu0 %852 }
  0xca   : > { %11670 = vst [vmem:[#allocation49_spill] sm:$0xff] %v8120_v0  ;;  %11672 = vst [vmem:[#allocation51_spill] sm:$0xff] %v8124_v62  ;;  %v8140_v0 = vld [vmem:[#allocation2 + $0x120] sm:$0xff] }
  0xcb   : > { %1090 = vrot.lane.b32.xlu1 %v8122_v4, %s7537_s10  ;;  %1096 = vrot.lane.b32.xlu0 %v8128_v39, %s7537_s10  ;;  %11677 = vst [vmem:[#allocation56_spill] sm:$0xff] %v8140_v0  ;;  %v8146_v4 = vld [vmem:[#allocation2 + $0x110] sm:$0xff]  ;;  %v8200_v39 = vld [vmem:[#allocation2 + $0x180] sm:$0xff] }
  0xcc   : > { %11679 = vst [vmem:[#allocation58_spill] sm:$0xff] %v8146_v4 }
  0xcd   : > { %v8132_v34 = vpop.permute.xlu1 %850  ;;  %v8136_v58 = vpop.permute.xlu0 %856 }
  0xce   : > { %11674 = vst [vmem:[#allocation53_spill] sm:$0xff] %v8132_v34  ;;  %11676 = vst [vmem:[#allocation55_spill] sm:$0xff] %v8136_v58  ;;  %v8152_v34 = vld [vmem:[#allocation2 + $0x138] sm:$0xff] }
  0xcf   : > { %1094 = vrot.lane.b32.xlu1 %v8134_v1, %s7537_s10  ;;  %1100 = vrot.lane.b32.xlu0 %v8140_v0, %s7537_s10  ;;  %11681 = vst [vmem:[#allocation60_spill] sm:$0xff] %v8152_v34  ;;  %v8158_v1 = vld [vmem:[#allocation2 + $0x128] sm:$0xff] }
  0xd0   : > { %11683 = vst [vmem:[#allocation62_spill] sm:$0xff] %v8158_v1 }
  0xd1   : > { %v8144_v62 = vpop.permute.xlu1 %854  ;;  %v8148_v37 = vpop.permute.xlu0 %860 }
  0xd2   : > { %11678 = vst [vmem:[#allocation57_spill] sm:$0xff] %v8144_v62  ;;  %11680 = vst [vmem:[#allocation59_spill] sm:$0xff] %v8148_v37  ;;  %v11685_v62 = vmov 0.0   ;;  %v8180_v37 = vld [vmem:[#allocation2 + $0x150] sm:$0xff] }
  0xd3   : > { %1098 = vrot.lane.b32.xlu1 %v8146_v4, %s7537_s10  ;;  %1104 = vrot.lane.b32.xlu0 %v8152_v34, %s7537_s10  ;;  %326 = vst.msk [vmem:[#allocation3] sm:$0xff] %vm325_vm3, %v11685_v62  ;;  %327 = vst.msk [vmem:[#allocation3 + $0x8] sm:$0xff] %vm325_vm3, %v11685_v62  ;;  %v8192_v34 = vld [vmem:[#allocation2 + $0x168] sm:$0xff]  ;;  %v8198_v4 = vld [vmem:[#allocation2 + $0x158] sm:$0xff] }
  0xd4   : > { %331 = vst.msk [vmem:[#allocation3 + $0x198] sm:$0xff] %vm325_vm3, %v11685_v62  ;;  %332 = vst.msk [vmem:[#allocation3 + $0x1a0] sm:$0xff] %vm325_vm3, %v11685_v62 }
  0xd5   : > { %v8156_v58 = vpop.permute.xlu1 %858  ;;  %v8160_v0 = vpop.permute.xlu0 %928  ;;  %371 = vst.msk [vmem:[#allocation4] sm:$0xff] %vm325_vm3, %v11685_v62  ;;  %372 = vst.msk [vmem:[#allocation4 + $0x8] sm:$0xff] %vm325_vm3, %v11685_v62 }
  0xd6   : > { %11682 = vst [vmem:[#allocation61_spill] sm:$0xff] %v8156_v58  ;;  %11684 = vst [vmem:[#allocation63_spill] sm:$0xff] %v8160_v0  ;;  %v8186_v0 = vld [vmem:[#allocation2 + $0x140] sm:$0xff] }
  0xd7   : > { %1102 = vrot.lane.b32.xlu1 %v8158_v1, %s7537_s10  ;;  %375 = vst.msk [vmem:[#allocation4 + $0x198] sm:$0xff] %vm325_vm3, %v11685_v62  ;;  %376 = vst.msk [vmem:[#allocation4 + $0x1a0] sm:$0xff] %vm325_vm3, %v11685_v62  ;;  %1108 = vrot.lane.b32.xlu0 %v8180_v37, %s7537_s10 }
  0xd8   : > { %11686 = vst [vmem:[#allocation64_spill] sm:$0xff] %v8180_v37  ;;  %11688 = vst [vmem:[#allocation66_spill] sm:$0xff] %v8186_v0 }
  0xd9   : > { %v8184_v58 = vpop.permute.xlu1 %862  ;;  %v8188_v1 = vpop.permute.xlu0 %932  ;;  %11691 = vst [vmem:[#allocation69_spill] sm:$0xff] %v8198_v4 }
  0xda   : > { %11687 = vst [vmem:[#allocation65_spill] sm:$0xff] %v8184_v58  ;;  %11689 = vst [vmem:[#allocation67_spill] sm:$0xff] %v8188_v1  ;;  %v8210_v1 = vld [vmem:[#allocation2 + $0x170] sm:$0xff] }
  0xdb   : > { %1106 = vrot.lane.b32.xlu1 %v8186_v0, %s7537_s10  ;;  %1112 = vrot.lane.b32.xlu0 %v8192_v34, %s7537_s10 }
  0xdd   : > { %v8196_v62 = vpop.permute.xlu1 %930  ;;  %v8202_v37 = vpop.permute.xlu0 %936 }
  0xde   : > { %11690 = vst [vmem:[#allocation68_spill] sm:$0xff] %v8196_v62  ;;  %11692 = vst [vmem:[#allocation70_spill] sm:$0xff] %v8202_v37  ;;  %v8216_v62 = vld [vmem:[#allocation2 + $0x188] sm:$0xff] }
  0xdf   : > { %1110 = vrot.lane.b32.xlu1 %v8198_v4, %s7537_s10  ;;  %1116 = vrot.lane.b32.xlu0 %v8200_v39, %s7537_s10 }
  0xe1   : > { %v8208_v58 = vpop.permute.xlu1 %934  ;;  %v8212_v0 = vpop.permute.xlu0 %940 }
  0xe2   : > { %11693 = vst [vmem:[#allocation71_spill] sm:$0xff] %v8208_v58  ;;  %11694 = vst [vmem:[#allocation72_spill] sm:$0xff] %v8212_v0 }
  0xe3   : > { %1114 = vrot.lane.b32.xlu1 %v8210_v1, %s7537_s10  ;;  %1184 = vrot.lane.b32.xlu0 %v7741_v25, %s7538_s11 }
  0xe5   : > { %v8220_v37 = vpop.permute.xlu1 %938  ;;  %v8222_v4 = vpop.permute.xlu0 %944 }
  0xe6   : > { %11695 = vst [vmem:[#allocation73_spill] sm:$0xff] %v8220_v37  ;;  %11696 = vst [vmem:[#allocation74_spill] sm:$0xff] %v8222_v4 }
  0xe7   : > { %1118 = vrot.lane.b32.xlu1 %v8216_v62, %s7537_s10  ;;  %1188 = vrot.lane.b32.xlu0 %v7743_v26, %s7538_s11  ;;  %s7546_s10 = smov 80  }
  0xe9   : > { %v8228_v0 = vpop.permute.xlu1 %942  ;;  %v8230_v58 = vpop.permute.xlu0 %948 }
  0xeb   : > { %1186 = vrot.lane.b32.xlu1 %v7750_v27, %s7538_s11  ;;  %1192 = vrot.lane.b32.xlu0 %v7758_v30, %s7538_s11 }
  0xed   : > { %v8236_v25 = vpop.permute.xlu1 %946  ;;  %v8238_v37 = vpop.permute.xlu0 %952 }
  0xee   : > { %11697 = vst [vmem:[#allocation75_spill] sm:$0xff] %v8238_v37 }
  0xef   : > { %1190 = vrot.lane.b32.xlu1 %v7762_v31, %s7538_s11  ;;  %1196 = vrot.lane.b32.xlu0 %v7766_v32, %s7538_s11 }
  0xf1   : > { %v8244_v26 = vpop.permute.xlu1 %950  ;;  %v8246_v4 = vpop.permute.xlu0 %956 }
  0xf2   : > { %11698 = vst [vmem:[#allocation76_spill] sm:$0xff] %v8244_v26  ;;  %11699 = vst [vmem:[#allocation77_spill] sm:$0xff] %v8246_v4  ;;  %v742_v4 = vld [vmem:[#allocation2 + $0x7a] sm:$0xff] }
  0xf3   : > { %1194 = vrot.lane.b32.xlu1 %v7778_v38, %s7538_s11  ;;  %1200 = vrot.lane.b32.xlu0 %v7786_v40, %s7538_s11 }
  0xf5   : > { %v8252_v27 = vpop.permute.xlu1 %954  ;;  %v8254_v30 = vpop.permute.xlu0 %960 }
  0xf6   : > { %11700 = vst [vmem:[#allocation78_spill] sm:$0xff] %v8252_v27  ;;  %11701 = vst [vmem:[#allocation79_spill] sm:$0xff] %v8254_v30  ;;  %v744_v27 = vld [vmem:[#allocation2 + $0x92] sm:$0xff] }
  0xf7   : > { %1198 = vrot.lane.b32.xlu1 %v7790_v41, %s7538_s11  ;;  %1204 = vrot.lane.b32.xlu0 %v7794_v42, %s7538_s11 }
  0xf9   : > { %v8260_v31 = vpop.permute.xlu1 %958  ;;  %v8262_v32 = vpop.permute.xlu0 %964 }
  0xfa   : > { %11702 = vst [vmem:[#allocation80_spill] sm:$0xff] %v8260_v31  ;;  %11703 = vst [vmem:[#allocation81_spill] sm:$0xff] %v8262_v32  ;;  %v716_v31 = vld [vmem:[#allocation2 + $0xc1] sm:$0xff] }
  0xfb   : > { %1202 = vrot.lane.b32.xlu1 %v7798_v43, %s7538_s11  ;;  %1208 = vrot.lane.b32.xlu0 %v7802_v44, %s7538_s11 }
  0xfd   : > { %v8268_v38 = vpop.permute.xlu1 %962  ;;  %v8270_v40 = vpop.permute.xlu0 %968 }
  0xfe   : > { %11704 = vst [vmem:[#allocation82_spill] sm:$0xff] %v8268_v38  ;;  %11705 = vst [vmem:[#allocation83_spill] sm:$0xff] %v8270_v40  ;;  %v11764_v40 = vld [vmem:[#allocation42_spill] sm:$0xff] }
  0xff   : > { %1206 = vrot.lane.b32.xlu1 %v7806_v45, %s7538_s11  ;;  %1212 = vrot.lane.b32.xlu0 %v7810_v46, %s7538_s11  ;;  %v710_v38 = vld [vmem:[#allocation2 + $0x79] sm:$0xff] }
 0x101   : > { %v8276_v41 = vpop.permute.xlu1 %966  ;;  %v8278_v42 = vpop.permute.xlu0 %972 }
 0x102   : > { %11706 = vst [vmem:[#allocation84_spill] sm:$0xff] %v8276_v41  ;;  %11707 = vst [vmem:[#allocation85_spill] sm:$0xff] %v8278_v42  ;;  %v11756_v42 = vld [vmem:[#allocation34_spill] sm:$0xff] }
 0x103   : > { %1210 = vrot.lane.b32.xlu1 %v7814_v47, %s7538_s11  ;;  %1216 = vrot.lane.b32.xlu0 %v7818_v48, %s7538_s11 }
 0x105   : > { %v8284_v43 = vpop.permute.xlu1 %970  ;;  %v8286_v44 = vpop.permute.xlu0 %976 }
 0x106   : > { %11708 = vst [vmem:[#allocation86_spill] sm:$0xff] %v8284_v43  ;;  %11709 = vst [vmem:[#allocation87_spill] sm:$0xff] %v8286_v44  ;;  %v11749_v44 = vld [vmem:[#allocation28_spill] sm:$0xff] }
 0x107   : > { %1214 = vrot.lane.b32.xlu1 %v7822_v49, %s7538_s11  ;;  %1220 = vrot.lane.b32.xlu0 %v7826_v50, %s7538_s11 }
 0x109   : > { %v8292_v45 = vpop.permute.xlu1 %974  ;;  %v8294_v46 = vpop.permute.xlu0 %980 }
 0x10a   : > { %11710 = vst [vmem:[#allocation88_spill] sm:$0xff] %v8292_v45  ;;  %11711 = vst [vmem:[#allocation89_spill] sm:$0xff] %v8294_v46 }
 0x10b   : > { %1218 = vrot.lane.b32.xlu1 %v7830_v51, %s7538_s11  ;;  %1224 = vrot.lane.b32.xlu0 %v7834_v52, %s7538_s11 }
 0x10d   : > { %v8300_v47 = vpop.permute.xlu1 %978  ;;  %v8302_v48 = vpop.permute.xlu0 %984 }
 0x10e   : > { %11712 = vst [vmem:[#allocation90_spill] sm:$0xff] %v8300_v47  ;;  %11713 = vst [vmem:[#allocation91_spill] sm:$0xff] %v8302_v48  ;;  %v11746_v47 = vld [vmem:[#allocation24_spill] sm:$0xff] }
 0x10f   : > { %1222 = vrot.lane.b32.xlu1 %v7838_v53, %s7538_s11  ;;  %1228 = vrot.lane.b32.xlu0 %v7842_v54, %s7538_s11 }
 0x111   : > { %v8308_v49 = vpop.permute.xlu1 %982  ;;  %v8310_v50 = vpop.permute.xlu0 %988 }
 0x112   : > { %11714 = vst [vmem:[#allocation92_spill] sm:$0xff] %v8308_v49  ;;  %11715 = vst [vmem:[#allocation93_spill] sm:$0xff] %v8310_v50 }
 0x113   : > { %1226 = vrot.lane.b32.xlu1 %v7846_v55, %s7538_s11  ;;  %1232 = vrot.lane.b32.xlu0 %v7850_v56, %s7538_s11  ;;  %v8334_v56 = vld [vmem:[#allocation2 + $0x181] sm:$0xff] }
 0x115   : > { %v8316_v51 = vpop.permute.xlu1 %986  ;;  %v8318_v52 = vpop.permute.xlu0 %1056 }
 0x116   : > { %11716 = vst [vmem:[#allocation94_spill] sm:$0xff] %v8316_v51 }
 0x117   : > { %1230 = vrot.lane.b32.xlu1 %v7854_v57, %s7538_s11  ;;  %1236 = vrot.lane.b32.xlu0 %v7860_v59, %s7538_s11 }
 0x119   : > { %v8324_v53 = vpop.permute.xlu1 %990  ;;  %v8326_v54 = vpop.permute.xlu0 %1060 }
 0x11a   : > { %11717 = vst [vmem:[#allocation95_spill] sm:$0xff] %v8324_v53 }
 0x11b   : > { %1234 = vrot.lane.b32.xlu1 %v7864_v60, %s7538_s11  ;;  %1240 = vrot.lane.b32.xlu0 %v7868_v61, %s7538_s11  ;;  %v8348_v60 = vld [vmem:[#allocation2 + $0x189] sm:$0xff] }
 0x11d   : > { %v8332_v55 = vpop.permute.xlu1 %1058  ;;  %v8336_v50 = vpop.permute.xlu0 %1064 }
 0x11f   : > { %1238 = vrot.lane.b32.xlu1 %v7874_v63, %s7538_s11  ;;  %1244 = vrot.lane.b32.xlu0 %v8334_v56, %s7538_s11 }
 0x121   : > { %v8342_v57 = vpop.permute.xlu1 %1062  ;;  %v8344_v59 = vpop.permute.xlu0 %1068 }
 0x123   : > { %1242 = vrot.lane.b32.xlu1 %v7880_v2, %s7538_s11  ;;  %1312 = vrot.lane.b32.xlu0 %v7883_v3, %s7539_s12 }
 0x125   : > { %v8352_v61 = vpop.permute.xlu1 %1066  ;;  %v8354_v53 = vpop.permute.xlu0 %1072 }
 0x127   : > { %1246 = vrot.lane.b32.xlu1 %v8348_v60, %s7538_s11  ;;  %1316 = vrot.lane.b32.xlu0 %v7889_v5, %s7539_s12 }
 0x129   : > { %v8360_v63 = vpop.permute.xlu1 %1070  ;;  %v8362_v51 = vpop.permute.xlu0 %1076 }
 0x12b   : > { %1314 = vrot.lane.b32.xlu1 %v7892_v6, %s7539_s12  ;;  %1320 = vrot.lane.b32.xlu0 %v7896_v7, %s7539_s12 }
 0x12d   : > { %v8368_v2 = vpop.permute.xlu1 %1074  ;;  %v8370_v3 = vpop.permute.xlu0 %1080 }
 0x12e   : > { %11718 = vst [vmem:[#allocation96_spill] sm:$0xff] %v8370_v3 }
 0x12f   : > { %1318 = vrot.lane.b32.xlu1 %v7900_v8, %s7539_s12  ;;  %1324 = vrot.lane.b32.xlu0 %v7904_v9, %s7539_s12 }
 0x131   : > { %v8376_v5 = vpop.permute.xlu1 %1078  ;;  %v8378_v48 = vpop.permute.xlu0 %1084 }
 0x132   : > { %11719 = vst [vmem:[#allocation97_spill] sm:$0xff] %v8376_v5  ;;  %11720 = vst [vmem:[#allocation98_spill] sm:$0xff] %v8378_v48  ;;  %v740_v48 = vld [vmem:[#allocation2 + $0x62] sm:$0xff] }
 0x133   : > { %1322 = vrot.lane.b32.xlu1 %v7908_v10, %s7539_s12  ;;  %1328 = vrot.lane.b32.xlu0 %v7912_v11, %s7539_s12 }
 0x135   : > { %v8384_v6 = vpop.permute.xlu1 %1082  ;;  %v8386_v7 = vpop.permute.xlu0 %1088 }
 0x136   : > { %11721 = vst [vmem:[#allocation99_spill] sm:$0xff] %v8384_v6  ;;  %11722 = vst [vmem:[#allocation100_spill] sm:$0xff] %v8386_v7 }
 0x137   : > { %1326 = vrot.lane.b32.xlu1 %v7916_v12, %s7539_s12  ;;  %1332 = vrot.lane.b32.xlu0 %v7920_v13, %s7539_s12 }
 0x139   : > { %v8392_v8 = vpop.permute.xlu1 %1086  ;;  %v8394_v9 = vpop.permute.xlu0 %1092 }
 0x13a   : > { %11723 = vst [vmem:[#allocation101_spill] sm:$0xff] %v8392_v8  ;;  %11724 = vst [vmem:[#allocation102_spill] sm:$0xff] %v8394_v9  ;;  %v714_v8 = vld [vmem:[#allocation2 + $0xa9] sm:$0xff] }
 0x13b   : > { %1330 = vrot.lane.b32.xlu1 %v7924_v14, %s7539_s12  ;;  %1336 = vrot.lane.b32.xlu0 %v7928_v15, %s7539_s12 }
 0x13d   : > { %v8400_v10 = vpop.permute.xlu1 %1090  ;;  %v8402_v11 = vpop.permute.xlu0 %1096 }
 0x13e   : > { %11725 = vst [vmem:[#allocation103_spill] sm:$0xff] %v8400_v10  ;;  %11726 = vst [vmem:[#allocation104_spill] sm:$0xff] %v8402_v11  ;;  %v11760_v11 = vld [vmem:[#allocation38_spill] sm:$0xff]  ;;  %v708_v10 = vld [vmem:[#allocation2 + $0x61] sm:$0xff] }
 0x13f   : > { %1334 = vrot.lane.b32.xlu1 %v7932_v16, %s7539_s12  ;;  %1340 = vrot.lane.b32.xlu0 %v7936_v17, %s7539_s12 }
 0x141   : > { %v8408_v12 = vpop.permute.xlu1 %1094  ;;  %v8410_v13 = vpop.permute.xlu0 %1100 }
 0x142   : > { %11727 = vst [vmem:[#allocation105_spill] sm:$0xff] %v8408_v12  ;;  %11728 = vst [vmem:[#allocation106_spill] sm:$0xff] %v8410_v13  ;;  %v11752_v13 = vld [vmem:[#allocation30_spill] sm:$0xff] }
 0x143   : > { %1338 = vrot.lane.b32.xlu1 %v7940_v18, %s7539_s12  ;;  %1344 = vrot.lane.b32.xlu0 %v7944_v19, %s7539_s12 }
 0x145   : > { %v8416_v14 = vpop.permute.xlu1 %1098  ;;  %v8418_v15 = vpop.permute.xlu0 %1104 }
 0x146   : > { %11729 = vst [vmem:[#allocation107_spill] sm:$0xff] %v8416_v14  ;;  %11730 = vst [vmem:[#allocation108_spill] sm:$0xff] %v8418_v15 }
 0x147   : > { %1342 = vrot.lane.b32.xlu1 %v7948_v20, %s7539_s12  ;;  %1348 = vrot.lane.b32.xlu0 %v7952_v21, %s7539_s12 }
 0x149   : > { %v8424_v16 = vpop.permute.xlu1 %1102  ;;  %v8426_v17 = vpop.permute.xlu0 %1108 }
 0x14a   : > { %11731 = vst [vmem:[#allocation109_spill] sm:$0xff] %v8424_v16  ;;  %11732 = vst [vmem:[#allocation110_spill] sm:$0xff] %v8426_v17  ;;  %v11748_v16 = vld [vmem:[#allocation26_spill] sm:$0xff] }
 0x14b   : > { %1346 = vrot.lane.b32.xlu1 %v7956_v22, %s7539_s12  ;;  %1352 = vrot.lane.b32.xlu0 %v7960_v23, %s7539_s12 }
 0x14d   : > { %v8432_v18 = vpop.permute.xlu1 %1106  ;;  %v8434_v19 = vpop.permute.xlu0 %1112 }
 0x14e   : > { %11733 = vst [vmem:[#allocation111_spill] sm:$0xff] %v8432_v18  ;;  %11734 = vst [vmem:[#allocation112_spill] sm:$0xff] %v8434_v19 }
 0x14f   : > { %1350 = vrot.lane.b32.xlu1 %v7964_v24, %s7539_s12  ;;  %1356 = vrot.lane.b32.xlu0 %v7968_v28, %s7539_s12 }
 0x151   : > { %v8440_v20 = vpop.permute.xlu1 %1110  ;;  %v8442_v21 = vpop.permute.xlu0 %1116 }
 0x152   : > { %11735 = vst [vmem:[#allocation113_spill] sm:$0xff] %v8440_v20  ;;  %11736 = vst [vmem:[#allocation114_spill] sm:$0xff] %v8442_v21  ;;  %v11739_v21 = vld [vmem:[#allocation7_spill] sm:$0xff]  ;;  %v11743_v20 = vld [vmem:[#allocation17_spill] sm:$0xff] }
 0x153   : > { %1354 = vrot.lane.b32.xlu1 %v7972_v29, %s7539_s12  ;;  %1360 = vrot.lane.b32.xlu0 %v7976_v33, %s7539_s12  ;;  %v11740_v29 = vld [vmem:[#allocation9_spill] sm:$0xff] }
 0x155   : > { %v8448_v22 = vpop.permute.xlu1 %1114  ;;  %v8450_v23 = vpop.permute.xlu0 %1184 }
 0x156   : > { %11737 = vst [vmem:[#allocation115_spill] sm:$0xff] %v8448_v22  ;;  %v8466_v22 = vld [vmem:[#allocation2 + $0x182] sm:$0xff] }
 0x157   : > { %1358 = vrot.lane.b32.xlu1 %v7982_v35, %s7539_s12  ;;  %1364 = vrot.lane.b32.xlu0 %v7986_v36, %s7539_s12  ;;  %v11741_v35 = vld [vmem:[#allocation11_spill] sm:$0xff] }
 0x159   : > { %v8456_v24 = vpop.permute.xlu1 %1118  ;;  %v8458_v28 = vpop.permute.xlu0 %1188 }
 0x15a   : > { %11738 = vst [vmem:[#allocation116_spill] sm:$0xff] %v8456_v24 }
 0x15b   : > { %1362 = vrot.lane.b32.xlu1 %v11739_v21, %s7539_s12  ;;  %1368 = vrot.lane.b32.xlu0 %v11740_v29, %s7539_s12  ;;  %v11742_v21 = vld [vmem:[#allocation14_spill] sm:$0xff]  ;;  %v8480_v29 = vld [vmem:[#allocation2 + $0x18a] sm:$0xff] }
 0x15d   : > { %v8464_v33 = vpop.permute.xlu1 %1186  ;;  %v8468_v19 = vpop.permute.xlu0 %1192 }
 0x15f   : > { %1366 = vrot.lane.b32.xlu1 %v11741_v35, %s7539_s12  ;;  %1372 = vrot.lane.b32.xlu0 %v8466_v22, %s7539_s12  ;;  %v11744_v35 = vld [vmem:[#allocation20_spill] sm:$0xff] }
 0x161   : > { %v8474_v36 = vpop.permute.xlu1 %1190  ;;  %v8476_v24 = vpop.permute.xlu0 %1196 }
 0x163   : > { %1370 = vrot.lane.b32.xlu1 %v11742_v21, %s7539_s12  ;;  %1440 = vrot.lane.b32.xlu0 %v11743_v20, %s7540_s13  ;;  %v11745_v21 = vld [vmem:[#allocation22_spill] sm:$0xff] }
 0x165   : > { %v8484_v49 = vpop.permute.xlu1 %1194  ;;  %v8486_v17 = vpop.permute.xlu0 %1200 }
 0x167   : > { %1374 = vrot.lane.b32.xlu1 %v8480_v29, %s7539_s12  ;;  %1444 = vrot.lane.b32.xlu0 %v11744_v35, %s7540_s13  ;;  %s7547_s12 = smov 96  }
 0x169   : > { %v8492_v18 = vpop.permute.xlu1 %1198  ;;  %v8494_v46 = vpop.permute.xlu0 %1204 }
 0x16b   : > { %1442 = vrot.lane.b32.xlu1 %v11745_v21, %s7540_s13  ;;  %1448 = vrot.lane.b32.xlu0 %v11746_v47, %s7540_s13  ;;  %v11753_v21 = vld [vmem:[#allocation32_spill] sm:$0xff] }
 0x16d   : > { %v8500_v20 = vpop.permute.xlu1 %1202  ;;  %v8502_v15 = vpop.permute.xlu0 %1208 }
 0x16e   : > { %11747 = vst [vmem:[#allocation7_spill] sm:$0xff] %v8502_v15  ;;  %v746_v15 = vld [vmem:[#allocation2 + $0xaa] sm:$0xff] }
 0x16f   : > { %1446 = vrot.lane.b32.xlu1 %v11748_v16, %s7540_s13  ;;  %1452 = vrot.lane.b32.xlu0 %v11749_v44, %s7540_s13  ;;  %v11757_v16 = vld [vmem:[#allocation36_spill] sm:$0xff] }
 0x171   : > { %v8508_v35 = vpop.permute.xlu1 %1206  ;;  %v8510_v45 = vpop.permute.xlu0 %1212 }
 0x172   : > { %11750 = vst [vmem:[#allocation9_spill] sm:$0xff] %v8508_v35  ;;  %11751 = vst [vmem:[#allocation11_spill] sm:$0xff] %v8510_v45 }
 0x173   : > { %1450 = vrot.lane.b32.xlu1 %v11752_v13, %s7540_s13  ;;  %1456 = vrot.lane.b32.xlu0 %v11753_v21, %s7540_s13  ;;  %v11761_v13 = vld [vmem:[#allocation40_spill] sm:$0xff] }
 0x175   : > { %v8516_v47 = vpop.permute.xlu1 %1210  ;;  %v8518_v14 = vpop.permute.xlu0 %1216 }
 0x176   : > { %11754 = vst [vmem:[#allocation14_spill] sm:$0xff] %v8516_v47  ;;  %11755 = vst [vmem:[#allocation17_spill] sm:$0xff] %v8518_v14 }
 0x177   : > { %1454 = vrot.lane.b32.xlu1 %v11756_v42, %s7540_s13  ;;  %1460 = vrot.lane.b32.xlu0 %v11757_v16, %s7540_s13  ;;  %v11765_v42 = vld [vmem:[#allocation44_spill] sm:$0xff] }
 0x179   : > { %v8524_v44 = vpop.permute.xlu1 %1214  ;;  %v8526_v43 = vpop.permute.xlu0 %1220 }
 0x17a   : > { %11758 = vst [vmem:[#allocation20_spill] sm:$0xff] %v8524_v44  ;;  %11759 = vst [vmem:[#allocation22_spill] sm:$0xff] %v8526_v43  ;;  %v11768_v43 = vld [vmem:[#allocation46_spill] sm:$0xff] }
 0x17b   : > { %1458 = vrot.lane.b32.xlu1 %v11760_v11, %s7540_s13  ;;  %1464 = vrot.lane.b32.xlu0 %v11761_v13, %s7540_s13  ;;  %v11769_v11 = vld [vmem:[#allocation48_spill] sm:$0xff]  ;;  %v712_v44 = vld [vmem:[#allocation2 + $0x91] sm:$0xff] }
 0x17d   : > { %v8532_v21 = vpop.permute.xlu1 %1218  ;;  %v8534_v12 = vpop.permute.xlu0 %1224 }
 0x17e   : > { %11762 = vst [vmem:[#allocation24_spill] sm:$0xff] %v8532_v21  ;;  %11763 = vst [vmem:[#allocation26_spill] sm:$0xff] %v8534_v12  ;;  %v11772_v12 = vld [vmem:[#allocation50_spill] sm:$0xff] }
 0x17f   : > { %1462 = vrot.lane.b32.xlu1 %v11764_v40, %s7540_s13  ;;  %1468 = vrot.lane.b32.xlu0 %v11765_v42, %s7540_s13  ;;  %v11773_v40 = vld [vmem:[#allocation52_spill] sm:$0xff] }
 0x181   : > { %v8540_v16 = vpop.permute.xlu1 %1222  ;;  %v8542_v41 = vpop.permute.xlu0 %1228 }
 0x182   : > { %11766 = vst [vmem:[#allocation28_spill] sm:$0xff] %v8540_v16  ;;  %11767 = vst [vmem:[#allocation30_spill] sm:$0xff] %v8542_v41  ;;  %v11776_v41 = vld [vmem:[#allocation54_spill] sm:$0xff] }
 0x183   : > { %1466 = vrot.lane.b32.xlu1 %v11768_v43, %s7540_s13  ;;  %1472 = vrot.lane.b32.xlu0 %v11769_v11, %s7540_s13  ;;  %v11777_v43 = vld [vmem:[#allocation56_spill] sm:$0xff] }
 0x185   : > { %v8548_v13 = vpop.permute.xlu1 %1226  ;;  %v8550_v21 = vpop.permute.xlu0 %1232 }
 0x186   : > { %11770 = vst [vmem:[#allocation32_spill] sm:$0xff] %v8548_v13  ;;  %11771 = vst [vmem:[#allocation34_spill] sm:$0xff] %v8550_v21  ;;  %v11780_v21 = vld [vmem:[#allocation58_spill] sm:$0xff] }
 0x187   : > { %1470 = vrot.lane.b32.xlu1 %v11772_v12, %s7540_s13  ;;  %1476 = vrot.lane.b32.xlu0 %v11773_v40, %s7540_s13  ;;  %v11781_v12 = vld [vmem:[#allocation60_spill] sm:$0xff] }
 0x189   : > { %v8556_v42 = vpop.permute.xlu1 %1230  ;;  %v8558_v16 = vpop.permute.xlu0 %1236 }
 0x18a   : > { %11774 = vst [vmem:[#allocation36_spill] sm:$0xff] %v8556_v42  ;;  %11775 = vst [vmem:[#allocation38_spill] sm:$0xff] %v8558_v16  ;;  %v11784_v16 = vld [vmem:[#allocation62_spill] sm:$0xff] }
 0x18b   : > { %1474 = vrot.lane.b32.xlu1 %v11776_v41, %s7540_s13  ;;  %1480 = vrot.lane.b32.xlu0 %v11777_v43, %s7540_s13  ;;  %v11785_v41 = vld [vmem:[#allocation64_spill] sm:$0xff] }
 0x18d   : > { %v8564_v11 = vpop.permute.xlu1 %1234  ;;  %v8566_v13 = vpop.permute.xlu0 %1240 }
 0x18e   : > { %11778 = vst [vmem:[#allocation40_spill] sm:$0xff] %v8564_v11  ;;  %11779 = vst [vmem:[#allocation42_spill] sm:$0xff] %v8566_v13  ;;  %v11787_v13 = vld [vmem:[#allocation66_spill] sm:$0xff] }
 0x18f   : > { %1478 = vrot.lane.b32.xlu1 %v11780_v21, %s7540_s13  ;;  %1484 = vrot.lane.b32.xlu0 %v11781_v12, %s7540_s13 }
 0x191   : > { %v8572_v40 = vpop.permute.xlu1 %1238  ;;  %v8574_v42 = vpop.permute.xlu0 %1244 }
 0x192   : > { %11782 = vst [vmem:[#allocation44_spill] sm:$0xff] %v8572_v40  ;;  %11783 = vst [vmem:[#allocation46_spill] sm:$0xff] %v8574_v42  ;;  %v11789_v42 = vld [vmem:[#allocation69_spill] sm:$0xff] }
 0x193   : > { %1482 = vrot.lane.b32.xlu1 %v11784_v16, %s7540_s13  ;;  %1488 = vrot.lane.b32.xlu0 %v11785_v41, %s7540_s13  ;;  %v702_v41 = vld [vmem:[#allocation2 + $0x198] sm:$0xff]  ;;  %v706_v40 = vld [vmem:[#allocation2 + $0x49] sm:$0xff] }
 0x195   : > { %v8580_v43 = vpop.permute.xlu1 %1242  ;;  %v8582_v11 = vpop.permute.xlu0 %1312 }
 0x196   : > { %11786 = vst [vmem:[#allocation48_spill] sm:$0xff] %v8580_v43 }
 0x197   : > { %1486 = vrot.lane.b32.xlu1 %v11787_v13, %s7540_s13  ;;  %1492 = vrot.lane.b32.xlu0 %v8192_v34, %s7540_s13  ;;  %v704_v13 = vld [vmem:[#allocation2 + $0x31] sm:$0xff] }
 0x199   : > { %v8588_v21 = vpop.permute.xlu1 %1246  ;;  %v8590_v12 = vpop.permute.xlu0 %1316 }
 0x19a   : > { %11788 = vst [vmem:[#allocation50_spill] sm:$0xff] %v8588_v21 }
 0x19b   : > { %1490 = vrot.lane.b32.xlu1 %v11789_v42, %s7540_s13  ;;  %1496 = vrot.lane.b32.xlu0 %v8200_v39, %s7540_s13  ;;  %v703_v42 = vld [vmem:[#allocation2 + $0x1a0] sm:$0xff] }
 0x19d   : > { %v8596_v16 = vpop.permute.xlu1 %1314  ;;  %v8598_v43 = vpop.permute.xlu0 %1320 }
 0x19f   : > { %1494 = vrot.lane.b32.xlu1 %v8210_v1, %s7540_s13  ;;  %1500 = vrot.lane.b32.xlu0 %v702_v41, %s7540_s13  ;;  %v705_v1 = vld [vmem:[#allocation2 + $0x39] sm:$0xff] }
 0x1a1   : > { %v8603_v34 = vpop.permute.xlu1 %1318  ;;  %v8605_v21 = vpop.permute.xlu0 %1324 }
 0x1a3   : > { %1498 = vrot.lane.b32.xlu1 %v8216_v62, %s7540_s13  ;;  %1568 = vrot.lane.b32.xlu0 %v704_v13, %s7541_s14  ;;  %v707_v62 = vld [vmem:[#allocation2 + $0x51] sm:$0xff] }
 0x1a5   : > { %v8610_v39 = vpop.permute.xlu1 %1322  ;;  %v8612_v9 = vpop.permute.xlu0 %1328 }
 0x1a7   : > { %1502 = vrot.lane.b32.xlu1 %v703_v42, %s7540_s13  ;;  %1572 = vrot.lane.b32.xlu0 %v706_v40, %s7541_s14  ;;  %v709_v42 = vld [vmem:[#allocation2 + $0x69] sm:$0xff]  ;;  %s7548_s13 = smov 112  }
 0x1a9   : > { %v8616_v41 = vpop.permute.xlu1 %1326  ;;  %v8618_v32 = vpop.permute.xlu0 %1332 }
 0x1aa   : > { %11790 = vst [vmem:[#allocation52_spill] sm:$0xff] %v8618_v32 }
 0x1ab   : > { %1570 = vrot.lane.b32.xlu1 %v705_v1, %s7541_s14  ;;  %1576 = vrot.lane.b32.xlu0 %v708_v10, %s7541_s14  ;;  %v711_v1 = vld [vmem:[#allocation2 + $0x81] sm:$0xff] }
 0x1ad   : > { %v8622_v13 = vpop.permute.xlu1 %1330  ;;  %v8624_v14 = vpop.permute.xlu0 %1336 }
 0x1ae   : > { %11791 = vst [vmem:[#allocation54_spill] sm:$0xff] %v8622_v13  ;;  %11792 = vst [vmem:[#allocation56_spill] sm:$0xff] %v8624_v14 }
 0x1af   : > { %1574 = vrot.lane.b32.xlu1 %v707_v62, %s7541_s14  ;;  %1580 = vrot.lane.b32.xlu0 %v710_v38, %s7541_s14  ;;  %v713_v62 = vld [vmem:[#allocation2 + $0x99] sm:$0xff] }
 0x1b1   : > { %v8628_v40 = vpop.permute.xlu1 %1334  ;;  %v8630_v7 = vpop.permute.xlu0 %1340 }
 0x1b2   : > { %11793 = vst [vmem:[#allocation58_spill] sm:$0xff] %v8628_v40  ;;  %11794 = vst [vmem:[#allocation60_spill] sm:$0xff] %v8630_v7  ;;  %v718_v7 = vld [vmem:[#allocation2 + $0xd9] sm:$0xff] }
 0x1b3   : > { %1578 = vrot.lane.b32.xlu1 %v709_v42, %s7541_s14  ;;  %1584 = vrot.lane.b32.xlu0 %v712_v44, %s7541_s14  ;;  %v715_v42 = vld [vmem:[#allocation2 + $0xb1] sm:$0xff] }
 0x1b5   : > { %v8634_v10 = vpop.permute.xlu1 %1338  ;;  %v8636_v30 = vpop.permute.xlu0 %1344 }
 0x1b6   : > { %11795 = vst [vmem:[#allocation62_spill] sm:$0xff] %v8634_v10  ;;  %11796 = vst [vmem:[#allocation64_spill] sm:$0xff] %v8636_v30  ;;  %v720_v30 = vld [vmem:[#allocation2 + $0xf1] sm:$0xff] }
 0x1b7   : > { %1582 = vrot.lane.b32.xlu1 %v711_v1, %s7541_s14  ;;  %1588 = vrot.lane.b32.xlu0 %v714_v8, %s7541_s14  ;;  %v717_v1 = vld [vmem:[#allocation2 + $0xc9] sm:$0xff] }
 0x1b9   : > { %v8640_v38 = vpop.permute.xlu1 %1342  ;;  %v8642_v45 = vpop.permute.xlu0 %1348 }
 0x1ba   : > { %11797 = vst [vmem:[#allocation66_spill] sm:$0xff] %v8640_v38  ;;  %11798 = vst [vmem:[#allocation69_spill] sm:$0xff] %v8642_v45  ;;  %v722_v45 = vld [vmem:[#allocation2 + $0x109] sm:$0xff] }
 0x1bb   : > { %1586 = vrot.lane.b32.xlu1 %v713_v62, %s7541_s14  ;;  %1592 = vrot.lane.b32.xlu0 %v716_v31, %s7541_s14  ;;  %v719_v62 = vld [vmem:[#allocation2 + $0xe1] sm:$0xff] }
 0x1bd   : > { %v8646_v44 = vpop.permute.xlu1 %1346  ;;  %v8648_v10 = vpop.permute.xlu0 %1352 }
 0x1be   : > { %11799 = vst [vmem:[#allocation117_spill] sm:$0xff] %v8646_v44  ;;  %11800 = vst [vmem:[#allocation118_spill] sm:$0xff] %v8648_v10  ;;  %v724_v10 = vld [vmem:[#allocation2 + $0x121] sm:$0xff] }
 0x1bf   : > { %1590 = vrot.lane.b32.xlu1 %v715_v42, %s7541_s14  ;;  %1596 = vrot.lane.b32.xlu0 %v718_v7, %s7541_s14  ;;  %v721_v42 = vld [vmem:[#allocation2 + $0xf9] sm:$0xff] }
 0x1c1   : > { %v8652_v8 = vpop.permute.xlu1 %1350  ;;  %v8654_v38 = vpop.permute.xlu0 %1356 }
 0x1c2   : > { %11801 = vst [vmem:[#allocation119_spill] sm:$0xff] %v8652_v8  ;;  %11802 = vst [vmem:[#allocation120_spill] sm:$0xff] %v8654_v38  ;;  %v726_v38 = vld [vmem:[#allocation2 + $0x139] sm:$0xff] }
 0x1c3   : > { %1594 = vrot.lane.b32.xlu1 %v717_v1, %s7541_s14  ;;  %1600 = vrot.lane.b32.xlu0 %v720_v30, %s7541_s14  ;;  %v723_v1 = vld [vmem:[#allocation2 + $0x111] sm:$0xff] }
 0x1c5   : > { %v8658_v31 = vpop.permute.xlu1 %1354  ;;  %v8660_v44 = vpop.permute.xlu0 %1360 }
 0x1c6   : > { %11803 = vst [vmem:[#allocation121_spill] sm:$0xff] %v8658_v31  ;;  %11804 = vst [vmem:[#allocation122_spill] sm:$0xff] %v8660_v44  ;;  %v728_v44 = vld [vmem:[#allocation2 + $0x151] sm:$0xff] }
 0x1c7   : > { %1598 = vrot.lane.b32.xlu1 %v719_v62, %s7541_s14  ;;  %1604 = vrot.lane.b32.xlu0 %v722_v45, %s7541_s14  ;;  %v725_v62 = vld [vmem:[#allocation2 + $0x129] sm:$0xff] }
 0x1c9   : > { %v8664_v7 = vpop.permute.xlu1 %1358  ;;  %v8666_v8 = vpop.permute.xlu0 %1364 }
 0x1ca   : > { %11805 = vst [vmem:[#allocation123_spill] sm:$0xff] %v8664_v7  ;;  %11806 = vst [vmem:[#allocation124_spill] sm:$0xff] %v8666_v8  ;;  %v2057_v7 = vld [vmem:[%s11538_s1 + $0x18] sm:$0xff] }
 0x1cb   : > { %1602 = vrot.lane.b32.xlu1 %v721_v42, %s7541_s14  ;;  %1608 = vrot.lane.b32.xlu0 %v724_v10, %s7541_s14  ;;  %v2054_v42 = vld [vmem:[%s11538_s1] sm:$0xff]  ;;  %v2055_v10 = vld [vmem:[%s11538_s1 + $0x8] sm:$0xff] }
 0x1cd   : > { %v8670_v30 = vpop.permute.xlu1 %1362  ;;  %v8672_v31 = vpop.permute.xlu0 %1368 }
 0x1ce   : > { %11807 = vst [vmem:[#allocation125_spill] sm:$0xff] %v8670_v30  ;;  %11808 = vst [vmem:[#allocation126_spill] sm:$0xff] %v8672_v31  ;;  %v6200_v31 = vpack.c.bf16 %v2055_v10, %v2054_v42  ;;  %v2056_v30 = vld [vmem:[%s11538_s1 + $0x10] sm:$0xff]  ;;  %v729_v42 = vld [vmem:[#allocation2 + $0x159] sm:$0xff] }
 0x1cf   : > { %1606 = vrot.lane.b32.xlu1 %v723_v1, %s7541_s14  ;;  %1612 = vrot.lane.b32.xlu0 %v726_v38, %s7541_s14  ;;  %v727_v1 = vld [vmem:[#allocation2 + $0x141] sm:$0xff]  ;;  %v731_v10 = vld [vmem:[#allocation2 + $0x171] sm:$0xff] }
 0x1d0   : > { %6201 = vmatprep.subr.bf16.mxu0 %v6200_v31 }
 0x1d1   : > { %v8676_v45 = vpop.permute.xlu1 %1366  ;;  %v8684_v8 = vpop.permute.xlu0 %1372  ;;  %6203 = vmatpush3.bf16.msra.mxu0 %v6200_v31 }
 0x1d2   : > { %11809 = vst [vmem:[#allocation127_spill] sm:$0xff] %v8676_v45  ;;  %11810 = vst [vmem:[#allocation128_spill] sm:$0xff] %v8684_v8  ;;  %v730_v45 = vld [vmem:[#allocation2 + $0x169] sm:$0xff] }
 0x1d3   : > { %1610 = vrot.lane.b32.xlu1 %v725_v62, %s7541_s14  ;;  %1616 = vrot.lane.b32.xlu0 %v728_v44, %s7541_s14  ;;  %v6204_v62 = vpack.c.bf16 %v2057_v7, %v2056_v30  ;;  %v734_v30 = vld [vmem:[#allocation2 + $0x199] sm:$0xff] }
 0x1d5   : > { %v8688_v38 = vpop.permute.xlu1 %1370  ;;  %v8696_v8 = vpop.permute.xlu0 %1440  ;;  %6205 = vmatprep.subr.bf16.mxu0 %v6204_v62 }
 0x1d6   : > { %11811 = vst [vmem:[#allocation129_spill] sm:$0xff] %v8688_v38  ;;  %6207 = vmatpush3.bf16.msra.mxu0 %v6204_v62  ;;  %v2058_v38 = vld [vmem:[%s11538_s1 + $0x20] sm:$0xf]  ;;  %v736_v62 = vld [vmem:[#allocation2 + $0x32] sm:$0xff] }
 0x1d7   : > { %1614 = vrot.lane.b32.xlu1 %v727_v1, %s7541_s14  ;;  %1620 = vrot.lane.b32.xlu0 %v730_v45, %s7541_s14 }
 0x1d8   : > { %6150 = vmatprep.subr.msk.mxu0 %vm2163_vm4, %v2058_v38 }
 0x1d9   : > { %v8700_v44 = vpop.permute.xlu1 %1374  ;;  %v8702_v31 = vpop.permute.xlu0 %1444 }
 0x1da   : > { %11812 = vst [vmem:[#allocation130_spill] sm:$0xff] %v8700_v44  ;;  %6151 = vmatpush3.msk.msra.mxu0 %vm2163_vm4, %v2058_v38  ;;  %v738_v38 = vld [vmem:[#allocation2 + $0x4a] sm:$0xff]  ;;  %vm10679_vm4 = vmpackc.low %vm325_vm3, %vm325_vm3 }
 0x1db   : > { %1618 = vrot.lane.b32.xlu1 %v729_v42, %s7541_s14  ;;  %1624 = vrot.lane.b32.xlu0 %v8334_v56, %s7541_s14  ;;  %v735_v56 = vld [vmem:[#allocation2 + $0x1a1] sm:$0xff] }
 0x1dd   : > { %v8710_v7 = vpop.permute.xlu1 %1442  ;;  %v8712_v45 = vpop.permute.xlu0 %1448 }
 0x1df   : > { %1622 = vrot.lane.b32.xlu1 %v731_v10, %s7541_s14  ;;  %1628 = vrot.lane.b32.xlu0 %v734_v30, %s7541_s14  ;;  %v737_v10 = vld [vmem:[#allocation2 + $0x3a] sm:$0xff] }
 0x1e1   : > { %v8716_v1 = vpop.permute.xlu1 %1446  ;;  %v8718_v42 = vpop.permute.xlu0 %1452 }
 0x1e3   : > { %1626 = vrot.lane.b32.xlu1 %v8348_v60, %s7541_s14  ;;  %1696 = vrot.lane.b32.xlu0 %v736_v62, %s7542_s27  ;;  %v739_v60 = vld [vmem:[#allocation2 + $0x52] sm:$0xff] }
 0x1e5   : > { %v8723_v44 = vpop.permute.xlu1 %1450  ;;  %v8725_v47 = vpop.permute.xlu0 %1456 }
 0x1e7   : > { %1630 = vrot.lane.b32.xlu1 %v735_v56, %s7541_s14  ;;  %1700 = vrot.lane.b32.xlu0 %v738_v38, %s7542_s27  ;;  %v741_v56 = vld [vmem:[#allocation2 + $0x6a] sm:$0xff]  ;;  %s6104_s14 = sshll.u32 %s12135_s25, 5 }
 0x1e9   : > { %v8729_v30 = vpop.permute.xlu1 %1454  ;;  %v8731_v6 = vpop.permute.xlu0 %1460 }
 0x1ea   : > { %11813 = vst [vmem:[#allocation131_spill] sm:$0xff] %v8731_v6 }
 0x1eb   : > { %1698 = vrot.lane.b32.xlu1 %v737_v10, %s7542_s27  ;;  %1704 = vrot.lane.b32.xlu0 %v740_v48, %s7542_s27  ;;  %v743_v10 = vld [vmem:[#allocation2 + $0x82] sm:$0xff] }
 0x1ed   : > { %v8735_v62 = vpop.permute.xlu1 %1458  ;;  %v8737_v14 = vpop.permute.xlu0 %1464 }
 0x1ee   : > { %11814 = vst [vmem:[#allocation132_spill] sm:$0xff] %v8735_v62  ;;  %11815 = vst [vmem:[#allocation133_spill] sm:$0xff] %v8737_v14  ;;  %v748_v14 = vld [vmem:[#allocation2 + $0xc2] sm:$0xff] }
 0x1ef   : > { %1702 = vrot.lane.b32.xlu1 %v739_v60, %s7542_s27  ;;  %1708 = vrot.lane.b32.xlu0 %v742_v4, %s7542_s27  ;;  %v745_v60 = vld [vmem:[#allocation2 + $0x9a] sm:$0xff] }
 0x1f1   : > { %v8741_v38 = vpop.permute.xlu1 %1462  ;;  %v8743_v40 = vpop.permute.xlu0 %1468 }
 0x1f2   : > { %11816 = vst [vmem:[#allocation134_spill] sm:$0xff] %v8741_v38  ;;  %11817 = vst [vmem:[#allocation135_spill] sm:$0xff] %v8743_v40  ;;  %v750_v40 = vld [vmem:[#allocation2 + $0xda] sm:$0xff] }
 0x1f3   : > { %1706 = vrot.lane.b32.xlu1 %v741_v56, %s7542_s27  ;;  %1712 = vrot.lane.b32.xlu0 %v744_v27, %s7542_s27  ;;  %v747_v56 = vld [vmem:[#allocation2 + $0xb2] sm:$0xff] }
 0x1f5   : > { %v8747_v48 = vpop.permute.xlu1 %1466  ;;  %v8749_v35 = vpop.permute.xlu0 %1472 }
 0x1f6   : > { %11818 = vst [vmem:[#allocation136_spill] sm:$0xff] %v8747_v48  ;;  %11819 = vst [vmem:[#allocation137_spill] sm:$0xff] %v8749_v35  ;;  %v752_v35 = vld [vmem:[#allocation2 + $0xf2] sm:$0xff] }
 0x1f7   : > { %1710 = vrot.lane.b32.xlu1 %v743_v10, %s7542_s27  ;;  %1716 = vrot.lane.b32.xlu0 %v746_v15, %s7542_s27  ;;  %v749_v10 = vld [vmem:[#allocation2 + $0xca] sm:$0xff] }
 0x1f9   : > { %v8753_v4 = vpop.permute.xlu1 %1470  ;;  %v8755_v38 = vpop.permute.xlu0 %1476 }
 0x1fa   : > { %11820 = vst [vmem:[#allocation138_spill] sm:$0xff] %v8753_v4  ;;  %11821 = vst [vmem:[#allocation139_spill] sm:$0xff] %v8755_v38  ;;  %v754_v38 = vld [vmem:[#allocation2 + $0x10a] sm:$0xff] }
 0x1fb   : > { %1714 = vrot.lane.b32.xlu1 %v745_v60, %s7542_s27  ;;  %1720 = vrot.lane.b32.xlu0 %v748_v14, %s7542_s27  ;;  %v751_v60 = vld [vmem:[#allocation2 + $0xe2] sm:$0xff] }
 0x1fd   : > { %v8759_v27 = vpop.permute.xlu1 %1474  ;;  %v8761_v48 = vpop.permute.xlu0 %1480 }
 0x1fe   : > { %11822 = vst [vmem:[#allocation140_spill] sm:$0xff] %v8759_v27  ;;  %11823 = vst [vmem:[#allocation141_spill] sm:$0xff] %v8761_v48  ;;  %v756_v48 = vld [vmem:[#allocation2 + $0x122] sm:$0xff] }
 0x1ff   : > { %1718 = vrot.lane.b32.xlu1 %v747_v56, %s7542_s27  ;;  %1724 = vrot.lane.b32.xlu0 %v750_v40, %s7542_s27  ;;  %v753_v56 = vld [vmem:[#allocation2 + $0xfa] sm:$0xff] }
 0x201   : > { %v8765_v15 = vpop.permute.xlu1 %1478  ;;  %v8767_v4 = vpop.permute.xlu0 %1484 }
 0x202   : > { %11824 = vst [vmem:[#allocation142_spill] sm:$0xff] %v8765_v15  ;;  %11825 = vst [vmem:[#allocation143_spill] sm:$0xff] %v8767_v4  ;;  %v758_v4 = vld [vmem:[#allocation2 + $0x13a] sm:$0xff] }
 0x203   : > { %1722 = vrot.lane.b32.xlu1 %v749_v10, %s7542_s27  ;;  %1728 = vrot.lane.b32.xlu0 %v752_v35, %s7542_s27  ;;  %v755_v10 = vld [vmem:[#allocation2 + $0x112] sm:$0xff] }
 0x205   : > { %v8771_v14 = vpop.permute.xlu1 %1482  ;;  %v8773_v27 = vpop.permute.xlu0 %1488 }
 0x206   : > { %11826 = vst [vmem:[#allocation144_spill] sm:$0xff] %v8771_v14  ;;  %11827 = vst [vmem:[#allocation145_spill] sm:$0xff] %v8773_v27  ;;  %v760_v27 = vld [vmem:[#allocation2 + $0x152] sm:$0xff] }
 0x207   : > { %1726 = vrot.lane.b32.xlu1 %v751_v60, %s7542_s27  ;;  %1732 = vrot.lane.b32.xlu0 %v754_v38, %s7542_s27  ;;  %v757_v60 = vld [vmem:[#allocation2 + $0x12a] sm:$0xff] }
 0x209   : > { %v8777_v40 = vpop.permute.xlu1 %1486  ;;  %v8779_v15 = vpop.permute.xlu0 %1492 }
 0x20a   : > { %11828 = vst [vmem:[#allocation146_spill] sm:$0xff] %v8777_v40  ;;  %11829 = vst [vmem:[#allocation147_spill] sm:$0xff] %v8779_v15  ;;  %v762_v15 = vld [vmem:[#allocation2 + $0x16a] sm:$0xff] }
 0x20b   : > { %1730 = vrot.lane.b32.xlu1 %v753_v56, %s7542_s27  ;;  %1736 = vrot.lane.b32.xlu0 %v756_v48, %s7542_s27  ;;  %v759_v56 = vld [vmem:[#allocation2 + $0x142] sm:$0xff] }
 0x20d   : > { %v8783_v35 = vpop.permute.xlu1 %1490  ;;  %v8785_v14 = vpop.permute.xlu0 %1496 }
 0x20e   : > { %11830 = vst [vmem:[#allocation148_spill] sm:$0xff] %v8783_v35  ;;  %11831 = vst [vmem:[#allocation149_spill] sm:$0xff] %v8785_v14 }
 0x20f   : > { %1734 = vrot.lane.b32.xlu1 %v755_v10, %s7542_s27  ;;  %1740 = vrot.lane.b32.xlu0 %v758_v4, %s7542_s27  ;;  %v761_v10 = vld [vmem:[#allocation2 + $0x15a] sm:$0xff] }
 0x211   : > { %v8789_v38 = vpop.permute.xlu1 %1494  ;;  %v8791_v40 = vpop.permute.xlu0 %1500 }
 0x212   : > { %11832 = vst [vmem:[#allocation150_spill] sm:$0xff] %v8789_v38  ;;  %11833 = vst [vmem:[#allocation151_spill] sm:$0xff] %v8791_v40  ;;  %v763_v40 = vld [vmem:[#allocation2 + $0x172] sm:$0xff] }
 0x213   : > { %1738 = vrot.lane.b32.xlu1 %v757_v60, %s7542_s27  ;;  %1744 = vrot.lane.b32.xlu0 %v760_v27, %s7542_s27  ;;  %v766_v60 = vld [vmem:[#allocation2 + $0x19a] sm:$0xff] }
 0x215   : > { %v8795_v48 = vpop.permute.xlu1 %1498  ;;  %v1569_v35 = vpop.permute.xlu0 %1568 }
 0x216   : > { %11834 = vst [vmem:[#allocation152_spill] sm:$0xff] %v8795_v48 }
 0x217   : > { %1742 = vrot.lane.b32.xlu1 %v759_v56, %s7542_s27  ;;  %1748 = vrot.lane.b32.xlu0 %v762_v15, %s7542_s27 }
 0x219   : > { %v8799_v4 = vpop.permute.xlu1 %1502  ;;  %v8801_v14 = vpop.permute.xlu0 %1572 }
 0x21a   : > { %11835 = vst [vmem:[#allocation153_spill] sm:$0xff] %v8799_v4 }
 0x21b   : > { %1746 = vrot.lane.b32.xlu1 %v761_v10, %s7542_s27  ;;  %1752 = vrot.lane.b32.xlu0 %v8466_v22, %s7542_s27  ;;  %v767_v10 = vld [vmem:[#allocation2 + $0x1a2] sm:$0xff] }
 0x21d   : > { %v8806_v27 = vpop.permute.xlu1 %1570  ;;  %v8808_v48 = vpop.permute.xlu0 %1576 }
 0x21f   : > { %1750 = vrot.lane.b32.xlu1 %v763_v40, %s7542_s27  ;;  %1756 = vrot.lane.b32.xlu0 %v766_v60, %s7542_s27 }
 0x221   : > { %v8812_v15 = vpop.permute.xlu1 %1574  ;;  %v8814_v56 = vpop.permute.xlu0 %1580 }
 0x223   : > { %1754 = vrot.lane.b32.xlu1 %v8480_v29, %s7542_s27 }
 0x225   : > { %v8818_v4 = vpop.permute.xlu1 %1578  ;;  %v8820_v22 = vpop.permute.xlu0 %1584 }
 0x227   : > { %1758 = vrot.lane.b32.xlu1 %v767_v10, %s7542_s27 }
 0x229   : > { %v8823_v38 = vpop.permute.xlu1 %1582  ;;  %v8825_v3 = vpop.permute.xlu0 %1588 }
 0x22a   : > { %11836 = vst [vmem:[#allocation154_spill] sm:$0xff] %v8825_v3 }
 0x22d   : > { %v8827_v40 = vpop.permute.xlu1 %1586  ;;  %v8829_v60 = vpop.permute.xlu0 %1592 }
 0x22e   : > { %11837 = vst [vmem:[#allocation155_spill] sm:$0xff] %v8827_v40  ;;  %11838 = vst [vmem:[#allocation156_spill] sm:$0xff] %v8829_v60 }
 0x231   : > { %v8831_v6 = vpop.permute.xlu1 %1590  ;;  %v8833_v5 = vpop.permute.xlu0 %1596 }
 0x232   : > { %11839 = vst [vmem:[#allocation157_spill] sm:$0xff] %v8831_v6  ;;  %11840 = vst [vmem:[#allocation158_spill] sm:$0xff] %v8833_v5 }
 0x235   : > { %v8835_v29 = vpop.permute.xlu1 %1594  ;;  %v8837_v37 = vpop.permute.xlu0 %1600 }
 0x236   : > { %11841 = vst [vmem:[#allocation159_spill] sm:$0xff] %v8835_v29  ;;  %11842 = vst [vmem:[#allocation160_spill] sm:$0xff] %v8837_v37 }
 0x239   : > { %v8839_v62 = vpop.permute.xlu1 %1598  ;;  %v8841_v32 = vpop.permute.xlu0 %1604 }
 0x23a   : > { %11843 = vst [vmem:[#allocation161_spill] sm:$0xff] %v8839_v62  ;;  %11844 = vst [vmem:[#allocation162_spill] sm:$0xff] %v8841_v32  ;;  %v479_v62 = vld [vmem:[#allocation2] sm:$0xff] }
 0x23d   : > { %v8843_v10 = vpop.permute.xlu1 %1602  ;;  %v8845_v26 = vpop.permute.xlu0 %1608 }
 0x23e   : > { %11845 = vst [vmem:[#allocation163_spill] sm:$0xff] %v8843_v10  ;;  %11846 = vst [vmem:[#allocation164_spill] sm:$0xff] %v8845_v26  ;;  %v11855_v26 = vld [vmem:[#allocation5_spill] sm:$0xff] }
 0x241   : > { %v8847_v3 = vpop.permute.xlu1 %1606  ;;  %v8849_v40 = vpop.permute.xlu0 %1612 }
 0x242   : > { %11847 = vst [vmem:[#allocation165_spill] sm:$0xff] %v8847_v3  ;;  %11848 = vst [vmem:[#allocation166_spill] sm:$0xff] %v8849_v40  ;;  %v1792_v3 = vsel %vm279_vm0, %v479_v62, %v11855_v26  ;;  %v11857_v40 = vld [vmem:[#allocation63_spill] sm:$0xff] }
 0x245   : > { %v8851_v60 = vpop.permute.xlu1 %1610  ;;  %v8853_v6 = vpop.permute.xlu0 %1616 }
 0x246   : > { %11849 = vst [vmem:[#allocation167_spill] sm:$0xff] %v8851_v60  ;;  %11850 = vst [vmem:[#allocation168_spill] sm:$0xff] %v8853_v6  ;;  %v1825_v60 = vsel %vm1824_vm5, %v1792_v3, %v11857_v40  ;;  %v11860_v40 = vld [vmem:[#allocation6_spill] sm:$0xff] }
 0x247   : > { %v1858_v6 = vsel %vm1857_vm6, %v1825_v60, %v8318_v52 }
 0x249   : > { %v8855_v5 = vpop.permute.xlu1 %1614  ;;  %v8857_v29 = vpop.permute.xlu0 %1620 }
 0x24a   : > { %11851 = vst [vmem:[#allocation169_spill] sm:$0xff] %v8855_v5  ;;  %11852 = vst [vmem:[#allocation170_spill] sm:$0xff] %v8857_v29  ;;  %v11861_v5 = vld [vmem:[#allocation8_spill] sm:$0xff] }
 0x24d   : > { %v8859_v37 = vpop.permute.xlu1 %1618  ;;  %v8861_v32 = vpop.permute.xlu0 %1624 }
 0x24e   : > { %11853 = vst [vmem:[#allocation171_spill] sm:$0xff] %v8859_v37  ;;  %11854 = vst [vmem:[#allocation172_spill] sm:$0xff] %v8861_v32  ;;  %v480_v37 = vld [vmem:[#allocation2 + $0x8] sm:$0xff]  ;;  %v1890_v32 = vsel %vm325_vm3, %v1858_v6, %v8450_v23 }
 0x24f   : > { %v1923_v26 = vsel %vm1922_vm7, %v1890_v32, %v8582_v11  ;;  %v1793_v52 = vsel %vm279_vm0, %v480_v37, %v11860_v40  ;;  %v11862_v23 = vld [vmem:[#allocation68_spill] sm:$0xff]  ;;  %v7462_v40 = vld [vmem:[#allocation2 + $0x30] sm:$0xff] }
 0x250   : > { %v1956_v3 = vsel %vm1955_vm8, %v1923_v26, %v8696_v8  ;;  %v1826_v32 = vsel %vm1824_vm5, %v1793_v52, %v11862_v23  ;;  %v11864_v26 = vld [vmem:[#allocation12_spill] sm:$0xff]  ;;  %v11865_v52 = vld [vmem:[#allocation10_spill] sm:$0xff] }
 0x251   : > { %v8865_v10 = vpop.permute.xlu1 %1622  ;;  %v8871_v29 = vpop.permute.xlu0 %1628  ;;  %v1989_v60 = vsel %vm1988_vm9, %v1956_v3, %v1569_v35  ;;  %v1859_v8 = vsel %vm1857_vm6, %v1826_v32, %v8332_v55  ;;  %v11867_v23 = vld [vmem:[#allocation70_spill] sm:$0xff] }
 0x252   : > { %11856 = vst [vmem:[#allocation5_spill] sm:$0xff] %v8865_v10  ;;  %11858 = vst [vmem:[#allocation63_spill] sm:$0xff] %v8871_v29  ;;  %v7460_v10 = vld [vmem:[#allocation2 + $0x18] sm:$0xff] }
 0x253   : > { %v1794_v6 = vsel %vm279_vm0, %v7460_v10, %v11861_v5  ;;  %v1891_v5 = vsel %vm325_vm3, %v1859_v8, %v8464_v33  ;;  %v7461_v10 = vld [vmem:[#allocation2 + $0x20] sm:$0xff] }
 0x254   : > { %v1924_v55 = vsel %vm1922_vm7, %v1891_v5, %v8596_v16 }
 0x255   : > { %v8877_v62 = vpop.permute.xlu1 %1626  ;;  %v1697_v29 = vpop.permute.xlu0 %1696 }
 0x256   : > { %11859 = vst [vmem:[#allocation173_spill] sm:$0xff] %v8877_v62  ;;  %v2022_v11 = vsel %vm2021_vm10, %v1989_v60, %v1697_v29  ;;  %v11863_v62 = vld [vmem:[#allocation67_spill] sm:$0xff]  ;;  %v1795_v29 = vsel %vm279_vm0, %v7461_v10, %v11864_v26  ;;  %v1796_v60 = vsel %vm279_vm0, %v7462_v40, %v11865_v52  ;;  %v7463_v10 = vld [vmem:[#allocation2 + $0x38] sm:$0xff] }
 0x257   : > { %v1827_v13 = vsel %vm1824_vm5, %v1794_v6, %v11863_v62  ;;  %6152 = vmatprep.mubr.msk.f32.mxu0 %vm2066_vm11, %v2022_v11  ;;  %v11866_v6 = vld [vmem:[#allocation71_spill] sm:$0xff] }
 0x258   : > { %v1860_v35 = vsel %vm1857_vm6, %v1827_v13, %v8326_v54  ;;  %v1828_v54 = vsel %vm1824_vm5, %v1795_v29, %v11866_v6  ;;  %v1957_v13 = vsel %vm1955_vm8, %v1924_v55, %v8710_v7  ;;  %v11870_v55 = vld [vmem:[#allocation73_spill] sm:$0xff] }
 0x259   : > { %v8894_v37 = vpop.permute.xlu1 %1630  ;;  %v1892_v62 = vsel %vm325_vm3, %v1860_v35, %v8458_v28  ;;  %v1701_v3 = vpop.permute.xlu0 %1700  ;;  %v1829_v28 = vsel %vm1824_vm5, %v1796_v60, %v11867_v23  ;;  %v1861_v16 = vsel %vm1857_vm6, %v1828_v54, %v8342_v57  ;;  %v1990_v11 = vsel %vm1988_vm9, %v1957_v13, %v8806_v27  ;;  %v11868_v57 = vld [vmem:[#allocation15_spill] sm:$0xff] }
 0x25a   : > { %v1925_v33 = vsel %vm1922_vm7, %v1892_v62, %v8590_v12  ;;  %v1862_v35 = vsel %vm1857_vm6, %v1829_v28, %v8336_v50  ;;  %v1893_v12 = vsel %vm325_vm3, %v1861_v16, %v8474_v36  ;;  %v1797_v26 = vsel %vm279_vm0, %v7463_v10, %v11868_v57  ;;  %v7464_v36 = vld [vmem:[#allocation2 + $0x48] sm:$0xff]  ;;  %v11869_v62 = vld [vmem:[#allocation13_spill] sm:$0xff] }
 0x25b   : > { %v1958_v32 = vsel %vm1955_vm8, %v1925_v33, %v8702_v31  ;;  %v1894_v31 = vsel %vm325_vm3, %v1862_v35, %v8468_v19  ;;  %v1926_v27 = vsel %vm1922_vm7, %v1893_v12, %v8603_v34  ;;  %v1830_v40 = vsel %vm1824_vm5, %v1797_v26, %v11870_v55  ;;  %v11871_v34 = vld [vmem:[#allocation72_spill] sm:$0xff]  ;;  %v7465_v28 = vld [vmem:[#allocation2 + $0x50] sm:$0xff] }
 0x25c   : > { %v1991_v7 = vsel %vm1988_vm9, %v1958_v32, %v8801_v14  ;;  %v1798_v14 = vsel %vm279_vm0, %v7464_v36, %v11869_v62  ;;  %v1927_v52 = vsel %vm1922_vm7, %v1894_v31, %v8598_v43  ;;  %v1959_v19 = vsel %vm1955_vm8, %v1926_v27, %v8716_v1  ;;  %v7467_v31 = vld [vmem:[#allocation2 + $0x68] sm:$0xff] }
 0x25d   : > { %v1699_v8 = vpop.permute.xlu1 %1698  ;;  %v2024_v50 = vsel %vm2021_vm10, %v1991_v7, %v1701_v3  ;;  %v1705_v29 = vpop.permute.xlu0 %1704  ;;  %v1831_v3 = vsel %vm1824_vm5, %v1798_v14, %v11871_v34  ;;  %v1863_v60 = vsel %vm1857_vm6, %v1830_v40, %v8352_v61  ;;  %v1960_v6 = vsel %vm1955_vm8, %v1927_v52, %v8712_v45  ;;  %v11872_v61 = vld [vmem:[#allocation18_spill] sm:$0xff] }
 0x25e   : > { %v2023_v5 = vsel %vm2021_vm10, %v1990_v11, %v1699_v8  ;;  %v1992_v54 = vsel %vm1988_vm9, %v1959_v19, %v8812_v15  ;;  %v1864_v43 = vsel %vm1857_vm6, %v1831_v3, %v8344_v59  ;;  %v1895_v1 = vsel %vm325_vm3, %v1863_v60, %v8484_v49  ;;  %v7466_v49 = vld [vmem:[#allocation2 + $0x60] sm:$0xff]  ;;  %v11873_v11 = vld [vmem:[#allocation16_spill] sm:$0xff] }
 0x25f   : > { %6153 = vmatmul.mubr.msk.f32.vlgmr.msra.gmra.mrb[0].mxu0 %vm2066_vm11, %v2023_v5  ;;  %v1993_v13 = vsel %vm1988_vm9, %v1960_v6, %v8808_v48  ;;  %v1799_v16 = vsel %vm279_vm0, %v7465_v28, %v11872_v61  ;;  %v1896_v45 = vsel %vm325_vm3, %v1864_v43, %v8476_v24  ;;  %v1928_v15 = vsel %vm1922_vm7, %v1895_v1, %v8610_v39  ;;  %v11874_v39 = vld [vmem:[#allocation74_spill] sm:$0xff]  ;;  %v7469_v19 = vld [vmem:[#allocation2 + $0x80] sm:$0xff]  ;;  %v11881_v43 = vld [vmem:[#allocation52_spill] sm:$0xff] }
 0x260   : > { %6155 = vmatprep.mubr.msk.f32.mxu0 %vm2066_vm11, %v2024_v50  ;;  %v2026_v59 = vsel %vm2021_vm10, %v1993_v13, %v1705_v29  ;;  %v1800_v48 = vsel %vm279_vm0, %v7466_v49, %v11873_v11  ;;  %v1832_v8 = vsel %vm1824_vm5, %v1799_v16, %v8228_v0  ;;  %v1929_v35 = vsel %vm1922_vm7, %v1896_v45, %v8605_v21  ;;  %v11876_v29 = vld [vmem:[#allocation19_spill] sm:$0xff]  ;;  %v11882_v13 = vld [vmem:[#allocation132_spill] sm:$0xff]  ;;  %v11884_v61 = vld [vmem:[#allocation97_spill] sm:$0xff] }
 0x261   : > { %v1703_v33 = vpop.permute.xlu1 %1702  ;;  %v1709_v32 = vpop.permute.xlu0 %1708  ;;  %v1961_v24 = vsel %vm1955_vm8, %v1928_v15, %v8723_v44  ;;  %v1833_v12 = vsel %vm1824_vm5, %v1800_v48, %v11874_v39  ;;  %v1865_v7 = vsel %vm1857_vm6, %v1832_v8, %v8360_v63  ;;  %v1962_v5 = vsel %vm1955_vm8, %v1929_v35, %v8718_v42  ;;  %v11875_v63 = vld [vmem:[#allocation21_spill] sm:$0xff]  ;;  %v11879_v6 = vld [vmem:[#allocation23_spill] sm:$0xff]  ;;  %v11887_v11 = vld [vmem:[#allocation96_spill] sm:$0xff] }
 0x262   : > { %v2025_v23 = vsel %vm2021_vm10, %v1992_v54, %v1703_v33  ;;  %v1994_v0 = vsel %vm1988_vm9, %v1961_v24, %v8818_v4  ;;  %v1866_v21 = vsel %vm1857_vm6, %v1833_v12, %v8354_v53  ;;  %v1897_v44 = vsel %vm325_vm3, %v1865_v7, %v8492_v18  ;;  %v7468_v18 = vld [vmem:[#allocation2 + $0x78] sm:$0xff]  ;;  %v11880_v54 = vld [vmem:[#allocation76_spill] sm:$0xff]  ;;  %v11885_v45 = vld [vmem:[#allocation131_spill] sm:$0xff] }
 0x263   : > { %6156 = vmatmul.mubr.msk.f32.gmra.mrb[2].mxu0 %vm2066_vm11, %v2025_v23  ;;  %v1995_v57 = vsel %vm1988_vm9, %v1962_v5, %v8814_v56  ;;  %v1801_v27 = vsel %vm279_vm0, %v7467_v31, %v11875_v63  ;;  %v1898_v42 = vsel %vm325_vm3, %v1866_v21, %v8486_v17  ;;  %v1930_v4 = vsel %vm1922_vm7, %v1897_v44, %v8616_v41  ;;  %v11883_v23 = vld [vmem:[#allocation75_spill] sm:$0xff]  ;;  %v11888_v8 = vld [vmem:[#allocation9_spill] sm:$0xff]  ;;  %v11889_v24 = vld [vmem:[#allocation154_spill] sm:$0xff] }
 0x264   : > { %6158 = vmatprep.mubr.msk.f32.mxu0 %vm2066_vm11, %v2026_v59  ;;  %v2028_v53 = vsel %vm2021_vm10, %v1995_v57, %v1709_v32  ;;  %v1802_v56 = vsel %vm279_vm0, %v7468_v18, %v11876_v29  ;;  %v1834_v36 = vsel %vm1824_vm5, %v1801_v27, %v8236_v25  ;;  %v1931_v62 = vsel %vm1922_vm7, %v1898_v42, %v8612_v9  ;;  %v11886_v59 = vld [vmem:[#allocation155_spill] sm:$0xff]  ;;  %v7471_v7 = vld [vmem:[#allocation2 + $0x98] sm:$0xff]  ;;  %v11890_v5 = vld [vmem:[#allocation29_spill] sm:$0xff] }
 0x265   : > { %v1707_v10 = vpop.permute.xlu1 %1706  ;;  %v1713_v50 = vpop.permute.xlu0 %1712  ;;  %v1963_v17 = vsel %vm1955_vm8, %v1930_v4, %v8729_v30  ;;  %v1835_v41 = vsel %vm1824_vm5, %v1802_v56, %v8230_v58  ;;  %v1867_v14 = vsel %vm1857_vm6, %v1834_v36, %v8368_v2  ;;  %v1964_v55 = vsel %vm1955_vm8, %v1931_v62, %v8725_v47  ;;  %v11877_v2 = vld [vmem:[#allocation25_spill] sm:$0xff]  ;;  %v11892_v44 = vld [vmem:[#allocation58_spill] sm:$0xff]  ;;  %v7472_v63 = vld [vmem:[#allocation2 + $0xa8] sm:$0xff] }
 0x266   : > { %v2027_v26 = vsel %vm2021_vm10, %v1994_v0, %v1707_v10  ;;  %v1996_v25 = vsel %vm1988_vm9, %v1963_v17, %v8823_v38  ;;  %v1868_v9 = vsel %vm1857_vm6, %v1835_v41, %v8362_v51  ;;  %v1899_v30 = vsel %vm325_vm3, %v1867_v14, %v8500_v20  ;;  %v11878_v38 = vld [vmem:[#allocation54_spill] sm:$0xff]  ;;  %v7470_v20 = vld [vmem:[#allocation2 + $0x90] sm:$0xff]  ;;  %v11891_v10 = vld [vmem:[#allocation7_spill] sm:$0xff] }
 0x267   : > { %6159 = vmatmul.mubr.msk.f32.gmra.mrb[4].mxu0 %vm2066_vm11, %v2027_v26  ;;  %v1997_v52 = vsel %vm1988_vm9, %v1964_v55, %v8820_v22  ;;  %v1803_v34 = vsel %vm279_vm0, %v7469_v19, %v11877_v2  ;;  %v1900_v47 = vsel %vm325_vm3, %v1868_v9, %v8494_v46  ;;  %v1932_v3 = vsel %vm1922_vm7, %v1899_v30, %v11878_v38  ;;  %v11893_v27 = vld [vmem:[#allocation27_spill] sm:$0xff]  ;;  %v11894_v4 = vld [vmem:[#allocation78_spill] sm:$0xff]  ;;  %v11897_v36 = vld [vmem:[#allocation77_spill] sm:$0xff] }
 0x268   : > { %6161 = vmatprep.mubr.msk.f32.mxu0 %vm2066_vm11, %v2028_v53  ;;  %v2030_v51 = vsel %vm2021_vm10, %v1997_v52, %v1713_v50  ;;  %v1804_v22 = vsel %vm279_vm0, %v7470_v20, %v11879_v6  ;;  %v1836_v33 = vsel %vm1824_vm5, %v1803_v34, %v11880_v54  ;;  %v1933_v1 = vsel %vm1922_vm7, %v1900_v47, %v11881_v43  ;;  %v11895_v50 = vld [vmem:[#allocation56_spill] sm:$0xff]  ;;  %v11896_v29 = vld [vmem:[#allocation134_spill] sm:$0xff]  ;;  %v11898_v17 = vld [vmem:[#allocation99_spill] sm:$0xff] }
 0x269   : > { %v1711_v40 = vpop.permute.xlu1 %1710  ;;  %v1717_v60 = vpop.permute.xlu0 %1716  ;;  %v1965_v46 = vsel %vm1955_vm8, %v1932_v3, %v11882_v13  ;;  %v1837_v28 = vsel %vm1824_vm5, %v1804_v22, %v11883_v23  ;;  %v1869_v16 = vsel %vm1857_vm6, %v1836_v33, %v11884_v61  ;;  %v1966_v15 = vsel %vm1955_vm8, %v1933_v1, %v11885_v45  ;;  %v11899_v14 = vld [vmem:[#allocation133_spill] sm:$0xff]  ;;  %v11901_v30 = vld [vmem:[#allocation98_spill] sm:$0xff]  ;;  %v11903_v2 = vld [vmem:[#allocation156_spill] sm:$0xff] }
 0x26a   : > { %v2029_v58 = vsel %vm2021_vm10, %v1996_v25, %v1711_v40  ;;  %v1998_v32 = vsel %vm1988_vm9, %v1965_v46, %v11886_v59  ;;  %v1870_v48 = vsel %vm1857_vm6, %v1837_v28, %v11887_v11  ;;  %v1901_v35 = vsel %vm325_vm3, %v1869_v16, %v11888_v8  ;;  %v11900_v25 = vld [vmem:[#allocation157_spill] sm:$0xff]  ;;  %v11906_v6 = vld [vmem:[#allocation62_spill] sm:$0xff]  ;;  %v7474_v43 = vld [vmem:[#allocation2 + $0xc0] sm:$0xff] }
 0x26b   : > { %6162 = vmatmul.mubr.msk.f32.gmra.mrb[6].mxu0 %vm2066_vm11, %v2029_v58  ;;  %v1999_v39 = vsel %vm1988_vm9, %v1966_v15, %v11889_v24  ;;  %v1805_v0 = vsel %vm279_vm0, %v7471_v7, %v11890_v5  ;;  %v1902_v21 = vsel %vm325_vm3, %v1870_v48, %v11891_v10  ;;  %v1934_v57 = vsel %vm1922_vm7, %v1901_v35, %v11892_v44  ;;  %v11902_v58 = vld [vmem:[#allocation14_spill] sm:$0xff]  ;;  %v7473_v38 = vld [vmem:[#allocation2 + $0xb0] sm:$0xff]  ;;  %v11907_v1 = vld [vmem:[#allocation31_spill] sm:$0xff] }
 0x26c   : > { %6164 = vmatprep.mubr.msk.f32.mxu0 %vm2066_vm11, %v2030_v51  ;;  %v2032_v26 = vsel %vm2021_vm10, %v1999_v39, %v1717_v60  ;;  %v1806_v42 = vsel %vm279_vm0, %v7472_v63, %v11893_v27  ;;  %v1838_v53 = vsel %vm1824_vm5, %v1805_v0, %v11894_v4  ;;  %v1935_v18 = vsel %vm1922_vm7, %v1902_v21, %v11895_v50  ;;  %v11904_v3 = vld [vmem:[#allocation33_spill] sm:$0xff]  ;;  %v11905_v60 = vld [vmem:[#allocation11_spill] sm:$0xff]  ;;  %v11908_v46 = vld [vmem:[#allocation80_spill] sm:$0xff] }
 0x26d   : > { %v1715_v49 = vpop.permute.xlu1 %1714  ;;  %v1721_v31 = vpop.permute.xlu0 %1720  ;;  %v1967_v56 = vsel %vm1955_vm8, %v1934_v57, %v11896_v29  ;;  %v1839_v62 = vsel %vm1824_vm5, %v1806_v42, %v11897_v36  ;;  %v1871_v41 = vsel %vm1857_vm6, %v1838_v53, %v11898_v17  ;;  %v1968_v55 = vsel %vm1955_vm8, %v1935_v18, %v11899_v14  ;;  %v11909_v28 = vld [vmem:[#allocation60_spill] sm:$0xff]  ;;  %v11911_v15 = vld [vmem:[#allocation79_spill] sm:$0xff]  ;;  %v11917_v0 = vld [vmem:[#allocation158_spill] sm:$0xff] }
 0x26e   : > { %v2031_v12 = vsel %vm2021_vm10, %v1998_v32, %v1715_v49  ;;  %v2000_v40 = vsel %vm1988_vm9, %v1967_v56, %v11900_v25  ;;  %v1872_v52 = vsel %vm1857_vm6, %v1839_v62, %v11901_v30  ;;  %v1903_v19 = vsel %vm325_vm3, %v1871_v41, %v11902_v58  ;;  %v11910_v16 = vld [vmem:[#allocation136_spill] sm:$0xff]  ;;  %v11912_v32 = vld [vmem:[#allocation101_spill] sm:$0xff]  ;;  %v11913_v11 = vld [vmem:[#allocation135_spill] sm:$0xff] }
 0x26f   : > { %6165 = vmatmul.mubr.msk.f32.gmra.mrb[8].mxu0 %vm2066_vm11, %v2031_v12  ;;  %v2001_v34 = vsel %vm1988_vm9, %v1968_v55, %v11903_v2  ;;  %v1807_v51 = vsel %vm279_vm0, %v7473_v38, %v11904_v3  ;;  %v1904_v20 = vsel %vm325_vm3, %v1872_v52, %v11905_v60  ;;  %v1936_v22 = vsel %vm1922_vm7, %v1903_v19, %v11906_v6  ;;  %v11914_v8 = vld [vmem:[#allocation159_spill] sm:$0xff]  ;;  %v11915_v39 = vld [vmem:[#allocation100_spill] sm:$0xff]  ;;  %v11918_v57 = vld [vmem:[#allocation37_spill] sm:$0xff] }
 0x270   : > { %6167 = vmatprep.mubr.msk.f32.mxu0 %vm2066_vm11, %v2032_v26  ;;  %v2034_v54 = vsel %vm2021_vm10, %v2001_v34, %v1721_v31  ;;  %v1808_v13 = vsel %vm279_vm0, %v7474_v43, %v11907_v1  ;;  %v1840_v23 = vsel %vm1824_vm5, %v1807_v51, %v11908_v46  ;;  %v1937_v61 = vsel %vm1922_vm7, %v1904_v20, %v11909_v28  ;;  %v11916_v7 = vld [vmem:[#allocation20_spill] sm:$0xff]  ;;  %v11919_v31 = vld [vmem:[#allocation17_spill] sm:$0xff]  ;;  %v11920_v27 = vld [vmem:[#allocation66_spill] sm:$0xff] }
 0x271   : > { %v1719_v9 = vpop.permute.xlu1 %1718  ;;  %v1725_v33 = vpop.permute.xlu0 %1724  ;;  %v1969_v45 = vsel %vm1955_vm8, %v1936_v22, %v11910_v16  ;;  %v1841_v59 = vsel %vm1824_vm5, %v1808_v13, %v11911_v15  ;;  %v1873_v49 = vsel %vm1857_vm6, %v1840_v23, %v11912_v32  ;;  %v1970_v48 = vsel %vm1955_vm8, %v1937_v61, %v11913_v11  ;;  %v7475_v44 = vld [vmem:[#allocation2 + $0xc8] sm:$0xff]  ;;  %v7476_v50 = vld [vmem:[#allocation2 + $0xd8] sm:$0xff]  ;;  %v11921_v18 = vld [vmem:[#allocation35_spill] sm:$0xff] }
 0x272   : > { %v2033_v47 = vsel %vm2021_vm10, %v2000_v40, %v1719_v9  ;;  %v2002_v35 = vsel %vm1988_vm9, %v1969_v45, %v11914_v8  ;;  %v1874_v12 = vsel %vm1857_vm6, %v1841_v59, %v11915_v39  ;;  %v1905_v5 = vsel %vm325_vm3, %v1873_v49, %v11916_v7  ;;  %v11922_v56 = vld [vmem:[#allocation82_spill] sm:$0xff]  ;;  %v11923_v62 = vld [vmem:[#allocation64_spill] sm:$0xff]  ;;  %v11925_v55 = vld [vmem:[#allocation81_spill] sm:$0xff] }
 0x273   : > { %6168 = vmatmul.mubr.msk.f32.gmra.mrb[10].mxu0 %vm2066_vm11, %v2033_v47  ;;  %v2003_v10 = vsel %vm1988_vm9, %v1970_v48, %v11917_v0  ;;  %v1809_v26 = vsel %vm279_vm0, %v7475_v44, %v11918_v57  ;;  %v1906_v63 = vsel %vm325_vm3, %v1874_v12, %v11919_v31  ;;  %v1938_v42 = vsel %vm1922_vm7, %v1905_v5, %v11920_v27  ;;  %v11924_v41 = vld [vmem:[#allocation138_spill] sm:$0xff]  ;;  %v11926_v40 = vld [vmem:[#allocation103_spill] sm:$0xff]  ;;  %v11927_v30 = vld [vmem:[#allocation137_spill] sm:$0xff] }
 0x274   : > { %6170 = vmatprep.mubr.msk.f32.mxu0 %vm2066_vm11, %v2034_v54  ;;  %v2036_v4 = vsel %vm2021_vm10, %v2003_v10, %v1725_v33  ;;  %v1810_v29 = vsel %vm279_vm0, %v7476_v50, %v11921_v18  ;;  %v1842_v36 = vsel %vm1824_vm5, %v1809_v26, %v11922_v56  ;;  %v1939_v17 = vsel %vm1922_vm7, %v1906_v63, %v11923_v62  ;;  %v11928_v58 = vld [vmem:[#allocation161_spill] sm:$0xff]  ;;  %v11929_v34 = vld [vmem:[#allocation102_spill] sm:$0xff]  ;;  %v11930_v38 = vld [vmem:[#allocation24_spill] sm:$0xff] }
 0x275   : > { %v1723_v24 = vpop.permute.xlu1 %1722  ;;  %v1729_v53 = vpop.permute.xlu0 %1728  ;;  %v1971_v14 = vsel %vm1955_vm8, %v1938_v42, %v11924_v41  ;;  %v1843_v25 = vsel %vm1824_vm5, %v1810_v29, %v11925_v55  ;;  %v1875_v9 = vsel %vm1857_vm6, %v1842_v36, %v11926_v40  ;;  %v1972_v52 = vsel %vm1955_vm8, %v1939_v17, %v11927_v30  ;;  %v11931_v51 = vld [vmem:[#allocation160_spill] sm:$0xff]  ;;  %v7477_v6 = vld [vmem:[#allocation2 + $0xe0] sm:$0xff]  ;;  %v11932_v22 = vld [vmem:[#allocation41_spill] sm:$0xff] }
 0x276   : > { %v2035_v21 = vsel %vm2021_vm10, %v2002_v35, %v1723_v24  ;;  %v2004_v19 = vsel %vm1988_vm9, %v1971_v14, %v11928_v58  ;;  %v1876_v47 = vsel %vm1857_vm6, %v1843_v25, %v11929_v34  ;;  %v1907_v3 = vsel %vm325_vm3, %v1875_v9, %v11930_v38  ;;  %v11933_v33 = vld [vmem:[#allocation22_spill] sm:$0xff]  ;;  %v11934_v1 = vld [vmem:[#allocation117_spill] sm:$0xff]  ;;  %v11935_v61 = vld [vmem:[#allocation39_spill] sm:$0xff] }
 0x277   : > { %6171 = vmatmul.mubr.msk.f32.gmra.mrb[12].mxu0 %vm2066_vm11, %v2035_v21  ;;  %v2005_v60 = vsel %vm1988_vm9, %v1972_v52, %v11931_v51  ;;  %v1811_v54 = vsel %vm279_vm0, %v7477_v6, %v11932_v22  ;;  %v1908_v43 = vsel %vm325_vm3, %v1876_v47, %v11933_v33  ;;  %v1940_v13 = vsel %vm1922_vm7, %v1907_v3, %v11934_v1  ;;  %v7478_v28 = vld [vmem:[#allocation2 + $0xf0] sm:$0xff]  ;;  %v11936_v45 = vld [vmem:[#allocation84_spill] sm:$0xff]  ;;  %v11939_v48 = vld [vmem:[#allocation83_spill] sm:$0xff] }
 0x278   : > { %6173 = vmatprep.mubr.msk.f32.mxu0 %vm2066_vm11, %v2036_v4  ;;  %v2038_v46 = vsel %vm2021_vm10, %v2005_v60, %v1729_v53  ;;  %v1812_v16 = vsel %vm279_vm0, %v7478_v28, %v11935_v61  ;;  %v1844_v15 = vsel %vm1824_vm5, %v1811_v54, %v11936_v45  ;;  %v11937_v59 = vld [vmem:[#allocation69_spill] sm:$0xff]  ;;  %v11938_v49 = vld [vmem:[#allocation140_spill] sm:$0xff]  ;;  %v11941_v39 = vld [vmem:[#allocation139_spill] sm:$0xff] }
 0x279   : > { %v1727_v2 = vpop.permute.xlu1 %1726  ;;  %v1733_v23 = vpop.permute.xlu0 %1732  ;;  %v1941_v32 = vsel %vm1922_vm7, %v1908_v43, %v11937_v59  ;;  %v1973_v11 = vsel %vm1955_vm8, %v1940_v13, %v11938_v49  ;;  %v1845_v8 = vsel %vm1824_vm5, %v1812_v16, %v11939_v48  ;;  %v11940_v35 = vld [vmem:[#allocation105_spill] sm:$0xff]  ;;  %v11942_v7 = vld [vmem:[#allocation163_spill] sm:$0xff]  ;;  %v11943_v10 = vld [vmem:[#allocation104_spill] sm:$0xff] }
 0x27a   : > { %v2037_v20 = vsel %vm2021_vm10, %v2004_v19, %v1727_v2  ;;  %v1877_v24 = vsel %vm1857_vm6, %v1844_v15, %v11940_v35  ;;  %v1974_v12 = vsel %vm1955_vm8, %v1941_v32, %v11941_v39  ;;  %v2006_v5 = vsel %vm1988_vm9, %v1973_v11, %v11942_v7  ;;  %v11944_v44 = vld [vmem:[#allocation28_spill] sm:$0xff]  ;;  %v11945_v26 = vld [vmem:[#allocation162_spill] sm:$0xff]  ;;  %v11946_v42 = vld [vmem:[#allocation45_spill] sm:$0xff] }
 0x27b   : > { %6174 = vmatmul.mubr.msk.f32.gmra.mrb[14].mxu0 %vm2066_vm11, %v2037_v20  ;;  %v1878_v21 = vsel %vm1857_vm6, %v1845_v8, %v11943_v10  ;;  %v1909_v57 = vsel %vm325_vm3, %v1877_v24, %v11944_v44  ;;  %v2007_v31 = vsel %vm1988_vm9, %v1974_v12, %v11945_v26  ;;  %v7479_v27 = vld [vmem:[#allocation2 + $0xf8] sm:$0xff]  ;;  %v11948_v18 = vld [vmem:[#allocation119_spill] sm:$0xff]  ;;  %v7480_v62 = vld [vmem:[#allocation2 + $0x108] sm:$0xff] }
 0x27c   : > { %6176 = vmatprep.mubr.msk.f32.mxu0 %vm2066_vm11, %v2038_v46  ;;  %v1813_v4 = vsel %vm279_vm0, %v7479_v27, %v11946_v42  ;;  %v11947_v53 = vld [vmem:[#allocation26_spill] sm:$0xff]  ;;  %v1942_v29 = vsel %vm1922_vm7, %v1909_v57, %v11948_v18  ;;  %v2040_v56 = vsel %vm2021_vm10, %v2007_v31, %v1733_v23  ;;  %v11949_v17 = vld [vmem:[#allocation43_spill] sm:$0xff]  ;;  %v11953_v52 = vld [vmem:[#allocation85_spill] sm:$0xff] }
 0x27d   : > { %v1731_v0 = vpop.permute.xlu1 %1730  ;;  %v1910_v50 = vsel %vm325_vm3, %v1878_v21, %v11947_v53  ;;  %v1737_v36 = vpop.permute.xlu0 %1736  ;;  %v1814_v41 = vsel %vm279_vm0, %v7480_v62, %v11949_v17  ;;  %v11950_v14 = vld [vmem:[#allocation86_spill] sm:$0xff]  ;;  %v11954_v19 = vld [vmem:[#allocation107_spill] sm:$0xff]  ;;  %v11955_v34 = vld [vmem:[#allocation141_spill] sm:$0xff] }
 0x27e   : > { %v2039_v63 = vsel %vm2021_vm10, %v2006_v5, %v1731_v0  ;;  %v1846_v55 = vsel %vm1824_vm5, %v1813_v4, %v11950_v14  ;;  %v11951_v25 = vld [vmem:[#allocation118_spill] sm:$0xff]  ;;  %v1847_v58 = vsel %vm1824_vm5, %v1814_v41, %v11953_v52  ;;  %v11956_v38 = vld [vmem:[#allocation165_spill] sm:$0xff]  ;;  %v11958_v6 = vld [vmem:[#allocation32_spill] sm:$0xff] }
 0x27f   : > { %6177 = vmatmul.mubr.msk.f32.gmra.mrb[16].mxu0 %vm2066_vm11, %v2039_v63  ;;  %v1943_v40 = vsel %vm1922_vm7, %v1910_v50, %v11951_v25  ;;  %v11952_v9 = vld [vmem:[#allocation142_spill] sm:$0xff]  ;;  %v1879_v2 = vsel %vm1857_vm6, %v1846_v55, %v11954_v19  ;;  %v11959_v54 = vld [vmem:[#allocation164_spill] sm:$0xff]  ;;  %v7481_v1 = vld [vmem:[#allocation2 + $0x110] sm:$0xff] }
 0x280   : > { %v1975_v30 = vsel %vm1955_vm8, %v1942_v29, %v11952_v9  ;;  %6179 = vmatprep.mubr.msk.f32.mxu0 %vm2066_vm11, %v2040_v56  ;;  %v1976_v47 = vsel %vm1955_vm8, %v1943_v40, %v11955_v34  ;;  %v11957_v60 = vld [vmem:[#allocation106_spill] sm:$0xff]  ;;  %v1911_v22 = vsel %vm325_vm3, %v1879_v2, %v11958_v6  ;;  %v11960_v13 = vld [vmem:[#allocation49_spill] sm:$0xff]  ;;  %v7482_v59 = vld [vmem:[#allocation2 + $0x120] sm:$0xff] }
 0x281   : > { %v2008_v3 = vsel %vm1988_vm9, %v1975_v30, %v11956_v38  ;;  %v1735_v51 = vpop.permute.xlu1 %1734  ;;  %v1880_v20 = vsel %vm1857_vm6, %v1847_v58, %v11957_v60  ;;  %v2009_v33 = vsel %vm1988_vm9, %v1976_v47, %v11959_v54  ;;  %v1815_v46 = vsel %vm279_vm0, %v7481_v1, %v11960_v13  ;;  %v11961_v23 = vld [vmem:[#allocation30_spill] sm:$0xff]  ;;  %v11962_v61 = vld [vmem:[#allocation121_spill] sm:$0xff]  ;;  %v1741_v15 = vpop.permute.xlu0 %1740  ;;  %v11963_v32 = vld [vmem:[#allocation47_spill] sm:$0xff] }
 0x282   : > { %v2041_v43 = vsel %vm2021_vm10, %v2008_v3, %v1735_v51  ;;  %v1912_v28 = vsel %vm325_vm3, %v1880_v20, %v11961_v23  ;;  %v1944_v16 = vsel %vm1922_vm7, %v1911_v22, %v11962_v61  ;;  %v2042_v45 = vsel %vm2021_vm10, %v2009_v33, %v1737_v36  ;;  %v11964_v11 = vld [vmem:[#allocation88_spill] sm:$0xff]  ;;  %v11967_v12 = vld [vmem:[#allocation87_spill] sm:$0xff]  ;;  %v11968_v5 = vld [vmem:[#allocation109_spill] sm:$0xff] }
 0x283   : > { %6180 = vmatmul.mubr.msk.f32.gmra.mrb[18].mxu0 %vm2066_vm11, %v2041_v43  ;;  %v1816_v49 = vsel %vm279_vm0, %v7482_v59, %v11963_v32  ;;  %v1848_v48 = vsel %vm1824_vm5, %v1815_v46, %v11964_v11  ;;  %v11965_v8 = vld [vmem:[#allocation120_spill] sm:$0xff]  ;;  %v11969_v10 = vld [vmem:[#allocation143_spill] sm:$0xff]  ;;  %v11973_v4 = vld [vmem:[#allocation166_spill] sm:$0xff] }
 0x284   : > { %v1945_v35 = vsel %vm1922_vm7, %v1912_v28, %v11965_v8  ;;  %v11966_v24 = vld [vmem:[#allocation144_spill] sm:$0xff]  ;;  %6182 = vmatprep.mubr.msk.f32.mxu0 %vm2066_vm11, %v2042_v45  ;;  %v1849_v7 = vsel %vm1824_vm5, %v1816_v49, %v11967_v12  ;;  %v1881_v0 = vsel %vm1857_vm6, %v1848_v48, %v11968_v5  ;;  %v11970_v44 = vld [vmem:[#allocation167_spill] sm:$0xff]  ;;  %v11974_v29 = vld [vmem:[#allocation53_spill] sm:$0xff] }
 0x285   : > { %v1977_v39 = vsel %vm1955_vm8, %v1944_v16, %v11966_v24  ;;  %v1978_v21 = vsel %vm1955_vm8, %v1945_v35, %v11969_v10  ;;  %v1739_v26 = vpop.permute.xlu1 %1738  ;;  %v11971_v31 = vld [vmem:[#allocation108_spill] sm:$0xff]  ;;  %v11975_v36 = vld [vmem:[#allocation34_spill] sm:$0xff]  ;;  %v11976_v17 = vld [vmem:[#allocation123_spill] sm:$0xff]  ;;  %v1745_v55 = vpop.permute.xlu0 %1744 }
 0x286   : > { %v2010_v57 = vsel %vm1988_vm9, %v1977_v39, %v11970_v44  ;;  %v1882_v63 = vsel %vm1857_vm6, %v1849_v7, %v11971_v31  ;;  %v11972_v27 = vld [vmem:[#allocation36_spill] sm:$0xff]  ;;  %v2011_v53 = vsel %vm1988_vm9, %v1978_v21, %v11973_v4  ;;  %v7484_v25 = vld [vmem:[#allocation2 + $0x138] sm:$0xff]  ;;  %v11977_v40 = vld [vmem:[#allocation51_spill] sm:$0xff] }
 0x287   : > { %v1913_v42 = vsel %vm325_vm3, %v1881_v0, %v11972_v27  ;;  %v2043_v50 = vsel %vm2021_vm10, %v2010_v57, %v1739_v26  ;;  %v7483_v18 = vld [vmem:[#allocation2 + $0x128] sm:$0xff]  ;;  %v1914_v62 = vsel %vm325_vm3, %v1882_v63, %v11975_v36  ;;  %v2044_v14 = vsel %vm2021_vm10, %v2011_v53, %v1741_v15  ;;  %v11978_v30 = vld [vmem:[#allocation90_spill] sm:$0xff]  ;;  %v11981_v47 = vld [vmem:[#allocation89_spill] sm:$0xff] }
 0x288   : > { %v1817_v56 = vsel %vm279_vm0, %v7483_v18, %v11974_v29  ;;  %v1946_v41 = vsel %vm1922_vm7, %v1913_v42, %v11976_v17  ;;  %6183 = vmatmul.mubr.msk.f32.gmra.mrb[20].mxu0 %vm2066_vm11, %v2043_v50  ;;  %v1818_v9 = vsel %vm279_vm0, %v7484_v25, %v11977_v40  ;;  %v11979_v58 = vld [vmem:[#allocation122_spill] sm:$0xff]  ;;  %v11982_v3 = vld [vmem:[#allocation111_spill] sm:$0xff]  ;;  %v11983_v60 = vld [vmem:[#allocation145_spill] sm:$0xff] }
 0x289   : > { %v1850_v52 = vsel %vm1824_vm5, %v1817_v56, %v11978_v30  ;;  %v1947_v19 = vsel %vm1922_vm7, %v1914_v62, %v11979_v58  ;;  %v11980_v2 = vld [vmem:[#allocation146_spill] sm:$0xff]  ;;  %6185 = vmatprep.mubr.msk.f32.mxu0 %vm2066_vm11, %v2044_v14  ;;  %v1851_v38 = vsel %vm1824_vm5, %v1818_v9, %v11981_v47  ;;  %v11984_v6 = vld [vmem:[#allocation169_spill] sm:$0xff]  ;;  %v1743_v54 = vpop.permute.xlu1 %1742  ;;  %v11986_v1 = vld [vmem:[#allocation40_spill] sm:$0xff]  ;;  %v1749_v48 = vpop.permute.xlu0 %1748 }
 0x28a   : > { %v1979_v34 = vsel %vm1955_vm8, %v1946_v41, %v11980_v2  ;;  %v1883_v51 = vsel %vm1857_vm6, %v1850_v52, %v11982_v3  ;;  %v1980_v20 = vsel %vm1955_vm8, %v1947_v19, %v11983_v60  ;;  %v11985_v33 = vld [vmem:[#allocation110_spill] sm:$0xff]  ;;  %v11987_v46 = vld [vmem:[#allocation168_spill] sm:$0xff]  ;;  %v7485_v61 = vld [vmem:[#allocation2 + $0x140] sm:$0xff] }
 0x28b   : > { %v2012_v22 = vsel %vm1988_vm9, %v1979_v34, %v11984_v6  ;;  %v1884_v43 = vsel %vm1857_vm6, %v1851_v38, %v11985_v33  ;;  %v1915_v13 = vsel %vm325_vm3, %v1883_v51, %v11986_v1  ;;  %v2013_v23 = vsel %vm1988_vm9, %v1980_v20, %v11987_v46  ;;  %v11988_v16 = vld [vmem:[#allocation57_spill] sm:$0xff]  ;;  %v11989_v15 = vld [vmem:[#allocation38_spill] sm:$0xff]  ;;  %v11991_v35 = vld [vmem:[#allocation55_spill] sm:$0xff] }
 0x28c   : > { %v2045_v28 = vsel %vm2021_vm10, %v2012_v22, %v1743_v54  ;;  %v1819_v45 = vsel %vm279_vm0, %v7485_v61, %v11988_v16  ;;  %v1916_v59 = vsel %vm325_vm3, %v1884_v43, %v11989_v15  ;;  %v11990_v32 = vld [vmem:[#allocation125_spill] sm:$0xff]  ;;  %v2046_v11 = vsel %vm2021_vm10, %v2013_v23, %v1745_v55  ;;  %v11992_v39 = vld [vmem:[#allocation92_spill] sm:$0xff]  ;;  %v11995_v21 = vld [vmem:[#allocation91_spill] sm:$0xff] }
 0x28d   : > { %v1948_v49 = vsel %vm1922_vm7, %v1915_v13, %v11990_v32  ;;  %6186 = vmatmul.mubr.msk.f32.gmra.mrb[22].mxu0 %vm2066_vm11, %v2045_v28  ;;  %v7486_v8 = vld [vmem:[#allocation2 + $0x150] sm:$0xff]  ;;  %v1852_v12 = vsel %vm1824_vm5, %v1819_v45, %v11992_v39  ;;  %v11993_v7 = vld [vmem:[#allocation124_spill] sm:$0xff]  ;;  %v11997_v31 = vld [vmem:[#allocation147_spill] sm:$0xff]  ;;  %v1747_v4 = vpop.permute.xlu1 %1746  ;;  %v1753_v52 = vpop.permute.xlu0 %1752 }
 0x28e   : > { %v1820_v24 = vsel %vm279_vm0, %v7486_v8, %v11991_v35  ;;  %v1949_v5 = vsel %vm1922_vm7, %v1916_v59, %v11993_v7  ;;  %v11994_v0 = vld [vmem:[#allocation148_spill] sm:$0xff]  ;;  %6188 = vmatprep.mubr.msk.f32.mxu0 %vm2066_vm11, %v2046_v11  ;;  %v11996_v57 = vld [vmem:[#allocation113_spill] sm:$0xff]  ;;  %v11998_v27 = vld [vmem:[#allocation171_spill] sm:$0xff] }
 0x28f   : > { %v1981_v10 = vsel %vm1955_vm8, %v1948_v49, %v11994_v0  ;;  %v1853_v44 = vsel %vm1824_vm5, %v1820_v24, %v11995_v21  ;;  %v1885_v26 = vsel %vm1857_vm6, %v1852_v12, %v11996_v57  ;;  %v1982_v63 = vsel %vm1955_vm8, %v1949_v5, %v11997_v31  ;;  %v11999_v53 = vld [vmem:[#allocation112_spill] sm:$0xff]  ;;  %v12001_v56 = vld [vmem:[#allocation170_spill] sm:$0xff]  ;;  %v12002_v41 = vld [vmem:[#allocation61_spill] sm:$0xff] }
 0x290   : > { %v2014_v42 = vsel %vm1988_vm9, %v1981_v10, %v11998_v27  ;;  %v1886_v50 = vsel %vm1857_vm6, %v1853_v44, %v11999_v53  ;;  %v12000_v18 = vld [vmem:[#allocation44_spill] sm:$0xff]  ;;  %v2015_v36 = vsel %vm1988_vm9, %v1982_v63, %v12001_v56  ;;  %v7487_v17 = vld [vmem:[#allocation2 + $0x158] sm:$0xff]  ;;  %v12004_v40 = vld [vmem:[#allocation127_spill] sm:$0xff] }
 0x291   : > { %v1917_v29 = vsel %vm325_vm3, %v1885_v26, %v12000_v18  ;;  %v2047_v62 = vsel %vm2021_vm10, %v2014_v42, %v1747_v4  ;;  %v1821_v14 = vsel %vm279_vm0, %v7487_v17, %v12002_v41  ;;  %v12003_v55 = vld [vmem:[#allocation42_spill] sm:$0xff]  ;;  %v2048_v30 = vsel %vm2021_vm10, %v2015_v36, %v1749_v48  ;;  %v7488_v58 = vld [vmem:[#allocation2 + $0x168] sm:$0xff]  ;;  %v12005_v19 = vld [vmem:[#allocation59_spill] sm:$0xff]  ;;  %v1751_v46 = vpop.permute.xlu1 %1750  ;;  %v1757_v44 = vpop.permute.xlu0 %1756 }
 0x292   : > { %v1918_v25 = vsel %vm325_vm3, %v1886_v50, %v12003_v55  ;;  %v1950_v9 = vsel %vm1922_vm7, %v1917_v29, %v12004_v40  ;;  %6189 = vmatmul.mubr.msk.f32.gmra.mrb[24].mxu0 %vm2066_vm11, %v2047_v62  ;;  %v1822_v2 = vsel %vm279_vm0, %v7488_v58, %v12005_v19  ;;  %v12006_v34 = vld [vmem:[#allocation94_spill] sm:$0xff]  ;;  %v12009_v20 = vld [vmem:[#allocation93_spill] sm:$0xff]  ;;  %v12010_v22 = vld [vmem:[#allocation115_spill] sm:$0xff] }
 0x293   : > { %v1854_v47 = vsel %vm1824_vm5, %v1821_v14, %v12006_v34  ;;  %v12007_v38 = vld [vmem:[#allocation126_spill] sm:$0xff]  ;;  %6191 = vmatprep.mubr.msk.f32.mxu0 %vm2066_vm11, %v2048_v30  ;;  %v1855_v6 = vsel %vm1824_vm5, %v1822_v2, %v12009_v20  ;;  %v12011_v33 = vld [vmem:[#allocation149_spill] sm:$0xff]  ;;  %v12014_v61 = vld [vmem:[#allocation48_spill] sm:$0xff] }
 0x294   : > { %v1951_v3 = vsel %vm1922_vm7, %v1918_v25, %v12007_v38  ;;  %v12008_v51 = vld [vmem:[#allocation150_spill] sm:$0xff]  ;;  %v1887_v54 = vsel %vm1857_vm6, %v1854_v47, %v12010_v22  ;;  %v12012_v1 = vld [vmem:[#allocation5_spill] sm:$0xff]  ;;  %v12015_v45 = vld [vmem:[#allocation172_spill] sm:$0xff] }
 0x295   : > { %v1983_v60 = vsel %vm1955_vm8, %v1950_v9, %v12008_v51  ;;  %v1984_v43 = vsel %vm1955_vm8, %v1951_v3, %v12011_v33  ;;  %v12013_v23 = vld [vmem:[#allocation114_spill] sm:$0xff]  ;;  %v1919_v16 = vsel %vm325_vm3, %v1887_v54, %v12014_v61  ;;  %v7489_v32 = vld [vmem:[#allocation2 + $0x170] sm:$0xff]  ;;  %v12019_v12 = vld [vmem:[#allocation95_spill] sm:$0xff]  ;;  %v1755_v4 = vpop.permute.xlu1 %1754  ;;  %v12029_v9 = vmov 0.0  }
 0x296   : > { %v2016_v13 = vsel %vm1988_vm9, %v1983_v60, %v12012_v1  ;;  %v1888_v28 = vsel %vm1857_vm6, %v1855_v6, %v12013_v23  ;;  %v2017_v15 = vsel %vm1988_vm9, %v1984_v43, %v12015_v45  ;;  %v12016_v49 = vld [vmem:[#allocation65_spill] sm:$0xff]  ;;  %v12017_v48 = vld [vmem:[#allocation46_spill] sm:$0xff]  ;;  %v12020_v5 = vld [vmem:[#allocation128_spill] sm:$0xff]  ;;  %335 = vst.msk [vmem:[#allocation3] sm:$0x1] %vm334_vm12, %v12029_v9 }
 0x297   : > { %v2049_v59 = vsel %vm2021_vm10, %v2016_v13, %v1751_v46  ;;  %v1823_v11 = vsel %vm279_vm0, %v7489_v32, %v12016_v49  ;;  %v1920_v8 = vsel %vm325_vm3, %v1888_v28, %v12017_v48  ;;  %v12018_v35 = vld [vmem:[#allocation129_spill] sm:$0xff]  ;;  %v2050_v39 = vsel %vm2021_vm10, %v2017_v15, %v1753_v52  ;;  %v12021_v10 = vld [vmem:[#allocation152_spill] sm:$0xff]  ;;  %v12023_v31 = vld [vmem:[#allocation151_spill] sm:$0xff]  ;;  %336 = vst.msk [vmem:[#allocation3 + $0x18] sm:$0x1] %vm334_vm12, %v12029_v9 }
 0x298   : > { %v1952_v24 = vsel %vm1922_vm7, %v1919_v16, %v12018_v35  ;;  %6192 = vmatmul.mubr.msk.f32.gmra.mrb[26].mxu0 %vm2066_vm11, %v2049_v59  ;;  %v1856_v7 = vsel %vm1824_vm5, %v1823_v11, %v12019_v12  ;;  %v1953_v0 = vsel %vm1922_vm7, %v1920_v8, %v12020_v5  ;;  %v12022_v57 = vld [vmem:[#allocation116_spill] sm:$0xff]  ;;  %v12024_v27 = vld [vmem:[#allocation173_spill] sm:$0xff]  ;;  %v12025_v53 = vld [vmem:[#allocation50_spill] sm:$0xff]  ;;  %337 = vst.msk [vmem:[#allocation3 + $0x30] sm:$0x1] %vm334_vm12, %v12029_v9  ;;  %vm3772_vm0 = vcmask 654336  }
 0x299   : > { %v1985_v21 = vsel %vm1955_vm8, %v1952_v24, %v12021_v10  ;;  %6194 = vmatprep.mubr.msk.f32.mxu0 %vm2066_vm11, %v2050_v39  ;;  %v1889_v26 = vsel %vm1857_vm6, %v1856_v7, %v12022_v57  ;;  %v1986_v63 = vsel %vm1955_vm8, %v1953_v0, %v12023_v31  ;;  %v12026_v18 = vld [vmem:[#allocation63_spill] sm:$0xff]  ;;  %v12027_v36 = vld [vmem:[#allocation130_spill] sm:$0xff]  ;;  %v12028_v41 = vld [vmem:[#allocation153_spill] sm:$0xff]  ;;  %v1759_v25 = vpop.permute.xlu1 %1758  ;;  %338 = vst.msk [vmem:[#allocation3 + $0x48] sm:$0x1] %vm334_vm12, %v12029_v9 }
 0x29a   : > { %v2018_v42 = vsel %vm1988_vm9, %v1985_v21, %v12024_v27  ;;  %v1921_v50 = vsel %vm325_vm3, %v1889_v26, %v12025_v53  ;;  %v2019_v29 = vsel %vm1988_vm9, %v1986_v63, %v12026_v18  ;;  %339 = vst.msk [vmem:[#allocation3 + $0x60] sm:$0x1] %vm334_vm12, %v12029_v9  ;;  %340 = vst.msk [vmem:[#allocation3 + $0x78] sm:$0x1] %vm334_vm12, %v12029_v9  ;;  %v9538_v58 = vld [vmem:[%s11539_s2] ss:$0 sm:$0xff] }
 0x29b   : > { %v2051_v56 = vsel %vm2021_vm10, %v2018_v42, %v1755_v4  ;;  %v1954_v62 = vsel %vm1922_vm7, %v1921_v50, %v12027_v36  ;;  %v2052_v17 = vsel %vm2021_vm10, %v2019_v29, %v1757_v44  ;;  %341 = vst.msk [vmem:[#allocation3 + $0x90] sm:$0x1] %vm334_vm12, %v12029_v9  ;;  %342 = vst.msk [vmem:[#allocation3 + $0xa8] sm:$0x1] %vm334_vm12, %v12029_v9 }
 0x29c   : > { %6195 = vmatmul.mubr.msk.f32.gmra.mrb[28].mxu0 %vm2066_vm11, %v2051_v56  ;;  %v1987_v14 = vsel %vm1955_vm8, %v1954_v62, %v12028_v41  ;;  %343 = vst.msk [vmem:[#allocation3 + $0xc0] sm:$0x1] %vm334_vm12, %v12029_v9  ;;  %344 = vst.msk [vmem:[#allocation3 + $0xd8] sm:$0x1] %vm334_vm12, %v12029_v9 }
 0x29d   : > { %6197 = vmatprep.mubr.msk.f32.mxu0 %vm2066_vm11, %v2052_v17  ;;  %v2020_v55 = vsel %vm1988_vm9, %v1987_v14, %v8894_v37  ;;  %345 = vst.msk [vmem:[#allocation3 + $0xf0] sm:$0x1] %vm334_vm12, %v12029_v9  ;;  %346 = vst.msk [vmem:[#allocation3 + $0x108] sm:$0x1] %vm334_vm12, %v12029_v9  ;;  %v2489_v37 = vld [vmem:[#allocation3 + $0x1] sm:$0xff] }
 0x29e   : > { %v2053_v40 = vsel %vm2021_vm10, %v2020_v55, %v1759_v25  ;;  %347 = vst.msk [vmem:[#allocation3 + $0x120] sm:$0x1] %vm334_vm12, %v12029_v9  ;;  %348 = vst.msk [vmem:[#allocation3 + $0x138] sm:$0x1] %vm334_vm12, %v12029_v9 }
 0x29f   : > { %349 = vst.msk [vmem:[#allocation3 + $0x150] sm:$0x1] %vm334_vm12, %v12029_v9  ;;  %350 = vst.msk [vmem:[#allocation3 + $0x168] sm:$0x1] %vm334_vm12, %v12029_v9 }
 0x2a0   : > { %6198 = vmatmul.mubr.msk.f32.gmra.mrb[30].mxu0 %vm2066_vm11, %v2053_v40  ;;  %351 = vst.msk [vmem:[#allocation3 + $0x180] sm:$0x1] %vm334_vm12, %v12029_v9  ;;  %352 = vst.msk [vmem:[#allocation3 + $0x198] sm:$0x1] %vm334_vm12, %v12029_v9 }
 0x2a1   : > { %354 = vst.msk [vmem:[#allocation3 + $0x29] sm:$0x1] %vm334_vm12, %v12029_v9  ;;  %355 = vst.msk [vmem:[#allocation3 + $0x41] sm:$0x1] %vm334_vm12, %v12029_v9 }
 0x2a2   : > { %356 = vst.msk [vmem:[#allocation3 + $0x59] sm:$0x1] %vm334_vm12, %v12029_v9  ;;  %357 = vst.msk [vmem:[#allocation3 + $0x71] sm:$0x1] %vm334_vm12, %v12029_v9 }
 0x2a3   : > { %358 = vst.msk [vmem:[#allocation3 + $0x89] sm:$0x1] %vm334_vm12, %v12029_v9  ;;  %359 = vst.msk [vmem:[#allocation3 + $0xa1] sm:$0x1] %vm334_vm12, %v12029_v9 }
 0x2a4   : > { %360 = vst.msk [vmem:[#allocation3 + $0xb9] sm:$0x1] %vm334_vm12, %v12029_v9  ;;  %361 = vst.msk [vmem:[#allocation3 + $0xd1] sm:$0x1] %vm334_vm12, %v12029_v9 }
 0x2a5   : > { %362 = vst.msk [vmem:[#allocation3 + $0xe9] sm:$0x1] %vm334_vm12, %v12029_v9  ;;  %363 = vst.msk [vmem:[#allocation3 + $0x101] sm:$0x1] %vm334_vm12, %v12029_v9 }
 0x2a6   : > { %364 = vst.msk [vmem:[#allocation3 + $0x119] sm:$0x1] %vm334_vm12, %v12029_v9  ;;  %365 = vst.msk [vmem:[#allocation3 + $0x131] sm:$0x1] %vm334_vm12, %v12029_v9 }
 0x2a7   : > { %366 = vst.msk [vmem:[#allocation3 + $0x149] sm:$0x1] %vm334_vm12, %v12029_v9  ;;  %367 = vst.msk [vmem:[#allocation3 + $0x161] sm:$0x1] %vm334_vm12, %v12029_v9 }
 0x2a8   : > { %368 = vst.msk [vmem:[#allocation3 + $0x179] sm:$0x1] %vm334_vm12, %v12029_v9  ;;  %369 = vst.msk [vmem:[#allocation3 + $0x191] sm:$0x1] %vm334_vm12, %v12029_v9 }
 0x2a9   : > { %378 = vst.msk [vmem:[#allocation4] sm:$0x1] %vm334_vm12, %v12029_v9  ;;  %379 = vst.msk [vmem:[#allocation4 + $0x18] sm:$0x1] %vm334_vm12, %v12029_v9 }
 0x2aa   : > { %380 = vst.msk [vmem:[#allocation4 + $0x30] sm:$0x1] %vm334_vm12, %v12029_v9  ;;  %381 = vst.msk [vmem:[#allocation4 + $0x48] sm:$0x1] %vm334_vm12, %v12029_v9 }
 0x2ab   : > { %382 = vst.msk [vmem:[#allocation4 + $0x60] sm:$0x1] %vm334_vm12, %v12029_v9  ;;  %383 = vst.msk [vmem:[#allocation4 + $0x78] sm:$0x1] %vm334_vm12, %v12029_v9 }
 0x2ac   : > { %384 = vst.msk [vmem:[#allocation4 + $0x90] sm:$0x1] %vm334_vm12, %v12029_v9  ;;  %385 = vst.msk [vmem:[#allocation4 + $0xa8] sm:$0x1] %vm334_vm12, %v12029_v9 }
 0x2ad   : > { %386 = vst.msk [vmem:[#allocation4 + $0xc0] sm:$0x1] %vm334_vm12, %v12029_v9  ;;  %387 = vst.msk [vmem:[#allocation4 + $0xd8] sm:$0x1] %vm334_vm12, %v12029_v9 }
 0x2ae   : > { %388 = vst.msk [vmem:[#allocation4 + $0xf0] sm:$0x1] %vm334_vm12, %v12029_v9  ;;  %389 = vst.msk [vmem:[#allocation4 + $0x108] sm:$0x1] %vm334_vm12, %v12029_v9 }
 0x2af   : > { %390 = vst.msk [vmem:[#allocation4 + $0x120] sm:$0x1] %vm334_vm12, %v12029_v9  ;;  %391 = vst.msk [vmem:[#allocation4 + $0x138] sm:$0x1] %vm334_vm12, %v12029_v9 }
 0x2b0   : > { %392 = vst.msk [vmem:[#allocation4 + $0x150] sm:$0x1] %vm334_vm12, %v12029_v9  ;;  %393 = vst.msk [vmem:[#allocation4 + $0x168] sm:$0x1] %vm334_vm12, %v12029_v9 }
 0x2b1   : > { %394 = vst.msk [vmem:[#allocation4 + $0x180] sm:$0x1] %vm334_vm12, %v12029_v9  ;;  %395 = vst.msk [vmem:[#allocation4 + $0x198] sm:$0x1] %vm334_vm12, %v12029_v9 }
 0x2b2   : > { %397 = vst.msk [vmem:[#allocation4 + $0x29] sm:$0x1] %vm334_vm12, %v12029_v9  ;;  %398 = vst.msk [vmem:[#allocation4 + $0x41] sm:$0x1] %vm334_vm12, %v12029_v9 }
 0x2b3   : > { %399 = vst.msk [vmem:[#allocation4 + $0x59] sm:$0x1] %vm334_vm12, %v12029_v9  ;;  %400 = vst.msk [vmem:[#allocation4 + $0x71] sm:$0x1] %vm334_vm12, %v12029_v9 }
 0x2b4   : > { %401 = vst.msk [vmem:[#allocation4 + $0x89] sm:$0x1] %vm334_vm12, %v12029_v9  ;;  %402 = vst.msk [vmem:[#allocation4 + $0xa1] sm:$0x1] %vm334_vm12, %v12029_v9 }
 0x2b5   : > { %403 = vst.msk [vmem:[#allocation4 + $0xb9] sm:$0x1] %vm334_vm12, %v12029_v9  ;;  %404 = vst.msk [vmem:[#allocation4 + $0xd1] sm:$0x1] %vm334_vm12, %v12029_v9 }
 0x2b6   : > { %405 = vst.msk [vmem:[#allocation4 + $0xe9] sm:$0x1] %vm334_vm12, %v12029_v9  ;;  %406 = vst.msk [vmem:[#allocation4 + $0x101] sm:$0x1] %vm334_vm12, %v12029_v9 }
 0x2b7   : > { %407 = vst.msk [vmem:[#allocation4 + $0x119] sm:$0x1] %vm334_vm12, %v12029_v9  ;;  %408 = vst.msk [vmem:[#allocation4 + $0x131] sm:$0x1] %vm334_vm12, %v12029_v9 }
 0x2b8   : > { %409 = vst.msk [vmem:[#allocation4 + $0x149] sm:$0x1] %vm334_vm12, %v12029_v9  ;;  %410 = vst.msk [vmem:[#allocation4 + $0x161] sm:$0x1] %vm334_vm12, %v12029_v9 }
 0x2b9   : > { %411 = vst.msk [vmem:[#allocation4 + $0x179] sm:$0x1] %vm334_vm12, %v12029_v9  ;;  %412 = vst.msk [vmem:[#allocation4 + $0x191] sm:$0x1] %vm334_vm12, %v12029_v9 }
 0x2ba   : > { %329 = vst.msk [vmem:[#allocation3 + $0x10] sm:$0x3] %vm328_vm13, %v12029_v9  ;;  %333 = vst.msk [vmem:[#allocation3 + $0x1a8] sm:$0x3] %vm328_vm13, %v12029_v9 }
 0x2bb   : > { %373 = vst.msk [vmem:[#allocation4 + $0x10] sm:$0x3] %vm328_vm13, %v12029_v9  ;;  %377 = vst.msk [vmem:[#allocation4 + $0x1a8] sm:$0x3] %vm328_vm13, %v12029_v9 }
 0x2bc   : > { %353 = vst.msk [vmem:[#allocation3 + $0x11] sm:$0x1] %vm334_vm12, %v12029_v9  ;;  %370 = vst.msk [vmem:[#allocation3 + $0x1a9] sm:$0x1] %vm334_vm12, %v12029_v9 }
 0x2bd   : > { %396 = vst.msk [vmem:[#allocation4 + $0x11] sm:$0x1] %vm334_vm12, %v12029_v9  ;;  %413 = vst.msk [vmem:[#allocation4 + $0x1a9] sm:$0x1] %vm334_vm12, %v12029_v9 }
 0x2c1   : > { %v2490_v30 = vld [vmem:[#allocation3 + $0x9] sm:$0xff] }
 0x2c2   : > { %v6339_v52 = vpack.i.bf16 %v2490_v30, %v2489_v37 }
 0x2c4   : > { %6340 = vrot.lane.b32.xlu0 %v6339_v52, %s7538_s11 }
 0x332   : > { %v6154_v19 = vpop.f32.mrb[0].mxu0 }
 0x333   : > { %v2239_v2 = vadd.f32 %v6154_v19, %v9538_v58  ;;  %v2233_v34 = vpop.f32.mrb[1].mxu0 }
 0x334   : > { %v2234_v47 = vadd.f32 %v9538_v58, %v2233_v34 }
 0x335   : > { %v2393_v38 = vmax.f32 %v2239_v2, 0.0 }
 0x336   : > { %v2392_v3 = vmax.f32 %v2234_v47, 0.0  ;;  %v6157_v51 = vpop.f32.mrb[2].mxu0 }
 0x337   : > { %2426 = vst.msk [vmem:[#allocation3 + $0x21] sm:$0xff] %vm325_vm3, %v2393_v38  ;;  %v2249_v60 = vadd.f32 %v6157_v51, %v9538_v58  ;;  %v2243_v20 = vpop.f32.mrb[3].mxu0 }
 0x338   : > { %2425 = vst.msk [vmem:[#allocation3 + $0x19] sm:$0xff] %vm325_vm3, %v2392_v3  ;;  %v2244_v6 = vadd.f32 %v9538_v58, %v2243_v20 }
 0x339   : > { %v2395_v22 = vmax.f32 %v2249_v60, 0.0 }
 0x33a   : > { %v2394_v54 = vmax.f32 %v2244_v6, 0.0  ;;  %v6160_v33 = vpop.f32.mrb[4].mxu0 }
 0x33b   : > { %2428 = vst.msk [vmem:[#allocation3 + $0x39] sm:$0xff] %vm325_vm3, %v2395_v22  ;;  %v2259_v43 = vadd.f32 %v6160_v33, %v9538_v58  ;;  %v2253_v1 = vpop.f32.mrb[5].mxu0 }
 0x33c   : > { %2427 = vst.msk [vmem:[#allocation3 + $0x31] sm:$0xff] %vm325_vm3, %v2394_v54  ;;  %v2254_v13 = vadd.f32 %v9538_v58, %v2253_v1 }
 0x33d   : > { %v2397_v46 = vmax.f32 %v2259_v43, 0.0 }
 0x33e   : > { %v2396_v23 = vmax.f32 %v2254_v13, 0.0  ;;  %v6163_v28 = vpop.f32.mrb[6].mxu0  ;;  %v2492_v61 = vld [vmem:[#allocation3 + $0x21] sm:$0xff] }
 0x33f   : > { %2430 = vst.msk [vmem:[#allocation3 + $0x51] sm:$0xff] %vm325_vm3, %v2397_v46  ;;  %v2269_v16 = vadd.f32 %v6163_v28, %v9538_v58  ;;  %v2263_v45 = vpop.f32.mrb[7].mxu0  ;;  %v2491_v15 = vld [vmem:[#allocation3 + $0x19] sm:$0xff] }
 0x340   : > { %2429 = vst.msk [vmem:[#allocation3 + $0x49] sm:$0xff] %vm325_vm3, %v2396_v23  ;;  %v2264_v59 = vadd.f32 %v9538_v58, %v2263_v45  ;;  %v9554_v32 = vpack.i.bf16 %v2492_v61, %v2491_v15 }
 0x341   : > { %v2399_v49 = vmax.f32 %v2269_v16, 0.0 }
 0x342   : > { %v2398_v11 = vmax.f32 %v2264_v59, 0.0  ;;  %6345 = vrot.lane.b32.xlu1 %v9554_v32, %s7538_s11  ;;  %v6166_v48 = vpop.f32.mrb[8].mxu0  ;;  %v2494_v8 = vld [vmem:[#allocation3 + $0x39] sm:$0xff] }
 0x343   : > { %2432 = vst.msk [vmem:[#allocation3 + $0x69] sm:$0xff] %vm325_vm3, %v2399_v49  ;;  %v2279_v35 = vadd.f32 %v6166_v48, %v9538_v58  ;;  %v2273_v24 = vpop.f32.mrb[9].mxu0  ;;  %v9560_v39 = vld [vmem:[#allocation3 + $0x32] sm:$0xff] }
 0x344   : > { %v2493_v12 = vld [vmem:[#allocation3 + $0x31] sm:$0xff]  ;;  %2431 = vst.msk [vmem:[#allocation3 + $0x61] sm:$0xff] %vm325_vm3, %v2398_v11  ;;  %v2274_v7 = vadd.f32 %v9538_v58, %v2273_v24  ;;  %6035 = vmatprep.mubr.msk.f32.mxu1 %vm325_vm3, %v9560_v39 }
 0x345   : > { %v9566_v5 = vpack.i.bf16 %v2494_v8, %v2493_v12  ;;  %v2401_v0 = vmax.f32 %v2279_v35, 0.0 }
 0x346   : > { %v2400_v10 = vmax.f32 %v2274_v7, 0.0  ;;  %v6169_v21 = vpop.f32.mrb[10].mxu0  ;;  %v2496_v44 = vld [vmem:[#allocation3 + $0x51] sm:$0xff] }
 0x347   : > { %6350 = vrot.lane.b32.xlu0 %v9566_v5, %s7538_s11  ;;  %2434 = vst.msk [vmem:[#allocation3 + $0x81] sm:$0xff] %vm325_vm3, %v2401_v0  ;;  %v2289_v57 = vadd.f32 %v6169_v21, %v9538_v58  ;;  %v2283_v26 = vpop.f32.mrb[11].mxu0  ;;  %v2495_v31 = vld [vmem:[#allocation3 + $0x49] sm:$0xff] }
 0x348   : > { %2433 = vst.msk [vmem:[#allocation3 + $0x79] sm:$0xff] %vm325_vm3, %v2400_v10  ;;  %v2284_v63 = vadd.f32 %v9538_v58, %v2283_v26  ;;  %v9574_v27 = vpack.i.bf16 %v2496_v44, %v2495_v31 }
 0x349   : > { %v2403_v42 = vmax.f32 %v2289_v57, 0.0 }
 0x34a   : > { %v2402_v4 = vmax.f32 %v2284_v63, 0.0  ;;  %v6172_v53 = vpop.f32.mrb[12].mxu0  ;;  %6355 = vrot.lane.b32.xlu1 %v9574_v27, %s7538_s11  ;;  %v2498_v50 = vld [vmem:[#allocation3 + $0x69] sm:$0xff] }
 0x34b   : > { %2436 = vst.msk [vmem:[#allocation3 + $0x99] sm:$0xff] %vm325_vm3, %v2403_v42  ;;  %v2299_v18 = vadd.f32 %v6172_v53, %v9538_v58  ;;  %v2293_v29 = vpop.f32.mrb[13].mxu0  ;;  %v2497_v56 = vld [vmem:[#allocation3 + $0x61] sm:$0xff] }
 0x34c   : > { %2435 = vst.msk [vmem:[#allocation3 + $0x91] sm:$0xff] %vm325_vm3, %v2402_v4  ;;  %v2294_v36 = vadd.f32 %v9538_v58, %v2293_v29  ;;  %v9582_v62 = vpack.i.bf16 %v2498_v50, %v2497_v56 }
 0x34d   : > { %v2405_v17 = vmax.f32 %v2299_v18, 0.0 }
 0x34e   : > { %v2404_v41 = vmax.f32 %v2294_v36, 0.0  ;;  %v6175_v14 = vpop.f32.mrb[14].mxu0  ;;  %6360 = vrot.lane.b32.xlu0 %v9582_v62, %s7538_s11  ;;  %v2500_v55 = vld [vmem:[#allocation3 + $0x81] sm:$0xff] }
 0x34f   : > { %2438 = vst.msk [vmem:[#allocation3 + $0xb1] sm:$0xff] %vm325_vm3, %v2405_v17  ;;  %v2309_v25 = vadd.f32 %v6175_v14, %v9538_v58  ;;  %v2303_v40 = vpop.f32.mrb[15].mxu0  ;;  %v2499_v9 = vld [vmem:[#allocation3 + $0x79] sm:$0xff] }
 0x350   : > { %2437 = vst.msk [vmem:[#allocation3 + $0xa9] sm:$0xff] %vm325_vm3, %v2404_v41  ;;  %v2304_v37 = vadd.f32 %v9538_v58, %v2303_v40  ;;  %v9590_v30 = vpack.i.bf16 %v2500_v55, %v2499_v9 }
 0x351   : > { %v2407_v52 = vmax.f32 %v2309_v25, 0.0 }
 0x352   : > { %v2406_v19 = vmax.f32 %v2304_v37, 0.0  ;;  %v6178_v2 = vpop.f32.mrb[16].mxu0  ;;  %6365 = vrot.lane.b32.xlu1 %v9590_v30, %s7538_s11  ;;  %v2502_v34 = vld [vmem:[#allocation3 + $0x99] sm:$0xff] }
 0x353   : > { %2440 = vst.msk [vmem:[#allocation3 + $0xc9] sm:$0xff] %vm325_vm3, %v2407_v52  ;;  %v2319_v47 = vadd.f32 %v6178_v2, %v9538_v58  ;;  %v2313_v38 = vpop.f32.mrb[17].mxu0  ;;  %v2501_v3 = vld [vmem:[#allocation3 + $0x91] sm:$0xff] }
 0x354   : > { %2439 = vst.msk [vmem:[#allocation3 + $0xc1] sm:$0xff] %vm325_vm3, %v2406_v19  ;;  %v2314_v51 = vadd.f32 %v9538_v58, %v2313_v38  ;;  %v9598_v60 = vpack.i.bf16 %v2502_v34, %v2501_v3 }
 0x355   : > { %v2409_v20 = vmax.f32 %v2319_v47, 0.0 }
 0x356   : > { %v2408_v6 = vmax.f32 %v2314_v51, 0.0  ;;  %v6181_v22 = vpop.f32.mrb[18].mxu0  ;;  %6370 = vrot.lane.b32.xlu0 %v9598_v60, %s7538_s11  ;;  %v2504_v54 = vld [vmem:[#allocation3 + $0xb1] sm:$0xff] }
 0x357   : > { %2442 = vst.msk [vmem:[#allocation3 + $0xe1] sm:$0xff] %vm325_vm3, %v2409_v20  ;;  %v2329_v33 = vadd.f32 %v6181_v22, %v9538_v58  ;;  %v2323_v43 = vpop.f32.mrb[19].mxu0  ;;  %v2503_v1 = vld [vmem:[#allocation3 + $0xa9] sm:$0xff] }
 0x358   : > { %2441 = vst.msk [vmem:[#allocation3 + $0xd9] sm:$0xff] %vm325_vm3, %v2408_v6  ;;  %v2324_v13 = vadd.f32 %v9538_v58, %v2323_v43  ;;  %v9606_v46 = vpack.i.bf16 %v2504_v54, %v2503_v1 }
 0x359   : > { %v2411_v23 = vmax.f32 %v2329_v33, 0.0 }
 0x35a   : > { %v2410_v28 = vmax.f32 %v2324_v13, 0.0  ;;  %6375 = vrot.lane.b32.xlu1 %v9606_v46, %s7538_s11  ;;  %v2506_v16 = vld [vmem:[#allocation3 + $0xc9] sm:$0xff] }
 0x35b   : > { %v6184_v61 = vpop.f32.mrb[20].mxu0  ;;  %2444 = vst.msk [vmem:[#allocation3 + $0xf9] sm:$0xff] %vm325_vm3, %v2411_v23  ;;  %v2505_v59 = vld [vmem:[#allocation3 + $0xc1] sm:$0xff] }
 0x35c   : > { %v2339_v45 = vadd.f32 %v6184_v61, %v9538_v58  ;;  %v2333_v15 = vpop.f32.mrb[21].mxu0  ;;  %2443 = vst.msk [vmem:[#allocation3 + $0xf1] sm:$0xff] %vm325_vm3, %v2410_v28  ;;  %v9614_v11 = vpack.i.bf16 %v2506_v16, %v2505_v59  ;;  %v2521_v16 = vld [vmem:[#allocation3 + $0x2] sm:$0xff] }
 0x35d   : > { %v2334_v49 = vadd.f32 %v9538_v58, %v2333_v15 }
 0x35e   : > { %v2413_v48 = vmax.f32 %v2339_v45, 0.0  ;;  %6380 = vrot.lane.b32.xlu0 %v9614_v11, %s7538_s11  ;;  %v2508_v24 = vld [vmem:[#allocation3 + $0xe1] sm:$0xff]  ;;  %v2522_v45 = vld [vmem:[#allocation3 + $0xa] sm:$0xff] }
 0x35f   : > { %v2412_v8 = vmax.f32 %v2334_v49, 0.0  ;;  %v2507_v0 = vld [vmem:[#allocation3 + $0xd9] sm:$0xff]  ;;  %v6419_v59 = vpack.i.bf16 %v2522_v45, %v2521_v16 }
 0x360   : > { %v6187_v35 = vpop.f32.mrb[22].mxu0  ;;  %2446 = vst.msk [vmem:[#allocation3 + $0x111] sm:$0xff] %vm325_vm3, %v2413_v48  ;;  %v9622_v21 = vpack.i.bf16 %v2508_v24, %v2507_v0  ;;  %v2526_v24 = vld [vmem:[#allocation3 + $0x3a] sm:$0xff]  ;;  %v2528_v0 = vld [vmem:[#allocation3 + $0x52] sm:$0xff] }
 0x361   : > { %v2349_v12 = vadd.f32 %v6187_v35, %v9538_v58  ;;  %v2343_v7 = vpop.f32.mrb[23].mxu0  ;;  %2445 = vst.msk [vmem:[#allocation3 + $0x109] sm:$0xff] %vm325_vm3, %v2412_v8  ;;  %v2523_v8 = vld [vmem:[#allocation3 + $0x1a] sm:$0xff]  ;;  %v2524_v35 = vld [vmem:[#allocation3 + $0x22] sm:$0xff] }
 0x362   : > { %v2344_v10 = vadd.f32 %v9538_v58, %v2343_v7  ;;  %6385 = vrot.lane.b32.xlu1 %v9622_v21, %s7538_s11  ;;  %v2510_v31 = vld [vmem:[#allocation3 + $0xf9] sm:$0xff]  ;;  %v9672_v7 = vpack.i.bf16 %v2526_v24, %v9560_v39 }
 0x363   : > { %v2415_v44 = vmax.f32 %v2349_v12, 0.0  ;;  %v2509_v4 = vld [vmem:[#allocation3 + $0xf1] sm:$0xff]  ;;  %v9669_v12 = vpack.i.bf16 %v2524_v35, %v2523_v8  ;;  %v9720_v16 = vld [vmem:[#allocation3 + $0x20] sm:$0xff]  ;;  %v9730_v8 = vld [vmem:[#allocation3 + $0x48] sm:$0xff] }
 0x364   : > { %v2414_v57 = vmax.f32 %v2344_v10, 0.0  ;;  %v9630_v50 = vpack.i.bf16 %v2510_v31, %v2509_v4  ;;  %v2527_v10 = vld [vmem:[#allocation3 + $0x4a] sm:$0xff]  ;;  %v2533_v4 = vld [vmem:[#allocation3 + $0x92] sm:$0xff] }
 0x365   : > { %v6190_v26 = vpop.f32.mrb[24].mxu0  ;;  %2448 = vst.msk [vmem:[#allocation3 + $0x129] sm:$0xff] %vm325_vm3, %v2415_v44  ;;  %v2529_v44 = vld [vmem:[#allocation3 + $0x62] sm:$0xff]  ;;  %v9732_v35 = vld [vmem:[#allocation3 + $0x50] sm:$0xff] }
 0x366   : > { %v2359_v63 = vadd.f32 %v6190_v26, %v9538_v58  ;;  %v2353_v42 = vpop.f32.mrb[25].mxu0  ;;  %2447 = vst.msk [vmem:[#allocation3 + $0x121] sm:$0xff] %vm325_vm3, %v2414_v57  ;;  %6390 = vrot.lane.b32.xlu0 %v9630_v50, %s7538_s11  ;;  %v2530_v57 = vld [vmem:[#allocation3 + $0x6a] sm:$0xff]  ;;  %v9678_v26 = vpack.i.bf16 %v2528_v0, %v2527_v10  ;;  %v9742_v0 = vpack.i.bf16 %v9732_v35, %v9730_v8  ;;  %v9744_v10 = vld [vmem:[#allocation3 + $0x60] sm:$0xff] }
 0x367   : > { %v2354_v53 = vadd.f32 %v9538_v58, %v2353_v42  ;;  %v2512_v36 = vld [vmem:[#allocation3 + $0x111] sm:$0xff]  ;;  %v9680_v31 = vpack.i.bf16 %v2530_v57, %v2529_v44  ;;  %v2531_v42 = vld [vmem:[#allocation3 + $0x7a] sm:$0xff]  ;;  %v9746_v44 = vld [vmem:[#allocation3 + $0x68] sm:$0xff] }
 0x368   : > { %v2417_v18 = vmax.f32 %v2359_v63, 0.0  ;;  %v2511_v14 = vld [vmem:[#allocation3 + $0x109] sm:$0xff]  ;;  %v9748_v57 = vld [vmem:[#allocation3 + $0x78] sm:$0xff] }
 0x369   : > { %v2416_v29 = vmax.f32 %v2354_v53, 0.0  ;;  %v9638_v25 = vpack.i.bf16 %v2512_v36, %v2511_v14  ;;  %v2532_v63 = vld [vmem:[#allocation3 + $0x82] sm:$0xff]  ;;  %v2534_v53 = vld [vmem:[#allocation3 + $0x9a] sm:$0xff] }
 0x36a   : > { %2450 = vst.msk [vmem:[#allocation3 + $0x141] sm:$0xff] %vm325_vm3, %v2417_v18  ;;  %v9686_v39 = vpack.i.bf16 %v2532_v63, %v2531_v42  ;;  %v9688_v18 = vpack.i.bf16 %v2534_v53, %v2533_v4  ;;  %v2537_v36 = vld [vmem:[#allocation3 + $0xc2] sm:$0xff]  ;;  %v9758_v42 = vpack.i.bf16 %v9746_v44, %v9744_v10  ;;  %v9764_v53 = vld [vmem:[#allocation3 + $0x90] sm:$0xff] }
 0x36b   : > { %v6193_v56 = vpop.f32.mrb[26].mxu0  ;;  %2449 = vst.msk [vmem:[#allocation3 + $0x139] sm:$0xff] %vm325_vm3, %v2416_v29  ;;  %6395 = vrot.lane.b32.xlu1 %v9638_v25, %s7538_s11  ;;  %v2536_v29 = vld [vmem:[#allocation3 + $0xb2] sm:$0xff]  ;;  %v9750_v63 = vld [vmem:[#allocation3 + $0x80] sm:$0xff] }
 0x36c   : > { %v2369_v17 = vadd.f32 %v6193_v56, %v9538_v58  ;;  %v2363_v41 = vpop.f32.mrb[27].mxu0  ;;  %v2514_v52 = vld [vmem:[#allocation3 + $0x129] sm:$0xff]  ;;  %v9762_v4 = vpack.i.bf16 %v9750_v63, %v9748_v57 }
 0x36d   : > { %v2364_v55 = vadd.f32 %v9538_v58, %v2363_v41  ;;  %v2513_v34 = vld [vmem:[#allocation3 + $0x121] sm:$0xff]  ;;  %v2535_v56 = vld [vmem:[#allocation3 + $0xaa] sm:$0xff] }
 0x36e   : > { %v2419_v40 = vmax.f32 %v2369_v17, 0.0  ;;  %v9646_v38 = vpack.i.bf16 %v2514_v52, %v2513_v34  ;;  %v2538_v17 = vld [vmem:[#allocation3 + $0xca] sm:$0xff]  ;;  %v9694_v41 = vpack.i.bf16 %v2536_v29, %v2535_v56  ;;  %v2564_v29 = vld [vmem:[#allocation3 + $0x98] sm:$0xff] }
 0x36f   : > { %v2418_v9 = vmax.f32 %v2364_v55, 0.0  ;;  %v6196_v37 = vpop.f32.mrb[28].mxu0  ;;  %v9696_v14 = vpack.i.bf16 %v2538_v17, %v2537_v36  ;;  %v2540_v55 = vld [vmem:[#allocation3 + $0xe2] sm:$0xff]  ;;  %v2543_v34 = vld [vmem:[#allocation3 + $0x10a] sm:$0xff]  ;;  %v9771_v17 = vpack.i.bf16 %v2564_v29, %v9764_v53 }
 0x370   : > { %2452 = vst.msk [vmem:[#allocation3 + $0x159] sm:$0xff] %vm325_vm3, %v2419_v40  ;;  %v2379_v19 = vadd.f32 %v6196_v37, %v9538_v58  ;;  %v2373_v2 = vpop.f32.mrb[29].mxu0  ;;  %6400 = vrot.lane.b32.xlu0 %v9646_v38, %s7538_s11  ;;  %v2539_v40 = vld [vmem:[#allocation3 + $0xda] sm:$0xff]  ;;  %v2565_v56 = vld [vmem:[#allocation3 + $0xa8] sm:$0xff]  ;;  %v2566_v36 = vld [vmem:[#allocation3 + $0xb0] sm:$0xff] }
 0x371   : > { %2451 = vst.msk [vmem:[#allocation3 + $0x151] sm:$0xff] %vm325_vm3, %v2418_v9  ;;  %v2374_v47 = vadd.f32 %v9538_v58, %v2373_v2  ;;  %v2516_v6 = vld [vmem:[#allocation3 + $0x141] sm:$0xff]  ;;  %v2541_v9 = vld [vmem:[#allocation3 + $0xf2] sm:$0xff]  ;;  %v9702_v52 = vpack.i.bf16 %v2540_v55, %v2539_v40  ;;  %v9773_v55 = vpack.i.bf16 %v2566_v36, %v2565_v56 }
 0x372   : > { %v2421_v3 = vmax.f32 %v2379_v19, 0.0  ;;  %v2515_v33 = vld [vmem:[#allocation3 + $0x139] sm:$0xff] }
 0x373   : > { %v2420_v51 = vmax.f32 %v2374_v47, 0.0  ;;  %v6199_v20 = vpop.f32.mrb[30].mxu0  ;;  %v9654_v1 = vpack.i.bf16 %v2516_v6, %v2515_v33  ;;  %v2542_v37 = vld [vmem:[#allocation3 + $0xfa] sm:$0xff]  ;;  %v2544_v2 = vld [vmem:[#allocation3 + $0x112] sm:$0xff]  ;;  %v2545_v47 = vld [vmem:[#allocation3 + $0x122] sm:$0xff] }
 0x374   : > { %2454 = vst.msk [vmem:[#allocation3 + $0x171] sm:$0xff] %vm325_vm3, %v2421_v3  ;;  %v2389_v22 = vadd.f32 %v6199_v20, %v9538_v58  ;;  %v2383_v54 = vpop.f32.mrb[31].mxu0  ;;  %v9704_v19 = vpack.i.bf16 %v2542_v37, %v2541_v9  ;;  %v2546_v3 = vld [vmem:[#allocation3 + $0x12a] sm:$0xff]  ;;  %v2548_v6 = vld [vmem:[#allocation3 + $0x142] sm:$0xff]  ;;  %v2569_v37 = vld [vmem:[#allocation3 + $0xd8] sm:$0xff] }
 0x375   : > { %2453 = vst.msk [vmem:[#allocation3 + $0x169] sm:$0xff] %vm325_vm3, %v2420_v51  ;;  %v2384_v43 = vadd.f32 %v9538_v58, %v2383_v54  ;;  %6405 = vrot.lane.b32.xlu1 %v9654_v1, %s7538_s11  ;;  %v9710_v51 = vpack.i.bf16 %v2544_v2, %v2543_v34  ;;  %v9712_v20 = vpack.i.bf16 %v2546_v3, %v2545_v47  ;;  %v2567_v40 = vld [vmem:[#allocation3 + $0xc0] sm:$0xff]  ;;  %v2568_v9 = vld [vmem:[#allocation3 + $0xc8] sm:$0xff]  ;;  %v2571_v3 = vld [vmem:[#allocation3 + $0xf0] sm:$0xff] }
 0x376   : > { %v2423_v13 = vmax.f32 %v2389_v22, 0.0  ;;  %v2547_v22 = vld [vmem:[#allocation3 + $0x13a] sm:$0xff]  ;;  %v9779_v34 = vpack.i.bf16 %v2568_v9, %v2567_v40  ;;  %v7544_v9 = vmov 0.0|0.0  }
 0x377   : > { %v2422_v23 = vmax.f32 %v2384_v43, 0.0  ;;  %v2518_v28 = vld [vmem:[#allocation3 + $0x159] sm:$0xff]  ;;  %v6484_v43 = vpack.i.bf16 %v2548_v6, %v2547_v22  ;;  %v2573_v22 = vld [vmem:[#allocation3 + $0x108] sm:$0xff]  ;;  %6208 = vmatprep.subr.bf16.mxu1 %v7544_v9 }
 0x378   : > { %2456 = vst.msk [vmem:[#allocation3 + $0x189] sm:$0xff] %vm325_vm3, %v2423_v13  ;;  %v2517_v61 = vld [vmem:[#allocation3 + $0x151] sm:$0xff]  ;;  %v2550_v33 = vld [vmem:[#allocation3 + $0x15a] sm:$0xff] }
 0x379   : > { %2455 = vst.msk [vmem:[#allocation3 + $0x181] sm:$0xff] %vm325_vm3, %v2422_v23  ;;  %v9660_v15 = vpack.i.bf16 %v2518_v28, %v2517_v61  ;;  %v2549_v54 = vld [vmem:[#allocation3 + $0x152] sm:$0xff]  ;;  %v2570_v2 = vld [vmem:[#allocation3 + $0xe0] sm:$0xff] }
 0x37a   : > { %v6489_v13 = vpack.i.bf16 %v2550_v33, %v2549_v54  ;;  %v9718_v23 = vld [vmem:[#allocation3 + $0x18] sm:$0xff]  ;;  %v9781_v47 = vpack.i.bf16 %v2570_v2, %v2569_v37  ;;  %v2574_v54 = vld [vmem:[#allocation3 + $0x110] sm:$0xff] }
 0x37b   : > { %6410 = vrot.lane.b32.xlu0 %v9660_v15, %s7538_s11  ;;  %v2520_v58 = vld [vmem:[#allocation3 + $0x171] sm:$0xff] }
 0x37c   : > { %v2519_v49 = vld [vmem:[#allocation3 + $0x169] sm:$0xff]  ;;  %v2552_v61 = vld [vmem:[#allocation3 + $0x172] sm:$0xff] }
 0x37d   : > { %v9664_v48 = vpack.i.bf16 %v2520_v58, %v2519_v49  ;;  %v2551_v28 = vld [vmem:[#allocation3 + $0x16a] sm:$0xff]  ;;  %v6499_v58 = vpack.i.bf16 %v9720_v16, %v9718_v23  ;;  %v9728_v49 = vld [vmem:[#allocation3 + $0x38] sm:$0xff] }
 0x37e   : > { %v6494_v45 = vpack.i.bf16 %v2552_v61, %v2551_v28  ;;  %v2572_v6 = vld [vmem:[#allocation3 + $0xf8] sm:$0xff]  ;;  %v2576_v28 = vld [vmem:[#allocation3 + $0x128] sm:$0xff]  ;;  %v2579_v56 = vld [vmem:[#allocation3 + $0x150] sm:$0xff] }
 0x37f   : > { %6415 = vrot.lane.b32.xlu1 %v9664_v48, %s7538_s11  ;;  %6420 = vrot.lane.b32.xlu0 %v6419_v59, %s7542_s27  ;;  %v9726_v59 = vld [vmem:[#allocation3 + $0x30] sm:$0xff]  ;;  %v9787_v33 = vpack.i.bf16 %v2572_v6, %v2571_v3  ;;  %v2577_v61 = vld [vmem:[#allocation3 + $0x138] sm:$0xff]  ;;  %v2581_v40 = vld [vmem:[#allocation3 + $0x168] sm:$0xff] }
 0x380   : > { %v9738_v24 = vpack.i.bf16 %v9728_v49, %v9726_v59  ;;  %v2580_v36 = vld [vmem:[#allocation3 + $0x158] sm:$0xff]  ;;  %v2582_v37 = vld [vmem:[#allocation3 + $0x170] sm:$0xff] }
 0x381   : > { %v3871_v2 = vld [vmem:[%s11540_s3] sm:$0xff]  ;;  %v3872_v3 = vld [vmem:[%s11540_s3 + $0x8] sm:$0xff] }
 0x382   : > { %v6209_v6 = vpack.c.bf16 %v3872_v3, %v3871_v2  ;;  %v3877_v3 = vld [vmem:[%s11540_s3 + $0x30] sm:$0xff] }
 0x383   : > { %6425 = vrot.lane.b32.xlu1 %v9669_v12, %s7542_s27  ;;  %6430 = vrot.lane.b32.xlu0 %v9672_v7, %s7542_s27 }
 0x384   : > { %6210 = vmatpush1.bf16.msra.mxu1 %v6209_v6  ;;  %v3878_v6 = vld [vmem:[%s11540_s3 + $0x38] sm:$0xff] }
 0x385   : > { %6211 = vmatprep.subr.bf16.mxu1 %v7544_v9 }
 0x387   : > { %6435 = vrot.lane.b32.xlu1 %v9678_v26, %s7542_s27  ;;  %6440 = vrot.lane.b32.xlu0 %v9680_v31, %s7542_s27 }
 0x38b   : > { %6445 = vrot.lane.b32.xlu1 %v9686_v39, %s7542_s27  ;;  %6450 = vrot.lane.b32.xlu0 %v9688_v18, %s7542_s27 }
 0x38f   : > { %6455 = vrot.lane.b32.xlu1 %v9694_v41, %s7542_s27  ;;  %6460 = vrot.lane.b32.xlu0 %v9696_v14, %s7542_s27 }
 0x393   : > { %6465 = vrot.lane.b32.xlu1 %v9702_v52, %s7542_s27  ;;  %6470 = vrot.lane.b32.xlu0 %v9704_v19, %s7542_s27 }
 0x397   : > { %6475 = vrot.lane.b32.xlu1 %v9710_v51, %s7542_s27  ;;  %6480 = vrot.lane.b32.xlu0 %v9712_v20, %s7542_s27 }
 0x39b   : > { %6485 = vrot.lane.b32.xlu1 %v6484_v43, %s7542_s27  ;;  %6490 = vrot.lane.b32.xlu0 %v6489_v13, %s7542_s27  ;;  %v9789_v43 = vpack.i.bf16 %v2574_v54, %v2573_v22  ;;  %v2575_v13 = vld [vmem:[#allocation3 + $0x120] sm:$0xff]  ;;  %v9810_v22 = vpack.i.bf16 %v2580_v36, %v2579_v56  ;;  %v9812_v54 = vpack.i.bf16 %v2582_v37, %v2581_v40  ;;  %v3875_v40 = vld [vmem:[%s11540_s3 + $0x20] sm:$0xff]  ;;  %v3876_v37 = vld [vmem:[%s11540_s3 + $0x28] sm:$0xff] }
 0x39c   : > { %v6215_v2 = vpack.c.bf16 %v3876_v37, %v3875_v40  ;;  %v3884_v40 = vld [vmem:[%s11540_s3 + $0x68] sm:$0xff]  ;;  %v9878_v37 = vpop.permute.xlu0 %6340 }
 0x39f   : > { %6495 = vrot.lane.b32.xlu1 %v6494_v45, %s7542_s27  ;;  %6500 = vrot.lane.b32.xlu0 %v6499_v58, %s7543_s30  ;;  %v2578_v45 = vld [vmem:[#allocation3 + $0x140] sm:$0xff]  ;;  %v9795_v58 = vpack.i.bf16 %v2576_v28, %v2575_v13  ;;  %v2584_v28 = vld [vmem:[#allocation3 + $0x188] sm:$0xff] }
 0x3a0   : > { %v9797_v29 = vpack.i.bf16 %v2578_v45, %v2577_v61  ;;  %v2583_v13 = vld [vmem:[#allocation3 + $0x180] sm:$0xff]  ;;  %v3874_v45 = vld [vmem:[%s11540_s3 + $0x18] sm:$0xff] }
 0x3a1   : > { %v3873_v61 = vld [vmem:[%s11540_s3 + $0x10] sm:$0xff]  ;;  %v9825_v36 = vpack.i.bf16 %v2584_v28, %v2583_v13  ;;  %v6218_v13 = vpack.c.bf16 %v3878_v6, %v3877_v3  ;;  %v3880_v28 = vld [vmem:[%s11540_s3 + $0x48] sm:$0xff]  ;;  %v3887_v6 = vld [vmem:[%s11540_s3 + $0x80] sm:$0xff] }
 0x3a2   : > { %v6212_v56 = vpack.c.bf16 %v3874_v45, %v3873_v61  ;;  %v3881_v45 = vld [vmem:[%s11540_s3 + $0x50] sm:$0xff] }
 0x3a3   : > { %6505 = vrot.lane.b32.xlu1 %v9738_v24, %s7543_s30  ;;  %6510 = vrot.lane.b32.xlu0 %v9742_v0, %s7543_s30 }
 0x3a4   : > { %6213 = vmatpush1.bf16.msra.mxu1 %v6212_v56  ;;  %v3882_v56 = vld [vmem:[%s11540_s3 + $0x58] sm:$0xff] }
 0x3a5   : > { %6214 = vmatprep.subr.bf16.mxu1 %v7544_v9 }
 0x3a7   : > { %6515 = vrot.lane.b32.xlu1 %v9758_v42, %s7543_s30  ;;  %6520 = vrot.lane.b32.xlu0 %v9762_v4, %s7543_s30 }
 0x3a8   : > { %6216 = vmatpush1.bf16.msra.mxu1 %v6215_v2  ;;  %v3886_v2 = vld [vmem:[%s11540_s3 + $0x78] sm:$0xff] }
 0x3a9   : > { %6217 = vmatprep.subr.bf16.mxu1 %v7544_v9 }
 0x3ab   : > { %6525 = vrot.lane.b32.xlu1 %v9771_v17, %s7543_s30  ;;  %6530 = vrot.lane.b32.xlu0 %v9773_v55, %s7543_s30 }
 0x3ac   : > { %6219 = vmatpush1.bf16.msra.mxu1 %v6218_v13  ;;  %v3888_v13 = vld [vmem:[%s11540_s3 + $0x88] sm:$0xff] }
 0x3ad   : > { %6220 = vmatprep.subr.bf16.mxu1 %v7544_v9 }
 0x3af   : > { %6535 = vrot.lane.b32.xlu1 %v9779_v34, %s7543_s30  ;;  %6540 = vrot.lane.b32.xlu0 %v9781_v47, %s7543_s30 }
 0x3b3   : > { %6545 = vrot.lane.b32.xlu1 %v9787_v33, %s7543_s30  ;;  %6550 = vrot.lane.b32.xlu0 %v9789_v43, %s7543_s30 }
 0x3b7   : > { %6555 = vrot.lane.b32.xlu1 %v9795_v58, %s7543_s30  ;;  %6560 = vrot.lane.b32.xlu0 %v9797_v29, %s7543_s30 }
 0x3b9   : > { %v9897_v3 = vpop.permute.xlu0 %6350 }
 0x3bb   : > { %6565 = vrot.lane.b32.xlu1 %v9810_v22, %s7543_s30  ;;  %6570 = vrot.lane.b32.xlu0 %v9812_v54, %s7543_s30 }
 0x3bf   : > { %6575 = vrot.lane.b32.xlu1 %v9825_v36, %s7543_s30  ;;  %6580 = vrot.lane.b32.xlu0 %v9554_v32, %s7545_s21  ;;  %v3879_v32 = vld [vmem:[%s11540_s3 + $0x40] sm:$0xff] }
 0x3c0   : > { %v6221_v61 = vpack.c.bf16 %v3880_v28, %v3879_v32  ;;  %v9912_v32 = vpop.permute.xlu0 %6360 }
 0x3c2   : > { %6222 = vmatpush1.bf16.msra.mxu1 %v6221_v61  ;;  %v2686_v61 = vld [vmem:[#allocation3 + $0x61] sm:$0xff] }
 0x3c3   : > { %6585 = vrot.lane.b32.xlu1 %v9566_v5, %s7545_s21  ;;  %6590 = vrot.lane.b32.xlu0 %v9574_v27, %s7545_s21 }
 0x3c4   : > { %6223 = vmatprep.subr.bf16.mxu1 %v7544_v9 }
 0x3c7   : > { %6595 = vrot.lane.b32.xlu1 %v9582_v62, %s7545_s21  ;;  %6600 = vrot.lane.b32.xlu0 %v9590_v30, %s7545_s21  ;;  %v6224_v62 = vpack.c.bf16 %v3882_v56, %v3881_v45  ;;  %v3883_v30 = vld [vmem:[%s11540_s3 + $0x60] sm:$0xff]  ;;  %v2688_v56 = vld [vmem:[#allocation3 + $0x79] sm:$0xff] }
 0x3c8   : > { %v9920_v28 = vpop.permute.xlu0 %6370  ;;  %v2687_v45 = vld [vmem:[#allocation3 + $0x69] sm:$0xff] }
 0x3c9   : > { %6225 = vmatpush1.bf16.msra.mxu1 %v6224_v62  ;;  %v2689_v62 = vld [vmem:[#allocation3 + $0x81] sm:$0xff] }
 0x3ca   : > { %6226 = vmatprep.subr.bf16.mxu1 %v7544_v9 }
 0x3cb   : > { %6605 = vrot.lane.b32.xlu1 %v9598_v60, %s7545_s21  ;;  %6610 = vrot.lane.b32.xlu0 %v9606_v46, %s7545_s21  ;;  %v6227_v60 = vpack.c.bf16 %v3884_v40, %v3883_v30  ;;  %v3885_v46 = vld [vmem:[%s11540_s3 + $0x70] sm:$0xff] }
 0x3cd   : > { %6228 = vmatpush1.bf16.msra.mxu1 %v6227_v60  ;;  %v2690_v60 = vld [vmem:[#allocation3 + $0x91] sm:$0xff] }
 0x3ce   : > { %6229 = vmatprep.subr.bf16.mxu1 %v7544_v9 }
 0x3cf   : > { %6615 = vrot.lane.b32.xlu1 %v9614_v11, %s7545_s21  ;;  %6620 = vrot.lane.b32.xlu0 %v9622_v21, %s7545_s21  ;;  %v6230_v11 = vpack.c.bf16 %v3886_v2, %v3885_v46  ;;  %v9895_v21 = vpop.permute.xlu1 %6345  ;;  %v2691_v46 = vld [vmem:[#allocation3 + $0x99] sm:$0xff] }
 0x3d1   : > { %6231 = vmatpush1.bf16.msra.mxu1 %v6230_v11  ;;  %v6724_v11 = vpack.i.bf16 %v2691_v46, %v2690_v60 }
 0x3d2   : > { %6232 = vmatprep.subr.bf16.mxu1 %v7544_v9 }
 0x3d3   : > { %6625 = vrot.lane.b32.xlu1 %v9630_v50, %s7545_s21  ;;  %6630 = vrot.lane.b32.xlu0 %v9638_v25, %s7545_s21  ;;  %v6233_v50 = vpack.c.bf16 %v3888_v13, %v3887_v6  ;;  %v9910_v25 = vpop.permute.xlu1 %6355  ;;  %v2693_v6 = vld [vmem:[#allocation3 + $0xb1] sm:$0xff] }
 0x3d5   : > { %6234 = vmatpush1.bf16.msra.mxu1 %v6233_v50 }
 0x3d7   : > { %6635 = vrot.lane.b32.xlu1 %v9646_v38, %s7545_s21  ;;  %6640 = vrot.lane.b32.xlu0 %v9654_v1, %s7545_s21  ;;  %v9918_v9 = vpop.permute.xlu1 %6365  ;;  %v9928_v1 = vpop.permute.xlu0 %6380 }
 0x3db   : > { %6645 = vrot.lane.b32.xlu1 %v9660_v15, %s7545_s21  ;;  %6650 = vrot.lane.b32.xlu0 %v9664_v48, %s7545_s21  ;;  %v9926_v38 = vpop.permute.xlu1 %6375  ;;  %v9936_v48 = vpop.permute.xlu0 %6390 }
 0x3dc   : > { %12031 = vst [vmem:[#allocation8_spill] sm:$0xff] %v9936_v48 }
 0x3df   : > { %6655 = vrot.lane.b32.xlu1 %v9669_v12, %s7546_s10  ;;  %6660 = vrot.lane.b32.xlu0 %v9738_v24, %s7547_s12  ;;  %v9934_v15 = vpop.permute.xlu1 %6385 }
 0x3e0   : > { %12030 = vst [vmem:[#allocation6_spill] sm:$0xff] %v9934_v15 }
 0x3e2   : > { %v9944_v24 = vpop.permute.xlu0 %6400 }
 0x3e3   : > { %6665 = vrot.lane.b32.xlu1 %v9566_v5, %s7548_s13  ;;  %6670 = vrot.lane.b32.xlu0 %v9672_v7, %s7546_s10  ;;  %v9942_v12 = vpop.permute.xlu1 %6395  ;;  %12033 = vst [vmem:[#allocation67_spill] sm:$0xff] %v9944_v24  ;;  %v2646_v24 = vld [vmem:[#allocation3 + $0x172] sm:$0xff] }
 0x3e4   : > { %12032 = vst [vmem:[#allocation68_spill] sm:$0xff] %v9942_v12 }
 0x3e7   : > { %6675 = vrot.lane.b32.xlu1 %v9742_v0, %s7547_s12  ;;  %6680 = vrot.lane.b32.xlu0 %v9574_v27, %s7548_s13  ;;  %v9950_v5 = vpop.permute.xlu1 %6405  ;;  %v6694_v0 = vpack.i.bf16 %v2687_v45, %v2686_v61  ;;  %v2694_v45 = vld [vmem:[#allocation3 + $0xc1] sm:$0xff] }
 0x3e8   : > { %12034 = vst [vmem:[#allocation12_spill] sm:$0xff] %v9950_v5  ;;  %v2709_v5 = vld [vmem:[#allocation3 + $0x171] sm:$0xff] }
 0x3eb   : > { %6685 = vrot.lane.b32.xlu1 %v9678_v26, %s7546_s10  ;;  %6690 = vrot.lane.b32.xlu0 %v9758_v42, %s7547_s12  ;;  %v6709_v26 = vpack.i.bf16 %v2689_v62, %v2688_v56 }
 0x3ed   : > { %v9952_v7 = vpop.permute.xlu0 %6410 }
 0x3ee   : > { %12035 = vst [vmem:[#allocation10_spill] sm:$0xff] %v9952_v7  ;;  %v2644_v7 = vld [vmem:[#allocation3 + $0x15a] sm:$0xff] }
 0x3ef   : > { %6695 = vrot.lane.b32.xlu1 %v6694_v0, %s7548_s13  ;;  %6700 = vrot.lane.b32.xlu0 %v9680_v31, %s7546_s10  ;;  %v2695_v0 = vld [vmem:[#allocation3 + $0xc9] sm:$0xff] }
 0x3f0   : > { %v6754_v62 = vpack.i.bf16 %v2695_v0, %v2694_v45  ;;  %v2701_v0 = vld [vmem:[#allocation3 + $0x111] sm:$0xff] }
 0x3f1   : > { %v9957_v27 = vpop.permute.xlu1 %6415  ;;  %v9959_v30 = vpop.permute.xlu0 %6420 }
 0x3f2   : > { %12036 = vst [vmem:[#allocation71_spill] sm:$0xff] %v9957_v27  ;;  %v2706_v27 = vld [vmem:[#allocation3 + $0x151] sm:$0xff] }
 0x3f3   : > { %6705 = vrot.lane.b32.xlu1 %v9762_v4, %s7547_s12  ;;  %6710 = vrot.lane.b32.xlu0 %v6709_v26, %s7548_s13  ;;  %v2692_v4 = vld [vmem:[#allocation3 + $0xa9] sm:$0xff]  ;;  %v2697_v26 = vld [vmem:[#allocation3 + $0xe1] sm:$0xff] }
 0x3f5   : > { %v9964_v42 = vpop.permute.xlu1 %6425  ;;  %v9966_v40 = vpop.permute.xlu0 %6430 }
 0x3f7   : > { %6715 = vrot.lane.b32.xlu1 %v9686_v39, %s7546_s10  ;;  %6720 = vrot.lane.b32.xlu0 %v9771_v17, %s7547_s12  ;;  %v6739_v39 = vpack.i.bf16 %v2693_v6, %v2692_v4  ;;  %v2698_v4 = vld [vmem:[#allocation3 + $0xf1] sm:$0xff]  ;;  %v2699_v6 = vld [vmem:[#allocation3 + $0xf9] sm:$0xff] }
 0x3f8   : > { %v6784_v45 = vpack.i.bf16 %v2699_v6, %v2698_v4  ;;  %v2703_v4 = vld [vmem:[#allocation3 + $0x129] sm:$0xff] }
 0x3f9   : > { %v9972_v31 = vpop.permute.xlu1 %6435  ;;  %v9974_v2 = vpop.permute.xlu0 %6440 }
 0x3fb   : > { %6725 = vrot.lane.b32.xlu1 %v6724_v11, %s7548_s13  ;;  %6730 = vrot.lane.b32.xlu0 %v9688_v18, %s7546_s10 }
 0x3fd   : > { %v9979_v13 = vpop.permute.xlu1 %6445  ;;  %v9981_v50 = vpop.permute.xlu0 %6450 }
 0x3ff   : > { %6735 = vrot.lane.b32.xlu1 %v9773_v55, %s7547_s12  ;;  %6740 = vrot.lane.b32.xlu0 %v6739_v39, %s7548_s13  ;;  %v2696_v55 = vld [vmem:[#allocation3 + $0xd9] sm:$0xff] }
 0x401   : > { %v9986_v17 = vpop.permute.xlu1 %6455  ;;  %v9988_v61 = vpop.permute.xlu0 %6460 }
 0x402   : > { %12037 = vst [vmem:[#allocation70_spill] sm:$0xff] %v9988_v61  ;;  %v2715_v61 = vld [vmem:[#allocation3 + $0x3a] sm:$0xff] }
 0x403   : > { %6745 = vrot.lane.b32.xlu1 %v9694_v41, %s7546_s10  ;;  %6750 = vrot.lane.b32.xlu0 %v9779_v34, %s7547_s12  ;;  %v6769_v41 = vpack.i.bf16 %v2697_v26, %v2696_v55 }
 0x405   : > { %v9994_v18 = vpop.permute.xlu1 %6465  ;;  %v9996_v56 = vpop.permute.xlu0 %6470 }
 0x406   : > { %12038 = vst [vmem:[#allocation15_spill] sm:$0xff] %v9994_v18  ;;  %12039 = vst [vmem:[#allocation13_spill] sm:$0xff] %v9996_v56 }
 0x407   : > { %6755 = vrot.lane.b32.xlu1 %v6754_v62, %s7548_s13  ;;  %6760 = vrot.lane.b32.xlu0 %v9696_v14, %s7546_s10 }
 0x409   : > { %v10001_v60 = vpop.permute.xlu1 %6475  ;;  %v10003_v46 = vpop.permute.xlu0 %6480 }
 0x40a   : > { %12040 = vst [vmem:[#allocation73_spill] sm:$0xff] %v10001_v60  ;;  %12041 = vst [vmem:[#allocation72_spill] sm:$0xff] %v10003_v46  ;;  %v2645_v46 = vld [vmem:[#allocation3 + $0x16a] sm:$0xff] }
 0x40b   : > { %6765 = vrot.lane.b32.xlu1 %v9781_v47, %s7547_s12  ;;  %6770 = vrot.lane.b32.xlu0 %v6769_v41, %s7548_s13  ;;  %v2700_v47 = vld [vmem:[#allocation3 + $0x109] sm:$0xff]  ;;  %v2702_v41 = vld [vmem:[#allocation3 + $0x121] sm:$0xff] }
 0x40d   : > { %v10008_v34 = vpop.permute.xlu1 %6485  ;;  %v10010_v11 = vpop.permute.xlu0 %6490 }
 0x40e   : > { %12042 = vst [vmem:[#allocation18_spill] sm:$0xff] %v10008_v34  ;;  %12043 = vst [vmem:[#allocation16_spill] sm:$0xff] %v10010_v11  ;;  %v2643_v11 = vld [vmem:[#allocation3 + $0x152] sm:$0xff]  ;;  %v2708_v34 = vld [vmem:[#allocation3 + $0x169] sm:$0xff] }
 0x40f   : > { %6775 = vrot.lane.b32.xlu1 %v9702_v52, %s7546_s10  ;;  %6780 = vrot.lane.b32.xlu0 %v9787_v33, %s7547_s12  ;;  %v6799_v52 = vpack.i.bf16 %v2701_v0, %v2700_v47  ;;  %v2705_v47 = vld [vmem:[#allocation3 + $0x141] sm:$0xff] }
 0x411   : > { %v10016_v14 = vpop.permute.xlu1 %6495  ;;  %v10018_v39 = vpop.permute.xlu0 %6500 }
 0x412   : > { %12044 = vst [vmem:[#allocation74_spill] sm:$0xff] %v10016_v14  ;;  %v10049_v14 = vld [vmem:[#allocation3 + $0x13a] sm:$0xff]  ;;  %v6502_v60 = vunpack.i.l.bf16 %v10018_v39 }
 0x413   : > { %6785 = vrot.lane.b32.xlu1 %v6784_v45, %s7548_s13  ;;  %6790 = vrot.lane.b32.xlu0 %v9704_v19, %s7546_s10  ;;  %v6814_v45 = vpack.i.bf16 %v2703_v4, %v2702_v41  ;;  %12046 = vst [vmem:[#allocation19_spill] sm:$0xff] %v10049_v14 }
 0x415   : > { %v10023_v62 = vpop.permute.xlu1 %6505  ;;  %v10025_v55 = vpop.permute.xlu0 %6510 }
 0x417   : > { %6795 = vrot.lane.b32.xlu1 %v9789_v43, %s7547_s12  ;;  %6800 = vrot.lane.b32.xlu0 %v6799_v52, %s7548_s13  ;;  %v2704_v43 = vld [vmem:[#allocation3 + $0x139] sm:$0xff] }
 0x419   : > { %v10030_v33 = vpop.permute.xlu1 %6515  ;;  %v10032_v26 = vpop.permute.xlu0 %6520 }
 0x41b   : > { %6805 = vrot.lane.b32.xlu1 %v9710_v51, %s7546_s10  ;;  %6810 = vrot.lane.b32.xlu0 %v9795_v58, %s7547_s12  ;;  %v6829_v51 = vpack.i.bf16 %v2705_v47, %v2704_v43  ;;  %v2642_v58 = vld [vmem:[#allocation3 + $0x142] sm:$0xff] }
 0x41d   : > { %v10038_v19 = vpop.permute.xlu1 %6525  ;;  %v10040_v6 = vpop.permute.xlu0 %6530 }
 0x41f   : > { %6815 = vrot.lane.b32.xlu1 %v6814_v45, %s7548_s13  ;;  %6820 = vrot.lane.b32.xlu0 %v9712_v20, %s7546_s10  ;;  %v6834_v45 = vpack.i.bf16 %v2642_v58, %v10049_v14  ;;  %v2707_v20 = vld [vmem:[#allocation3 + $0x159] sm:$0xff] }
 0x420   : > { %v6844_v47 = vpack.i.bf16 %v2707_v20, %v2706_v27  ;;  %v6864_v27 = vpack.i.bf16 %v2646_v24, %v2645_v46  ;;  %v2711_v20 = vld [vmem:[#allocation3 + $0x189] sm:$0xff]  ;;  %v2712_v46 = vld [vmem:[#allocation3 + $0x199] sm:$0xff] }
 0x421   : > { %v10045_v0 = vpop.permute.xlu1 %6535  ;;  %v10047_v52 = vpop.permute.xlu0 %6540 }
 0x422   : > { %12045 = vst [vmem:[#allocation21_spill] sm:$0xff] %v10047_v52 }
 0x423   : > { %6825 = vrot.lane.b32.xlu1 %v9797_v29, %s7547_s12  ;;  %6830 = vrot.lane.b32.xlu0 %v6829_v51, %s7548_s13  ;;  %v6849_v51 = vpack.i.bf16 %v2644_v7, %v2643_v11  ;;  %v2710_v11 = vld [vmem:[#allocation3 + $0x181] sm:$0xff] }
 0x425   : > { %v10054_v41 = vpop.permute.xlu1 %6545  ;;  %v10056_v4 = vpop.permute.xlu0 %6550 }
 0x426   : > { %12047 = vst [vmem:[#allocation25_spill] sm:$0xff] %v10054_v41  ;;  %12048 = vst [vmem:[#allocation54_spill] sm:$0xff] %v10056_v4  ;;  %v6423_v4 = vunpack.i.h.bf16 %v9959_v30 }
 0x427   : > { %6835 = vrot.lane.b32.xlu1 %v6834_v45, %s7546_s10  ;;  %6840 = vrot.lane.b32.xlu0 %v9810_v22, %s7547_s12  ;;  %v6859_v45 = vpack.i.bf16 %v2709_v5, %v2708_v34  ;;  %v2680_v5 = vld [vmem:[#allocation3 + $0x198] sm:$0xff]  ;;  %v2681_v34 = vld [vmem:[#allocation3 + $0x1a0] sm:$0xff] }
 0x428   : > { %v6889_v24 = vpack.i.bf16 %v2681_v34, %v2680_v5 }
 0x429   : > { %v10062_v43 = vpop.permute.xlu1 %6555  ;;  %v10064_v29 = vpop.permute.xlu0 %6560 }
 0x42a   : > { %12049 = vst [vmem:[#allocation23_spill] sm:$0xff] %v10062_v43  ;;  %12050 = vst [vmem:[#allocation76_spill] sm:$0xff] %v10064_v29 }
 0x42b   : > { %6845 = vrot.lane.b32.xlu1 %v6844_v47, %s7548_s13  ;;  %6850 = vrot.lane.b32.xlu0 %v6849_v51, %s7546_s10 }
 0x42d   : > { %v10068_v58 = vpop.permute.xlu1 %6565  ;;  %v10070_v14 = vpop.permute.xlu0 %6570 }
 0x42e   : > { %12051 = vst [vmem:[#allocation52_spill] sm:$0xff] %v10068_v58  ;;  %12052 = vst [vmem:[#allocation132_spill] sm:$0xff] %v10070_v14  ;;  %v2648_v14 = vld [vmem:[#allocation3 + $0x18a] sm:$0xff] }
 0x42f   : > { %6855 = vrot.lane.b32.xlu1 %v9812_v54, %s7547_s12  ;;  %6860 = vrot.lane.b32.xlu0 %v6859_v45, %s7548_s13  ;;  %v6874_v54 = vpack.i.bf16 %v2711_v20, %v2710_v11  ;;  %v2647_v45 = vld [vmem:[#allocation3 + $0x182] sm:$0xff] }
 0x431   : > { %v10075_v22 = vpop.permute.xlu1 %6575  ;;  %v10077_v7 = vpop.permute.xlu0 %6580 }
 0x432   : > { %12053 = vst [vmem:[#allocation75_spill] sm:$0xff] %v10075_v22  ;;  %v2713_v22 = vld [vmem:[#allocation3 + $0x1a1] sm:$0xff]  ;;  %v6582_v12 = vunpack.i.l.bf16 %v10077_v7 }
 0x433   : > { %6865 = vrot.lane.b32.xlu1 %v6864_v27, %s7546_s10  ;;  %6870 = vrot.lane.b32.xlu0 %v9825_v36, %s7547_s12  ;;  %v6884_v36 = vpack.i.bf16 %v2648_v14, %v2647_v45  ;;  %v6894_v29 = vpack.i.bf16 %v2713_v22, %v2712_v46  ;;  %v6342_v22 = vunpack.i.l.bf16 %v9878_v37  ;;  %v6422_v46 = vunpack.i.l.bf16 %v9959_v30 }
 0x435   : > { %v10082_v47 = vpop.permute.xlu1 %6585  ;;  %v10084_v51 = vpop.permute.xlu0 %6590 }
 0x437   : > { %6875 = vrot.lane.b32.xlu1 %v6874_v54, %s7548_s13  ;;  %6880 = vrot.lane.b32.xlu0 %v6874_v54, %s7545_s21 }
 0x439   : > { %v10088_v27 = vpop.permute.xlu1 %6595  ;;  %v10090_v58 = vpop.permute.xlu0 %6600 }
 0x43b   : > { %6885 = vrot.lane.b32.xlu1 %v6884_v36, %s7546_s10  ;;  %6890 = vrot.lane.b32.xlu0 %v6889_v24, %s7547_s12  ;;  %v2457_v24 = vld [vmem:[#allocation3] sm:$0xff] }
 0x43d   : > { %v10094_v11 = vpop.permute.xlu1 %6605  ;;  %v10096_v20 = vpop.permute.xlu0 %6610 }
 0x43f   : > { %6895 = vrot.lane.b32.xlu1 %v6894_v29, %s7548_s13 }
 0x441   : > { %v10099_v54 = vpop.permute.xlu1 %6615  ;;  %v10101_v5 = vpop.permute.xlu0 %6620 }
 0x442   : > { %12054 = vst [vmem:[#allocation97_spill] sm:$0xff] %v10101_v5 }
 0x445   : > { %v10103_v34 = vpop.permute.xlu1 %6625  ;;  %v10105_v43 = vpop.permute.xlu0 %6630 }
 0x446   : > { %12055 = vst [vmem:[#allocation131_spill] sm:$0xff] %v10103_v34  ;;  %12056 = vst [vmem:[#allocation155_spill] sm:$0xff] %v10105_v43  ;;  %v6343_v43 = vunpack.i.h.bf16 %v9878_v37  ;;  %v6583_v37 = vunpack.i.h.bf16 %v10077_v7 }
 0x449   : > { %v10107_v14 = vpop.permute.xlu1 %6635  ;;  %v10109_v45 = vpop.permute.xlu0 %6640 }
 0x44a   : > { %12057 = vst [vmem:[#allocation96_spill] sm:$0xff] %v10107_v14  ;;  %12058 = vst [vmem:[#allocation9_spill] sm:$0xff] %v10109_v45  ;;  %v3642_v14 = vsel %vm325_vm3, %v2457_v24, %v6342_v22  ;;  %v2458_v45 = vld [vmem:[#allocation3 + $0x8] sm:$0xff] }
 0x44b   : > { %v3674_v56 = vsel %vm2021_vm10, %v3642_v14, %v6422_v46  ;;  %v3643_v15 = vsel %vm325_vm3, %v2458_v45, %v6343_v43  ;;  %v6348_v46 = vunpack.i.h.bf16 %v9895_v21  ;;  %v6587_v43 = vunpack.i.l.bf16 %v10082_v47 }
 0x44c   : > { %v3707_v41 = vsel %vm3706_vm14, %v3674_v56, %v6502_v60  ;;  %v3675_v5 = vsel %vm2021_vm10, %v3643_v15, %v6423_v4 }
 0x44d   : > { %v10113_v36 = vpop.permute.xlu1 %6645  ;;  %v10115_v29 = vpop.permute.xlu0 %6650  ;;  %v3740_v22 = vsel %vm3739_vm15, %v3707_v41, %v6582_v12  ;;  %v6507_v41 = vunpack.i.l.bf16 %v10023_v62 }
 0x44e   : > { %12059 = vst [vmem:[#allocation154_spill] sm:$0xff] %v10113_v36  ;;  %12060 = vst [vmem:[#allocation29_spill] sm:$0xff] %v10115_v29  ;;  %v6347_v29 = vunpack.i.l.bf16 %v9895_v21  ;;  %v6503_v36 = vunpack.i.h.bf16 %v10018_v39  ;;  %v6427_v39 = vunpack.i.l.bf16 %v9964_v42 }
 0x450   : > { %v3644_v60 = vsel %vm325_vm3, %v9718_v23, %v6347_v29  ;;  %v3708_v12 = vsel %vm3706_vm14, %v3675_v5, %v6503_v36  ;;  %v6428_v23 = vunpack.i.h.bf16 %v9964_v42  ;;  %v6588_v42 = vunpack.i.h.bf16 %v10082_v47  ;;  %v2716_v47 = vld [vmem:[#allocation3 + $0x4a] sm:$0xff] }
 0x451   : > { %v6656_v48 = vpop.permute.xlu1 %6655  ;;  %v6661_v34 = vpop.permute.xlu0 %6660  ;;  %v3676_v5 = vsel %vm2021_vm10, %v3644_v60, %v6427_v39 }
 0x452   : > { %v6657_v18 = vunpack.i.l.bf16 %v6656_v48  ;;  %v6662_v24 = vunpack.i.l.bf16 %v6661_v34  ;;  %v6658_v30 = vunpack.i.h.bf16 %v6656_v48  ;;  %v6663_v21 = vunpack.i.h.bf16 %v6661_v34 }
 0x453   : > { %v6508_v34 = vunpack.i.h.bf16 %v10023_v62 }
 0x454   : > { %v3773_v14 = vsel %vm3772_vm0, %v3740_v22, %v6657_v18  ;;  %v3741_v18 = vsel %vm3739_vm15, %v3708_v12, %v6583_v37  ;;  %v3645_v37 = vsel %vm325_vm3, %v9720_v16, %v6348_v46  ;;  %v6432_v46 = vunpack.i.l.bf16 %v9966_v40 }
 0x455   : > { %v6666_v52 = vpop.permute.xlu1 %6665  ;;  %v6671_v56 = vpop.permute.xlu0 %6670  ;;  %v3806_v15 = vsel %vm3805_vm1, %v3773_v14, %v6662_v24  ;;  %v3774_v22 = vsel %vm3772_vm0, %v3741_v18, %v6658_v30  ;;  %v6352_v30 = vunpack.i.l.bf16 %v9897_v3  ;;  %v3677_v62 = vsel %vm2021_vm10, %v3645_v37, %v6428_v23 }
 0x456   : > { %v6667_v48 = vunpack.i.l.bf16 %v6666_v52  ;;  %v6668_v4 = vunpack.i.h.bf16 %v6666_v52  ;;  %v6672_v7 = vunpack.i.l.bf16 %v6671_v56  ;;  %v3709_v52 = vsel %vm3706_vm14, %v3676_v5, %v6507_v41 }
 0x457   : > { %v3742_v14 = vsel %vm3739_vm15, %v3709_v52, %v6587_v43  ;;  %v3807_v39 = vsel %vm3805_vm1, %v3774_v22, %v6663_v21  ;;  %v6673_v60 = vunpack.i.h.bf16 %v6671_v56  ;;  %v3710_v21 = vsel %vm3706_vm14, %v3677_v62, %v6508_v34 }
 0x458   : > { %v3839_v45 = vsel %vm3838_vm2, %v3806_v15, %v6667_v48  ;;  %v3840_v48 = vsel %vm3838_vm2, %v3807_v39, %v6668_v4  ;;  %v3775_v16 = vsel %vm3772_vm0, %v3742_v14, %v6672_v7  ;;  %v6512_v56 = vunpack.i.l.bf16 %v10025_v55 }
 0x459   : > { %v6676_v36 = vpop.permute.xlu1 %6675  ;;  %v6681_v29 = vpop.permute.xlu0 %6680  ;;  %4057 = vmatmul.mubr.f32.vlgmr.msra.gmra.mrb[0].mxu1 %v3839_v45  ;;  %v6353_v15 = vunpack.i.h.bf16 %v9897_v3  ;;  %v3646_v4 = vsel %vm325_vm3, %v9726_v59, %v6352_v30  ;;  %v3743_v7 = vsel %vm3739_vm15, %v3710_v21, %v6588_v42  ;;  %v6592_v45 = vunpack.i.l.bf16 %v10084_v51  ;;  %v2717_v3 = vld [vmem:[#allocation3 + $0x52] sm:$0xff] }
 0x45a   : > { %v6677_v24 = vunpack.i.l.bf16 %v6676_v36  ;;  %6036 = vmatprep.mubr.msk.f32.mxu1 %vm325_vm3, %v2715_v61  ;;  %v6682_v12 = vunpack.i.l.bf16 %v6681_v29  ;;  %v6678_v41 = vunpack.i.h.bf16 %v6676_v36  ;;  %v6683_v22 = vunpack.i.h.bf16 %v6681_v29 }
 0x45b   : > { %v3776_v36 = vsel %vm3772_vm0, %v3743_v7, %v6673_v60  ;;  %v6433_v37 = vunpack.i.h.bf16 %v9966_v40  ;;  %v3678_v34 = vsel %vm2021_vm10, %v3646_v4, %v6432_v46  ;;  %v6357_v30 = vunpack.i.l.bf16 %v9910_v25 }
 0x45c   : > { %v3808_v43 = vsel %vm3805_vm1, %v3775_v16, %v6677_v24  ;;  %v3809_v59 = vsel %vm3805_vm1, %v3776_v36, %v6678_v41  ;;  %v6513_v29 = vunpack.i.h.bf16 %v10025_v55  ;;  %v3711_v42 = vsel %vm3706_vm14, %v3678_v34, %v6512_v56 }
 0x45d   : > { %v6686_v61 = vpop.permute.xlu1 %6685  ;;  %v10157_v18 = vpop.permute.xlu0 %6690  ;;  %4062 = vmatmul.mubr.f32.gmra.mrb[2].mxu1 %v3840_v48  ;;  %v3841_v5 = vsel %vm3838_vm2, %v3808_v43, %v6682_v12  ;;  %v3647_v40 = vsel %vm325_vm3, %v9728_v49, %v6353_v15  ;;  %v6593_v14 = vunpack.i.h.bf16 %v10084_v51  ;;  %v3744_v39 = vsel %vm3739_vm15, %v3711_v42, %v6592_v45  ;;  %v2718_v49 = vld [vmem:[#allocation3 + $0x62] sm:$0xff] }
 0x45e   : > { %6037 = vmatprep.mubr.msk.f32.mxu1 %vm325_vm3, %v2716_v47  ;;  %v6687_v23 = vunpack.i.l.bf16 %v6686_v61  ;;  %v6692_v60 = vunpack.i.l.bf16 %v10157_v18  ;;  %v6688_v12 = vunpack.i.h.bf16 %v6686_v61  ;;  %v3842_v16 = vsel %vm3838_vm2, %v3809_v59, %v6683_v22 }
 0x45f   : > { %v3679_v55 = vsel %vm2021_vm10, %v3647_v40, %v6433_v37  ;;  %v6437_v46 = vunpack.i.l.bf16 %v9972_v31  ;;  %v6358_v51 = vunpack.i.h.bf16 %v9910_v25  ;;  %v3648_v61 = vsel %vm325_vm3, %v9730_v8, %v6357_v30 }
 0x460   : > { %v3777_v62 = vsel %vm3772_vm0, %v3744_v39, %v6687_v23  ;;  %v3712_v43 = vsel %vm3706_vm14, %v3679_v55, %v6513_v29  ;;  %v6517_v21 = vunpack.i.l.bf16 %v10030_v33  ;;  %v6597_v15 = vunpack.i.l.bf16 %v10088_v27 }
 0x461   : > { %v6696_v52 = vpop.permute.xlu1 %6695  ;;  %v10172_v24 = vpop.permute.xlu0 %6700  ;;  %4067 = vmatmul.mubr.f32.gmra.mrb[4].mxu1 %v3841_v5  ;;  %v3745_v56 = vsel %vm3739_vm15, %v3712_v43, %v6593_v14  ;;  %v6693_v4 = vunpack.i.h.bf16 %v10157_v18  ;;  %v3810_v7 = vsel %vm3805_vm1, %v3777_v62, %v6692_v60  ;;  %v6438_v23 = vunpack.i.h.bf16 %v9972_v31  ;;  %v2719_v18 = vld [vmem:[#allocation3 + $0x6a] sm:$0xff] }
 0x462   : > { %6038 = vmatprep.mubr.msk.f32.mxu1 %vm325_vm3, %v2717_v3  ;;  %v6697_v48 = vunpack.i.l.bf16 %v6696_v52  ;;  %v6698_v45 = vunpack.i.h.bf16 %v6696_v52  ;;  %v6702_v25 = vunpack.i.l.bf16 %v10172_v24  ;;  %v3778_v8 = vsel %vm3772_vm0, %v3745_v56, %v6688_v12 }
 0x463   : > { %v3680_v5 = vsel %vm2021_vm10, %v3648_v61, %v6437_v46  ;;  %v3649_v52 = vsel %vm325_vm3, %v9732_v35, %v6358_v51  ;;  %v6518_v3 = vunpack.i.h.bf16 %v10030_v33  ;;  %v6362_v31 = vunpack.i.l.bf16 %v9912_v32 }
 0x464   : > { %v3843_v22 = vsel %vm3838_vm2, %v3810_v7, %v6697_v48  ;;  %v3713_v59 = vsel %vm3706_vm14, %v3680_v5, %v6517_v21  ;;  %v6598_v30 = vunpack.i.h.bf16 %v10088_v27  ;;  %v3811_v42 = vsel %vm3805_vm1, %v3778_v8, %v6693_v4 }
 0x465   : > { %v10188_v41 = vpop.permute.xlu1 %6705  ;;  %v10190_v47 = vpop.permute.xlu0 %6710  ;;  %4072 = vmatmul.mubr.f32.gmra.mrb[6].mxu1 %v3842_v16  ;;  %v3746_v29 = vsel %vm3739_vm15, %v3713_v59, %v6597_v15  ;;  %v6703_v40 = vunpack.i.h.bf16 %v10172_v24  ;;  %v3844_v35 = vsel %vm3838_vm2, %v3811_v42, %v6698_v45  ;;  %v3681_v39 = vsel %vm2021_vm10, %v3649_v52, %v6438_v23  ;;  %v2720_v16 = vld [vmem:[#allocation3 + $0x7a] sm:$0xff] }
 0x466   : > { %6039 = vmatprep.mubr.msk.f32.mxu1 %vm325_vm3, %v2718_v49  ;;  %v6707_v36 = vunpack.i.l.bf16 %v10188_v41  ;;  %v6712_v14 = vunpack.i.l.bf16 %v10190_v47  ;;  %v3779_v33 = vsel %vm3772_vm0, %v3746_v29, %v6702_v25  ;;  %v6442_v60 = vunpack.i.l.bf16 %v9974_v2 }
 0x467   : > { %v6708_v12 = vunpack.i.h.bf16 %v10188_v41  ;;  %v3714_v62 = vsel %vm3706_vm14, %v3681_v39, %v6518_v3  ;;  %v6522_v55 = vunpack.i.l.bf16 %v10032_v26  ;;  %v6363_v46 = vunpack.i.h.bf16 %v9912_v32 }
 0x468   : > { %v3812_v24 = vsel %vm3805_vm1, %v3779_v33, %v6707_v36  ;;  %v3650_v49 = vsel %vm325_vm3, %v9744_v10, %v6362_v31  ;;  %v3747_v41 = vsel %vm3739_vm15, %v3714_v62, %v6598_v30  ;;  %v6602_v51 = vunpack.i.l.bf16 %v10090_v58  ;;  %v2721_v10 = vld [vmem:[#allocation3 + $0x82] sm:$0xff] }
 0x469   : > { %v10208_v37 = vpop.permute.xlu1 %6715  ;;  %v10210_v34 = vpop.permute.xlu0 %6720  ;;  %4077 = vmatmul.mubr.f32.gmra.mrb[8].mxu1 %v3843_v22  ;;  %v6713_v61 = vunpack.i.h.bf16 %v10190_v47  ;;  %v3845_v21 = vsel %vm3838_vm2, %v3812_v24, %v6712_v14  ;;  %v3780_v56 = vsel %vm3772_vm0, %v3747_v41, %v6703_v40  ;;  %v6443_v15 = vunpack.i.h.bf16 %v9974_v2 }
 0x46a   : > { %6040 = vmatprep.mubr.msk.f32.mxu1 %vm325_vm3, %v2719_v18  ;;  %v6717_v43 = vunpack.i.l.bf16 %v10208_v37  ;;  %v3682_v4 = vsel %vm2021_vm10, %v3650_v49, %v6442_v60  ;;  %v3813_v45 = vsel %vm3805_vm1, %v3780_v56, %v6708_v12  ;;  %v6367_v47 = vunpack.i.l.bf16 %v9918_v9 }
 0x46b   : > { %v6523_v25 = vunpack.i.h.bf16 %v10032_v26  ;;  %v3715_v22 = vsel %vm3706_vm14, %v3682_v4, %v6522_v55  ;;  %v3651_v2 = vsel %vm325_vm3, %v9746_v44, %v6363_v46  ;;  %v6603_v8 = vunpack.i.h.bf16 %v10090_v58  ;;  %v2722_v58 = vld [vmem:[#allocation3 + $0x92] sm:$0xff] }
 0x46c   : > { %v3748_v23 = vsel %vm3739_vm15, %v3715_v22, %v6602_v51  ;;  %v6722_v5 = vunpack.i.l.bf16 %v10210_v34  ;;  %v6718_v36 = vunpack.i.h.bf16 %v10208_v37  ;;  %v3846_v52 = vsel %vm3838_vm2, %v3813_v45, %v6713_v61 }
 0x46d   : > { %v10228_v48 = vpop.permute.xlu1 %6725  ;;  %v10230_v27 = vpop.permute.xlu0 %6730  ;;  %4082 = vmatmul.mubr.f32.gmra.mrb[10].mxu1 %v3844_v35  ;;  %v3781_v26 = vsel %vm3772_vm0, %v3748_v23, %v6717_v43  ;;  %v3683_v3 = vsel %vm2021_vm10, %v3651_v2, %v6443_v15  ;;  %v6447_v59 = vunpack.i.l.bf16 %v9979_v13  ;;  %v6368_v30 = vunpack.i.h.bf16 %v9918_v9 }
 0x46e   : > { %6041 = vmatprep.mubr.msk.f32.mxu1 %vm325_vm3, %v2720_v16  ;;  %v6727_v18 = vunpack.i.l.bf16 %v10228_v48  ;;  %v3652_v37 = vsel %vm325_vm3, %v9748_v57, %v6367_v47  ;;  %v3716_v29 = vsel %vm3706_vm14, %v3683_v3, %v6523_v25  ;;  %v6527_v42 = vunpack.i.l.bf16 %v10038_v19 }
 0x46f   : > { %v3749_v40 = vsel %vm3739_vm15, %v3716_v29, %v6603_v8  ;;  %v6607_v14 = vunpack.i.l.bf16 %v10094_v11  ;;  %v6723_v35 = vunpack.i.h.bf16 %v10210_v34  ;;  %v3814_v33 = vsel %vm3805_vm1, %v3781_v26, %v6722_v5  ;;  %v2723_v34 = vld [vmem:[#allocation3 + $0x9a] sm:$0xff] }
 0x470   : > { %v6728_v39 = vunpack.i.h.bf16 %v10228_v48  ;;  %v6732_v9 = vunpack.i.l.bf16 %v10230_v27  ;;  %v3847_v57 = vsel %vm3838_vm2, %v3814_v33, %v6727_v18  ;;  %v3782_v60 = vsel %vm3772_vm0, %v3749_v40, %v6718_v36 }
 0x471   : > { %v10247_v32 = vpop.permute.xlu1 %6735  ;;  %v10249_v7 = vpop.permute.xlu0 %6740  ;;  %4087 = vmatmul.mubr.f32.gmra.mrb[12].mxu1 %v3845_v21  ;;  %v6448_v12 = vunpack.i.h.bf16 %v9979_v13  ;;  %v3684_v16 = vsel %vm2021_vm10, %v3652_v37, %v6447_v59  ;;  %v3653_v55 = vsel %vm325_vm3, %v9750_v63, %v6368_v30  ;;  %v6528_v48 = vunpack.i.h.bf16 %v10038_v19  ;;  %v7490_v30 = vld [vmem:[#allocation3 + $0x98] sm:$0xff] }
 0x472   : > { %6042 = vmatprep.mubr.msk.f32.mxu1 %vm325_vm3, %v2721_v10  ;;  %v6737_v24 = vunpack.i.l.bf16 %v10247_v32  ;;  %v3717_v46 = vsel %vm3706_vm14, %v3684_v16, %v6527_v42  ;;  %v6372_v13 = vunpack.i.l.bf16 %v9920_v28  ;;  %v6608_v41 = vunpack.i.h.bf16 %v10094_v11  ;;  %v2724_v11 = vld [vmem:[#allocation3 + $0xaa] sm:$0xff] }
 0x473   : > { %v3750_v51 = vsel %vm3739_vm15, %v3717_v46, %v6607_v14  ;;  %v3815_v61 = vsel %vm3805_vm1, %v3782_v60, %v6723_v35  ;;  %v6733_v43 = vunpack.i.h.bf16 %v10230_v27  ;;  %v6742_v63 = vunpack.i.l.bf16 %v10249_v7 }
 0x474   : > { %v3848_v19 = vsel %vm3838_vm2, %v3815_v61, %v6728_v39  ;;  %v3783_v21 = vsel %vm3772_vm0, %v3750_v51, %v6732_v9  ;;  %v3685_v56 = vsel %vm2021_vm10, %v3653_v55, %v6448_v12  ;;  %v6452_v15 = vunpack.i.l.bf16 %v9981_v50  ;;  %v2726_v9 = vld [vmem:[#allocation3 + $0xc2] sm:$0xff] }
 0x475   : > { %v10267_v31 = vpop.permute.xlu1 %6745  ;;  %v10269_v44 = vpop.permute.xlu0 %6750  ;;  %4092 = vmatmul.mubr.f32.gmra.mrb[14].mxu1 %v3846_v52  ;;  %v6738_v4 = vunpack.i.h.bf16 %v10247_v32  ;;  %v3816_v45 = vsel %vm3805_vm1, %v3783_v21, %v6737_v24  ;;  %v3718_v27 = vsel %vm3706_vm14, %v3685_v56, %v6528_v48  ;;  %v6532_v47 = vunpack.i.l.bf16 %v10040_v6 }
 0x476   : > { %6043 = vmatprep.mubr.msk.f32.mxu1 %vm325_vm3, %v2722_v58  ;;  %v6373_v25 = vunpack.i.h.bf16 %v9920_v28  ;;  %v3654_v22 = vsel %vm325_vm3, %v9764_v53, %v6372_v13  ;;  %v3751_v2 = vsel %vm3739_vm15, %v3718_v27, %v6608_v41  ;;  %v6612_v32 = vunpack.i.l.bf16 %v10096_v20  ;;  %v2725_v53 = vld [vmem:[#allocation3 + $0xb2] sm:$0xff] }
 0x477   : > { %v6743_v8 = vunpack.i.h.bf16 %v10249_v7  ;;  %v6747_v23 = vunpack.i.l.bf16 %v10267_v31  ;;  %v3849_v36 = vsel %vm3838_vm2, %v3816_v45, %v6742_v63  ;;  %v3784_v18 = vsel %vm3772_vm0, %v3751_v2, %v6733_v43  ;;  %v12061_v2 = vld [vmem:[#allocation70_spill] sm:$0xff] }
 0x478   : > { %v6453_v52 = vunpack.i.h.bf16 %v9981_v50  ;;  %v3686_v28 = vsel %vm2021_vm10, %v3654_v22, %v6452_v15  ;;  %v3817_v3 = vsel %vm3805_vm1, %v3784_v18, %v6738_v4  ;;  %v6377_v7 = vunpack.i.l.bf16 %v9926_v38  ;;  %v12062_v18 = vld [vmem:[#allocation21_spill] sm:$0xff] }
 0x479   : > { %v10288_v62 = vpop.permute.xlu1 %6755  ;;  %4097 = vmatmul.mubr.f32.gmra.mrb[16].mxu1 %v3847_v57  ;;  %v10294_v49 = vpop.permute.xlu0 %6760  ;;  %v6533_v59 = vunpack.i.h.bf16 %v10040_v6  ;;  %v3719_v58 = vsel %vm3706_vm14, %v3686_v28, %v6532_v47  ;;  %v3655_v37 = vsel %vm325_vm3, %v7490_v30, %v6373_v25  ;;  %v6613_v50 = vunpack.i.h.bf16 %v10096_v20  ;;  %v7491_v57 = vld [vmem:[#allocation3 + $0xa8] sm:$0xff] }
 0x47a   : > { %6044 = vmatprep.mubr.msk.f32.mxu1 %vm325_vm3, %v2723_v34  ;;  %v3752_v29 = vsel %vm3739_vm15, %v3719_v58, %v6612_v32  ;;  %v6752_v42 = vunpack.i.l.bf16 %v10269_v44  ;;  %v6748_v40 = vunpack.i.h.bf16 %v10267_v31  ;;  %v6757_v14 = vunpack.i.l.bf16 %v10288_v62 }
 0x47b   : > { %v3850_v35 = vsel %vm3838_vm2, %v3817_v3, %v6743_v8  ;;  %v3785_v6 = vsel %vm3772_vm0, %v3752_v29, %v6747_v23  ;;  %v3687_v33 = vsel %vm2021_vm10, %v3655_v37, %v6453_v52  ;;  %v6457_v39 = vunpack.i.l.bf16 %v9986_v17  ;;  %v2728_v23 = vld [vmem:[#allocation3 + $0xda] sm:$0xff] }
 0x47c   : > { %v6378_v20 = vunpack.i.h.bf16 %v9926_v38  ;;  %v3656_v60 = vsel %vm325_vm3, %v7491_v57, %v6377_v7  ;;  %v3720_v12 = vsel %vm3706_vm14, %v3687_v33, %v6533_v59  ;;  %v6537_v31 = vunpack.i.l.bf16 %v10045_v0 }
 0x47d   : > { %v10308_v10 = vpop.permute.xlu1 %6765  ;;  %4102 = vmatmul.mubr.f32.gmra.mrb[18].mxu1 %v3848_v19  ;;  %v10321_v5 = vpop.permute.xlu0 %6770  ;;  %v3753_v24 = vsel %vm3739_vm15, %v3720_v12, %v6613_v50  ;;  %v6617_v34 = vunpack.i.l.bf16 %v10099_v54  ;;  %v6753_v55 = vunpack.i.h.bf16 %v10269_v44  ;;  %v3818_v38 = vsel %vm3805_vm1, %v3785_v6, %v6752_v42  ;;  %v2727_v44 = vld [vmem:[#allocation3 + $0xca] sm:$0xff] }
 0x47e   : > { %6045 = vmatprep.mubr.msk.f32.mxu1 %vm325_vm3, %v2724_v11  ;;  %v6758_v46 = vunpack.i.h.bf16 %v10288_v62  ;;  %v6762_v13 = vunpack.i.l.bf16 %v10294_v49  ;;  %v3851_v41 = vsel %vm3838_vm2, %v3818_v38, %v6757_v14  ;;  %v3786_v51 = vsel %vm3772_vm0, %v3753_v24, %v6748_v40  ;;  %v7492_v19 = vld [vmem:[#allocation3 + $0xb0] sm:$0xff]  ;;  %v12064_v14 = vld [vmem:[#allocation6_spill] sm:$0xff] }
 0x47f   : > { %v6458_v61 = vunpack.i.h.bf16 %v9986_v17  ;;  %v3688_v43 = vsel %vm2021_vm10, %v3656_v60, %v6457_v39  ;;  %v6767_v63 = vunpack.i.l.bf16 %v10308_v10  ;;  %v3657_v21 = vsel %vm325_vm3, %v7492_v19, %v6378_v20  ;;  %v7494_v39 = vld [vmem:[#allocation3 + $0xc8] sm:$0xff] }
 0x480   : > { %v6538_v56 = vunpack.i.h.bf16 %v10045_v0  ;;  %v3721_v62 = vsel %vm3706_vm14, %v3688_v43, %v6537_v31  ;;  %v6382_v15 = vunpack.i.l.bf16 %v9928_v1  ;;  %v6618_v4 = vunpack.i.h.bf16 %v10099_v54 }
 0x481   : > { %v10327_v26 = vpop.permute.xlu1 %6775  ;;  %4107 = vmatmul.mubr.f32.gmra.mrb[20].mxu1 %v3849_v36  ;;  %v10348_v16 = vpop.permute.xlu0 %6780  ;;  %v3754_v17 = vsel %vm3739_vm15, %v3721_v62, %v6617_v34  ;;  %v3819_v11 = vsel %vm3805_vm1, %v3786_v51, %v6753_v55  ;;  %v6763_v45 = vunpack.i.h.bf16 %v10294_v49  ;;  %v6772_v27 = vunpack.i.l.bf16 %v10321_v5 }
 0x482   : > { %6046 = vmatprep.mubr.msk.f32.mxu1 %vm325_vm3, %v2725_v53  ;;  %v3852_v0 = vsel %vm3838_vm2, %v3819_v11, %v6758_v46  ;;  %v3787_v25 = vsel %vm3772_vm0, %v3754_v17, %v6762_v13  ;;  %v3689_v22 = vsel %vm2021_vm10, %v3657_v21, %v6458_v61  ;;  %v6462_v32 = vunpack.i.l.bf16 %v12061_v2  ;;  %v7493_v53 = vld [vmem:[#allocation3 + $0xc0] sm:$0xff]  ;;  %v12065_v46 = vld [vmem:[#allocation15_spill] sm:$0xff]  ;;  %v7495_v61 = vld [vmem:[#allocation3 + $0xd8] sm:$0xff] }
 0x483   : > { %v6768_v54 = vunpack.i.h.bf16 %v10308_v10  ;;  %v3820_v49 = vsel %vm3805_vm1, %v3787_v25, %v6767_v63  ;;  %v3722_v36 = vsel %vm3706_vm14, %v3689_v22, %v6538_v56  ;;  %v6542_v52 = vunpack.i.l.bf16 %v12062_v18  ;;  %v12063_v10 = vld [vmem:[#allocation97_spill] sm:$0xff]  ;;  %v12067_v21 = vld [vmem:[#allocation131_spill] sm:$0xff] }
 0x484   : > { %v6383_v28 = vunpack.i.h.bf16 %v9928_v1  ;;  %v3658_v3 = vsel %vm325_vm3, %v7493_v53, %v6382_v15  ;;  %v3755_v7 = vsel %vm3739_vm15, %v3722_v36, %v6618_v4  ;;  %v6622_v59 = vunpack.i.l.bf16 %v12063_v10  ;;  %v2729_v1 = vld [vmem:[#allocation3 + $0xe2] sm:$0xff] }
 0x485   : > { %4112 = vmatmul.mubr.f32.gmra.mrb[22].mxu1 %v3850_v35  ;;  %v10354_v48 = vpop.permute.xlu1 %6785  ;;  %v10374_v47 = vpop.permute.xlu0 %6790  ;;  %v6773_v58 = vunpack.i.h.bf16 %v10321_v5  ;;  %v6777_v30 = vunpack.i.l.bf16 %v10327_v26  ;;  %v3853_v37 = vsel %vm3838_vm2, %v3820_v49, %v6772_v27  ;;  %v3788_v50 = vsel %vm3772_vm0, %v3755_v7, %v6763_v45  ;;  %v12068_v49 = vld [vmem:[#allocation8_spill] sm:$0xff] }
 0x486   : > { %6047 = vmatprep.mubr.msk.f32.mxu1 %vm325_vm3, %v2726_v9  ;;  %v6463_v29 = vunpack.i.h.bf16 %v12061_v2  ;;  %v3690_v42 = vsel %vm2021_vm10, %v3658_v3, %v6462_v32  ;;  %v3821_v40 = vsel %vm3805_vm1, %v3788_v50, %v6768_v54  ;;  %v6387_v35 = vunpack.i.l.bf16 %v12064_v14  ;;  %v7496_v32 = vld [vmem:[#allocation3 + $0xe0] sm:$0xff]  ;;  %v2732_v50 = vld [vmem:[#allocation3 + $0x10a] sm:$0xff] }
 0x487   : > { %v6543_v6 = vunpack.i.h.bf16 %v12062_v18  ;;  %v3723_v5 = vsel %vm3706_vm14, %v3690_v42, %v6542_v52  ;;  %v3659_v9 = vsel %vm325_vm3, %v7494_v39, %v6383_v28  ;;  %v6623_v20 = vunpack.i.h.bf16 %v12063_v10 }
 0x488   : > { %v3756_v57 = vsel %vm3739_vm15, %v3723_v5, %v6622_v59  ;;  %v6782_v60 = vunpack.i.l.bf16 %v10348_v16  ;;  %v6778_v31 = vunpack.i.h.bf16 %v10327_v26  ;;  %v6787_v24 = vunpack.i.l.bf16 %v10354_v48  ;;  %v12066_v26 = vld [vmem:[#allocation25_spill] sm:$0xff] }
 0x489   : > { %4117 = vmatmul.mubr.f32.gmra.mrb[24].mxu1 %v3851_v41  ;;  %v10381_v8 = vpop.permute.xlu1 %6795  ;;  %v10401_v33 = vpop.permute.xlu0 %6800  ;;  %v3854_v34 = vsel %vm3838_vm2, %v3821_v40, %v6773_v58  ;;  %v3789_v55 = vsel %vm3772_vm0, %v3756_v57, %v6777_v30  ;;  %v3691_v38 = vsel %vm2021_vm10, %v3659_v9, %v6463_v29  ;;  %v6467_v13 = vunpack.i.l.bf16 %v12065_v46  ;;  %v2730_v41 = vld [vmem:[#allocation3 + $0xf2] sm:$0xff]  ;;  %v12069_v58 = vld [vmem:[#allocation13_spill] sm:$0xff] }
 0x48a   : > { %6048 = vmatprep.mubr.msk.f32.mxu1 %vm325_vm3, %v2727_v44  ;;  %v6388_v51 = vunpack.i.h.bf16 %v12064_v14  ;;  %v3660_v43 = vsel %vm325_vm3, %v7495_v61, %v6387_v35  ;;  %v3724_v63 = vsel %vm3706_vm14, %v3691_v38, %v6543_v6  ;;  %v6547_v44 = vunpack.i.l.bf16 %v12066_v26  ;;  %v7497_v35 = vld [vmem:[#allocation3 + $0xf0] sm:$0xff] }
 0x48b   : > { %v3757_v19 = vsel %vm3739_vm15, %v3724_v63, %v6623_v20  ;;  %v6627_v56 = vunpack.i.l.bf16 %v12067_v21  ;;  %v6783_v62 = vunpack.i.h.bf16 %v10348_v16  ;;  %v3822_v15 = vsel %vm3805_vm1, %v3789_v55, %v6782_v60  ;;  %v2731_v16 = vld [vmem:[#allocation3 + $0xfa] sm:$0xff]  ;;  %v2733_v55 = vld [vmem:[#allocation3 + $0x112] sm:$0xff] }
 0x48c   : > { %v6788_v4 = vunpack.i.h.bf16 %v10354_v48  ;;  %v6792_v17 = vunpack.i.l.bf16 %v10374_v47  ;;  %v3855_v45 = vsel %vm3838_vm2, %v3822_v15, %v6787_v24  ;;  %v3790_v27 = vsel %vm3772_vm0, %v3757_v19, %v6778_v31 }
 0x48d   : > { %4122 = vmatmul.mubr.f32.gmra.mrb[26].mxu1 %v3852_v0  ;;  %v10408_v12 = vpop.permute.xlu1 %6805  ;;  %v10427_v11 = vpop.permute.xlu0 %6810  ;;  %v6468_v0 = vunpack.i.h.bf16 %v12065_v46  ;;  %v3692_v25 = vsel %vm2021_vm10, %v3660_v43, %v6467_v13  ;;  %v6797_v22 = vunpack.i.l.bf16 %v10381_v8  ;;  %v3661_v48 = vsel %vm325_vm3, %v7496_v32, %v6388_v51  ;;  %v12072_v46 = vld [vmem:[#allocation68_spill] sm:$0xff] }
 0x48e   : > { %6049 = vmatprep.mubr.msk.f32.mxu1 %vm325_vm3, %v2728_v23  ;;  %v6548_v54 = vunpack.i.h.bf16 %v12066_v26  ;;  %v3725_v23 = vsel %vm3706_vm14, %v3692_v25, %v6547_v44  ;;  %v6392_v36 = vunpack.i.l.bf16 %v12068_v49  ;;  %v6628_v18 = vunpack.i.h.bf16 %v12067_v21  ;;  %v7498_v51 = vld [vmem:[#allocation3 + $0xf8] sm:$0xff]  ;;  %v7499_v25 = vld [vmem:[#allocation3 + $0x108] sm:$0xff] }
 0x48f   : > { %v3758_v52 = vsel %vm3739_vm15, %v3725_v23, %v6627_v56  ;;  %v3823_v28 = vsel %vm3805_vm1, %v3790_v27, %v6783_v62  ;;  %v6793_v53 = vunpack.i.h.bf16 %v10374_v47  ;;  %v6802_v3 = vunpack.i.l.bf16 %v10401_v33  ;;  %v2734_v27 = vld [vmem:[#allocation3 + $0x122] sm:$0xff] }
 0x490   : > { %v3856_v7 = vsel %vm3838_vm2, %v3823_v28, %v6788_v4  ;;  %v3791_v10 = vsel %vm3772_vm0, %v3758_v52, %v6792_v17  ;;  %v3693_v59 = vsel %vm2021_vm10, %v3661_v48, %v6468_v0  ;;  %v6472_v30 = vunpack.i.l.bf16 %v12069_v58  ;;  %v12073_v4 = vld [vmem:[#allocation73_spill] sm:$0xff] }
 0x491   : > { %4127 = vmatmul.mubr.f32.gmra.mrb[28].mxu1 %v3853_v37  ;;  %v10434_v2 = vpop.permute.xlu1 %6815  ;;  %v6798_v37 = vunpack.i.h.bf16 %v10381_v8  ;;  %v3824_v29 = vsel %vm3805_vm1, %v3791_v10, %v6797_v22  ;;  %v3726_v42 = vsel %vm3706_vm14, %v3693_v59, %v6548_v54  ;;  %v10454_v40 = vpop.permute.xlu0 %6820  ;;  %v6393_v14 = vunpack.i.h.bf16 %v12068_v49  ;;  %v12071_v8 = vld [vmem:[#allocation155_spill] sm:$0xff]  ;;  %v12075_v54 = vld [vmem:[#allocation96_spill] sm:$0xff] }
 0x492   : > { %6050 = vmatprep.mubr.msk.f32.mxu1 %vm325_vm3, %v2729_v1  ;;  %v12070_v1 = vld [vmem:[#allocation54_spill] sm:$0xff]  ;;  %v3662_v6 = vsel %vm325_vm3, %v7497_v35, %v6392_v36  ;;  %v3759_v5 = vsel %vm3739_vm15, %v3726_v42, %v6628_v18  ;;  %v6632_v39 = vunpack.i.l.bf16 %v12071_v8  ;;  %v6803_v20 = vunpack.i.h.bf16 %v10401_v33 }
 0x493   : > { %v6552_v47 = vunpack.i.l.bf16 %v12070_v1  ;;  %v6807_v57 = vunpack.i.l.bf16 %v10408_v12  ;;  %v3857_v60 = vsel %vm3838_vm2, %v3824_v29, %v6802_v3  ;;  %v3792_v31 = vsel %vm3772_vm0, %v3759_v5, %v6793_v53  ;;  %v2735_v59 = vld [vmem:[#allocation3 + $0x12a] sm:$0xff] }
 0x494   : > { %v6473_v24 = vunpack.i.h.bf16 %v12069_v58  ;;  %v3825_v38 = vsel %vm3805_vm1, %v3792_v31, %v6798_v37  ;;  %v6397_v13 = vunpack.i.l.bf16 %v12072_v46  ;;  %v3663_v61 = vsel %vm325_vm3, %v7498_v51, %v6393_v14  ;;  %v7500_v58 = vld [vmem:[#allocation3 + $0x110] sm:$0xff] }
 0x495   : > { %4132 = vmatmul.mubr.f32.gmra.mrb[30].mxu1 %v3854_v34  ;;  %v10461_v9 = vpop.permute.xlu1 %6825  ;;  %v3694_v34 = vsel %vm2021_vm10, %v3662_v6, %v6472_v30  ;;  %v6633_v43 = vunpack.i.h.bf16 %v12071_v8  ;;  %v6812_v26 = vunpack.i.l.bf16 %v10427_v11  ;;  %v6808_v44 = vunpack.i.h.bf16 %v10408_v12  ;;  %v10480_v21 = vpop.permute.xlu0 %6830 }
 0x496   : > { %6051 = vmatprep.mubr.msk.f32.mxu1 %vm325_vm3, %v2730_v41  ;;  %v6553_v41 = vunpack.i.h.bf16 %v12070_v1  ;;  %v3727_v33 = vsel %vm3706_vm14, %v3694_v34, %v6552_v47  ;;  %v6817_v19 = vunpack.i.l.bf16 %v10434_v2  ;;  %v3858_v56 = vsel %vm3838_vm2, %v3825_v38, %v6803_v20  ;;  %v12077_v20 = vld [vmem:[#allocation72_spill] sm:$0xff] }
 0x497   : > { %v3760_v63 = vsel %vm3739_vm15, %v3727_v33, %v6632_v39  ;;  %v3695_v15 = vsel %vm2021_vm10, %v3663_v61, %v6473_v24  ;;  %v6477_v17 = vunpack.i.l.bf16 %v12073_v4  ;;  %v6398_v0 = vunpack.i.h.bf16 %v12072_v46  ;;  %v12078_v34 = vld [vmem:[#allocation76_spill] sm:$0xff]  ;;  %v7501_v46 = vld [vmem:[#allocation3 + $0x120] sm:$0xff] }
 0x498   : > { %v3793_v62 = vsel %vm3772_vm0, %v3760_v63, %v6807_v57  ;;  %v3664_v12 = vsel %vm325_vm3, %v7499_v25, %v6397_v13  ;;  %v3728_v22 = vsel %vm3706_vm14, %v3695_v15, %v6553_v41  ;;  %v6637_v23 = vunpack.i.l.bf16 %v12075_v54  ;;  %v12080_v33 = vld [vmem:[#allocation9_spill] sm:$0xff]  ;;  %v12081_v15 = vld [vmem:[#allocation12_spill] sm:$0xff] }
 0x499   : > { %4137 = vmatmul.mubr.f32.gmra.mrb[32].mxu1 %v3855_v45  ;;  %v10486_v45 = vpop.permute.xlu1 %6835  ;;  %v3761_v48 = vsel %vm3739_vm15, %v3728_v22, %v6633_v43  ;;  %v6813_v49 = vunpack.i.h.bf16 %v10427_v11  ;;  %v3826_v36 = vsel %vm3805_vm1, %v3793_v62, %v6812_v26  ;;  %v6818_v18 = vunpack.i.h.bf16 %v10434_v2  ;;  %v10507_v37 = vpop.permute.xlu0 %6840 }
 0x49a   : > { %6052 = vmatprep.mubr.msk.f32.mxu1 %vm325_vm3, %v2731_v16  ;;  %v12074_v16 = vld [vmem:[#allocation23_spill] sm:$0xff]  ;;  %v6822_v52 = vunpack.i.l.bf16 %v10454_v40  ;;  %v3859_v28 = vsel %vm3838_vm2, %v3826_v36, %v6817_v19  ;;  %v3794_v53 = vsel %vm3772_vm0, %v3761_v48, %v6808_v44  ;;  %v6478_v3 = vunpack.i.h.bf16 %v12073_v4  ;;  %v12082_v36 = vld [vmem:[#allocation18_spill] sm:$0xff] }
 0x49b   : > { %v6557_v32 = vunpack.i.l.bf16 %v12074_v16  ;;  %v6827_v10 = vunpack.i.l.bf16 %v10461_v9  ;;  %v3665_v11 = vsel %vm325_vm3, %v7500_v58, %v6398_v0  ;;  %v6558_v30 = vunpack.i.h.bf16 %v12074_v16  ;;  %v7503_v0 = vld [vmem:[#allocation3 + $0x128] sm:$0xff] }
 0x49c   : > { %v6638_v42 = vunpack.i.h.bf16 %v12075_v54  ;;  %v3827_v14 = vsel %vm3805_vm1, %v3794_v53, %v6813_v49  ;;  %v6823_v35 = vunpack.i.h.bf16 %v10454_v40  ;;  %v6832_v6 = vunpack.i.l.bf16 %v10480_v21  ;;  %v12079_v40 = vld [vmem:[#allocation19_spill] sm:$0xff] }
 0x49d   : > { %4142 = vmatmul.mubr.f32.gmra.mrb[34].mxu1 %v3856_v7  ;;  %v3696_v7 = vsel %vm2021_vm10, %v3664_v12, %v6477_v17  ;;  %v10513_v47 = vpop.permute.xlu1 %6845  ;;  %v3860_v5 = vsel %vm3838_vm2, %v3827_v14, %v6818_v18  ;;  %v3697_v39 = vsel %vm2021_vm10, %v3665_v11, %v6478_v3  ;;  %v6482_v57 = vunpack.i.l.bf16 %v12077_v20  ;;  %v10534_v43 = vpop.permute.xlu0 %6850  ;;  %v12084_v11 = vld [vmem:[#allocation154_spill] sm:$0xff] }
 0x49e   : > { %6053 = vmatprep.mubr.msk.f32.mxu1 %vm325_vm3, %v2732_v50  ;;  %v3729_v2 = vsel %vm3706_vm14, %v3696_v7, %v6557_v32  ;;  %v12076_v50 = vld [vmem:[#allocation67_spill] sm:$0xff]  ;;  %v3730_v24 = vsel %vm3706_vm14, %v3697_v39, %v6558_v30  ;;  %v6642_v51 = vunpack.i.l.bf16 %v12080_v33  ;;  %v6837_v61 = vunpack.i.l.bf16 %v10486_v45  ;;  %v12083_v7 = vld [vmem:[#allocation52_spill] sm:$0xff] }
 0x49f   : > { %v6402_v29 = vunpack.i.l.bf16 %v12076_v50  ;;  %v3762_v1 = vsel %vm3739_vm15, %v3729_v2, %v6637_v23  ;;  %v6403_v38 = vunpack.i.h.bf16 %v12076_v50  ;;  %v3763_v41 = vsel %vm3739_vm15, %v3730_v24, %v6638_v42 }
 0x4a0   : > { %v3795_v8 = vsel %vm3772_vm0, %v3762_v1, %v6822_v52  ;;  %v3796_v26 = vsel %vm3772_vm0, %v3763_v41, %v6823_v35  ;;  %v6483_v44 = vunpack.i.h.bf16 %v12077_v20  ;;  %v6407_v4 = vunpack.i.l.bf16 %v12081_v15 }
 0x4a1   : > { %4147 = vmatmul.mubr.f32.gmra.mrb[36].mxu1 %v3857_v60  ;;  %v6828_v60 = vunpack.i.h.bf16 %v10461_v9  ;;  %v3828_v31 = vsel %vm3805_vm1, %v3795_v8, %v6827_v10  ;;  %v3666_v13 = vsel %vm325_vm3, %v7501_v46, %v6402_v29  ;;  %v6833_v9 = vunpack.i.h.bf16 %v10480_v21  ;;  %v10561_v10 = vpop.permute.xlu0 %6860 }
 0x4a2   : > { %6054 = vmatprep.mubr.msk.f32.mxu1 %vm325_vm3, %v2733_v55  ;;  %v6562_v55 = vunpack.i.l.bf16 %v12078_v34  ;;  %v3861_v63 = vsel %vm3838_vm2, %v3828_v31, %v6832_v6  ;;  %v3698_v19 = vsel %vm2021_vm10, %v3666_v13, %v6482_v57  ;;  %v6563_v21 = vunpack.i.h.bf16 %v12078_v34  ;;  %v7507_v57 = vld [vmem:[#allocation3 + $0x15a] sm:$0xff] }
 0x4a3   : > { %v3829_v62 = vsel %vm3805_vm1, %v3796_v26, %v6828_v60  ;;  %v3667_v25 = vsel %vm325_vm3, %v7503_v0, %v6403_v38  ;;  %v6643_v12 = vunpack.i.h.bf16 %v12080_v33  ;;  %v6842_v16 = vunpack.i.l.bf16 %v10507_v37  ;;  %v12085_v60 = vld [vmem:[#allocation10_spill] sm:$0xff] }
 0x4a4   : > { %v3731_v17 = vsel %vm3706_vm14, %v3698_v19, %v6562_v55  ;;  %v6838_v32 = vunpack.i.h.bf16 %v10486_v45  ;;  %v6847_v48 = vunpack.i.l.bf16 %v10513_v47  ;;  %v3862_v54 = vsel %vm3838_vm2, %v3829_v62, %v6833_v9  ;;  %v7508_v62 = vld [vmem:[#allocation3 + $0x16a] sm:$0xff] }
 0x4a5   : > { %4152 = vmatmul.mubr.f32.gmra.mrb[38].mxu1 %v3858_v56  ;;  %v10540_v56 = vpop.permute.xlu1 %6855  ;;  %v3764_v22 = vsel %vm3739_vm15, %v3731_v17, %v6642_v51  ;;  %v3699_v49 = vsel %vm2021_vm10, %v3667_v25, %v6483_v44  ;;  %v6487_v18 = vunpack.i.l.bf16 %v12082_v36  ;;  %v6408_v52 = vunpack.i.h.bf16 %v12081_v15  ;;  %v10587_v46 = vpop.permute.xlu0 %6870  ;;  %v12086_v51 = vld [vmem:[#allocation16_spill] sm:$0xff] }
 0x4a6   : > { %6055 = vmatprep.mubr.msk.f32.mxu1 %vm325_vm3, %v2734_v27  ;;  %v7502_v27 = vld [vmem:[#allocation3 + $0x142] sm:$0xff]  ;;  %v3797_v23 = vsel %vm3772_vm0, %v3764_v22, %v6837_v61  ;;  %v3732_v3 = vsel %vm3706_vm14, %v3699_v49, %v6563_v21  ;;  %v6567_v45 = vunpack.i.l.bf16 %v12083_v7  ;;  %v6647_v30 = vunpack.i.l.bf16 %v12084_v11  ;;  %v12087_v44 = vld [vmem:[#allocation132_spill] sm:$0xff]  ;;  %v12089_v49 = vld [vmem:[#allocation71_spill] sm:$0xff] }
 0x4a7   : > { %v3765_v58 = vsel %vm3739_vm15, %v3732_v3, %v6643_v12  ;;  %v6843_v2 = vunpack.i.h.bf16 %v10507_v37  ;;  %v3830_v29 = vsel %vm3805_vm1, %v3797_v23, %v6842_v16  ;;  %v6848_v42 = vunpack.i.h.bf16 %v10513_v47  ;;  %v7506_v37 = vld [vmem:[#allocation3 + $0x140] sm:$0xff] }
 0x4a8   : > { %v6852_v1 = vunpack.i.l.bf16 %v10534_v43  ;;  %v3863_v14 = vsel %vm3838_vm2, %v3830_v29, %v6847_v48  ;;  %v3798_v35 = vsel %vm3772_vm0, %v3765_v58, %v6838_v32  ;;  %v6488_v6 = vunpack.i.h.bf16 %v12082_v36  ;;  %v4283_v23 = vld [vmem:[#allocation4 + $0x9] sm:$0xff] }
 0x4a9   : > { %4157 = vmatmul.mubr.f32.gmra.mrb[40].mxu1 %v3859_v28  ;;  %v7504_v28 = vld [vmem:[#allocation3 + $0x138] sm:$0xff]  ;;  %v10567_v50 = vpop.permute.xlu1 %6865  ;;  %v6857_v8 = vunpack.i.l.bf16 %v10540_v56  ;;  %v3669_v39 = vsel %vm325_vm3, %v7506_v37, %v6408_v52  ;;  %v6568_v20 = vunpack.i.h.bf16 %v12083_v7  ;;  %v6412_v31 = vunpack.i.l.bf16 %v12085_v60  ;;  %v12091_v37 = vld [vmem:[#allocation75_spill] sm:$0xff] }
 0x4aa   : > { %6056 = vmatprep.mubr.msk.f32.mxu1 %vm325_vm3, %v2735_v59  ;;  %v3668_v53 = vsel %vm325_vm3, %v7504_v28, %v6407_v4  ;;  %v7505_v59 = vld [vmem:[#allocation3 + $0x152] sm:$0xff]  ;;  %v6648_v24 = vunpack.i.h.bf16 %v12084_v11  ;;  %v3831_v55 = vsel %vm3805_vm1, %v3798_v35, %v6843_v2  ;;  %v6862_v38 = vunpack.i.l.bf16 %v10561_v10  ;;  %v6881_v28 = vpop.permute.xlu0 %6880 }
 0x4ab   : > { %v3864_v13 = vsel %vm3838_vm2, %v3831_v55, %v6848_v42  ;;  %v3701_v33 = vsel %vm2021_vm10, %v3669_v39, %v6488_v6  ;;  %v6492_v9 = vunpack.i.l.bf16 %v12086_v51  ;;  %v6858_v61 = vunpack.i.h.bf16 %v10540_v56  ;;  %v7509_v4 = vld [vmem:[#allocation3 + $0x150] sm:$0xff]  ;;  %v12088_v56 = vld [vmem:[#allocation29_spill] sm:$0xff]  ;;  %v7511_v7 = vld [vmem:[#allocation3 + $0x158] sm:$0xff] }
 0x4ac   : > { %v6572_v19 = vunpack.i.l.bf16 %v12087_v44  ;;  %v6413_v15 = vunpack.i.h.bf16 %v12085_v60  ;;  %v3670_v21 = vsel %vm325_vm3, %v7509_v4, %v6412_v31  ;;  %v6863_v0 = vunpack.i.h.bf16 %v10561_v10 }
 0x4ad   : > { %4162 = vmatmul.mubr.f32.gmra.mrb[42].mxu1 %v3860_v5  ;;  %v3700_v5 = vsel %vm2021_vm10, %v3668_v53, %v6487_v18  ;;  %v6867_v25 = vunpack.i.l.bf16 %v10567_v50  ;;  %v6493_v16 = vunpack.i.h.bf16 %v12086_v51  ;;  %v3702_v32 = vsel %vm2021_vm10, %v3670_v21, %v6492_v9  ;;  %v7510_v53 = vld [vmem:[#allocation3 + $0x172] sm:$0xff] }
 0x4ae   : > { %6057 = vmatprep.mubr.msk.f32.mxu1 %vm325_vm3, %v12079_v40  ;;  %v3733_v47 = vsel %vm3706_vm14, %v3700_v5, %v6567_v45  ;;  %v6853_v40 = vunpack.i.h.bf16 %v10534_v43  ;;  %v3734_v43 = vsel %vm3706_vm14, %v3701_v33, %v6568_v20  ;;  %v6417_v36 = vunpack.i.l.bf16 %v12089_v49  ;;  %v7512_v5 = vld [vmem:[#allocation3 + $0x168] sm:$0xff]  ;;  %v6891_v55 = vpop.permute.xlu0 %6890  ;;  %v7514_v51 = vld [vmem:[#allocation3 + $0x170] sm:$0xff] }
 0x4af   : > { %v3766_v34 = vsel %vm3739_vm15, %v3733_v47, %v6647_v30  ;;  %v3767_v17 = vsel %vm3739_vm15, %v3734_v43, %v6648_v24  ;;  %v6573_v18 = vunpack.i.h.bf16 %v12087_v44  ;;  %v3735_v52 = vsel %vm3706_vm14, %v3702_v32, %v6572_v19  ;;  %v7513_v20 = vld [vmem:[#allocation3 + $0x182] sm:$0xff] }
 0x4b0   : > { %v3799_v41 = vsel %vm3772_vm0, %v3766_v34, %v6852_v1  ;;  %v3800_v22 = vsel %vm3772_vm0, %v3767_v17, %v6853_v40  ;;  %v3671_v45 = vsel %vm325_vm3, %v7511_v7, %v6413_v15  ;;  %v6653_v10 = vunpack.i.h.bf16 %v12088_v56 }
 0x4b1   : > { %4167 = vmatmul.mubr.f32.gmra.mrb[44].mxu1 %v3861_v63  ;;  %v10594_v63 = vpop.permute.xlu1 %6875  ;;  %v3832_v26 = vsel %vm3805_vm1, %v3799_v41, %v6857_v8  ;;  %v3833_v48 = vsel %vm3805_vm1, %v3800_v22, %v6858_v61  ;;  %v6872_v58 = vunpack.i.l.bf16 %v10587_v46  ;;  %v6868_v30 = vunpack.i.h.bf16 %v10567_v50  ;;  %v2745_v22 = vld [vmem:[#allocation3 + $0x1a2] sm:$0xff] }
 0x4b2   : > { %6058 = vmatprep.mubr.msk.f32.mxu1 %vm325_vm3, %v7502_v27  ;;  %v6652_v27 = vunpack.i.l.bf16 %v12088_v56  ;;  %v3865_v12 = vsel %vm3838_vm2, %v3832_v26, %v6862_v38  ;;  %v6877_v2 = vunpack.i.l.bf16 %v10594_v63  ;;  %v3866_v29 = vsel %vm3838_vm2, %v3833_v48, %v6863_v0 }
 0x4b3   : > { %v3703_v1 = vsel %vm2021_vm10, %v3671_v45, %v6493_v16  ;;  %v6418_v6 = vunpack.i.h.bf16 %v12089_v49  ;;  %v3672_v8 = vsel %vm325_vm3, %v7512_v5, %v6417_v36  ;;  %v6577_v39 = vunpack.i.l.bf16 %v12091_v37  ;;  %v10660_v49 = vld [vmem:[%s11541_s4] ss:$0 sm:$0xff] }
 0x4b4   : > { %v3736_v50 = vsel %vm3706_vm14, %v3703_v1, %v6573_v18  ;;  %v6882_v60 = vunpack.i.l.bf16 %v6881_v28  ;;  %v6878_v24 = vunpack.i.h.bf16 %v10594_v63  ;;  %v6578_v9 = vunpack.i.h.bf16 %v12091_v37  ;;  %v7515_v63 = vld [vmem:[#allocation3 + $0x18a] sm:$0xff] }
 0x4b5   : > { %4172 = vmatmul.mubr.f32.gmra.mrb[46].mxu1 %v3862_v54  ;;  %v4282_v54 = vld [vmem:[#allocation4 + $0x1] sm:$0xff]  ;;  %v6886_v11 = vpop.permute.xlu1 %6885  ;;  %v3769_v47 = vsel %vm3739_vm15, %v3736_v50, %v6653_v10  ;;  %v6883_v26 = vunpack.i.h.bf16 %v6881_v28  ;;  %v6892_v44 = vunpack.i.l.bf16 %v6891_v55 }
 0x4b6   : > { %6059 = vmatprep.mubr.msk.f32.mxu1 %vm325_vm3, %v7505_v59  ;;  %v6899_v3 = vpack.i.bf16 %v4283_v23, %v4282_v54  ;;  %v3768_v59 = vsel %vm3739_vm15, %v3735_v52, %v6652_v27  ;;  %v6887_v34 = vunpack.i.l.bf16 %v6886_v11  ;;  %v3802_v38 = vsel %vm3772_vm0, %v3769_v47, %v6868_v30 }
 0x4b7   : > { %v3801_v42 = vsel %vm3772_vm0, %v3768_v59, %v6867_v25  ;;  %v6888_v15 = vunpack.i.h.bf16 %v6886_v11  ;;  %v6893_v25 = vunpack.i.h.bf16 %v6891_v55 }
 0x4b8   : > { %6900 = vrot.lane.b32.xlu0 %v6899_v3, %s7538_s11  ;;  %v3834_v31 = vsel %vm3805_vm1, %v3801_v42, %v6872_v58 }
 0x4b9   : > { %4177 = vmatmul.mubr.f32.gmra.mrb[48].mxu1 %v3863_v14  ;;  %v12090_v14 = vld [vmem:[#allocation74_spill] sm:$0xff]  ;;  %v3867_v40 = vsel %vm3838_vm2, %v3834_v31, %v6877_v2  ;;  %v6896_v33 = vpop.permute.xlu1 %6895 }
 0x4ba   : > { %6060 = vmatprep.mubr.msk.f32.mxu1 %vm325_vm3, %v7507_v57  ;;  %v6497_v35 = vunpack.i.l.bf16 %v12090_v14  ;;  %v6873_v57 = vunpack.i.h.bf16 %v10587_v46  ;;  %v3673_v46 = vsel %vm325_vm3, %v7514_v51, %v6418_v6  ;;  %v6897_v4 = vunpack.i.l.bf16 %v6896_v33 }
 0x4bb   : > { %v6898_v16 = vunpack.i.h.bf16 %v6896_v33 }
 0x4bc   : > { %v3704_v41 = vsel %vm2021_vm10, %v3672_v8, %v6497_v35  ;;  %v3835_v19 = vsel %vm3805_vm1, %v3802_v38, %v6873_v57 }
 0x4bd   : > { %4182 = vmatmul.mubr.f32.gmra.mrb[50].mxu1 %v3864_v13  ;;  %v6498_v13 = vunpack.i.h.bf16 %v12090_v14  ;;  %v3737_v61 = vsel %vm3706_vm14, %v3704_v41, %v6577_v39  ;;  %v3868_v21 = vsel %vm3838_vm2, %v3835_v19, %v6878_v24 }
 0x4be   : > { %6061 = vmatprep.mubr.msk.f32.mxu1 %vm325_vm3, %v7508_v62  ;;  %v3770_v43 = vsel %vm3739_vm15, %v3737_v61, %v6882_v60  ;;  %v2744_v62 = vld [vmem:[#allocation3 + $0x19a] sm:$0xff] }
 0x4bf   : > { %v3803_v17 = vsel %vm3772_vm0, %v3770_v43, %v6887_v34  ;;  %v3705_v56 = vsel %vm2021_vm10, %v3673_v46, %v6498_v13 }
 0x4c0   : > { %v3738_v27 = vsel %vm3706_vm14, %v3705_v56, %v6578_v9 }
 0x4c1   : > { %4187 = vmatmul.mubr.f32.gmra.mrb[52].mxu1 %v3865_v12  ;;  %v3771_v0 = vsel %vm3739_vm15, %v3738_v27, %v6883_v26  ;;  %v3836_v12 = vsel %vm3805_vm1, %v3803_v17, %v6892_v44 }
 0x4c2   : > { %6062 = vmatprep.mubr.msk.f32.mxu1 %vm325_vm3, %v7510_v53  ;;  %v3869_v32 = vsel %vm3838_vm2, %v3836_v12, %v6897_v4  ;;  %v3804_v48 = vsel %vm3772_vm0, %v3771_v0, %v6888_v15 }
 0x4c3   : > { %v3837_v54 = vsel %vm3805_vm1, %v3804_v48, %v6893_v25 }
 0x4c4   : > { %v3870_v23 = vsel %vm3838_vm2, %v3837_v54, %v6898_v16 }
 0x4c5   : > { %4192 = vmatmul.mubr.f32.gmra.mrb[54].mxu1 %v3866_v29 }
 0x4c6   : > { %6063 = vmatprep.mubr.msk.f32.mxu1 %vm325_vm3, %v7513_v20 }
 0x4c9   : > { %4197 = vmatmul.mubr.f32.gmra.mrb[56].mxu1 %v3867_v40 }
 0x4ca   : > { %6064 = vmatprep.mubr.msk.f32.mxu1 %vm325_vm3, %v7515_v63 }
 0x4cd   : > { %4202 = vmatmul.mubr.f32.gmra.mrb[58].mxu1 %v3868_v21 }
 0x4ce   : > { %6065 = vmatprep.mubr.msk.f32.mxu1 %vm325_vm3, %v2744_v62 }
 0x4d1   : > { %4207 = vmatmul.mubr.f32.gmra.mrb[60].mxu1 %v3869_v32 }
 0x4d2   : > { %6066 = vmatprep.mubr.msk.f32.mxu1 %vm325_vm3, %v2745_v22 }
 0x4d5   : > { %4212 = vmatmul.mubr.f32.gmra.mrb[62].mxu1 %v3870_v23 }
 0x52c   : > { %v4058_v36 = vpop.f32.mrb[0].mxu1 }
 0x52d   : > { %v4059_v18 = vadd.f32 %v10660_v49, %v4058_v36  ;;  %v4060_v52 = vpop.f32.mrb[1].mxu1 }
 0x52f   : > { %4218 = vst.msk [vmem:[#allocation4 + $0x19] sm:$0xff] %vm325_vm3, %v4059_v18 }
 0x530   : > { %v4063_v28 = vpop.f32.mrb[2].mxu1 }
 0x531   : > { %v4064_v53 = vadd.f32 %v10660_v49, %v4063_v28  ;;  %v4065_v3 = vpop.f32.mrb[3].mxu1  ;;  %v4314_v28 = vld [vmem:[#allocation4 + $0x2] sm:$0xff] }
 0x533   : > { %4219 = vst.msk [vmem:[#allocation4 + $0x21] sm:$0xff] %vm325_vm3, %v4064_v53 }
 0x534   : > { %v4068_v7 = vpop.f32.mrb[4].mxu1 }
 0x535   : > { %v4069_v45 = vadd.f32 %v10660_v49, %v4068_v7  ;;  %v4070_v10 = vpop.f32.mrb[5].mxu1  ;;  %v4315_v7 = vld [vmem:[#allocation4 + $0xa] sm:$0xff] }
 0x536   : > { %v4284_v30 = vld [vmem:[#allocation4 + $0x19] sm:$0xff] }
 0x537   : > { %4220 = vst.msk [vmem:[#allocation4 + $0x31] sm:$0xff] %vm325_vm3, %v4069_v45 }
 0x538   : > { %v4073_v59 = vpop.f32.mrb[6].mxu1 }
 0x539   : > { %v4074_v58 = vadd.f32 %v10660_v49, %v4073_v59  ;;  %v4075_v11 = vpop.f32.mrb[7].mxu1 }
 0x53a   : > { %v4285_v2 = vld [vmem:[#allocation4 + $0x21] sm:$0xff] }
 0x53b   : > { %4221 = vst.msk [vmem:[#allocation4 + $0x39] sm:$0xff] %vm325_vm3, %v4074_v58  ;;  %v10670_v29 = vpack.i.bf16 %v4285_v2, %v4284_v30  ;;  %v4316_v12 = vld [vmem:[#allocation4 + $0x1a] sm:$0xff]  ;;  %v4317_v22 = vld [vmem:[#allocation4 + $0x22] sm:$0xff]  ;;  %v6934_v30 = vpack.i.bf16 %v4315_v7, %v4314_v28 }
 0x53c   : > { %v4078_v42 = vpop.f32.mrb[8].mxu1  ;;  %v10722_v48 = vpack.i.bf16 %v4317_v22, %v4316_v12 }
 0x53d   : > { %v4079_v1 = vadd.f32 %v10660_v49, %v4078_v42  ;;  %6905 = vrot.lane.b32.xlu1 %v10670_v29, %s7538_s11  ;;  %v4080_v14 = vpop.f32.mrb[9].mxu1 }
 0x53e   : > { %v4286_v50 = vld [vmem:[#allocation4 + $0x31] sm:$0xff] }
 0x53f   : > { %4222 = vst.msk [vmem:[#allocation4 + $0x49] sm:$0xff] %vm325_vm3, %v4079_v1  ;;  %v10801_v28 = vld [vmem:[#allocation4 + $0x30] sm:$0xff] }
 0x540   : > { %v4083_v35 = vpop.f32.mrb[10].mxu1 }
 0x541   : > { %v4084_v6 = vadd.f32 %v10660_v49, %v4083_v35  ;;  %v4085_v5 = vpop.f32.mrb[11].mxu1 }
 0x542   : > { %v10683_v37 = vld [vmem:[#allocation4 + $0x32] sm:$0xff]  ;;  %v10685_v39 = vld [vmem:[#allocation4 + $0x3a] sm:$0xff] }
 0x543   : > { %v4287_v20 = vld [vmem:[#allocation4 + $0x39] sm:$0xff]  ;;  %4223 = vst.msk [vmem:[#allocation4 + $0x51] sm:$0xff] %vm325_vm3, %v4084_v6  ;;  %v6235_v47 = vpack.c.bf16 %v10685_v39, %v10683_v37  ;;  %v10743_v6 = vpack.i.bf16 %v10685_v39, %v10683_v37 }
 0x544   : > { %v10690_v57 = vpack.i.bf16 %v4287_v20, %v4286_v50  ;;  %v4088_v60 = vpop.f32.mrb[12].mxu1 }
 0x545   : > { %v4089_v31 = vadd.f32 %v10660_v49, %v4088_v60  ;;  %6237 = vmatprep.subr.msk.bf16.mxu0 %vm10679_vm4, %v6235_v47  ;;  %v4090_v24 = vpop.f32.mrb[13].mxu1 }
 0x546   : > { %6910 = vrot.lane.b32.xlu0 %v10690_v57, %s7538_s11  ;;  %v4288_v38 = vld [vmem:[#allocation4 + $0x49] sm:$0xff] }
 0x547   : > { %4224 = vst.msk [vmem:[#allocation4 + $0x61] sm:$0xff] %vm325_vm3, %v4089_v31 }
 0x548   : > { %v4093_v34 = vpop.f32.mrb[14].mxu1 }
 0x549   : > { %v4094_v55 = vadd.f32 %v10660_v49, %v4093_v34  ;;  %v4095_v40 = vpop.f32.mrb[15].mxu1 }
 0x54a   : > { %v4289_v13 = vld [vmem:[#allocation4 + $0x51] sm:$0xff] }
 0x54b   : > { %4225 = vst.msk [vmem:[#allocation4 + $0x69] sm:$0xff] %vm325_vm3, %v4094_v55  ;;  %v10700_v41 = vpack.i.bf16 %v4289_v13, %v4288_v38  ;;  %v4320_v23 = vld [vmem:[#allocation4 + $0x4a] sm:$0xff]  ;;  %v4321_v36 = vld [vmem:[#allocation4 + $0x52] sm:$0xff] }
 0x54c   : > { %v4098_v33 = vpop.f32.mrb[16].mxu1  ;;  %v10730_v10 = vpack.i.bf16 %v4321_v36, %v4320_v23  ;;  %v10793_v36 = vld [vmem:[#allocation4 + $0x38] sm:$0xff] }
 0x54d   : > { %v4099_v51 = vadd.f32 %v10660_v49, %v4098_v33  ;;  %v4100_v46 = vpop.f32.mrb[17].mxu1  ;;  %6915 = vrot.lane.b32.xlu1 %v10700_v41, %s7538_s11 }
 0x54e   : > { %v4290_v26 = vld [vmem:[#allocation4 + $0x61] sm:$0xff] }
 0x54f   : > { %4226 = vst.msk [vmem:[#allocation4 + $0x79] sm:$0xff] %vm325_vm3, %v4099_v51 }
 0x550   : > { %v4103_v9 = vpop.f32.mrb[18].mxu1 }
 0x551   : > { %v4104_v61 = vadd.f32 %v10660_v49, %v4103_v9  ;;  %v4105_v63 = vpop.f32.mrb[19].mxu1 }
 0x552   : > { %v4291_v43 = vld [vmem:[#allocation4 + $0x69] sm:$0xff] }
 0x553   : > { %4227 = vst.msk [vmem:[#allocation4 + $0x81] sm:$0xff] %vm325_vm3, %v4104_v61  ;;  %v10708_v44 = vpack.i.bf16 %v4291_v43, %v4290_v26  ;;  %v4322_v50 = vld [vmem:[#allocation4 + $0x62] sm:$0xff]  ;;  %v4323_v47 = vld [vmem:[#allocation4 + $0x6a] sm:$0xff] }
 0x554   : > { %v4108_v19 = vpop.f32.mrb[20].mxu1  ;;  %v10753_v37 = vpack.i.bf16 %v4323_v47, %v4322_v50 }
 0x555   : > { %v4109_v62 = vadd.f32 %v10660_v49, %v4108_v19  ;;  %v4110_v15 = vpop.f32.mrb[21].mxu1  ;;  %6920 = vrot.lane.b32.xlu0 %v10708_v44, %s7538_s11 }
 0x556   : > { %v4292_v56 = vld [vmem:[#allocation4 + $0x79] sm:$0xff] }
 0x557   : > { %4228 = vst.msk [vmem:[#allocation4 + $0x91] sm:$0xff] %vm325_vm3, %v4109_v62 }
 0x558   : > { %v4113_v4 = vpop.f32.mrb[22].mxu1 }
 0x559   : > { %v4114_v21 = vadd.f32 %v10660_v49, %v4113_v4  ;;  %v4115_v17 = vpop.f32.mrb[23].mxu1 }
 0x55a   : > { %v4293_v27 = vld [vmem:[#allocation4 + $0x81] sm:$0xff] }
 0x55b   : > { %4229 = vst.msk [vmem:[#allocation4 + $0x99] sm:$0xff] %vm325_vm3, %v4114_v21  ;;  %v10716_v0 = vpack.i.bf16 %v4293_v27, %v4292_v56  ;;  %v4324_v60 = vld [vmem:[#allocation4 + $0x7a] sm:$0xff]  ;;  %v4325_v31 = vld [vmem:[#allocation4 + $0x82] sm:$0xff] }
 0x55c   : > { %v4118_v25 = vpop.f32.mrb[24].mxu1  ;;  %v10755_v39 = vpack.i.bf16 %v4325_v31, %v4324_v60  ;;  %v10775_v21 = vld [vmem:[#allocation4 + $0x20] sm:$0xff]  ;;  %v10782_v27 = vld [vmem:[#allocation4 + $0x18] sm:$0xff] }
 0x55d   : > { %v4119_v16 = vadd.f32 %v10660_v49, %v4118_v25  ;;  %v4120_v32 = vpop.f32.mrb[25].mxu1  ;;  %6925 = vrot.lane.b32.xlu1 %v10716_v0, %s7538_s11 }
 0x55e   : > { %v4294_v53 = vld [vmem:[#allocation4 + $0x91] sm:$0xff] }
 0x55f   : > { %4230 = vst.msk [vmem:[#allocation4 + $0xa9] sm:$0xff] %vm325_vm3, %v4119_v16  ;;  %v6984_v16 = vpack.i.bf16 %v10775_v21, %v10782_v27 }
 0x560   : > { %v4123_v54 = vpop.f32.mrb[26].mxu1 }
 0x561   : > { %v4124_v18 = vadd.f32 %v10660_v49, %v4123_v54  ;;  %v4125_v52 = vpop.f32.mrb[27].mxu1  ;;  %6940 = vrot.lane.b32.xlu1 %v10722_v48, %s7542_s27 }
 0x562   : > { %v4295_v3 = vld [vmem:[#allocation4 + $0x99] sm:$0xff] }
 0x563   : > { %4231 = vst.msk [vmem:[#allocation4 + $0xb1] sm:$0xff] %vm325_vm3, %v4124_v18  ;;  %v10728_v45 = vpack.i.bf16 %v4295_v3, %v4294_v53  ;;  %v4326_v26 = vld [vmem:[#allocation4 + $0x92] sm:$0xff]  ;;  %v4327_v43 = vld [vmem:[#allocation4 + $0x9a] sm:$0xff]  ;;  %v7004_v53 = vpack.i.bf16 %v10793_v36, %v10801_v28 }
 0x564   : > { %v4128_v59 = vpop.f32.mrb[28].mxu1  ;;  %v10773_v15 = vpack.i.bf16 %v4327_v43, %v4326_v26 }
 0x565   : > { %v4129_v58 = vadd.f32 %v10660_v49, %v4128_v59  ;;  %v4130_v11 = vpop.f32.mrb[29].mxu1  ;;  %6930 = vrot.lane.b32.xlu0 %v10728_v45, %s7538_s11  ;;  %6950 = vrot.lane.b32.xlu1 %v10730_v10, %s7542_s27 }
 0x566   : > { %v4296_v14 = vld [vmem:[#allocation4 + $0xa9] sm:$0xff] }
 0x567   : > { %4232 = vst.msk [vmem:[#allocation4 + $0xc1] sm:$0xff] %vm325_vm3, %v4129_v58 }
 0x568   : > { %v4133_v2 = vpop.f32.mrb[30].mxu1 }
 0x569   : > { %v4134_v42 = vadd.f32 %v10660_v49, %v4133_v2  ;;  %v4135_v1 = vpop.f32.mrb[31].mxu1  ;;  %6935 = vrot.lane.b32.xlu0 %v6934_v30, %s7542_s27 }
 0x56a   : > { %v4297_v35 = vld [vmem:[#allocation4 + $0xb1] sm:$0xff] }
 0x56b   : > { %4233 = vst.msk [vmem:[#allocation4 + $0xc9] sm:$0xff] %vm325_vm3, %v4134_v42  ;;  %v10745_v5 = vpack.i.bf16 %v4297_v35, %v4296_v14  ;;  %v4328_v40 = vld [vmem:[#allocation4 + $0xaa] sm:$0xff]  ;;  %v4329_v38 = vld [vmem:[#allocation4 + $0xb2] sm:$0xff] }
 0x56c   : > { %v4138_v20 = vpop.f32.mrb[32].mxu1  ;;  %v10765_v61 = vpack.i.bf16 %v4329_v38, %v4328_v40  ;;  %v10836_v38 = vld [vmem:[#allocation4 + $0x50] sm:$0xff] }
 0x56d   : > { %v4139_v24 = vadd.f32 %v10660_v49, %v4138_v20  ;;  %v4140_v34 = vpop.f32.mrb[33].mxu1  ;;  %6945 = vrot.lane.b32.xlu0 %v10743_v6, %s7542_s27  ;;  %6960 = vrot.lane.b32.xlu1 %v10745_v5, %s7538_s11 }
 0x56e   : > { %v4298_v51 = vld [vmem:[#allocation4 + $0xc1] sm:$0xff] }
 0x56f   : > { %4234 = vst.msk [vmem:[#allocation4 + $0xd9] sm:$0xff] %vm325_vm3, %v4139_v24 }
 0x570   : > { %v4143_v55 = vpop.f32.mrb[34].mxu1 }
 0x571   : > { %v4144_v13 = vadd.f32 %v10660_v49, %v4143_v55  ;;  %v4145_v33 = vpop.f32.mrb[35].mxu1  ;;  %6955 = vrot.lane.b32.xlu0 %v10753_v37, %s7542_s27  ;;  %6965 = vrot.lane.b32.xlu1 %v10755_v39, %s7542_s27 }
 0x572   : > { %v4299_v46 = vld [vmem:[#allocation4 + $0xc9] sm:$0xff] }
 0x573   : > { %4235 = vst.msk [vmem:[#allocation4 + $0xe1] sm:$0xff] %vm325_vm3, %v4144_v13  ;;  %v10763_v9 = vpack.i.bf16 %v4299_v46, %v4298_v51 }
 0x574   : > { %v4148_v63 = vpop.f32.mrb[36].mxu1 }
 0x575   : > { %v4149_v19 = vadd.f32 %v10660_v49, %v4148_v63  ;;  %v4150_v62 = vpop.f32.mrb[37].mxu1  ;;  %6970 = vrot.lane.b32.xlu0 %v10763_v9, %s7538_s11  ;;  %6980 = vrot.lane.b32.xlu1 %v10765_v61, %s7542_s27 }
 0x576   : > { %v4300_v25 = vld [vmem:[#allocation4 + $0xd9] sm:$0xff] }
 0x577   : > { %4236 = vst.msk [vmem:[#allocation4 + $0xf1] sm:$0xff] %vm325_vm3, %v4149_v19 }
 0x578   : > { %v4153_v4 = vpop.f32.mrb[38].mxu1 }
 0x579   : > { %v4154_v17 = vadd.f32 %v10660_v49, %v4153_v4  ;;  %v4155_v56 = vpop.f32.mrb[39].mxu1  ;;  %6975 = vrot.lane.b32.xlu0 %v10773_v15, %s7542_s27  ;;  %6990 = vrot.lane.b32.xlu1 %v10670_v29, %s7545_s21 }
 0x57a   : > { %v4301_v12 = vld [vmem:[#allocation4 + $0xe1] sm:$0xff] }
 0x57b   : > { %v10784_v22 = vld [vmem:[#allocation4 + $0xda] sm:$0xff]  ;;  %4237 = vst.msk [vmem:[#allocation4 + $0xf9] sm:$0xff] %vm325_vm3, %v4154_v17  ;;  %v10789_v32 = vpack.i.bf16 %v4301_v12, %v4300_v25  ;;  %v10791_v54 = vld [vmem:[#allocation4 + $0xe2] sm:$0xff] }
 0x57c   : > { %12094 = vst [vmem:[#allocation7_spill] sm:$0xff] %v10784_v22  ;;  %12095 = vst [vmem:[#allocation58_spill] sm:$0xff] %v10791_v54  ;;  %v4158_v23 = vpop.f32.mrb[40].mxu1  ;;  %v10861_v25 = vld [vmem:[#allocation4 + $0x68] sm:$0xff] }
 0x57d   : > { %v4159_v18 = vadd.f32 %v10660_v49, %v4158_v23  ;;  %v4160_v52 = vpop.f32.mrb[41].mxu1  ;;  %6985 = vrot.lane.b32.xlu0 %v6984_v16, %s7543_s30  ;;  %7000 = vrot.lane.b32.xlu1 %v10789_v32, %s7538_s11 }
 0x57e   : > { %v4302_v58 = vld [vmem:[#allocation4 + $0xf1] sm:$0xff] }
 0x57f   : > { %4238 = vst.msk [vmem:[#allocation4 + $0x109] sm:$0xff] %vm325_vm3, %v4159_v18  ;;  %v10870_v18 = vld [vmem:[#allocation4 + $0x60] sm:$0xff] }
 0x580   : > { %v4163_v3 = vpop.f32.mrb[42].mxu1  ;;  %v7069_v52 = vpack.i.bf16 %v10861_v25, %v10870_v18 }
 0x581   : > { %v4164_v7 = vadd.f32 %v10660_v49, %v4163_v3  ;;  %v4165_v59 = vpop.f32.mrb[43].mxu1  ;;  %6995 = vrot.lane.b32.xlu0 %v10722_v48, %s7546_s10  ;;  %7005 = vrot.lane.b32.xlu1 %v7004_v53, %s7547_s12 }
 0x582   : > { %v4303_v11 = vld [vmem:[#allocation4 + $0xf9] sm:$0xff] }
 0x583   : > { %v10810_v30 = vld [vmem:[#allocation4 + $0xf2] sm:$0xff]  ;;  %4239 = vst.msk [vmem:[#allocation4 + $0x111] sm:$0xff] %vm325_vm3, %v4164_v7  ;;  %v10813_v2 = vpack.i.bf16 %v4303_v11, %v4302_v58  ;;  %v10815_v42 = vld [vmem:[#allocation4 + $0xfa] sm:$0xff] }
 0x584   : > { %12096 = vst [vmem:[#allocation27_spill] sm:$0xff] %v10810_v30  ;;  %12097 = vst [vmem:[#allocation78_spill] sm:$0xff] %v10815_v42  ;;  %v4168_v1 = vpop.f32.mrb[44].mxu1  ;;  %v7264_v13 = vpack.i.bf16 %v10815_v42, %v10810_v30  ;;  %v4251_v42 = vld [vmem:[#allocation4 + $0x8] sm:$0xff] }
 0x585   : > { %v4169_v35 = vadd.f32 %v10660_v49, %v4168_v1  ;;  %v4170_v50 = vpop.f32.mrb[45].mxu1  ;;  %7010 = vrot.lane.b32.xlu0 %v10813_v2, %s7538_s11  ;;  %7020 = vrot.lane.b32.xlu1 %v7004_v53, %s7543_s30 }
 0x586   : > { %v4304_v60 = vld [vmem:[#allocation4 + $0x109] sm:$0xff] }
 0x587   : > { %4240 = vst.msk [vmem:[#allocation4 + $0x121] sm:$0xff] %vm325_vm3, %v4169_v35  ;;  %v4461_v29 = vld [vmem:[#allocation4 + $0x108] sm:$0xff] }
 0x588   : > { %v4173_v48 = vpop.f32.mrb[46].mxu1 }
 0x589   : > { %v4174_v20 = vadd.f32 %v10660_v49, %v4173_v48  ;;  %v4175_v47 = vpop.f32.mrb[47].mxu1  ;;  %7015 = vrot.lane.b32.xlu0 %v10690_v57, %s7548_s13  ;;  %7030 = vrot.lane.b32.xlu1 %v10743_v6, %s7546_s10  ;;  %v10845_v6 = vld [vmem:[#allocation4 + $0x48] sm:$0xff] }
 0x58a   : > { %v4305_v31 = vld [vmem:[#allocation4 + $0x111] sm:$0xff]  ;;  %v7034_v46 = vpack.i.bf16 %v10836_v38, %v10845_v6 }
 0x58b   : > { %v10829_v24 = vld [vmem:[#allocation4 + $0x10a] sm:$0xff]  ;;  %4241 = vst.msk [vmem:[#allocation4 + $0x129] sm:$0xff] %vm325_vm3, %v4174_v20  ;;  %v10832_v34 = vpack.i.bf16 %v4305_v31, %v4304_v60  ;;  %v10834_v55 = vld [vmem:[#allocation4 + $0x112] sm:$0xff] }
 0x58c   : > { %12098 = vst [vmem:[#allocation56_spill] sm:$0xff] %v10829_v24  ;;  %12099 = vst [vmem:[#allocation134_spill] sm:$0xff] %v10834_v55  ;;  %v4178_v40 = vpop.f32.mrb[48].mxu1  ;;  %v4462_v14 = vld [vmem:[#allocation4 + $0x110] sm:$0xff] }
 0x58d   : > { %v4179_v33 = vadd.f32 %v10660_v49, %v4178_v40  ;;  %v4180_v51 = vpop.f32.mrb[49].mxu1  ;;  %7025 = vrot.lane.b32.xlu0 %v10690_v57, %s7545_s21  ;;  %7040 = vrot.lane.b32.xlu1 %v10832_v34, %s7538_s11 }
 0x58e   : > { %v4306_v57 = vld [vmem:[#allocation4 + $0x121] sm:$0xff] }
 0x58f   : > { %4242 = vst.msk [vmem:[#allocation4 + $0x139] sm:$0xff] %vm325_vm3, %v4179_v33 }
 0x590   : > { %v4183_v63 = vpop.f32.mrb[50].mxu1 }
 0x591   : > { %v4184_v26 = vadd.f32 %v10660_v49, %v4183_v63  ;;  %v4185_v43 = vpop.f32.mrb[51].mxu1  ;;  %7035 = vrot.lane.b32.xlu0 %v7034_v46, %s7547_s12  ;;  %7045 = vrot.lane.b32.xlu1 %v10700_v41, %s7548_s13 }
 0x592   : > { %v4307_v19 = vld [vmem:[#allocation4 + $0x129] sm:$0xff] }
 0x593   : > { %v10854_v62 = vld [vmem:[#allocation4 + $0x122] sm:$0xff]  ;;  %4243 = vst.msk [vmem:[#allocation4 + $0x141] sm:$0xff] %vm325_vm3, %v4184_v26  ;;  %v10857_v4 = vpack.i.bf16 %v4307_v19, %v4306_v57  ;;  %v10859_v17 = vld [vmem:[#allocation4 + $0x12a] sm:$0xff] }
 0x594   : > { %v4188_v56 = vpop.f32.mrb[52].mxu1 }
 0x595   : > { %v4189_v16 = vadd.f32 %v10660_v49, %v4188_v56  ;;  %v4190_v23 = vpop.f32.mrb[53].mxu1  ;;  %7050 = vrot.lane.b32.xlu0 %v10857_v4, %s7538_s11  ;;  %7060 = vrot.lane.b32.xlu1 %v10700_v41, %s7545_s21  ;;  %v10912_v56 = vld [vmem:[#allocation4 + $0x80] sm:$0xff] }
 0x596   : > { %v4308_v59 = vld [vmem:[#allocation4 + $0x139] sm:$0xff] }
 0x597   : > { %4244 = vst.msk [vmem:[#allocation4 + $0x151] sm:$0xff] %vm325_vm3, %v4189_v16 }
 0x598   : > { %v4193_v53 = vpop.f32.mrb[54].mxu1 }
 0x599   : > { %v4194_v3 = vadd.f32 %v10660_v49, %v4193_v53  ;;  %v4195_v7 = vpop.f32.mrb[55].mxu1  ;;  %7055 = vrot.lane.b32.xlu0 %v7034_v46, %s7543_s30  ;;  %7070 = vrot.lane.b32.xlu1 %v7069_v52, %s7547_s12 }
 0x59a   : > { %v4309_v58 = vld [vmem:[#allocation4 + $0x141] sm:$0xff] }
 0x59b   : > { %v10878_v11 = vld [vmem:[#allocation4 + $0x13a] sm:$0xff]  ;;  %4245 = vst.msk [vmem:[#allocation4 + $0x159] sm:$0xff] %vm325_vm3, %v4194_v3  ;;  %v10881_v41 = vpack.i.bf16 %v4309_v58, %v4308_v59  ;;  %v10883_v1 = vld [vmem:[#allocation4 + $0x142] sm:$0xff] }
 0x59c   : > { %v4198_v35 = vpop.f32.mrb[56].mxu1  ;;  %v10935_v58 = vld [vmem:[#allocation4 + $0x98] sm:$0xff] }
 0x59d   : > { %v4199_v48 = vadd.f32 %v10660_v49, %v4198_v35  ;;  %v4200_v20 = vpop.f32.mrb[57].mxu1  ;;  %7065 = vrot.lane.b32.xlu0 %v10730_v10, %s7546_s10  ;;  %7080 = vrot.lane.b32.xlu1 %v10881_v41, %s7538_s11  ;;  %v10940_v35 = vld [vmem:[#allocation4 + $0x90] sm:$0xff] }
 0x59e   : > { %v4310_v40 = vld [vmem:[#allocation4 + $0x151] sm:$0xff]  ;;  %v7134_v20 = vpack.i.bf16 %v10935_v58, %v10940_v35 }
 0x59f   : > { %4246 = vst.msk [vmem:[#allocation4 + $0x169] sm:$0xff] %vm325_vm3, %v4199_v48 }
 0x5a0   : > { %v4203_v47 = vpop.f32.mrb[58].mxu1 }
 0x5a1   : > { %v4204_v60 = vadd.f32 %v10660_v49, %v4203_v47  ;;  %v4205_v31 = vpop.f32.mrb[59].mxu1  ;;  %7075 = vrot.lane.b32.xlu0 %v10708_v44, %s7548_s13  ;;  %7085 = vrot.lane.b32.xlu1 %v7069_v52, %s7543_s30  ;;  %v10919_v52 = vld [vmem:[#allocation4 + $0x78] sm:$0xff] }
 0x5a2   : > { %v4311_v33 = vld [vmem:[#allocation4 + $0x159] sm:$0xff]  ;;  %v10962_v31 = vld [vmem:[#allocation4 + $0xa8] sm:$0xff] }
 0x5a3   : > { %v10897_v51 = vld [vmem:[#allocation4 + $0x152] sm:$0xff]  ;;  %4247 = vst.msk [vmem:[#allocation4 + $0x171] sm:$0xff] %vm325_vm3, %v4204_v60  ;;  %v10900_v10 = vpack.i.bf16 %v4311_v33, %v4310_v40  ;;  %v10902_v46 = vld [vmem:[#allocation4 + $0x15a] sm:$0xff]  ;;  %12101 = vst [vmem:[#allocation99_spill] sm:$0xff] %v10962_v31 }
 0x5a4   : > { %v4208_v63 = vpop.f32.mrb[60].mxu1  ;;  %v10969_v40 = vld [vmem:[#allocation4 + $0xc8] sm:$0xff]  ;;  %v11023_v60 = vld [vmem:[#allocation4 + $0xf0] sm:$0xff] }
 0x5a5   : > { %v4209_v43 = vadd.f32 %v10660_v49, %v4208_v63  ;;  %v4210_v57 = vpop.f32.mrb[61].mxu1  ;;  %7090 = vrot.lane.b32.xlu0 %v10900_v10, %s7538_s11  ;;  %7100 = vrot.lane.b32.xlu1 %v10753_v37, %s7546_s10  ;;  %v7104_v37 = vpack.i.bf16 %v10912_v56, %v10919_v52  ;;  %12102 = vst [vmem:[#allocation133_spill] sm:$0xff] %v10969_v40  ;;  %v10980_v63 = vpop.permute.xlu0 %6900  ;;  %12107 = vst [vmem:[#allocation33_spill] sm:$0xff] %v11023_v60 }
 0x5a6   : > { %v4312_v53 = vld [vmem:[#allocation4 + $0x169] sm:$0xff]  ;;  %v6902_v30 = vunpack.i.l.bf16 %v10980_v63 }
 0x5a7   : > { %4248 = vst.msk [vmem:[#allocation4 + $0x181] sm:$0xff] %vm325_vm3, %v4209_v43  ;;  %v4424_v57 = vld [vmem:[#allocation4 + $0xc2] sm:$0xff] }
 0x5a8   : > { %v4213_v19 = vpop.f32.mrb[62].mxu1 }
 0x5a9   : > { %v4214_v16 = vadd.f32 %v10660_v49, %v4213_v19  ;;  %v4215_v23 = vpop.f32.mrb[63].mxu1  ;;  %7095 = vrot.lane.b32.xlu0 %v10708_v44, %s7545_s21  ;;  %7110 = vrot.lane.b32.xlu1 %v10716_v0, %s7548_s13  ;;  %v4425_v19 = vld [vmem:[#allocation4 + $0xca] sm:$0xff] }
 0x5aa   : > { %v4313_v3 = vld [vmem:[#allocation4 + $0x171] sm:$0xff]  ;;  %v7204_v23 = vpack.i.bf16 %v4425_v19, %v4424_v57  ;;  %v7234_v57 = vpack.i.bf16 %v10791_v54, %v10784_v22  ;;  %v7294_v54 = vpack.i.bf16 %v10834_v55, %v10829_v24  ;;  %v4463_v55 = vld [vmem:[#allocation4 + $0x120] sm:$0xff] }
 0x5ab   : > { %4249 = vst.msk [vmem:[#allocation4 + $0x189] sm:$0xff] %vm325_vm3, %v4214_v16  ;;  %v10924_v7 = vpack.i.bf16 %v4313_v3, %v4312_v53  ;;  %v10926_v59 = vld [vmem:[#allocation4 + $0x16a] sm:$0xff]  ;;  %v10928_v49 = vld [vmem:[#allocation4 + $0x172] sm:$0xff]  ;;  %v10994_v53 = vld [vmem:[#allocation4 + $0xe0] sm:$0xff] }
 0x5ac   : > { %12104 = vst [vmem:[#allocation98_spill] sm:$0xff] %v10994_v53  ;;  %v11018_v19 = vld [vmem:[#allocation4 + $0xf8] sm:$0xff] }
 0x5ad   : > { %7105 = vrot.lane.b32.xlu0 %v7104_v37, %s7547_s12  ;;  %7120 = vrot.lane.b32.xlu1 %v10924_v7, %s7538_s11  ;;  %12106 = vst [vmem:[#allocation156_spill] sm:$0xff] %v11018_v19 }
 0x5b1   : > { %7115 = vrot.lane.b32.xlu0 %v7104_v37, %s7543_s30  ;;  %7125 = vrot.lane.b32.xlu1 %v10716_v0, %s7545_s21  ;;  %v10956_v0 = vld [vmem:[#allocation4 + $0xb0] sm:$0xff] }
 0x5b2   : > { %v10942_v48 = vld [vmem:[#allocation4 + $0x182] sm:$0xff]  ;;  %v10946_v47 = vld [vmem:[#allocation4 + $0x18a] sm:$0xff]  ;;  %12100 = vst [vmem:[#allocation77_spill] sm:$0xff] %v10956_v0 }
 0x5b5   : > { %7130 = vrot.lane.b32.xlu0 %v10755_v39, %s7546_s10  ;;  %7135 = vrot.lane.b32.xlu1 %v7134_v20, %s7547_s12  ;;  %v7159_v39 = vpack.i.bf16 %v10956_v0, %v10962_v31 }
 0x5b9   : > { %7140 = vrot.lane.b32.xlu0 %v10728_v45, %s7548_s13  ;;  %7145 = vrot.lane.b32.xlu1 %v7134_v20, %s7543_s30 }
 0x5bd   : > { %7150 = vrot.lane.b32.xlu0 %v10728_v45, %s7545_s21  ;;  %7155 = vrot.lane.b32.xlu1 %v10773_v15, %s7546_s10  ;;  %v10974_v45 = vld [vmem:[#allocation4 + $0xc0] sm:$0xff]  ;;  %v10976_v15 = vpop.permute.xlu1 %6905 }
 0x5be   : > { %12103 = vst [vmem:[#allocation157_spill] sm:$0xff] %v10974_v45  ;;  %v7184_v33 = vpack.i.bf16 %v10969_v40, %v10974_v45 }
 0x5c1   : > { %7160 = vrot.lane.b32.xlu0 %v7159_v39, %s7547_s12  ;;  %7165 = vrot.lane.b32.xlu1 %v10745_v5, %s7548_s13  ;;  %v10985_v43 = vpop.permute.xlu1 %6915 }
 0x5c5   : > { %7170 = vrot.lane.b32.xlu0 %v7159_v39, %s7543_s30  ;;  %7175 = vrot.lane.b32.xlu1 %v10745_v5, %s7545_s21  ;;  %v10990_v5 = vpop.permute.xlu0 %6910 }
 0x5c9   : > { %7180 = vrot.lane.b32.xlu0 %v10765_v61, %s7546_s10  ;;  %7185 = vrot.lane.b32.xlu1 %v7184_v33, %s7547_s12  ;;  %v10999_v61 = vld [vmem:[#allocation4 + $0xd8] sm:$0xff]  ;;  %v11001_v3 = vpop.permute.xlu0 %6920 }
 0x5ca   : > { %12105 = vst [vmem:[#allocation14_spill] sm:$0xff] %v10999_v61  ;;  %v7209_v37 = vpack.i.bf16 %v10994_v53, %v10999_v61  ;;  %v6903_v53 = vunpack.i.h.bf16 %v10980_v63  ;;  %v4464_v63 = vld [vmem:[#allocation4 + $0x128] sm:$0xff] }
 0x5cd   : > { %7190 = vrot.lane.b32.xlu0 %v10763_v9, %s7548_s13  ;;  %7195 = vrot.lane.b32.xlu1 %v7184_v33, %s7543_s30 }
 0x5cf   : > { %v10992_v16 = vpop.permute.xlu1 %6925 }
 0x5d1   : > { %7200 = vrot.lane.b32.xlu0 %v10763_v9, %s7545_s21  ;;  %7205 = vrot.lane.b32.xlu1 %v7204_v23, %s7546_s10 }
 0x5d3   : > { %v11005_v20 = vpop.permute.xlu1 %6940 }
 0x5d5   : > { %7210 = vrot.lane.b32.xlu0 %v7209_v37, %s7547_s12  ;;  %7215 = vrot.lane.b32.xlu1 %v10789_v32, %s7548_s13 }
 0x5d7   : > { %v11010_v39 = vpop.permute.xlu0 %6930  ;;  %v11014_v9 = vpop.permute.xlu1 %6950 }
 0x5d9   : > { %7220 = vrot.lane.b32.xlu0 %v7204_v23, %s7542_s27  ;;  %7225 = vrot.lane.b32.xlu1 %v7209_v37, %s7543_s30  ;;  %v7239_v37 = vpack.i.bf16 %v11018_v19, %v11023_v60 }
 0x5db   : > { %v6936_v33 = vpop.permute.xlu0 %6935 }
 0x5dc   : > { %v6938_v45 = vunpack.i.h.bf16 %v6936_v33  ;;  %v6937_v40 = vunpack.i.l.bf16 %v6936_v33 }
 0x5dd   : > { %7230 = vrot.lane.b32.xlu0 %v10789_v32, %s7545_s21  ;;  %7235 = vrot.lane.b32.xlu1 %v7234_v57, %s7546_s10 }
 0x5df   : > { %v11025_v44 = vpop.permute.xlu0 %6945  ;;  %v11027_v23 = vpop.permute.xlu1 %6960 }
 0x5e1   : > { %7240 = vrot.lane.b32.xlu0 %v7239_v37, %s7547_s12  ;;  %7245 = vrot.lane.b32.xlu1 %v10813_v2, %s7548_s13 }
 0x5e3   : > { %v11034_v26 = vpop.permute.xlu0 %6955  ;;  %v11036_v50 = vpop.permute.xlu1 %6965 }
 0x5e5   : > { %7250 = vrot.lane.b32.xlu0 %v7234_v57, %s7542_s27  ;;  %7255 = vrot.lane.b32.xlu1 %v7239_v37, %s7543_s30  ;;  %v7269_v57 = vpack.i.bf16 %v4462_v14, %v4461_v29 }
 0x5e7   : > { %v11040_v32 = vpop.permute.xlu0 %6970  ;;  %v11042_v12 = vpop.permute.xlu1 %6980 }
 0x5e8   : > { %12108 = vst [vmem:[#allocation11_spill] sm:$0xff] %v11040_v32 }
 0x5e9   : > { %7260 = vrot.lane.b32.xlu0 %v10813_v2, %s7545_s21  ;;  %7265 = vrot.lane.b32.xlu1 %v7264_v13, %s7546_s10  ;;  %v4250_v2 = vld [vmem:[#allocation4] sm:$0xff] }
 0x5ea   : > { %v5435_v31 = vsel %vm325_vm3, %v4250_v2, %v6902_v30 }
 0x5eb   : > { %v11049_v60 = vpop.permute.xlu0 %6975  ;;  %v6991_v19 = vpop.permute.xlu1 %6990  ;;  %v5467_v33 = vsel %vm2021_vm10, %v5435_v31, %v6937_v40 }
 0x5ed   : > { %7270 = vrot.lane.b32.xlu0 %v7269_v57, %s7547_s12  ;;  %7275 = vrot.lane.b32.xlu1 %v10832_v34, %s7548_s13 }
 0x5ef   : > { %v6986_v37 = vpop.permute.xlu0 %6985  ;;  %v11054_v61 = vpop.permute.xlu1 %7000 }
 0x5f0   : > { %12109 = vst [vmem:[#allocation62_spill] sm:$0xff] %v11054_v61  ;;  %v6988_v29 = vunpack.i.h.bf16 %v6986_v37  ;;  %v6987_v14 = vunpack.i.l.bf16 %v6986_v37  ;;  %v5436_v61 = vsel %vm325_vm3, %v4251_v42, %v6903_v53  ;;  %v6993_v42 = vunpack.i.h.bf16 %v6991_v19 }
 0x5f1   : > { %7280 = vrot.lane.b32.xlu0 %v7264_v13, %s7542_s27  ;;  %7285 = vrot.lane.b32.xlu1 %v7269_v57, %s7543_s30  ;;  %v5468_v0 = vsel %vm2021_vm10, %v5436_v61, %v6938_v45  ;;  %v6992_v53 = vunpack.i.l.bf16 %v6991_v19  ;;  %v7299_v45 = vpack.i.bf16 %v4464_v63, %v4463_v55  ;;  %v6908_v19 = vunpack.i.h.bf16 %v10976_v15 }
 0x5f2   : > { %v5499_v13 = vsel %vm3706_vm14, %v5467_v33, %v6987_v14  ;;  %v5500_v57 = vsel %vm3706_vm14, %v5468_v0, %v6988_v29  ;;  %v6907_v29 = vunpack.i.l.bf16 %v10976_v15  ;;  %v6943_v63 = vunpack.i.h.bf16 %v11005_v20 }
 0x5f3   : > { %v6996_v32 = vpop.permute.xlu0 %6995  ;;  %v7006_v22 = vpop.permute.xlu1 %7005  ;;  %v5531_v31 = vsel %vm3739_vm15, %v5499_v13, %v6992_v53  ;;  %v5532_v40 = vsel %vm3739_vm15, %v5500_v57, %v6993_v42  ;;  %v6942_v33 = vunpack.i.l.bf16 %v11005_v20 }
 0x5f4   : > { %v6998_v37 = vunpack.i.h.bf16 %v6996_v32  ;;  %v6997_v24 = vunpack.i.l.bf16 %v6996_v32  ;;  %v7007_v61 = vunpack.i.l.bf16 %v7006_v22  ;;  %v5437_v20 = vsel %vm325_vm3, %v10782_v27, %v6907_v29 }
 0x5f5   : > { %7290 = vrot.lane.b32.xlu0 %v10832_v34, %s7545_s21  ;;  %7295 = vrot.lane.b32.xlu1 %v7294_v54, %s7546_s10  ;;  %v7008_v34 = vunpack.i.h.bf16 %v7006_v22 }
 0x5f6   : > { %v5563_v0 = vsel %vm3772_vm0, %v5531_v31, %v6997_v24  ;;  %v5564_v32 = vsel %vm3772_vm0, %v5532_v40, %v6998_v37  ;;  %v4509_v31 = vld [vmem:[#allocation4 + $0x4a] sm:$0xff]  ;;  %v4510_v40 = vld [vmem:[#allocation4 + $0x52] sm:$0xff] }
 0x5f7   : > { %v11071_v30 = vpop.permute.xlu0 %7010  ;;  %v7021_v2 = vpop.permute.xlu1 %7020  ;;  %v5595_v57 = vsel %vm3805_vm1, %v5563_v0, %v7007_v61  ;;  %v5596_v42 = vsel %vm3805_vm1, %v5564_v32, %v7008_v34  ;;  %v5438_v61 = vsel %vm325_vm3, %v10775_v21, %v6908_v19  ;;  %v6240_v21 = vpack.c.bf16 %v4510_v40, %v4509_v31 }
 0x5f8   : > { %v7023_v53 = vunpack.i.h.bf16 %v7021_v2  ;;  %v7022_v24 = vunpack.i.l.bf16 %v7021_v2  ;;  %v5470_v2 = vsel %vm2021_vm10, %v5438_v61, %v6943_v63  ;;  %v4465_v63 = vld [vmem:[#allocation4 + $0x138] sm:$0xff] }
 0x5f9   : > { %7300 = vrot.lane.b32.xlu0 %v7299_v45, %s7547_s12  ;;  %7305 = vrot.lane.b32.xlu1 %v10857_v4, %s7548_s13 }
 0x5fa   : > { %v5502_v27 = vsel %vm3706_vm14, %v5470_v2, %v7023_v53  ;;  %v4512_v2 = vld [vmem:[#allocation4 + $0x6a] sm:$0xff] }
 0x5fb   : > { %v7016_v55 = vpop.permute.xlu0 %7015  ;;  %v7031_v14 = vpop.permute.xlu1 %7030 }
 0x5fc   : > { %v7018_v22 = vunpack.i.h.bf16 %v7016_v55  ;;  %v7017_v13 = vunpack.i.l.bf16 %v7016_v55 }
 0x5fd   : > { %7310 = vrot.lane.b32.xlu0 %v7294_v54, %s7542_s27  ;;  %7315 = vrot.lane.b32.xlu1 %v7299_v45, %s7543_s30  ;;  %v7324_v54 = vpack.i.bf16 %v10859_v17, %v10854_v62  ;;  %v5469_v45 = vsel %vm2021_vm10, %v5437_v20, %v6942_v33  ;;  %v7033_v33 = vunpack.i.h.bf16 %v7031_v14 }
 0x5fe   : > { %v5627_v15 = vsel %vm3838_vm2, %v5595_v57, %v7017_v13  ;;  %v5628_v37 = vsel %vm3838_vm2, %v5596_v42, %v7018_v22  ;;  %v4466_v13 = vld [vmem:[#allocation4 + $0x140] sm:$0xff]  ;;  %v5501_v57 = vsel %vm3706_vm14, %v5469_v45, %v7022_v24  ;;  %v7032_v42 = vunpack.i.l.bf16 %v7031_v14 }
 0x5ff   : > { %v6238_v0 = vpack.c.bf16 %v5628_v37, %v5627_v15  ;;  %v7026_v34 = vpop.permute.xlu0 %7025  ;;  %v11094_v32 = vpop.permute.xlu1 %7040  ;;  %v7329_v53 = vpack.i.bf16 %v4466_v13, %v4465_v63 }
 0x600   : > { %v7028_v55 = vunpack.i.h.bf16 %v7026_v34  ;;  %v7027_v22 = vunpack.i.l.bf16 %v7026_v34  ;;  %v4511_v34 = vld [vmem:[#allocation4 + $0x62] sm:$0xff] }
 0x601   : > { %7320 = vrot.lane.b32.xlu0 %v10857_v4, %s7545_s21  ;;  %7325 = vrot.lane.b32.xlu1 %v7324_v54, %s7546_s10  ;;  %v6245_v63 = vpack.c.bf16 %v4512_v2, %v4511_v34 }
 0x602   : > { %v5533_v19 = vsel %vm3739_vm15, %v5501_v57, %v7027_v22  ;;  %v5534_v29 = vsel %vm3739_vm15, %v5502_v27, %v7028_v55  ;;  %6239 = vmatpush1.bf16.xpose.msra.mxu0 %v6238_v0  ;;  %v6913_v57 = vunpack.i.h.bf16 %v10990_v5  ;;  %v6912_v27 = vunpack.i.l.bf16 %v10990_v5 }
 0x603   : > { %6242 = vmatprep.subr.msk.bf16.mxu0 %vm10679_vm4, %v6240_v21  ;;  %v7036_v24 = vpop.permute.xlu0 %7035  ;;  %v7046_v15 = vpop.permute.xlu1 %7045  ;;  %v5565_v31 = vsel %vm3772_vm0, %v5533_v19, %v7032_v42  ;;  %v5566_v40 = vsel %vm3772_vm0, %v5534_v29, %v7033_v33  ;;  %v6948_v19 = vunpack.i.h.bf16 %v11025_v44  ;;  %v6947_v29 = vunpack.i.l.bf16 %v11025_v44 }
 0x604   : > { %v7038_v37 = vunpack.i.h.bf16 %v7036_v24  ;;  %v7037_v20 = vunpack.i.l.bf16 %v7036_v24  ;;  %v7048_v4 = vunpack.i.h.bf16 %v7046_v15  ;;  %v7047_v61 = vunpack.i.l.bf16 %v7046_v15 }
 0x605   : > { %7330 = vrot.lane.b32.xlu0 %v7329_v53, %s7547_s12  ;;  %7335 = vrot.lane.b32.xlu1 %v10881_v41, %s7548_s13  ;;  %v7354_v24 = vpack.i.bf16 %v10883_v1, %v10878_v11  ;;  %v5439_v5 = vsel %vm325_vm3, %v10801_v28, %v6912_v27  ;;  %v5440_v44 = vsel %vm325_vm3, %v10793_v36, %v6913_v57  ;;  %v4467_v28 = vld [vmem:[#allocation4 + $0x150] sm:$0xff] }
 0x606   : > { %v5597_v14 = vsel %vm3805_vm1, %v5565_v31, %v7037_v20  ;;  %v5598_v0 = vsel %vm3805_vm1, %v5566_v40, %v7038_v37  ;;  %v4468_v37 = vld [vmem:[#allocation4 + $0x158] sm:$0xff]  ;;  %v5471_v20 = vsel %vm2021_vm10, %v5439_v5, %v6947_v29 }
 0x607   : > { %v5629_v45 = vsel %vm3838_vm2, %v5597_v14, %v7047_v61  ;;  %v5630_v55 = vsel %vm3838_vm2, %v5598_v0, %v7048_v4  ;;  %v11118_v22 = vpop.permute.xlu0 %7050  ;;  %v7061_v13 = vpop.permute.xlu1 %7060  ;;  %v7359_v0 = vpack.i.bf16 %v4468_v37, %v4467_v28  ;;  %v4514_v37 = vld [vmem:[#allocation4 + $0x82] sm:$0xff]  ;;  %v7384_v28 = vpack.i.bf16 %v10902_v46, %v10897_v51 }
 0x608   : > { %v6243_v21 = vpack.c.bf16 %v5630_v55, %v5629_v45  ;;  %v7063_v31 = vunpack.i.h.bf16 %v7061_v13  ;;  %v7062_v40 = vunpack.i.l.bf16 %v7061_v13 }
 0x609   : > { %7340 = vrot.lane.b32.xlu0 %v7324_v54, %s7542_s27  ;;  %7345 = vrot.lane.b32.xlu1 %v7329_v53, %s7543_s30  ;;  %v5472_v53 = vsel %vm2021_vm10, %v5440_v44, %v6948_v19 }
 0x60a   : > { %6244 = vmatpush1.bf16.xpose.msra.mxu0 %v6243_v21 }
 0x60b   : > { %v7056_v33 = vpop.permute.xlu0 %7055  ;;  %v7071_v42 = vpop.permute.xlu1 %7070  ;;  %6247 = vmatprep.subr.msk.bf16.mxu0 %vm10679_vm4, %v6245_v63 }
 0x60c   : > { %v7058_v15 = vunpack.i.h.bf16 %v7056_v33  ;;  %v7057_v54 = vunpack.i.l.bf16 %v7056_v33  ;;  %v7073_v13 = vunpack.i.h.bf16 %v7071_v42  ;;  %v7072_v27 = vunpack.i.l.bf16 %v7071_v42 }
 0x60d   : > { %7350 = vrot.lane.b32.xlu0 %v10881_v41, %s7545_s21  ;;  %7355 = vrot.lane.b32.xlu1 %v7354_v24, %s7546_s10  ;;  %v6918_v42 = vunpack.i.h.bf16 %v10985_v43 }
 0x60e   : > { %v5504_v4 = vsel %vm3706_vm14, %v5472_v53, %v7058_v15  ;;  %v5503_v61 = vsel %vm3706_vm14, %v5471_v20, %v7057_v54  ;;  %v4513_v54 = vld [vmem:[#allocation4 + $0x7a] sm:$0xff]  ;;  %v6917_v53 = vunpack.i.l.bf16 %v10985_v43 }
 0x60f   : > { %v7066_v36 = vpop.permute.xlu0 %7065  ;;  %v11141_v14 = vpop.permute.xlu1 %7080  ;;  %v5535_v45 = vsel %vm3739_vm15, %v5503_v61, %v7062_v40  ;;  %v5536_v55 = vsel %vm3739_vm15, %v5504_v4, %v7063_v31  ;;  %v6952_v31 = vunpack.i.l.bf16 %v11014_v9  ;;  %v4470_v40 = vld [vmem:[#allocation4 + $0x170] sm:$0xff]  ;;  %v6250_v43 = vpack.c.bf16 %v4514_v37, %v4513_v54 }
 0x610   : > { %v7068_v34 = vunpack.i.h.bf16 %v7066_v36  ;;  %v7067_v2 = vunpack.i.l.bf16 %v7066_v36  ;;  %v4407_v54 = vld [vmem:[#allocation4 + $0x171] sm:$0xff]  ;;  %v6958_v37 = vunpack.i.h.bf16 %v11034_v26 }
 0x611   : > { %7360 = vrot.lane.b32.xlu0 %v7359_v0, %s7547_s12  ;;  %7365 = vrot.lane.b32.xlu1 %v10900_v10, %s7548_s13 }
 0x612   : > { %v5567_v41 = vsel %vm3772_vm0, %v5535_v45, %v7067_v2  ;;  %v5568_v57 = vsel %vm3772_vm0, %v5536_v55, %v7068_v34  ;;  %v4469_v34 = vld [vmem:[#allocation4 + $0x168] sm:$0xff]  ;;  %v5441_v2 = vsel %vm325_vm3, %v10845_v6, %v6917_v53  ;;  %v5442_v45 = vsel %vm325_vm3, %v10836_v38, %v6918_v42 }
 0x613   : > { %v7076_v21 = vpop.permute.xlu0 %7075  ;;  %v7086_v19 = vpop.permute.xlu1 %7085  ;;  %v5599_v33 = vsel %vm3805_vm1, %v5567_v41, %v7072_v27  ;;  %v5600_v5 = vsel %vm3805_vm1, %v5568_v57, %v7073_v13  ;;  %v7389_v41 = vpack.i.bf16 %v4470_v40, %v4469_v34  ;;  %v5473_v57 = vsel %vm2021_vm10, %v5441_v2, %v6952_v31 }
 0x614   : > { %v7078_v29 = vunpack.i.h.bf16 %v7076_v21  ;;  %v7077_v63 = vunpack.i.l.bf16 %v7076_v21  ;;  %v7088_v36 = vunpack.i.h.bf16 %v7086_v19  ;;  %v6957_v42 = vunpack.i.l.bf16 %v11034_v26 }
 0x615   : > { %7370 = vrot.lane.b32.xlu0 %v7354_v24, %s7542_s27  ;;  %7375 = vrot.lane.b32.xlu1 %v7359_v0, %s7543_s30  ;;  %v6953_v24 = vunpack.i.h.bf16 %v11014_v9  ;;  %v7087_v0 = vunpack.i.l.bf16 %v7086_v19  ;;  %v7414_v2 = vpack.i.bf16 %v10928_v49, %v10926_v59 }
 0x616   : > { %v5631_v44 = vsel %vm3838_vm2, %v5599_v33, %v7077_v63  ;;  %v5632_v15 = vsel %vm3838_vm2, %v5600_v5, %v7078_v29  ;;  %v6923_v29 = vunpack.i.h.bf16 %v11001_v3  ;;  %v6922_v63 = vunpack.i.l.bf16 %v11001_v3  ;;  %v4406_v3 = vld [vmem:[#allocation4 + $0x169] sm:$0xff] }
 0x617   : > { %v6248_v20 = vpack.c.bf16 %v5632_v15, %v5631_v44  ;;  %v11158_v4 = vpop.permute.xlu0 %7090  ;;  %v7101_v61 = vpop.permute.xlu1 %7100  ;;  %v5505_v21 = vsel %vm3706_vm14, %v5473_v57, %v7087_v0  ;;  %v7409_v0 = vpack.i.bf16 %v4407_v54, %v4406_v3 }
 0x618   : > { %v7103_v33 = vunpack.i.h.bf16 %v7101_v61  ;;  %v7102_v5 = vunpack.i.l.bf16 %v7101_v61  ;;  %v5443_v26 = vsel %vm325_vm3, %v10870_v18, %v6922_v63  ;;  %v4504_v18 = vld [vmem:[#allocation4 + $0x189] sm:$0xff] }
 0x619   : > { %7380 = vrot.lane.b32.xlu0 %v10900_v10, %s7545_s21  ;;  %7385 = vrot.lane.b32.xlu1 %v7384_v28, %s7546_s10  ;;  %v5474_v10 = vsel %vm2021_vm10, %v5442_v45, %v6953_v24  ;;  %v5475_v57 = vsel %vm2021_vm10, %v5443_v26, %v6957_v42  ;;  %v6928_v26 = vunpack.i.h.bf16 %v10992_v16 }
 0x61a   : > { %6249 = vmatpush1.bf16.xpose.msra.mxu0 %v6248_v20  ;;  %v5506_v19 = vsel %vm3706_vm14, %v5474_v10, %v7088_v36 }
 0x61b   : > { %6252 = vmatprep.subr.msk.bf16.mxu0 %vm10679_vm4, %v6250_v43  ;;  %v7096_v9 = vpop.permute.xlu0 %7095  ;;  %v7111_v55 = vpop.permute.xlu1 %7110 }
 0x61c   : > { %v7098_v13 = vunpack.i.h.bf16 %v7096_v9  ;;  %v7097_v27 = vunpack.i.l.bf16 %v7096_v9  ;;  %v7113_v20 = vunpack.i.h.bf16 %v7111_v55  ;;  %v7112_v24 = vunpack.i.l.bf16 %v7111_v55  ;;  %v4515_v9 = vld [vmem:[#allocation4 + $0x92] sm:$0xff]  ;;  %v4516_v55 = vld [vmem:[#allocation4 + $0x9a] sm:$0xff] }
 0x61d   : > { %7390 = vrot.lane.b32.xlu0 %v7389_v41, %s7547_s12  ;;  %7395 = vrot.lane.b32.xlu1 %v10924_v7, %s7548_s13 }
 0x61e   : > { %v5537_v38 = vsel %vm3739_vm15, %v5505_v21, %v7097_v27  ;;  %v5538_v6 = vsel %vm3739_vm15, %v5506_v19, %v7098_v13  ;;  %v4472_v27 = vld [vmem:[#allocation4 + $0x188] sm:$0xff] }
 0x61f   : > { %v7106_v44 = vpop.permute.xlu0 %7105  ;;  %v11184_v15 = vpop.permute.xlu1 %7120  ;;  %v5569_v31 = vsel %vm3772_vm0, %v5537_v38, %v7102_v5  ;;  %v5570_v40 = vsel %vm3772_vm0, %v5538_v6, %v7103_v33  ;;  %v4503_v5 = vld [vmem:[#allocation4 + $0x181] sm:$0xff] }
 0x620   : > { %v7108_v53 = vunpack.i.h.bf16 %v7106_v44  ;;  %v7107_v7 = vunpack.i.l.bf16 %v7106_v44 }
 0x621   : > { %7400 = vrot.lane.b32.xlu0 %v7384_v28, %s7542_s27  ;;  %7405 = vrot.lane.b32.xlu1 %v7389_v41, %s7543_s30  ;;  %v5444_v41 = vsel %vm325_vm3, %v10861_v25, %v6923_v29  ;;  %v6255_v25 = vpack.c.bf16 %v4516_v55, %v4515_v9  ;;  %v4471_v29 = vld [vmem:[#allocation4 + $0x180] sm:$0xff]  ;;  %v4473_v9 = vld [vmem:[#allocation4 + $0x198] sm:$0xff] }
 0x622   : > { %v5601_v61 = vsel %vm3805_vm1, %v5569_v31, %v7107_v7  ;;  %v5602_v36 = vsel %vm3805_vm1, %v5570_v40, %v7108_v53  ;;  %v5476_v21 = vsel %vm2021_vm10, %v5444_v41, %v6958_v37  ;;  %v7419_v42 = vpack.i.bf16 %v4472_v27, %v4471_v29  ;;  %v4474_v55 = vld [vmem:[#allocation4 + $0x1a0] sm:$0xff] }
 0x623   : > { %v7116_v43 = vpop.permute.xlu0 %7115  ;;  %v7126_v34 = vpop.permute.xlu1 %7125  ;;  %v5633_v45 = vsel %vm3838_vm2, %v5601_v61, %v7112_v24  ;;  %v5634_v28 = vsel %vm3838_vm2, %v5602_v36, %v7113_v20  ;;  %v7424_v53 = vpack.i.bf16 %v4504_v18, %v4503_v5  ;;  %v4517_v20 = vld [vmem:[#allocation4 + $0xaa] sm:$0xff]  ;;  %v4518_v24 = vld [vmem:[#allocation4 + $0xb2] sm:$0xff]  ;;  %v6968_v41 = vunpack.i.h.bf16 %v11036_v50  ;;  %v4506_v18 = vld [vmem:[#allocation4 + $0x1a1] sm:$0xff] }
 0x624   : > { %v7118_v10 = vunpack.i.h.bf16 %v7116_v43  ;;  %v7117_v13 = vunpack.i.l.bf16 %v7116_v43  ;;  %v7128_v19 = vunpack.i.h.bf16 %v7126_v34  ;;  %v7127_v38 = vunpack.i.l.bf16 %v7126_v34  ;;  %v4505_v27 = vld [vmem:[#allocation4 + $0x199] sm:$0xff] }
 0x625   : > { %7410 = vrot.lane.b32.xlu0 %v7409_v0, %s7545_s21  ;;  %7415 = vrot.lane.b32.xlu1 %v7414_v2, %s7546_s10  ;;  %v6253_v6 = vpack.c.bf16 %v5634_v28, %v5633_v45  ;;  %v6927_v43 = vunpack.i.l.bf16 %v10992_v16  ;;  %v6260_v28 = vpack.c.bf16 %v4518_v24, %v4517_v20 }
 0x626   : > { %v5508_v63 = vsel %vm3706_vm14, %v5476_v21, %v7118_v10  ;;  %v5507_v33 = vsel %vm3706_vm14, %v5475_v57, %v7117_v13  ;;  %v6967_v57 = vunpack.i.l.bf16 %v11036_v50  ;;  %v7444_v50 = vpack.i.bf16 %v10946_v47, %v10942_v48 }
 0x627   : > { %6254 = vmatpush1.bf16.xpose.msra.mxu0 %v6253_v6  ;;  %v7131_v44 = vpop.permute.xlu0 %7130  ;;  %v7136_v54 = vpop.permute.xlu1 %7135  ;;  %v5540_v31 = vsel %vm3739_vm15, %v5508_v63, %v7128_v19  ;;  %v5539_v40 = vsel %vm3739_vm15, %v5507_v33, %v7127_v38  ;;  %v7449_v33 = vpack.i.bf16 %v4474_v55, %v4473_v9  ;;  %v5445_v29 = vsel %vm325_vm3, %v10919_v52, %v6927_v43  ;;  %v4519_v9 = vld [vmem:[#allocation4 + $0xc2] sm:$0xff]  ;;  %v4520_v55 = vld [vmem:[#allocation4 + $0xca] sm:$0xff] }
 0x628   : > { %v7133_v37 = vunpack.i.h.bf16 %v7131_v44  ;;  %v7132_v7 = vunpack.i.l.bf16 %v7131_v44  ;;  %6257 = vmatprep.subr.msk.bf16.mxu0 %vm10679_vm4, %v6255_v25  ;;  %v7138_v3 = vunpack.i.h.bf16 %v7136_v54  ;;  %v7137_v61 = vunpack.i.l.bf16 %v7136_v54 }
 0x629   : > { %7420 = vrot.lane.b32.xlu0 %v7419_v42, %s7547_s12  ;;  %7425 = vrot.lane.b32.xlu1 %v7424_v53, %s7548_s13  ;;  %v5446_v25 = vsel %vm325_vm3, %v10912_v56, %v6928_v26 }
 0x62a   : > { %v5571_v36 = vsel %vm3772_vm0, %v5539_v40, %v7132_v7  ;;  %v5572_v0 = vsel %vm3772_vm0, %v5540_v31, %v7133_v37  ;;  %v5478_v37 = vsel %vm2021_vm10, %v5446_v25, %v6968_v41  ;;  %v6978_v41 = vunpack.i.h.bf16 %v11049_v60 }
 0x62b   : > { %v7141_v34 = vpop.permute.xlu0 %7140  ;;  %v7146_v45 = vpop.permute.xlu1 %7145  ;;  %v5603_v21 = vsel %vm3805_vm1, %v5571_v36, %v7137_v61  ;;  %v5604_v19 = vsel %vm3805_vm1, %v5572_v0, %v7138_v3  ;;  %v6933_v61 = vunpack.i.h.bf16 %v11010_v39  ;;  %v6932_v36 = vunpack.i.l.bf16 %v11010_v39 }
 0x62c   : > { %v7143_v10 = vunpack.i.h.bf16 %v7141_v34  ;;  %v7142_v13 = vunpack.i.l.bf16 %v7141_v34  ;;  %v7148_v38 = vunpack.i.h.bf16 %v7146_v45  ;;  %v7147_v6 = vunpack.i.l.bf16 %v7146_v45 }
 0x62d   : > { %7430 = vrot.lane.b32.xlu0 %v7414_v2, %s7542_s27  ;;  %7435 = vrot.lane.b32.xlu1 %v7419_v42, %s7543_s30  ;;  %v7454_v2 = vpack.i.bf16 %v4506_v18, %v4505_v27  ;;  %v5477_v42 = vsel %vm2021_vm10, %v5445_v29, %v6967_v57  ;;  %v6977_v57 = vunpack.i.l.bf16 %v11049_v60  ;;  %v5448_v27 = vsel %vm325_vm3, %v10935_v58, %v6933_v61  ;;  %s278_s27 = scalar_lea.vmem %s11544_s7, %s6104_s14 }
 0x62e   : > { %v5635_v16 = vsel %vm3838_vm2, %v5603_v21, %v7142_v13  ;;  %v5636_v63 = vsel %vm3838_vm2, %v5604_v19, %v7143_v10  ;;  %v5509_v24 = vsel %vm3706_vm14, %v5477_v42, %v7147_v6  ;;  %v5510_v31 = vsel %vm3706_vm14, %v5478_v37, %v7148_v38 }
 0x62f   : > { %v6258_v5 = vpack.c.bf16 %v5636_v63, %v5635_v16  ;;  %v7151_v44 = vpop.permute.xlu0 %7150  ;;  %v7156_v54 = vpop.permute.xlu1 %7155  ;;  %v6265_v38 = vpack.c.bf16 %v4520_v55, %v4519_v9  ;;  %v5447_v6 = vsel %vm325_vm3, %v10940_v35, %v6932_v36  ;;  %v5480_v25 = vsel %vm2021_vm10, %v5448_v27, %v6978_v41 }
 0x630   : > { %v7153_v7 = vunpack.i.h.bf16 %v7151_v44  ;;  %v7152_v20 = vunpack.i.l.bf16 %v7151_v44  ;;  %v7158_v40 = vunpack.i.h.bf16 %v7156_v54  ;;  %v7157_v3 = vunpack.i.l.bf16 %v7156_v54 }
 0x631   : > { %7440 = vrot.lane.b32.xlu0 %v7424_v53, %s7545_s21  ;;  %7445 = vrot.lane.b32.xlu1 %v7444_v50, %s7546_s10  ;;  %v6983_v36 = vunpack.i.h.bf16 %v11042_v12 }
 0x632   : > { %v5541_v56 = vsel %vm3739_vm15, %v5509_v24, %v7152_v20  ;;  %v5542_v52 = vsel %vm3739_vm15, %v5510_v31, %v7153_v7  ;;  %6259 = vmatpush1.bf16.xpose.msra.mxu0 %v6258_v5 }
 0x633   : > { %6262 = vmatprep.subr.msk.bf16.mxu0 %vm10679_vm4, %v6260_v28  ;;  %v7161_v0 = vpop.permute.xlu0 %7160  ;;  %v7166_v26 = vpop.permute.xlu1 %7165  ;;  %v5573_v10 = vsel %vm3772_vm0, %v5541_v56, %v7157_v3  ;;  %v5574_v13 = vsel %vm3772_vm0, %v5542_v52, %v7158_v40  ;;  %v6963_v3 = vunpack.i.h.bf16 %v11027_v23  ;;  %v6962_v56 = vunpack.i.l.bf16 %v11027_v23 }
 0x634   : > { %v7163_v43 = vunpack.i.h.bf16 %v7161_v0  ;;  %v7162_v34 = vunpack.i.l.bf16 %v7161_v0  ;;  %v7168_v45 = vunpack.i.h.bf16 %v7166_v26  ;;  %v7167_v53 = vunpack.i.l.bf16 %v7166_v26 }
 0x635   : > { %7450 = vrot.lane.b32.xlu0 %v7449_v33, %s7547_s12  ;;  %7455 = vrot.lane.b32.xlu1 %v7454_v2, %s7548_s13  ;;  %v5479_v33 = vsel %vm2021_vm10, %v5447_v6, %v6977_v57  ;;  %v6982_v0 = vunpack.i.l.bf16 %v11042_v12  ;;  %v12110_v57 = vld [vmem:[#allocation77_spill] sm:$0xff] }
 0x636   : > { %v5605_v39 = vsel %vm3805_vm1, %v5573_v10, %v7162_v34  ;;  %v5606_v28 = vsel %vm3805_vm1, %v5574_v13, %v7163_v43  ;;  %v5450_v23 = vsel %vm325_vm3, %v12110_v57, %v6963_v3  ;;  %v12111_v10 = vld [vmem:[#allocation99_spill] sm:$0xff] }
 0x637   : > { %v5637_v18 = vsel %vm3838_vm2, %v5605_v39, %v7167_v53  ;;  %v5638_v21 = vsel %vm3838_vm2, %v5606_v28, %v7168_v45  ;;  %v7171_v60 = vpop.permute.xlu0 %7170  ;;  %v7176_v19 = vpop.permute.xlu1 %7175  ;;  %v5449_v13 = vsel %vm325_vm3, %v12111_v10, %v6962_v56 }
 0x638   : > { %v6263_v16 = vpack.c.bf16 %v5638_v21, %v5637_v18  ;;  %v7173_v63 = vunpack.i.h.bf16 %v7171_v60  ;;  %v7172_v50 = vunpack.i.l.bf16 %v7171_v60  ;;  %v7178_v29 = vunpack.i.h.bf16 %v7176_v19 }
 0x639   : > { %v7177_v5 = vunpack.i.l.bf16 %v7176_v19  ;;  %v5481_v27 = vsel %vm2021_vm10, %v5449_v13, %v6982_v0  ;;  %v5482_v18 = vsel %vm2021_vm10, %v5450_v23, %v6983_v36  ;;  %v12118_v13 = vld [vmem:[#allocation78_spill] sm:$0xff] }
 0x63a   : > { %v5512_v58 = vsel %vm3706_vm14, %v5480_v25, %v7173_v63  ;;  %v5511_v44 = vsel %vm3706_vm14, %v5479_v33, %v7172_v50  ;;  %6264 = vmatpush1.bf16.xpose.msra.mxu0 %v6263_v16  ;;  %v12112_v33 = vld [vmem:[#allocation58_spill] sm:$0xff]  ;;  %v12113_v25 = vld [vmem:[#allocation7_spill] sm:$0xff] }
 0x63b   : > { %v7181_v54 = vpop.permute.xlu0 %7180  ;;  %v7186_v2 = vpop.permute.xlu1 %7185  ;;  %6267 = vmatprep.subr.msk.bf16.mxu0 %vm10679_vm4, %v6265_v38  ;;  %v5544_v37 = vsel %vm3739_vm15, %v5512_v58, %v7178_v29  ;;  %v5543_v7 = vsel %vm3739_vm15, %v5511_v44, %v7177_v5  ;;  %v12114_v29 = vpack.c.bf16 %v12112_v33, %v12113_v25 }
 0x63c   : > { %v7183_v35 = vunpack.i.h.bf16 %v7181_v54  ;;  %v7182_v42 = vunpack.i.l.bf16 %v7181_v54  ;;  %v7188_v20 = vunpack.i.h.bf16 %v7186_v2  ;;  %v7187_v24 = vunpack.i.l.bf16 %v7186_v2 }
 0x63e   : > { %v5575_v31 = vsel %vm3772_vm0, %v5543_v7, %v7182_v42  ;;  %v5576_v40 = vsel %vm3772_vm0, %v5544_v37, %v7183_v35  ;;  %v12115_v42 = vld [vmem:[#allocation11_spill] sm:$0xff] }
 0x63f   : > { %v7191_v52 = vpop.permute.xlu0 %7190  ;;  %v7196_v61 = vpop.permute.xlu1 %7195  ;;  %v5607_v34 = vsel %vm3805_vm1, %v5575_v31, %v7187_v24  ;;  %v5608_v45 = vsel %vm3805_vm1, %v5576_v40, %v7188_v20  ;;  %v6973_v37 = vunpack.i.h.bf16 %v12115_v42  ;;  %v6972_v7 = vunpack.i.l.bf16 %v12115_v42 }
 0x640   : > { %v7193_v26 = vunpack.i.h.bf16 %v7191_v52  ;;  %v7192_v43 = vunpack.i.l.bf16 %v7191_v52  ;;  %v7198_v53 = vunpack.i.h.bf16 %v7196_v61  ;;  %v7197_v9 = vunpack.i.l.bf16 %v7196_v61 }
 0x642   : > { %v5639_v55 = vsel %vm3838_vm2, %v5607_v34, %v7192_v43  ;;  %v5640_v41 = vsel %vm3838_vm2, %v5608_v45, %v7193_v26  ;;  %v5513_v19 = vsel %vm3706_vm14, %v5481_v27, %v7197_v9  ;;  %v5514_v38 = vsel %vm3706_vm14, %v5482_v18, %v7198_v53  ;;  %v12116_v43 = vld [vmem:[#allocation133_spill] sm:$0xff]  ;;  %v5675_v18 = vld [vmem:[%s11542_s5 + $0x80] sm:$0xff] }
 0x643   : > { %v6268_v39 = vpack.c.bf16 %v5640_v41, %v5639_v55  ;;  %v7201_v12 = vpop.permute.xlu0 %7200  ;;  %v7206_v28 = vpop.permute.xlu1 %7205  ;;  %v5452_v34 = vsel %vm325_vm3, %v12116_v43, %v6973_v37  ;;  %v12117_v45 = vld [vmem:[#allocation157_spill] sm:$0xff] }
 0x644   : > { %v7203_v21 = vunpack.i.h.bf16 %v7201_v12  ;;  %v7202_v60 = vunpack.i.l.bf16 %v7201_v12  ;;  %v7208_v6 = vunpack.i.h.bf16 %v7206_v28  ;;  %v7207_v16 = vunpack.i.l.bf16 %v7206_v28 }
 0x645   : > { %6269 = vmatpush1.bf16.xpose.msra.mxu0 %v6268_v39  ;;  %v5451_v53 = vsel %vm325_vm3, %v12117_v45, %v6972_v7  ;;  %v12119_v39 = vld [vmem:[#allocation27_spill] sm:$0xff] }
 0x646   : > { %v5545_v63 = vsel %vm3739_vm15, %v5513_v19, %v7202_v60  ;;  %v5546_v50 = vsel %vm3739_vm15, %v5514_v38, %v7203_v21  ;;  %6272 = vmatprep.subr.msk.bf16.mxu0 %vm10679_vm4, %v12114_v29  ;;  %v12120_v12 = vpack.c.bf16 %v12118_v13, %v12119_v39 }
 0x647   : > { %v7211_v5 = vpop.permute.xlu0 %7210  ;;  %v7216_v58 = vpop.permute.xlu1 %7215  ;;  %v5577_v20 = vsel %vm3772_vm0, %v5545_v63, %v7207_v16  ;;  %v5578_v24 = vsel %vm3772_vm0, %v5546_v50, %v7208_v6 }
 0x648   : > { %v7213_v44 = vunpack.i.h.bf16 %v7211_v5  ;;  %v7212_v54 = vunpack.i.l.bf16 %v7211_v5  ;;  %v7218_v2 = vunpack.i.h.bf16 %v7216_v58  ;;  %v7217_v35 = vunpack.i.l.bf16 %v7216_v58  ;;  %v5676_v58 = vld [vmem:[%s11542_s5 + $0x88] sm:$0xff] }
 0x64a   : > { %v5609_v31 = vsel %vm3805_vm1, %v5577_v20, %v7212_v54  ;;  %v5610_v40 = vsel %vm3805_vm1, %v5578_v24, %v7213_v44  ;;  %v12121_v44 = vld [vmem:[#allocation62_spill] sm:$0xff] }
 0x64b   : > { %v5641_v3 = vsel %vm3838_vm2, %v5609_v31, %v7217_v35  ;;  %v5642_v56 = vsel %vm3838_vm2, %v5610_v40, %v7218_v2  ;;  %v7221_v52 = vpop.permute.xlu0 %7220  ;;  %v7226_v61 = vpop.permute.xlu1 %7225  ;;  %v7003_v54 = vunpack.i.h.bf16 %v12121_v44  ;;  %v7002_v2 = vunpack.i.l.bf16 %v12121_v44 }
 0x64c   : > { %v6273_v36 = vpack.c.bf16 %v5642_v56, %v5641_v3  ;;  %v7223_v0 = vunpack.i.h.bf16 %v7221_v52  ;;  %v7222_v26 = vunpack.i.l.bf16 %v7221_v52  ;;  %v7228_v9 = vunpack.i.h.bf16 %v7226_v61 }
 0x64d   : > { %v7227_v55 = vunpack.i.l.bf16 %v7226_v61  ;;  %v12122_v61 = vld [vmem:[#allocation98_spill] sm:$0xff] }
 0x64e   : > { %v5484_v41 = vsel %vm2021_vm10, %v5452_v34, %v7223_v0  ;;  %v5483_v57 = vsel %vm2021_vm10, %v5451_v53, %v7222_v26  ;;  %6274 = vmatpush1.bf16.xpose.msra.mxu0 %v6273_v36  ;;  %v5454_v36 = vsel %vm325_vm3, %v12122_v61, %v7003_v54  ;;  %v12123_v0 = vld [vmem:[#allocation14_spill] sm:$0xff] }
 0x64f   : > { %v7231_v23 = vpop.permute.xlu0 %7230  ;;  %v7236_v10 = vpop.permute.xlu1 %7235  ;;  %6277 = vmatprep.subr.msk.bf16.mxu0 %vm10679_vm4, %v12120_v12  ;;  %v5516_v21 = vsel %vm3706_vm14, %v5484_v41, %v7228_v9  ;;  %v5515_v60 = vsel %vm3706_vm14, %v5483_v57, %v7227_v55  ;;  %v5453_v26 = vsel %vm325_vm3, %v12123_v0, %v7002_v2  ;;  %v12124_v41 = vld [vmem:[#allocation134_spill] sm:$0xff]  ;;  %v12125_v57 = vld [vmem:[#allocation56_spill] sm:$0xff] }
 0x650   : > { %v7233_v28 = vunpack.i.h.bf16 %v7231_v23  ;;  %v7232_v27 = vunpack.i.l.bf16 %v7231_v23  ;;  %v7238_v19 = vunpack.i.h.bf16 %v7236_v10  ;;  %v7237_v38 = vunpack.i.l.bf16 %v7236_v10  ;;  %v5659_v10 = vld [vmem:[%s11542_s5] sm:$0xff] }
 0x651   : > { %v12126_v23 = vpack.c.bf16 %v12124_v41, %v12125_v57 }
 0x652   : > { %v5547_v6 = vsel %vm3739_vm15, %v5515_v60, %v7232_v27  ;;  %v5548_v16 = vsel %vm3739_vm15, %v5516_v21, %v7233_v28 }
 0x653   : > { %v7241_v63 = vpop.permute.xlu0 %7240  ;;  %v7246_v50 = vpop.permute.xlu1 %7245  ;;  %5721 = vxpose.xlu0.b32.start [1/2] (short) (narrow) %v5675_v18, 16  ;;  %v5579_v35 = vsel %vm3772_vm0, %v5547_v6, %v7237_v38  ;;  %v5580_v42 = vsel %vm3772_vm0, %v5548_v16, %v7238_v19  ;;  %v5660_v6 = vld [vmem:[%s11542_s5 + $0x8] sm:$0xff] }
 0x654   : > { %v7243_v33 = vunpack.i.h.bf16 %v7241_v63  ;;  %v7242_v25 = vunpack.i.l.bf16 %v7241_v63  ;;  %v7248_v29 = vunpack.i.h.bf16 %v7246_v50  ;;  %v7247_v5 = vunpack.i.l.bf16 %v7246_v50 }
 0x656   : > { %v5611_v37 = vsel %vm3805_vm1, %v5579_v35, %v7242_v25  ;;  %v5612_v7 = vsel %vm3805_vm1, %v5580_v42, %v7243_v33  ;;  %v7013_v25 = vunpack.i.h.bf16 %v11071_v30 }
 0x657   : > { %v5643_v20 = vsel %vm3838_vm2, %v5611_v37, %v7247_v5  ;;  %v5644_v24 = vsel %vm3838_vm2, %v5612_v7, %v7248_v29  ;;  %v7251_v31 = vpop.permute.xlu0 %7250  ;;  %v7256_v40 = vpop.permute.xlu1 %7255  ;;  %5722 = vxpose.xlu0.b32.end [2/2] (short) (narrow) %v5676_v58, 16  ;;  %v7012_v29 = vunpack.i.l.bf16 %v11071_v30  ;;  %v5661_v7 = vld [vmem:[%s11542_s5 + $0x10] sm:$0xff] }
 0x658   : > { %v6278_v3 = vpack.c.bf16 %v5644_v24, %v5643_v20  ;;  %v7253_v56 = vunpack.i.h.bf16 %v7251_v31  ;;  %v7252_v52 = vunpack.i.l.bf16 %v7251_v31  ;;  %v7258_v43 = vunpack.i.h.bf16 %v7256_v40  ;;  %v12127_v31 = vld [vmem:[#allocation156_spill] sm:$0xff] }
 0x659   : > { %v7257_v34 = vunpack.i.l.bf16 %v7256_v40  ;;  %v5456_v40 = vsel %vm325_vm3, %v12127_v31, %v7013_v25  ;;  %v12130_v31 = vpack.c.bf16 %v10883_v1, %v10878_v11  ;;  %v7053_v11 = vunpack.i.h.bf16 %v11118_v22 }
 0x65a   : > { %v5485_v45 = vsel %vm2021_vm10, %v5453_v26, %v7252_v52  ;;  %v5486_v53 = vsel %vm2021_vm10, %v5454_v36, %v7253_v56  ;;  %6279 = vmatpush1.bf16.xpose.msra.mxu0 %v6278_v3  ;;  %v12128_v3 = vld [vmem:[#allocation33_spill] sm:$0xff] }
 0x65b   : > { %v7261_v9 = vpop.permute.xlu0 %7260  ;;  %v7266_v55 = vpop.permute.xlu1 %7265  ;;  %6282 = vmatprep.subr.msk.bf16.mxu0 %vm10679_vm4, %v12126_v23  ;;  %v5517_v12 = vsel %vm3706_vm14, %v5485_v45, %v7257_v34  ;;  %v5518_v28 = vsel %vm3706_vm14, %v5486_v53, %v7258_v43  ;;  %v5455_v56 = vsel %vm325_vm3, %v12128_v3, %v7012_v29  ;;  %v12129_v34 = vpack.c.bf16 %v10859_v17, %v10854_v62  ;;  %v5662_v45 = vld [vmem:[%s11542_s5 + $0x18] sm:$0xff]  ;;  %v5664_v29 = vld [vmem:[%s11542_s5 + $0x28] sm:$0xff] }
 0x65c   : > { %v7263_v13 = vunpack.i.h.bf16 %v7261_v9  ;;  %v7262_v39 = vunpack.i.l.bf16 %v7261_v9  ;;  %v7268_v27 = vunpack.i.h.bf16 %v7266_v55  ;;  %v7267_v18 = vunpack.i.l.bf16 %v7266_v55 }
 0x65e   : > { %v5549_v21 = vsel %vm3739_vm15, %v5517_v12, %v7262_v39  ;;  %v5550_v60 = vsel %vm3739_vm15, %v5518_v28, %v7263_v13  ;;  %5689 = vxpose.xlu1.b32.start [1/16] (narrow) %v5659_v10, 16  ;;  %v5663_v39 = vld [vmem:[%s11542_s5 + $0x20] sm:$0xff] }
 0x65f   : > { %v7271_v19 = vpop.permute.xlu0 %7270  ;;  %v7276_v38 = vpop.permute.xlu1 %7275  ;;  %v5581_v5 = vsel %vm3772_vm0, %v5549_v21, %v7267_v18  ;;  %v5582_v58 = vsel %vm3772_vm0, %v5550_v60, %v7268_v27  ;;  %v7043_v21 = vunpack.i.h.bf16 %v11094_v32  ;;  %v7042_v60 = vunpack.i.l.bf16 %v11094_v32 }
 0x660   : > { %v7273_v16 = vunpack.i.h.bf16 %v7271_v19  ;;  %v7272_v63 = vunpack.i.l.bf16 %v7271_v19  ;;  %v7278_v50 = vunpack.i.h.bf16 %v7276_v38  ;;  %v7277_v33 = vunpack.i.l.bf16 %v7276_v38 }
 0x662   : > { %v5613_v44 = vsel %vm3805_vm1, %v5581_v5, %v7272_v63  ;;  %v5614_v54 = vsel %vm3805_vm1, %v5582_v58, %v7273_v16  ;;  %5690 = vxpose.xlu1.b32.cont [2/16] (narrow) %v5660_v6, 16 }
 0x663   : > { %v5645_v2 = vsel %vm3838_vm2, %v5613_v44, %v7277_v33  ;;  %v5646_v35 = vsel %vm3838_vm2, %v5614_v54, %v7278_v50  ;;  %v7281_v42 = vpop.permute.xlu0 %7280  ;;  %v7286_v37 = vpop.permute.xlu1 %7285  ;;  %v7516_v44 = vld [vmem:[#allocation4 + $0x110] sm:$0xff] }
 0x664   : > { %v6283_v30 = vpack.c.bf16 %v5646_v35, %v5645_v2  ;;  %v7283_v20 = vunpack.i.h.bf16 %v7281_v42  ;;  %v7282_v24 = vunpack.i.l.bf16 %v7281_v42  ;;  %v7288_v52 = vunpack.i.h.bf16 %v7286_v37  ;;  %v7517_v2 = vld [vmem:[#allocation4 + $0x108] sm:$0xff] }
 0x665   : > { %v7287_v61 = vunpack.i.l.bf16 %v7286_v37  ;;  %v5458_v54 = vsel %vm325_vm3, %v7516_v44, %v7043_v21  ;;  %v5457_v35 = vsel %vm325_vm3, %v7517_v2, %v7042_v60  ;;  %v7549_v2 = vmov 0  }
 0x666   : > { %v5488_v36 = vsel %vm2021_vm10, %v5456_v40, %v7283_v20  ;;  %v5487_v0 = vsel %vm2021_vm10, %v5455_v56, %v7282_v24  ;;  %5691 = vxpose.xlu1.b32.cont [3/16] (narrow) %v5661_v7, 16  ;;  %6284 = vmatpush1.bf16.xpose.msra.mxu0 %v6283_v30  ;;  %v5665_v40 = vld [vmem:[%s11542_s5 + $0x30] sm:$0xff] }
 0x667   : > { %v7291_v26 = vpop.permute.xlu0 %7290  ;;  %v7296_v43 = vpop.permute.xlu1 %7295  ;;  %6287 = vmatprep.subr.msk.bf16.mxu0 %vm10679_vm4, %v12129_v34  ;;  %v5520_v55 = vsel %vm3706_vm14, %v5488_v36, %v7288_v52  ;;  %v5519_v41 = vsel %vm3706_vm14, %v5487_v0, %v7287_v61 }
 0x668   : > { %v7293_v53 = vunpack.i.h.bf16 %v7291_v26  ;;  %v7292_v9 = vunpack.i.l.bf16 %v7291_v26  ;;  %v7298_v57 = vunpack.i.h.bf16 %v7296_v43  ;;  %v7297_v23 = vunpack.i.l.bf16 %v7296_v43 }
 0x66a   : > { %v5551_v10 = vsel %vm3739_vm15, %v5519_v41, %v7292_v9  ;;  %v5552_v13 = vsel %vm3739_vm15, %v5520_v55, %v7293_v53  ;;  %5692 = vxpose.xlu1.b32.cont [4/16] (narrow) %v5662_v45, 16  ;;  %v5666_v45 = vld [vmem:[%s11542_s5 + $0x38] sm:$0xff] }
 0x66b   : > { %v7301_v62 = vpop.permute.xlu0 %7300  ;;  %v7306_v17 = vpop.permute.xlu1 %7305  ;;  %v5583_v19 = vsel %vm3772_vm0, %v5551_v10, %v7297_v23  ;;  %v5584_v38 = vsel %vm3772_vm0, %v5552_v13, %v7298_v57  ;;  %v7052_v57 = vunpack.i.l.bf16 %v11118_v22  ;;  %v7518_v22 = vld [vmem:[#allocation4 + $0x128] sm:$0xff] }
 0x66c   : > { %v7303_v12 = vunpack.i.h.bf16 %v7301_v62  ;;  %v7302_v28 = vunpack.i.l.bf16 %v7301_v62  ;;  %v7308_v27 = vunpack.i.h.bf16 %v7306_v17  ;;  %v7307_v18 = vunpack.i.l.bf16 %v7306_v17 }
 0x66e   : > { %v5615_v6 = vsel %vm3805_vm1, %v5583_v19, %v7302_v28  ;;  %v5616_v16 = vsel %vm3805_vm1, %v5584_v38, %v7303_v12  ;;  %5693 = vxpose.xlu1.b32.cont [5/16] (narrow) %v5663_v39, 16  ;;  %v7519_v38 = vld [vmem:[#allocation4 + $0x120] sm:$0xff] }
 0x66f   : > { %v5647_v63 = vsel %vm3838_vm2, %v5615_v6, %v7307_v18  ;;  %v5648_v50 = vsel %vm3838_vm2, %v5616_v16, %v7308_v27  ;;  %v7311_v33 = vpop.permute.xlu0 %7310  ;;  %v7316_v25 = vpop.permute.xlu1 %7315  ;;  %v5667_v27 = vld [vmem:[%s11542_s5 + $0x40] sm:$0xff]  ;;  %v5460_v18 = vsel %vm325_vm3, %v7518_v22, %v7053_v11  ;;  %v5459_v6 = vsel %vm325_vm3, %v7519_v38, %v7052_v57 }
 0x670   : > { %v6288_v32 = vpack.c.bf16 %v5648_v50, %v5647_v63  ;;  %v7313_v5 = vunpack.i.h.bf16 %v7311_v33  ;;  %v7312_v58 = vunpack.i.l.bf16 %v7311_v33  ;;  %v7318_v42 = vunpack.i.h.bf16 %v7316_v25  ;;  %v7520_v57 = vld [vmem:[#allocation4 + $0x140] sm:$0xff] }
 0x671   : > { %v7317_v37 = vunpack.i.l.bf16 %v7316_v25  ;;  %v5677_v25 = vld [vmem:[%s11543_s6] sm:$0xff]  ;;  %v12132_v22 = vpack.c.bf16 %v10928_v49, %v10926_v59 }
 0x672   : > { %v5489_v7 = vsel %vm2021_vm10, %v5457_v35, %v7312_v58  ;;  %v5490_v30 = vsel %vm2021_vm10, %v5458_v54, %v7313_v5  ;;  %5694 = vxpose.xlu1.b32.cont [6/16] (narrow) %v5664_v29, 16  ;;  %6289 = vmatpush1.bf16.xpose.msra.mxu0 %v6288_v32  ;;  %v12131_v5 = vpack.c.bf16 %v10902_v46, %v10897_v51  ;;  %v5668_v58 = vld [vmem:[%s11542_s5 + $0x48] sm:$0xff] }
 0x673   : > { %v7321_v20 = vpop.permute.xlu0 %7320  ;;  %v7326_v24 = vpop.permute.xlu1 %7325  ;;  %6292 = vmatprep.subr.msk.bf16.mxu0 %vm10679_vm4, %v12130_v31  ;;  %v5521_v52 = vsel %vm3706_vm14, %v5489_v7, %v7317_v37  ;;  %v5522_v61 = vsel %vm3706_vm14, %v5490_v30, %v7318_v42  ;;  %v5678_v30 = vld [vmem:[%s11543_s6 + $0x8] sm:$0x1]  ;;  %v5669_v31 = vld [vmem:[%s11542_s5 + $0x50] sm:$0xff] }
 0x674   : > { %v7323_v3 = vunpack.i.h.bf16 %v7321_v20  ;;  %v7322_v56 = vunpack.i.l.bf16 %v7321_v20  ;;  %v7328_v36 = vunpack.i.h.bf16 %v7326_v24  ;;  %v7327_v0 = vunpack.i.l.bf16 %v7326_v24 }
 0x676   : > { %v5553_v26 = vsel %vm3739_vm15, %v5521_v52, %v7322_v56  ;;  %v5554_v43 = vsel %vm3739_vm15, %v5522_v61, %v7323_v3  ;;  %5695 = vxpose.xlu1.b32.cont [7/16] (narrow) %v5665_v40, 16  ;;  %v7083_v61 = vunpack.i.h.bf16 %v11141_v14 }
 0x677   : > { %v7331_v1 = vpop.permute.xlu0 %7330  ;;  %v7336_v34 = vpop.permute.xlu1 %7335  ;;  %v5585_v23 = vsel %vm3772_vm0, %v5553_v26, %v7327_v0  ;;  %v5586_v10 = vsel %vm3772_vm0, %v5554_v43, %v7328_v36  ;;  %v7082_v36 = vunpack.i.l.bf16 %v11141_v14  ;;  %v5670_v14 = vld [vmem:[%s11542_s5 + $0x58] sm:$0xff] }
 0x678   : > { %v7333_v53 = vunpack.i.h.bf16 %v7331_v1  ;;  %v7332_v9 = vunpack.i.l.bf16 %v7331_v1  ;;  %v7338_v55 = vunpack.i.h.bf16 %v7336_v34  ;;  %v7337_v41 = vunpack.i.l.bf16 %v7336_v34 }
 0x67a   : > { %v5617_v13 = vsel %vm3805_vm1, %v5585_v23, %v7332_v9  ;;  %v5618_v62 = vsel %vm3805_vm1, %v5586_v10, %v7333_v53  ;;  %5696 = vxpose.xlu1.b32.cont [8/16] (narrow) %v5666_v45, 16  ;;  %v5462_v23 = vsel %vm325_vm3, %v7520_v57, %v7083_v61  ;;  %v7521_v10 = vld [vmem:[#allocation4 + $0x138] sm:$0xff] }
 0x67b   : > { %v5649_v17 = vsel %vm3838_vm2, %v5617_v13, %v7337_v41  ;;  %v5650_v39 = vsel %vm3838_vm2, %v5618_v62, %v7338_v55  ;;  %v7341_v12 = vpop.permute.xlu0 %7340  ;;  %v7346_v28 = vpop.permute.xlu1 %7345  ;;  %v5461_v13 = vsel %vm325_vm3, %v7521_v10, %v7082_v36 }
 0x67c   : > { %v6293_v21 = vpack.c.bf16 %v5650_v39, %v5649_v17  ;;  %v7343_v60 = vunpack.i.h.bf16 %v7341_v12  ;;  %v7342_v19 = vunpack.i.l.bf16 %v7341_v12  ;;  %v7348_v16 = vunpack.i.h.bf16 %v7346_v28 }
 0x67d   : > { %v7347_v63 = vunpack.i.l.bf16 %v7346_v28 }
 0x67e   : > { %v5492_v50 = vsel %vm2021_vm10, %v5460_v18, %v7343_v60  ;;  %v5491_v33 = vsel %vm2021_vm10, %v5459_v6, %v7342_v19  ;;  %5697 = vxpose.xlu1.b32.cont [9/16] (narrow) %v5667_v27, 16  ;;  %6294 = vmatpush1.bf16.xpose.msra.mxu0 %v6293_v21  ;;  %v5671_v18 = vld [vmem:[%s11542_s5 + $0x60] sm:$0xff] }
 0x67f   : > { %v7351_v29 = vpop.permute.xlu0 %7350  ;;  %v7356_v32 = vpop.permute.xlu1 %7355  ;;  %6297 = vmatprep.subr.msk.bf16.mxu0 %vm10679_vm4, %v12131_v5  ;;  %v5524_v35 = vsel %vm3706_vm14, %v5492_v50, %v7348_v16  ;;  %v5523_v42 = vsel %vm3706_vm14, %v5491_v33, %v7347_v63  ;;  %v5672_v33 = vld [vmem:[%s11542_s5 + $0x68] sm:$0xff] }
 0x680   : > { %v7353_v44 = vunpack.i.h.bf16 %v7351_v29  ;;  %v7352_v54 = vunpack.i.l.bf16 %v7351_v29  ;;  %7459 = vset.pattern.permute.xlu0 %v7549_v2  ;;  %v7358_v37 = vunpack.i.h.bf16 %v7356_v32  ;;  %v7357_v7 = vunpack.i.l.bf16 %v7356_v32 }
 0x681   : > { %5681 = vperm.xlu0 %7459, %v5677_v25  }
 0x682   : > { %v5555_v51 = vsel %vm3739_vm15, %v5523_v42, %v7352_v54  ;;  %v5556_v46 = vsel %vm3739_vm15, %v5524_v35, %v7353_v44  ;;  %5698 = vxpose.xlu1.b32.cont [10/16] (narrow) %v5668_v58, 16  ;;  %v7093_v58 = vunpack.i.h.bf16 %v11158_v4  ;;  %v7092_v44 = vunpack.i.l.bf16 %v11158_v4 }
 0x683   : > { %v7361_v20 = vpop.permute.xlu0 %7360  ;;  %v7366_v24 = vpop.permute.xlu1 %7365  ;;  %v5587_v0 = vsel %vm3772_vm0, %v5555_v51, %v7357_v7  ;;  %v5588_v26 = vsel %vm3772_vm0, %v5556_v46, %v7358_v37 }
 0x684   : > { %v7363_v40 = vunpack.i.h.bf16 %v7361_v20  ;;  %v7362_v3 = vunpack.i.l.bf16 %v7361_v20  ;;  %v7368_v56 = vunpack.i.h.bf16 %v7366_v24  ;;  %v7367_v52 = vunpack.i.l.bf16 %v7366_v24 }
 0x685   : > { %5686 = vperm.xlu0 %7459, %v5678_v30   ;;  %v5673_v30 = vld [vmem:[%s11542_s5 + $0x70] sm:$0xff] }
 0x686   : > { %v5619_v43 = vsel %vm3805_vm1, %v5587_v0, %v7362_v3  ;;  %v5620_v11 = vsel %vm3805_vm1, %v5588_v26, %v7363_v40  ;;  %5699 = vxpose.xlu1.b32.cont [11/16] (narrow) %v5669_v31, 16  ;;  %v7522_v31 = vld [vmem:[#allocation4 + $0x158] sm:$0xff]  ;;  %v7523_v3 = vld [vmem:[#allocation4 + $0x150] sm:$0xff] }
 0x687   : > { %v5651_v1 = vsel %vm3838_vm2, %v5619_v43, %v7367_v52  ;;  %v5652_v34 = vsel %vm3838_vm2, %v5620_v11, %v7368_v56  ;;  %v7371_v45 = vpop.permute.xlu0 %7370  ;;  %v7376_v53 = vpop.permute.xlu1 %7375  ;;  %v5464_v40 = vsel %vm325_vm3, %v7522_v31, %v7093_v58  ;;  %v5463_v56 = vsel %vm325_vm3, %v7523_v3, %v7092_v44 }
 0x688   : > { %v6298_v9 = vpack.c.bf16 %v5652_v34, %v5651_v1  ;;  %v7373_v55 = vunpack.i.h.bf16 %v7371_v45  ;;  %v7372_v41 = vunpack.i.l.bf16 %v7371_v45  ;;  %v7378_v62 = vunpack.i.h.bf16 %v7376_v53  ;;  %v5674_v1 = vld [vmem:[%s11542_s5 + $0x78] sm:$0xff] }
 0x689   : > { %v7377_v17 = vunpack.i.l.bf16 %v7376_v53  ;;  %v12133_v11 = vpack.c.bf16 %v10946_v47, %v10942_v48 }
 0x68a   : > { %v5493_v39 = vsel %vm2021_vm10, %v5461_v13, %v7372_v41  ;;  %v5494_v12 = vsel %vm2021_vm10, %v5462_v23, %v7373_v55  ;;  %5700 = vxpose.xlu1.b32.cont [12/16] (narrow) %v5670_v14, 16  ;;  %6299 = vmatpush1.bf16.xpose.msra.mxu0 %v6298_v9 }
 0x68b   : > { %v7381_v28 = vpop.permute.xlu0 %7380  ;;  %v7386_v27 = vpop.permute.xlu1 %7385  ;;  %6302 = vmatprep.subr.msk.bf16.mxu0 %vm10679_vm4, %v12132_v22  ;;  %v5525_v19 = vsel %vm3706_vm14, %v5493_v39, %v7377_v17  ;;  %v5526_v38 = vsel %vm3706_vm14, %v5494_v12, %v7378_v62  ;;  %v4537_v17 = vld [vmem:[#allocation4 + $0x19a] sm:$0xff]  ;;  %v4538_v39 = vld [vmem:[#allocation4 + $0x1a2] sm:$0xff]  ;;  %v7123_v12 = vunpack.i.h.bf16 %v11184_v15 }
 0x68c   : > { %v7383_v21 = vunpack.i.h.bf16 %v7381_v28  ;;  %v7382_v60 = vunpack.i.l.bf16 %v7381_v28  ;;  %v7388_v6 = vunpack.i.h.bf16 %v7386_v27  ;;  %v7387_v16 = vunpack.i.l.bf16 %v7386_v27 }
 0x68d   : > { %v7122_v28 = vunpack.i.l.bf16 %v11184_v15 }
 0x68e   : > { %v5557_v63 = vsel %vm3739_vm15, %v5525_v19, %v7382_v60  ;;  %v5558_v50 = vsel %vm3739_vm15, %v5526_v38, %v7383_v21  ;;  %5701 = vxpose.xlu1.b32.cont [13/16] (narrow) %v5671_v18, 16 }
 0x68f   : > { %v7391_v59 = vpop.permute.xlu0 %7390  ;;  %v7396_v49 = vpop.permute.xlu1 %7395  ;;  %v5589_v54 = vsel %vm3772_vm0, %v5557_v63, %v7387_v16  ;;  %v5590_v2 = vsel %vm3772_vm0, %v5558_v50, %v7388_v6  ;;  %v6310_v16 = vpack.c.bf16 %v4538_v39, %v4537_v17 }
 0x690   : > { %v7393_v25 = vunpack.i.h.bf16 %v7391_v59  ;;  %v7392_v29 = vunpack.i.l.bf16 %v7391_v59  ;;  %v7398_v32 = vunpack.i.h.bf16 %v7396_v49  ;;  %v7397_v5 = vunpack.i.l.bf16 %v7396_v49  ;;  %v7524_v49 = vld [vmem:[#allocation4 + $0x170] sm:$0xff] }
 0x691   : > { %v5466_v15 = vsel %vm325_vm3, %v7524_v49, %v7123_v12 }
 0x692   : > { %v5621_v35 = vsel %vm3805_vm1, %v5589_v54, %v7392_v29  ;;  %v5622_v42 = vsel %vm3805_vm1, %v5590_v2, %v7393_v25  ;;  %5702 = vxpose.xlu1.b32.cont [14/16] (narrow) %v5672_v33, 16  ;;  %v7525_v33 = vld [vmem:[#allocation4 + $0x168] sm:$0xff] }
 0x693   : > { %v5653_v37 = vsel %vm3838_vm2, %v5621_v35, %v7397_v5  ;;  %v5654_v7 = vsel %vm3838_vm2, %v5622_v42, %v7398_v32  ;;  %v7401_v51 = vpop.permute.xlu0 %7400  ;;  %v7406_v46 = vpop.permute.xlu1 %7405  ;;  %v5465_v25 = vsel %vm325_vm3, %v7525_v33, %v7122_v28 }
 0x694   : > { %v6303_v4 = vpack.c.bf16 %v5654_v7, %v5653_v37  ;;  %v7403_v20 = vunpack.i.h.bf16 %v7401_v51  ;;  %v7402_v24 = vunpack.i.l.bf16 %v7401_v51  ;;  %v7408_v52 = vunpack.i.h.bf16 %v7406_v46 }
 0x695   : > { %v7407_v61 = vunpack.i.l.bf16 %v7406_v46 }
 0x696   : > { %v5495_v36 = vsel %vm2021_vm10, %v5463_v56, %v7402_v24  ;;  %v5496_v0 = vsel %vm2021_vm10, %v5464_v40, %v7403_v20  ;;  %5703 = vxpose.xlu1.b32.cont [15/16] (narrow) %v5673_v30, 16  ;;  %6304 = vmatpush1.bf16.xpose.msra.mxu0 %v6303_v4 }
 0x697   : > { %v7411_v26 = vpop.permute.xlu0 %7410  ;;  %v7416_v43 = vpop.permute.xlu1 %7415  ;;  %6307 = vmatprep.subr.msk.bf16.mxu0 %vm10679_vm4, %v12133_v11  ;;  %v5528_v53 = vsel %vm3706_vm14, %v5496_v0, %v7408_v52  ;;  %v5527_v14 = vsel %vm3706_vm14, %v5495_v36, %v7407_v61 }
 0x698   : > { %v7413_v34 = vunpack.i.h.bf16 %v7411_v26  ;;  %v7412_v45 = vunpack.i.l.bf16 %v7411_v26  ;;  %v7418_v9 = vunpack.i.h.bf16 %v7416_v43  ;;  %v7417_v55 = vunpack.i.l.bf16 %v7416_v43 }
 0x69a   : > { %v5559_v41 = vsel %vm3739_vm15, %v5527_v14, %v7412_v45  ;;  %v5560_v57 = vsel %vm3739_vm15, %v5528_v53, %v7413_v34  ;;  %5704 = vxpose.xlu1.b32.end [16/16] (narrow) %v5674_v1, 16 }
 0x69b   : > { %v7421_v48 = vpop.permute.xlu0 %7420  ;;  %v7426_v47 = vpop.permute.xlu1 %7425  ;;  %v5591_v27 = vsel %vm3772_vm0, %v5559_v41, %v7417_v55  ;;  %v5592_v22 = vsel %vm3772_vm0, %v5560_v57, %v7418_v9 }
 0x69c   : > { %v7423_v23 = vunpack.i.h.bf16 %v7421_v48  ;;  %v7422_v10 = vunpack.i.l.bf16 %v7421_v48  ;;  %v7428_v13 = vunpack.i.h.bf16 %v7426_v47  ;;  %v7427_v62 = vunpack.i.l.bf16 %v7426_v47 }
 0x69e   : > { %v5623_v18 = vsel %vm3805_vm1, %v5591_v27, %v7422_v10  ;;  %v5624_v21 = vsel %vm3805_vm1, %v5592_v22, %v7423_v23 }
 0x69f   : > { %v5655_v60 = vsel %vm3838_vm2, %v5623_v18, %v7427_v62  ;;  %v5656_v19 = vsel %vm3838_vm2, %v5624_v21, %v7428_v13  ;;  %v7431_v38 = vpop.permute.xlu0 %7430  ;;  %v7436_v6 = vpop.permute.xlu1 %7435 }
 0x6a0   : > { %v6308_v63 = vpack.c.bf16 %v5656_v19, %v5655_v60  ;;  %v7433_v50 = vunpack.i.h.bf16 %v7431_v38  ;;  %v7432_v59 = vunpack.i.l.bf16 %v7431_v38  ;;  %v7438_v29 = vunpack.i.h.bf16 %v7436_v6 }
 0x6a1   : > { %v7437_v32 = vunpack.i.l.bf16 %v7436_v6 }
 0x6a2   : > { %v5497_v5 = vsel %vm2021_vm10, %v5465_v25, %v7432_v59  ;;  %v5498_v58 = vsel %vm2021_vm10, %v5466_v15, %v7433_v50  ;;  %6309 = vmatpush1.bf16.xpose.msra.mxu0 %v6308_v63 }
 0x6a3   : > { %v7441_v44 = vpop.permute.xlu0 %7440  ;;  %v7446_v54 = vpop.permute.xlu1 %7445  ;;  %6312 = vmatprep.subr.msk.bf16.mxu0 %vm10679_vm4, %v6310_v16  ;;  %v5529_v42 = vsel %vm3706_vm14, %v5497_v5, %v7437_v32  ;;  %v5530_v37 = vsel %vm3706_vm14, %v5498_v58, %v7438_v29 }
 0x6a4   : > { %v7443_v2 = vunpack.i.h.bf16 %v7441_v44  ;;  %v7442_v35 = vunpack.i.l.bf16 %v7441_v44  ;;  %v7448_v7 = vunpack.i.h.bf16 %v7446_v54  ;;  %v7447_v51 = vunpack.i.l.bf16 %v7446_v54 }
 0x6a6   : > { %v5561_v46 = vsel %vm3739_vm15, %v5529_v42, %v7442_v35  ;;  %v5562_v30 = vsel %vm3739_vm15, %v5530_v37, %v7443_v2 }
 0x6a7   : > { %v7451_v4 = vpop.permute.xlu0 %7450  ;;  %v7456_v20 = vpop.permute.xlu1 %7455  ;;  %v5593_v8 = vsel %vm3772_vm0, %v5561_v46, %v7447_v51  ;;  %v5594_v56 = vsel %vm3772_vm0, %v5562_v30, %v7448_v7 }
 0x6a8   : > { %v7453_v24 = vunpack.i.h.bf16 %v7451_v4  ;;  %v7452_v31 = vunpack.i.l.bf16 %v7451_v4  ;;  %v7458_v40 = vunpack.i.h.bf16 %v7456_v20  ;;  %v7457_v3 = vunpack.i.l.bf16 %v7456_v20 }
 0x6aa   : > { %v5625_v52 = vsel %vm3805_vm1, %v5593_v8, %v7452_v31  ;;  %v5626_v61 = vsel %vm3805_vm1, %v5594_v56, %v7453_v24 }
 0x6ab   : > { %v5657_v36 = vsel %vm3838_vm2, %v5625_v52, %v7457_v3  ;;  %v5658_v0 = vsel %vm3838_vm2, %v5626_v61, %v7458_v40 }
 0x6ac   : > { %v6313_v26 = vpack.c.bf16 %v5658_v0, %v5657_v36 }
 0x6ae   : > { %6314 = vmatpush1.bf16.xpose.msra.mxu0 %v6313_v26 }
 0x6d3   : > { %v5737_v43 = vpop.trf.xlu0 }
 0x6d4   : > { %6099 = vmatprep.mubr.msk.f32.mxu0 %vm325_vm3, %v5737_v43 }
 0x6d7   : > { %v5738_v11 = vpop.trf.xlu0 }
 0x6de   : > { %v5705_v1 = vpop.trf.xlu1 }
 0x6df   : > { %5920 = vmatmul.mubr.f32.vlgmr.msra.gmra.mrb[32].mxu0 %v5705_v1 }
 0x6e0   : > { %6100 = vmatprep.mubr.msk.f32.mxu0 %vm325_vm3, %v5738_v11 }
 0x6e2   : > { %v5706_v34 = vpop.trf.xlu1 }
 0x6e3   : > { %5926 = vmatmul.mubr.f32.gmra.mrb[34].mxu0 %v5706_v34 }
 0x700   : > { %v5682_v45 = vpop.permute.xlu0 %5681 }
 0x704   : > { %v5687_v41 = vpop.permute.xlu0 %5686 }
 0x7b2   : > { %v5921_v53 = vpop.f32.mrb[32].mxu0 }
 0x7b3   : > { %v5922_v14 = vadd.f32 %v5921_v53, %v5682_v45  ;;  %v5923_v9 = vpop.f32.mrb[33].mxu0 }
 0x7b4   : > { %v5924_v55 = vadd.f32 %v5923_v9, %v5682_v45 }
 0x7b5   : > { %5932 = vst [vmem:[%s278_s27] sm:$0xff] %v5922_v14 }
 0x7b6   : > { %5933 = vst [vmem:[%s278_s27 + $0x8] sm:$0xff] %v5924_v55  ;;  %v5927_v57 = vpop.f32.mrb[34].mxu0 }
 0x7b7   : > { %v5928_v48 = vadd.f32 %v5927_v57, %v5687_v41  ;;  %v5929_v47 = vpop.f32.mrb[35].mxu0 }
 0x7b8   : > { %v5930_v23 = vadd.f32 %v5929_v47, %v5687_v41 }
 0x7b9   : > { %5934 = vst [vmem:[%s278_s27 + $0x10] sm:$0x1] %v5928_v48 }
 0x7ba   : > { %5935 = vst [vmem:[%s278_s27 + $0x18] sm:$0x1] %v5930_v23 }
 0x7bb PF: > { %s17_s24 = sadd.s32 1, %s7532_s24  }
 0x7bc   : > { %p14_p4 = scmp.ge.s32.totalorder %s17_s24, 4  }
 0x7be   :  { %16 = sbr.rel (!%p14_p4) target bundleno = 1 (0x1), region = 87 }

</bundles_post_ra>
